<compile_context>
chip_gen: v5e
topology: v5e:2x2
jax: 0.10.0
libtpu: 0.0.40
codegen_flags: <defaults>
</compile_context>

<pallas_src>
import functools

import jax
import jax.numpy as jnp
from jax.experimental import pallas as pl
from jax.experimental.pallas import tpu as pltpu

NEG_SLOPE = 0.1
BN_EPS = 1e-5

_COMPILER_PARAMS = pltpu.CompilerParams(
    dimension_semantics=("parallel",),          # one image per grid step
    vmem_limit_bytes=32 * 1024 * 1024,          # > v5e 16 MiB scoped default
)


# ---------------------------------------------------------------------------
# In-kernel helpers
# ---------------------------------------------------------------------------
def _leaky(x):
    # LeakyReLU(0.1): max(x, 0.1*x) == x for x>=0, 0.1*x for x<0.
    return jnp.maximum(x, NEG_SLOPE * x)


def _accum_taps(tap_fn, w_ref, m):
    """Sum of 9 tap matmuls; tap_fn(ki, kj) -> (m, Cin) bf16, w_ref (9,Cin,Cout)."""
    acc = jnp.zeros((m, w_ref.shape[-1]), jnp.float32)
    for t in range(9):
        acc += jnp.dot(tap_fn(t // 3, t % 3), w_ref[t],
                       preferred_element_type=jnp.float32)
    return acc


# ---------------------------------------------------------------------------
# Kernels (grid = (B,), one image per step; all blocks full per-image arrays)
# ---------------------------------------------------------------------------
def _conv_s1_kernel(xp_ref, w_ref, s_ref, b_ref, o_ref):
    """3x3 stride-1 conv + folded BN + LeakyReLU.

    xp_ref: (1, H+2, W+2, Cin) padded NHWC, bf16.   o_ref: (1, H, W, Cout)."""
    _, ho, wo, cout = o_ref.shape
    cin = xp_ref.shape[-1]

    def tap(ki, kj):
        return xp_ref[0, ki:ki + ho, kj:kj + wo, :].reshape(ho * wo, cin)

    acc = _accum_taps(tap, w_ref, ho * wo)
    act = _leaky(acc * s_ref[...] + b_ref[...])
    o_ref[0] = act.reshape(ho, wo, cout).astype(o_ref.dtype)


def _conv_s2_kernel(xs_ref, w_ref, s_ref, b_ref, o_ref):
    """3x3 stride-2 conv + BN + LeakyReLU from a space-to-depth input.

    xs_ref: (1, Ho+1, 4, Wo+1, Cin) where axis 2 is the (row, col) parity of
    the padded activation; every tap is a contiguous static slice."""
    _, ho, wo, cout = o_ref.shape
    cin = xs_ref.shape[-1]

    def tap(ki, kj):
        p = (ki % 2) * 2 + (kj % 2)
        oi, oj = ki // 2, kj // 2
        return xs_ref[0, oi:oi + ho, p, oj:oj + wo, :].reshape(ho * wo, cin)

    acc = _accum_taps(tap, w_ref, ho * wo)
    act = _leaky(acc * s_ref[...] + b_ref[...])
    o_ref[0] = act.reshape(ho, wo, cout).astype(o_ref.dtype)


def _tail_kernel(xs_ref, w3_ref, s3_ref, b3_ref, w4_ref, s4_ref, b4_ref,
                 w5_ref, s5_ref, b5_ref, wh_ref, bh_ref, o_ref, ypad_ref):
    """layer3 (3x3 s2) + res_conv1 (1x1) + res_conv2 (3x3 s1) + residual add
    + 1x1 detection head, all per image in VMEM.  Only the head output is
    written to HBM (narrow, native channel count)."""
    _, ho, wo, nf = o_ref.shape
    cin = xs_ref.shape[-1]        # 64
    cmid = w4_ref.shape[-1]       # 64
    m = ho * wo

    # layer3: 3x3 stride-2 conv (space-to-depth input).
    def tap3(ki, kj):
        p = (ki % 2) * 2 + (kj % 2)
        oi, oj = ki // 2, kj // 2
        return xs_ref[0, oi:oi + ho, p, oj:oj + wo, :].reshape(m, cin)

    a3 = _leaky(_accum_taps(tap3, w3_ref, m) * s3_ref[...] + b3_ref[...])

    # res_conv1: 1x1, 128 -> 64.
    r1 = _leaky(jnp.dot(a3.astype(jnp.bfloat16), w4_ref[...],
                        preferred_element_type=jnp.float32)
                * s4_ref[...] + b4_ref[...])

    # Zero-padded res_conv2 input kept in a VMEM scratch (never hits HBM).
    ypad_ref[...] = jnp.zeros(ypad_ref.shape, ypad_ref.dtype)
    ypad_ref[1:ho + 1, 1:wo + 1, :] = (
        r1.astype(jnp.bfloat16).reshape(ho, wo, cmid))

    # res_conv2: 3x3 stride-1 conv on the padded scratch.
    def tap5(ki, kj):
        return ypad_ref[ki:ki + ho, kj:kj + wo, :].reshape(m, cmid)

    r2 = _leaky(_accum_taps(tap5, w5_ref, m) * s5_ref[...] + b5_ref[...])

    # Residual add (f32, in VMEM) + 1x1 detection head (bias only).
    z = a3 + r2
    head = jnp.dot(z.astype(jnp.bfloat16), wh_ref[...],
                   preferred_element_type=jnp.float32) + bh_ref[...]
    o_ref[0] = head.reshape(ho, wo, nf).astype(o_ref.dtype)


# ---------------------------------------------------------------------------
# pallas_call glue
# ---------------------------------------------------------------------------
def _per_image_spec(shape):
    rank = len(shape)
    return pl.BlockSpec((1,) + tuple(shape[1:]),
                        lambda b: (b,) + (0,) * (rank - 1))


def _bcast_spec(shape):
    rank = len(shape)
    return pl.BlockSpec(tuple(shape), lambda b: (0,) * rank)


def _conv_call(kernel, img_inputs, bcast_inputs, out_shape, scratch_shapes=()):
    batch = img_inputs[0].shape[0]
    in_specs = ([_per_image_spec(a.shape) for a in img_inputs]
                + [_bcast_spec(a.shape) for a in bcast_inputs])
    return pl.pallas_call(
        kernel,
        grid=(batch,),
        in_specs=in_specs,
        out_specs=_per_image_spec(out_shape.shape),
        out_shape=out_shape,
        scratch_shapes=list(scratch_shapes),
        compiler_params=_COMPILER_PARAMS,
    )(*img_inputs, *bcast_inputs)


def _pad_hw(x):
    """NHWC spatial zero-pad by 1 on each side."""
    return jnp.pad(x, ((0, 0), (1, 1), (1, 1), (0, 0)))


def _space_to_depth(xp):
    """(B, Hp, Wp, C) with Hp, Wp even -> (B, Hp/2, 4, Wp/2, C);
    axis 2 indexes the (row_parity, col_parity) of the padded activation."""
    b, hp, wp, c = xp.shape
    x = xp.reshape(b, hp // 2, 2, wp // 2, 2, c)
    x = jnp.transpose(x, (0, 1, 2, 4, 3, 5))
    return x.reshape(b, hp // 2, 4, wp // 2, c)


# ---------------------------------------------------------------------------
# Parameters (random, eval-mode BN folded into a post-matmul affine)
# ---------------------------------------------------------------------------
def init_params(key, num_classes):
    num_anchors = 3
    nf = num_anchors * (5 + num_classes)

    def conv_block(key, cin, cout, k):
        k1, k2, k3, k4, k5 = jax.random.split(key, 5)
        w = 0.05 * jax.random.normal(k1, (cout, cin, k, k), jnp.float32)
        gamma = 1.0 + 0.1 * jax.random.normal(k2, (cout,), jnp.float32)
        beta = 0.1 * jax.random.normal(k3, (cout,), jnp.float32)
        rmean = 0.1 * jax.random.normal(k4, (cout,), jnp.float32)
        rvar = jnp.abs(jax.random.normal(k5, (cout,), jnp.float32)) + 0.5
        scale = gamma / jnp.sqrt(rvar + BN_EPS)
        bias = beta - rmean * scale
        # (cout, cin, k, k) -> (k*k, cin, cout): one (cin, cout) matmul / tap.
        w_taps = jnp.transpose(w, (2, 3, 1, 0)).reshape(k * k, cin, cout)
        if k == 1:
            w_taps = w_taps.reshape(cin, cout)
        return {"w": w_taps.astype(jnp.bfloat16),
                "scale": scale[None, :].astype(jnp.float32),
                "bias": bias[None, :].astype(jnp.float32)}

    keys = jax.random.split(key, 7)
    head_w = 0.05 * jax.random.normal(keys[5], (nf, 128, 1, 1), jnp.float32)
    head_b = 0.1 * jax.random.normal(keys[6], (nf,), jnp.float32)
    return {
        "layer1": conv_block(keys[0], 3, 32, 3),
        "layer2": conv_block(keys[1], 32, 64, 3),
        "layer3": conv_block(keys[2], 64, 128, 3),
        "res_conv1": conv_block(keys[3], 128, 64, 1),
        "res_conv2": conv_block(keys[4], 64, 128, 3),
        "head_w": jnp.transpose(head_w, (2, 3, 1, 0)).reshape(128, nf)
                     .astype(jnp.bfloat16),
        "head_b": head_b[None, :].astype(jnp.float32),
    }


# ---------------------------------------------------------------------------
# Forward pass
# ---------------------------------------------------------------------------
@functools.partial(jax.jit, static_argnums=(2,))
def yolov4_forward(x_nchw, params, num_classes):
    num_anchors = 3
    nf = num_anchors * (5 + num_classes)

    # NCHW (PyTorch) -> NHWC; MXU feeds are bf16, accumulation stays f32.
    x = jnp.transpose(x_nchw, (0, 2, 3, 1)).astype(jnp.bfloat16)
    B, H, W, _ = x.shape
    assert H % 4 == 0 and W % 4 == 0, "spatial dims must be multiples of 4"

    # layer1: 3x3 s1 p1, 3 -> 32
    p1 = params["layer1"]
    a1 = _conv_call(
        _conv_s1_kernel, [_pad_hw(x)],
        [p1["w"], p1["scale"], p1["bias"]],
        jax.ShapeDtypeStruct((B, H, W, 32), jnp.bfloat16))

    # layer2: 3x3 s2 p1, 32 -> 64 (space-to-depth repack of the padded input)
    p2 = params["layer2"]
    a2 = _conv_call(
        _conv_s2_kernel, [_space_to_depth(_pad_hw(a1))],
        [p2["w"], p2["scale"], p2["bias"]],
        jax.ShapeDtypeStruct((B, H // 2, W // 2, 64), jnp.bfloat16))

    # layer3 (3x3 s2) + residual block + 1x1 detection head, fully fused.
    p3, p4, p5 = params["layer3"], params["res_conv1"], params["res_conv2"]
    H4, W4 = H // 4, W // 4
    out = _conv_call(
        _tail_kernel, [_space_to_depth(_pad_hw(a2))],
        [p3["w"], p3["scale"], p3["bias"],
         p4["w"], p4["scale"], p4["bias"],
         p5["w"], p5["scale"], p5["bias"],
         params["head_w"], params["head_b"]],
        jax.ShapeDtypeStruct((B, H4, W4, nf), jnp.float32),
        scratch_shapes=[pltpu.VMEM((H4 + 2, W4 + 2, 64), jnp.bfloat16)])

    # PyTorch: reshape (B, 3, 5+nc, H, W) then permute(0,3,4,1,2)
    # -> (B, H, W, 3, 5+nc); with NHWC channel ordering this is a reshape.
    return out.reshape(B, H4, W4, num_anchors, 5 + num_classes)


if __name__ == "__main__":
    num_classes = 3
    key = jax.random.PRNGKey(0)
    kx, kp = jax.random.split(key)

    # Small shapes consistent with the module: batch=2, RGB input, 16x16.
    x = jax.random.normal(kx, (2, 3, 16, 16), jnp.float32)
    params = init_params(kp, num_classes)

    out = jax.block_until_ready(yolov4_forward(x, params, num_classes))

    expected = (2, 4, 4, 3, 5 + num_classes)   # 16 -> /2 -> /2 spatial
    assert out.shape == expected, (out.shape, expected)
    assert jnp.all(jnp.isfinite(out))
    print("KERNEL_OK")
</pallas_src>

<mosaic_0001>
module attributes {stable_mosaic.version = 11 : i64} {
  func.func @_conv_s1_kernel(%arg0: i32, %arg1: memref<1x18x18x3xbf16, #tpu.memory_space<vmem>>, %arg2: memref<9x3x32xbf16, #tpu.memory_space<vmem>>, %arg3: memref<1x32xf32, #tpu.memory_space<vmem>>, %arg4: memref<1x32xf32, #tpu.memory_space<vmem>>, %arg5: memref<1x16x16x32xbf16, #tpu.memory_space<vmem>>) attributes {dimension_semantics = [#tpu.dimension_semantics<parallel>], iteration_bounds = array<i64: 2>, scalar_prefetch = 0 : i64, scratch_operands = 0 : i64, tpu.core_type = #tpu.core_type<tc>, window_params = [{transform_indices = @transform_0, window_bounds = array<i64: 1, 18, 18, 3>}, {pipeline_mode = #tpu.pipeline_mode<synchronous>, transform_indices = @transform_1, window_bounds = array<i64: 9, 3, 32>}, {pipeline_mode = #tpu.pipeline_mode<synchronous>, transform_indices = @transform_2, window_bounds = array<i64: 1, 32>}, {pipeline_mode = #tpu.pipeline_mode<synchronous>, transform_indices = @transform_3, window_bounds = array<i64: 1, 32>}, {transform_indices = @transform_4, window_bounds = array<i64: 1, 16, 16, 32>}]} {
    %cst = arith.constant 0.000000e+00 : f32
    %0 = vector.broadcast %cst : f32 to vector<256x32xf32>
    %c0 = arith.constant 0 : index
    %c0_0 = arith.constant 0 : index
    %c0_1 = arith.constant 0 : index
    %c0_2 = arith.constant 0 : index
    %1 = vector.load %arg1[%c0, %c0_0, %c0_1, %c0_2] : memref<1x18x18x3xbf16, #tpu.memory_space<vmem>>, vector<1x16x16x3xbf16>
    %2 = vector.shape_cast %1 : vector<1x16x16x3xbf16> to vector<16x16x3xbf16>
    %3 = vector.shape_cast %2 : vector<16x16x3xbf16> to vector<256x3xbf16>
    %c0_3 = arith.constant 0 : index
    %c0_4 = arith.constant 0 : index
    %c0_5 = arith.constant 0 : index
    %4 = vector.load %arg2[%c0_3, %c0_4, %c0_5] : memref<9x3x32xbf16, #tpu.memory_space<vmem>>, vector<1x3x32xbf16>
    %5 = vector.shape_cast %4 : vector<1x3x32xbf16> to vector<3x32xbf16>
    %cst_6 = arith.constant dense<0.000000e+00> : vector<256x32xf32>
    %6 = tpu.matmul %3, %5, %cst_6 {dimension_numbers = #tpu.dot_dimension_numbers<[1], [0], [0], [1], [0, 0, 1, 1], [], []>} : vector<256x3xbf16>, vector<3x32xbf16>, vector<256x32xf32> -> vector<256x32xf32>
    %7 = arith.addf %0, %6 : vector<256x32xf32>
    %c0_7 = arith.constant 0 : index
    %c0_8 = arith.constant 0 : index
    %c1 = arith.constant 1 : index
    %c0_9 = arith.constant 0 : index
    %8 = vector.load %arg1[%c0_7, %c0_8, %c1, %c0_9] : memref<1x18x18x3xbf16, #tpu.memory_space<vmem>>, vector<1x16x16x3xbf16>
    %9 = vector.shape_cast %8 : vector<1x16x16x3xbf16> to vector<16x16x3xbf16>
    %10 = vector.shape_cast %9 : vector<16x16x3xbf16> to vector<256x3xbf16>
    %c1_10 = arith.constant 1 : index
    %c0_11 = arith.constant 0 : index
    %c0_12 = arith.constant 0 : index
    %11 = vector.load %arg2[%c1_10, %c0_11, %c0_12] : memref<9x3x32xbf16, #tpu.memory_space<vmem>>, vector<1x3x32xbf16>
    %12 = vector.shape_cast %11 : vector<1x3x32xbf16> to vector<3x32xbf16>
    %cst_13 = arith.constant dense<0.000000e+00> : vector<256x32xf32>
    %13 = tpu.matmul %10, %12, %cst_13 {dimension_numbers = #tpu.dot_dimension_numbers<[1], [0], [0], [1], [0, 0, 1, 1], [], []>} : vector<256x3xbf16>, vector<3x32xbf16>, vector<256x32xf32> -> vector<256x32xf32>
    %14 = arith.addf %7, %13 : vector<256x32xf32>
    %c0_14 = arith.constant 0 : index
    %c0_15 = arith.constant 0 : index
    %c2 = arith.constant 2 : index
    %c0_16 = arith.constant 0 : index
    %15 = vector.load %arg1[%c0_14, %c0_15, %c2, %c0_16] : memref<1x18x18x3xbf16, #tpu.memory_space<vmem>>, vector<1x16x16x3xbf16>
    %16 = vector.shape_cast %15 : vector<1x16x16x3xbf16> to vector<16x16x3xbf16>
    %17 = vector.shape_cast %16 : vector<16x16x3xbf16> to vector<256x3xbf16>
    %c2_17 = arith.constant 2 : index
    %c0_18 = arith.constant 0 : index
    %c0_19 = arith.constant 0 : index
    %18 = vector.load %arg2[%c2_17, %c0_18, %c0_19] : memref<9x3x32xbf16, #tpu.memory_space<vmem>>, vector<1x3x32xbf16>
    %19 = vector.shape_cast %18 : vector<1x3x32xbf16> to vector<3x32xbf16>
    %cst_20 = arith.constant dense<0.000000e+00> : vector<256x32xf32>
    %20 = tpu.matmul %17, %19, %cst_20 {dimension_numbers = #tpu.dot_dimension_numbers<[1], [0], [0], [1], [0, 0, 1, 1], [], []>} : vector<256x3xbf16>, vector<3x32xbf16>, vector<256x32xf32> -> vector<256x32xf32>
    %21 = arith.addf %14, %20 : vector<256x32xf32>
    %c0_21 = arith.constant 0 : index
    %c1_22 = arith.constant 1 : index
    %c0_23 = arith.constant 0 : index
    %c0_24 = arith.constant 0 : index
    %22 = vector.load %arg1[%c0_21, %c1_22, %c0_23, %c0_24] : memref<1x18x18x3xbf16, #tpu.memory_space<vmem>>, vector<1x16x16x3xbf16>
    %23 = vector.shape_cast %22 : vector<1x16x16x3xbf16> to vector<16x16x3xbf16>
    %24 = vector.shape_cast %23 : vector<16x16x3xbf16> to vector<256x3xbf16>
    %c3 = arith.constant 3 : index
    %c0_25 = arith.constant 0 : index
    %c0_26 = arith.constant 0 : index
    %25 = vector.load %arg2[%c3, %c0_25, %c0_26] : memref<9x3x32xbf16, #tpu.memory_space<vmem>>, vector<1x3x32xbf16>
    %26 = vector.shape_cast %25 : vector<1x3x32xbf16> to vector<3x32xbf16>
    %cst_27 = arith.constant dense<0.000000e+00> : vector<256x32xf32>
    %27 = tpu.matmul %24, %26, %cst_27 {dimension_numbers = #tpu.dot_dimension_numbers<[1], [0], [0], [1], [0, 0, 1, 1], [], []>} : vector<256x3xbf16>, vector<3x32xbf16>, vector<256x32xf32> -> vector<256x32xf32>
    %28 = arith.addf %21, %27 : vector<256x32xf32>
    %c0_28 = arith.constant 0 : index
    %c1_29 = arith.constant 1 : index
    %c1_30 = arith.constant 1 : index
    %c0_31 = arith.constant 0 : index
    %29 = vector.load %arg1[%c0_28, %c1_29, %c1_30, %c0_31] : memref<1x18x18x3xbf16, #tpu.memory_space<vmem>>, vector<1x16x16x3xbf16>
    %30 = vector.shape_cast %29 : vector<1x16x16x3xbf16> to vector<16x16x3xbf16>
    %31 = vector.shape_cast %30 : vector<16x16x3xbf16> to vector<256x3xbf16>
    %c4 = arith.constant 4 : index
    %c0_32 = arith.constant 0 : index
    %c0_33 = arith.constant 0 : index
    %32 = vector.load %arg2[%c4, %c0_32, %c0_33] : memref<9x3x32xbf16, #tpu.memory_space<vmem>>, vector<1x3x32xbf16>
    %33 = vector.shape_cast %32 : vector<1x3x32xbf16> to vector<3x32xbf16>
    %cst_34 = arith.constant dense<0.000000e+00> : vector<256x32xf32>
    %34 = tpu.matmul %31, %33, %cst_34 {dimension_numbers = #tpu.dot_dimension_numbers<[1], [0], [0], [1], [0, 0, 1, 1], [], []>} : vector<256x3xbf16>, vector<3x32xbf16>, vector<256x32xf32> -> vector<256x32xf32>
    %35 = arith.addf %28, %34 : vector<256x32xf32>
    %c0_35 = arith.constant 0 : index
    %c1_36 = arith.constant 1 : index
    %c2_37 = arith.constant 2 : index
    %c0_38 = arith.constant 0 : index
    %36 = vector.load %arg1[%c0_35, %c1_36, %c2_37, %c0_38] : memref<1x18x18x3xbf16, #tpu.memory_space<vmem>>, vector<1x16x16x3xbf16>
    %37 = vector.shape_cast %36 : vector<1x16x16x3xbf16> to vector<16x16x3xbf16>
    %38 = vector.shape_cast %37 : vector<16x16x3xbf16> to vector<256x3xbf16>
    %c5 = arith.constant 5 : index
    %c0_39 = arith.constant 0 : index
    %c0_40 = arith.constant 0 : index
    %39 = vector.load %arg2[%c5, %c0_39, %c0_40] : memref<9x3x32xbf16, #tpu.memory_space<vmem>>, vector<1x3x32xbf16>
    %40 = vector.shape_cast %39 : vector<1x3x32xbf16> to vector<3x32xbf16>
    %cst_41 = arith.constant dense<0.000000e+00> : vector<256x32xf32>
    %41 = tpu.matmul %38, %40, %cst_41 {dimension_numbers = #tpu.dot_dimension_numbers<[1], [0], [0], [1], [0, 0, 1, 1], [], []>} : vector<256x3xbf16>, vector<3x32xbf16>, vector<256x32xf32> -> vector<256x32xf32>
    %42 = arith.addf %35, %41 : vector<256x32xf32>
    %c0_42 = arith.constant 0 : index
    %c2_43 = arith.constant 2 : index
    %c0_44 = arith.constant 0 : index
    %c0_45 = arith.constant 0 : index
    %43 = vector.load %arg1[%c0_42, %c2_43, %c0_44, %c0_45] : memref<1x18x18x3xbf16, #tpu.memory_space<vmem>>, vector<1x16x16x3xbf16>
    %44 = vector.shape_cast %43 : vector<1x16x16x3xbf16> to vector<16x16x3xbf16>
    %45 = vector.shape_cast %44 : vector<16x16x3xbf16> to vector<256x3xbf16>
    %c6 = arith.constant 6 : index
    %c0_46 = arith.constant 0 : index
    %c0_47 = arith.constant 0 : index
    %46 = vector.load %arg2[%c6, %c0_46, %c0_47] : memref<9x3x32xbf16, #tpu.memory_space<vmem>>, vector<1x3x32xbf16>
    %47 = vector.shape_cast %46 : vector<1x3x32xbf16> to vector<3x32xbf16>
    %cst_48 = arith.constant dense<0.000000e+00> : vector<256x32xf32>
    %48 = tpu.matmul %45, %47, %cst_48 {dimension_numbers = #tpu.dot_dimension_numbers<[1], [0], [0], [1], [0, 0, 1, 1], [], []>} : vector<256x3xbf16>, vector<3x32xbf16>, vector<256x32xf32> -> vector<256x32xf32>
    %49 = arith.addf %42, %48 : vector<256x32xf32>
    %c0_49 = arith.constant 0 : index
    %c2_50 = arith.constant 2 : index
    %c1_51 = arith.constant 1 : index
    %c0_52 = arith.constant 0 : index
    %50 = vector.load %arg1[%c0_49, %c2_50, %c1_51, %c0_52] : memref<1x18x18x3xbf16, #tpu.memory_space<vmem>>, vector<1x16x16x3xbf16>
    %51 = vector.shape_cast %50 : vector<1x16x16x3xbf16> to vector<16x16x3xbf16>
    %52 = vector.shape_cast %51 : vector<16x16x3xbf16> to vector<256x3xbf16>
    %c7 = arith.constant 7 : index
    %c0_53 = arith.constant 0 : index
    %c0_54 = arith.constant 0 : index
    %53 = vector.load %arg2[%c7, %c0_53, %c0_54] : memref<9x3x32xbf16, #tpu.memory_space<vmem>>, vector<1x3x32xbf16>
    %54 = vector.shape_cast %53 : vector<1x3x32xbf16> to vector<3x32xbf16>
    %cst_55 = arith.constant dense<0.000000e+00> : vector<256x32xf32>
    %55 = tpu.matmul %52, %54, %cst_55 {dimension_numbers = #tpu.dot_dimension_numbers<[1], [0], [0], [1], [0, 0, 1, 1], [], []>} : vector<256x3xbf16>, vector<3x32xbf16>, vector<256x32xf32> -> vector<256x32xf32>
    %56 = arith.addf %49, %55 : vector<256x32xf32>
    %c0_56 = arith.constant 0 : index
    %c2_57 = arith.constant 2 : index
    %c2_58 = arith.constant 2 : index
    %c0_59 = arith.constant 0 : index
    %57 = vector.load %arg1[%c0_56, %c2_57, %c2_58, %c0_59] : memref<1x18x18x3xbf16, #tpu.memory_space<vmem>>, vector<1x16x16x3xbf16>
    %58 = vector.shape_cast %57 : vector<1x16x16x3xbf16> to vector<16x16x3xbf16>
    %59 = vector.shape_cast %58 : vector<16x16x3xbf16> to vector<256x3xbf16>
    %c8 = arith.constant 8 : index
    %c0_60 = arith.constant 0 : index
    %c0_61 = arith.constant 0 : index
    %60 = vector.load %arg2[%c8, %c0_60, %c0_61] : memref<9x3x32xbf16, #tpu.memory_space<vmem>>, vector<1x3x32xbf16>
    %61 = vector.shape_cast %60 : vector<1x3x32xbf16> to vector<3x32xbf16>
    %cst_62 = arith.constant dense<0.000000e+00> : vector<256x32xf32>
    %62 = tpu.matmul %59, %61, %cst_62 {dimension_numbers = #tpu.dot_dimension_numbers<[1], [0], [0], [1], [0, 0, 1, 1], [], []>} : vector<256x3xbf16>, vector<3x32xbf16>, vector<256x32xf32> -> vector<256x32xf32>
    %63 = arith.addf %56, %62 : vector<256x32xf32>
    %c0_63 = arith.constant 0 : index
    %c0_64 = arith.constant 0 : index
    %64 = vector.load %arg3[%c0_63, %c0_64] : memref<1x32xf32, #tpu.memory_space<vmem>>, vector<1x32xf32>
    %65 = vector.broadcast %64 : vector<1x32xf32> to vector<256x32xf32>
    %66 = arith.mulf %63, %65 : vector<256x32xf32>
    %c0_65 = arith.constant 0 : index
    %c0_66 = arith.constant 0 : index
    %67 = vector.load %arg4[%c0_65, %c0_66] : memref<1x32xf32, #tpu.memory_space<vmem>>, vector<1x32xf32>
    %68 = vector.broadcast %67 : vector<1x32xf32> to vector<256x32xf32>
    %69 = arith.addf %66, %68 : vector<256x32xf32>
    %cst_67 = arith.constant 1.000000e-01 : f32
    %70 = vector.broadcast %cst_67 : f32 to vector<256x32xf32>
    %71 = arith.mulf %70, %69 : vector<256x32xf32>
    %72 = arith.maximumf %69, %71 : vector<256x32xf32>
    %73 = vector.shape_cast %72 : vector<256x32xf32> to vector<16x16x32xf32>
    %74 = arith.truncf %73 : vector<16x16x32xf32> to vector<16x16x32xbf16>
    %c0_68 = arith.constant 0 : index
    %c0_69 = arith.constant 0 : index
    %c0_70 = arith.constant 0 : index
    %c0_71 = arith.constant 0 : index
    %75 = vector.load %arg5[%c0_68, %c0_69, %c0_70, %c0_71] : memref<1x16x16x32xbf16, #tpu.memory_space<vmem>>, vector<1x16x16x32xbf16>
    %76 = vector.shape_cast %75 : vector<1x16x16x32xbf16> to vector<16x16x32xbf16>
    %77 = vector.shape_cast %74 : vector<16x16x32xbf16> to vector<1x16x16x32xbf16>
    tpu.vector_store %arg5[%c0_68, %c0_69, %c0_70, %c0_71], %77 {strides = array<i32>} : memref<1x16x16x32xbf16, #tpu.memory_space<vmem>>, vector<1x16x16x32xbf16>,
    return
  }
  func.func @transform_0(%arg0: i32) -> (i32, i32, i32, i32) {
    %c0_i32 = arith.constant 0 : i32
    %c0_i32_0 = arith.constant 0 : i32
    %c0_i32_1 = arith.constant 0 : i32
    %c0_i32_2 = arith.constant 0 : i32
    return %arg0, %c0_i32, %c0_i32_0, %c0_i32_1 : i32, i32, i32, i32
  }
  func.func @transform_1(%arg0: i32) -> (i32, i32, i32) {
    %c0_i32 = arith.constant 0 : i32
    %c0_i32_0 = arith.constant 0 : i32
    %c0_i32_1 = arith.constant 0 : i32
    %c0_i32_2 = arith.constant 0 : i32
    return %c0_i32, %c0_i32_0, %c0_i32_1 : i32, i32, i32
  }
  func.func @transform_2(%arg0: i32) -> (i32, i32) {
    %c0_i32 = arith.constant 0 : i32
    %c0_i32_0 = arith.constant 0 : i32
    %c0_i32_1 = arith.constant 0 : i32
    return %c0_i32, %c0_i32_0 : i32, i32
  }
  func.func @transform_3(%arg0: i32) -> (i32, i32) {
    %c0_i32 = arith.constant 0 : i32
    %c0_i32_0 = arith.constant 0 : i32
    %c0_i32_1 = arith.constant 0 : i32
    return %c0_i32, %c0_i32_0 : i32, i32
  }
  func.func @transform_4(%arg0: i32) -> (i32, i32, i32, i32) {
    %c0_i32 = arith.constant 0 : i32
    %c0_i32_0 = arith.constant 0 : i32
    %c0_i32_1 = arith.constant 0 : i32
    %c0_i32_2 = arith.constant 0 : i32
    return %arg0, %c0_i32, %c0_i32_0, %c0_i32_1 : i32, i32, i32, i32
  }
}

module attributes {stable_mosaic.version = 11 : i64} {
  func.func @_conv_s2_kernel(%arg0: i32, %arg1: memref<1x9x4x9x32xbf16, #tpu.memory_space<vmem>>, %arg2: memref<9x32x64xbf16, #tpu.memory_space<vmem>>, %arg3: memref<1x64xf32, #tpu.memory_space<vmem>>, %arg4: memref<1x64xf32, #tpu.memory_space<vmem>>, %arg5: memref<1x8x8x64xbf16, #tpu.memory_space<vmem>>) attributes {dimension_semantics = [#tpu.dimension_semantics<parallel>], iteration_bounds = array<i64: 2>, scalar_prefetch = 0 : i64, scratch_operands = 0 : i64, tpu.core_type = #tpu.core_type<tc>, window_params = [{transform_indices = @transform_0, window_bounds = array<i64: 1, 9, 4, 9, 32>}, {pipeline_mode = #tpu.pipeline_mode<synchronous>, transform_indices = @transform_1, window_bounds = array<i64: 9, 32, 64>}, {pipeline_mode = #tpu.pipeline_mode<synchronous>, transform_indices = @transform_2, window_bounds = array<i64: 1, 64>}, {pipeline_mode = #tpu.pipeline_mode<synchronous>, transform_indices = @transform_3, window_bounds = array<i64: 1, 64>}, {transform_indices = @transform_4, window_bounds = array<i64: 1, 8, 8, 64>}]} {
    %cst = arith.constant 0.000000e+00 : f32
    %0 = vector.broadcast %cst : f32 to vector<64x64xf32>
    %c0 = arith.constant 0 : index
    %c0_0 = arith.constant 0 : index
    %c0_1 = arith.constant 0 : index
    %c0_2 = arith.constant 0 : index
    %c0_3 = arith.constant 0 : index
    %1 = vector.load %arg1[%c0, %c0_0, %c0_1, %c0_2, %c0_3] : memref<1x9x4x9x32xbf16, #tpu.memory_space<vmem>>, vector<1x8x1x8x32xbf16>
    %2 = vector.shape_cast %1 : vector<1x8x1x8x32xbf16> to vector<8x8x32xbf16>
    %3 = vector.shape_cast %2 : vector<8x8x32xbf16> to vector<64x32xbf16>
    %c0_4 = arith.constant 0 : index
    %c0_5 = arith.constant 0 : index
    %c0_6 = arith.constant 0 : index
    %4 = vector.load %arg2[%c0_4, %c0_5, %c0_6] : memref<9x32x64xbf16, #tpu.memory_space<vmem>>, vector<1x32x64xbf16>
    %5 = vector.shape_cast %4 : vector<1x32x64xbf16> to vector<32x64xbf16>
    %cst_7 = arith.constant dense<0.000000e+00> : vector<64x64xf32>
    %6 = tpu.matmul %3, %5, %cst_7 {dimension_numbers = #tpu.dot_dimension_numbers<[1], [0], [0], [1], [0, 0, 1, 1], [], []>} : vector<64x32xbf16>, vector<32x64xbf16>, vector<64x64xf32> -> vector<64x64xf32>
    %7 = arith.addf %0, %6 : vector<64x64xf32>
    %c0_8 = arith.constant 0 : index
    %c0_9 = arith.constant 0 : index
    %c1 = arith.constant 1 : index
    %c0_10 = arith.constant 0 : index
    %c0_11 = arith.constant 0 : index
    %8 = vector.load %arg1[%c0_8, %c0_9, %c1, %c0_10, %c0_11] : memref<1x9x4x9x32xbf16, #tpu.memory_space<vmem>>, vector<1x8x1x8x32xbf16>
    %9 = vector.shape_cast %8 : vector<1x8x1x8x32xbf16> to vector<8x8x32xbf16>
    %10 = vector.shape_cast %9 : vector<8x8x32xbf16> to vector<64x32xbf16>
    %c1_12 = arith.constant 1 : index
    %c0_13 = arith.constant 0 : index
    %c0_14 = arith.constant 0 : index
    %11 = vector.load %arg2[%c1_12, %c0_13, %c0_14] : memref<9x32x64xbf16, #tpu.memory_space<vmem>>, vector<1x32x64xbf16>
    %12 = vector.shape_cast %11 : vector<1x32x64xbf16> to vector<32x64xbf16>
    %cst_15 = arith.constant dense<0.000000e+00> : vector<64x64xf32>
    %13 = tpu.matmul %10, %12, %cst_15 {dimension_numbers = #tpu.dot_dimension_numbers<[1], [0], [0], [1], [0, 0, 1, 1], [], []>} : vector<64x32xbf16>, vector<32x64xbf16>, vector<64x64xf32> -> vector<64x64xf32>
    %14 = arith.addf %7, %13 : vector<64x64xf32>
    %c0_16 = arith.constant 0 : index
    %c0_17 = arith.constant 0 : index
    %c0_18 = arith.constant 0 : index
    %c1_19 = arith.constant 1 : index
    %c0_20 = arith.constant 0 : index
    %15 = vector.load %arg1[%c0_16, %c0_17, %c0_18, %c1_19, %c0_20] : memref<1x9x4x9x32xbf16, #tpu.memory_space<vmem>>, vector<1x8x1x8x32xbf16>
    %16 = vector.shape_cast %15 : vector<1x8x1x8x32xbf16> to vector<8x8x32xbf16>
    %17 = vector.shape_cast %16 : vector<8x8x32xbf16> to vector<64x32xbf16>
    %c2 = arith.constant 2 : index
    %c0_21 = arith.constant 0 : index
    %c0_22 = arith.constant 0 : index
    %18 = vector.load %arg2[%c2, %c0_21, %c0_22] : memref<9x32x64xbf16, #tpu.memory_space<vmem>>, vector<1x32x64xbf16>
    %19 = vector.shape_cast %18 : vector<1x32x64xbf16> to vector<32x64xbf16>
    %cst_23 = arith.constant dense<0.000000e+00> : vector<64x64xf32>
    %20 = tpu.matmul %17, %19, %cst_23 {dimension_numbers = #tpu.dot_dimension_numbers<[1], [0], [0], [1], [0, 0, 1, 1], [], []>} : vector<64x32xbf16>, vector<32x64xbf16>, vector<64x64xf32> -> vector<64x64xf32>
    %21 = arith.addf %14, %20 : vector<64x64xf32>
    %c0_24 = arith.constant 0 : index
    %c0_25 = arith.constant 0 : index
    %c2_26 = arith.constant 2 : index
    %c0_27 = arith.constant 0 : index
    %c0_28 = arith.constant 0 : index
    %22 = vector.load %arg1[%c0_24, %c0_25, %c2_26, %c0_27, %c0_28] : memref<1x9x4x9x32xbf16, #tpu.memory_space<vmem>>, vector<1x8x1x8x32xbf16>
    %23 = vector.shape_cast %22 : vector<1x8x1x8x32xbf16> to vector<8x8x32xbf16>
    %24 = vector.shape_cast %23 : vector<8x8x32xbf16> to vector<64x32xbf16>
    %c3 = arith.constant 3 : index
    %c0_29 = arith.constant 0 : index
    %c0_30 = arith.constant 0 : index
    %25 = vector.load %arg2[%c3, %c0_29, %c0_30] : memref<9x32x64xbf16, #tpu.memory_space<vmem>>, vector<1x32x64xbf16>
    %26 = vector.shape_cast %25 : vector<1x32x64xbf16> to vector<32x64xbf16>
    %cst_31 = arith.constant dense<0.000000e+00> : vector<64x64xf32>
    %27 = tpu.matmul %24, %26, %cst_31 {dimension_numbers = #tpu.dot_dimension_numbers<[1], [0], [0], [1], [0, 0, 1, 1], [], []>} : vector<64x32xbf16>, vector<32x64xbf16>, vector<64x64xf32> -> vector<64x64xf32>
    %28 = arith.addf %21, %27 : vector<64x64xf32>
    %c0_32 = arith.constant 0 : index
    %c0_33 = arith.constant 0 : index
    %c3_34 = arith.constant 3 : index
    %c0_35 = arith.constant 0 : index
    %c0_36 = arith.constant 0 : index
    %29 = vector.load %arg1[%c0_32, %c0_33, %c3_34, %c0_35, %c0_36] : memref<1x9x4x9x32xbf16, #tpu.memory_space<vmem>>, vector<1x8x1x8x32xbf16>
    %30 = vector.shape_cast %29 : vector<1x8x1x8x32xbf16> to vector<8x8x32xbf16>
    %31 = vector.shape_cast %30 : vector<8x8x32xbf16> to vector<64x32xbf16>
    %c4 = arith.constant 4 : index
    %c0_37 = arith.constant 0 : index
    %c0_38 = arith.constant 0 : index
    %32 = vector.load %arg2[%c4, %c0_37, %c0_38] : memref<9x32x64xbf16, #tpu.memory_space<vmem>>, vector<1x32x64xbf16>
    %33 = vector.shape_cast %32 : vector<1x32x64xbf16> to vector<32x64xbf16>
    %cst_39 = arith.constant dense<0.000000e+00> : vector<64x64xf32>
    %34 = tpu.matmul %31, %33, %cst_39 {dimension_numbers = #tpu.dot_dimension_numbers<[1], [0], [0], [1], [0, 0, 1, 1], [], []>} : vector<64x32xbf16>, vector<32x64xbf16>, vector<64x64xf32> -> vector<64x64xf32>
    %35 = arith.addf %28, %34 : vector<64x64xf32>
    %c0_40 = arith.constant 0 : index
    %c0_41 = arith.constant 0 : index
    %c2_42 = arith.constant 2 : index
    %c1_43 = arith.constant 1 : index
    %c0_44 = arith.constant 0 : index
    %36 = vector.load %arg1[%c0_40, %c0_41, %c2_42, %c1_43, %c0_44] : memref<1x9x4x9x32xbf16, #tpu.memory_space<vmem>>, vector<1x8x1x8x32xbf16>
    %37 = vector.shape_cast %36 : vector<1x8x1x8x32xbf16> to vector<8x8x32xbf16>
    %38 = vector.shape_cast %37 : vector<8x8x32xbf16> to vector<64x32xbf16>
    %c5 = arith.constant 5 : index
    %c0_45 = arith.constant 0 : index
    %c0_46 = arith.constant 0 : index
    %39 = vector.load %arg2[%c5, %c0_45, %c0_46] : memref<9x32x64xbf16, #tpu.memory_space<vmem>>, vector<1x32x64xbf16>
    %40 = vector.shape_cast %39 : vector<1x32x64xbf16> to vector<32x64xbf16>
    %cst_47 = arith.constant dense<0.000000e+00> : vector<64x64xf32>
    %41 = tpu.matmul %38, %40, %cst_47 {dimension_numbers = #tpu.dot_dimension_numbers<[1], [0], [0], [1], [0, 0, 1, 1], [], []>} : vector<64x32xbf16>, vector<32x64xbf16>, vector<64x64xf32> -> vector<64x64xf32>
    %42 = arith.addf %35, %41 : vector<64x64xf32>
    %c0_48 = arith.constant 0 : index
    %c1_49 = arith.constant 1 : index
    %c0_50 = arith.constant 0 : index
    %c0_51 = arith.constant 0 : index
    %c0_52 = arith.constant 0 : index
    %43 = vector.load %arg1[%c0_48, %c1_49, %c0_50, %c0_51, %c0_52] : memref<1x9x4x9x32xbf16, #tpu.memory_space<vmem>>, vector<1x8x1x8x32xbf16>
    %44 = vector.shape_cast %43 : vector<1x8x1x8x32xbf16> to vector<8x8x32xbf16>
    %45 = vector.shape_cast %44 : vector<8x8x32xbf16> to vector<64x32xbf16>
    %c6 = arith.constant 6 : index
    %c0_53 = arith.constant 0 : index
    %c0_54 = arith.constant 0 : index
    %46 = vector.load %arg2[%c6, %c0_53, %c0_54] : memref<9x32x64xbf16, #tpu.memory_space<vmem>>, vector<1x32x64xbf16>
    %47 = vector.shape_cast %46 : vector<1x32x64xbf16> to vector<32x64xbf16>
    %cst_55 = arith.constant dense<0.000000e+00> : vector<64x64xf32>
    %48 = tpu.matmul %45, %47, %cst_55 {dimension_numbers = #tpu.dot_dimension_numbers<[1], [0], [0], [1], [0, 0, 1, 1], [], []>} : vector<64x32xbf16>, vector<32x64xbf16>, vector<64x64xf32> -> vector<64x64xf32>
    %49 = arith.addf %42, %48 : vector<64x64xf32>
    %c0_56 = arith.constant 0 : index
    %c1_57 = arith.constant 1 : index
    %c1_58 = arith.constant 1 : index
    %c0_59 = arith.constant 0 : index
    %c0_60 = arith.constant 0 : index
    %50 = vector.load %arg1[%c0_56, %c1_57, %c1_58, %c0_59, %c0_60] : memref<1x9x4x9x32xbf16, #tpu.memory_space<vmem>>, vector<1x8x1x8x32xbf16>
    %51 = vector.shape_cast %50 : vector<1x8x1x8x32xbf16> to vector<8x8x32xbf16>
    %52 = vector.shape_cast %51 : vector<8x8x32xbf16> to vector<64x32xbf16>
    %c7 = arith.constant 7 : index
    %c0_61 = arith.constant 0 : index
    %c0_62 = arith.constant 0 : index
    %53 = vector.load %arg2[%c7, %c0_61, %c0_62] : memref<9x32x64xbf16, #tpu.memory_space<vmem>>, vector<1x32x64xbf16>
    %54 = vector.shape_cast %53 : vector<1x32x64xbf16> to vector<32x64xbf16>
    %cst_63 = arith.constant dense<0.000000e+00> : vector<64x64xf32>
    %55 = tpu.matmul %52, %54, %cst_63 {dimension_numbers = #tpu.dot_dimension_numbers<[1], [0], [0], [1], [0, 0, 1, 1], [], []>} : vector<64x32xbf16>, vector<32x64xbf16>, vector<64x64xf32> -> vector<64x64xf32>
    %56 = arith.addf %49, %55 : vector<64x64xf32>
    %c0_64 = arith.constant 0 : index
    %c1_65 = arith.constant 1 : index
    %c0_66 = arith.constant 0 : index
    %c1_67 = arith.constant 1 : index
    %c0_68 = arith.constant 0 : index
    %57 = vector.load %arg1[%c0_64, %c1_65, %c0_66, %c1_67, %c0_68] : memref<1x9x4x9x32xbf16, #tpu.memory_space<vmem>>, vector<1x8x1x8x32xbf16>
    %58 = vector.shape_cast %57 : vector<1x8x1x8x32xbf16> to vector<8x8x32xbf16>
    %59 = vector.shape_cast %58 : vector<8x8x32xbf16> to vector<64x32xbf16>
    %c8 = arith.constant 8 : index
    %c0_69 = arith.constant 0 : index
    %c0_70 = arith.constant 0 : index
    %60 = vector.load %arg2[%c8, %c0_69, %c0_70] : memref<9x32x64xbf16, #tpu.memory_space<vmem>>, vector<1x32x64xbf16>
    %61 = vector.shape_cast %60 : vector<1x32x64xbf16> to vector<32x64xbf16>
    %cst_71 = arith.constant dense<0.000000e+00> : vector<64x64xf32>
    %62 = tpu.matmul %59, %61, %cst_71 {dimension_numbers = #tpu.dot_dimension_numbers<[1], [0], [0], [1], [0, 0, 1, 1], [], []>} : vector<64x32xbf16>, vector<32x64xbf16>, vector<64x64xf32> -> vector<64x64xf32>
    %63 = arith.addf %56, %62 : vector<64x64xf32>
    %c0_72 = arith.constant 0 : index
    %c0_73 = arith.constant 0 : index
    %64 = vector.load %arg3[%c0_72, %c0_73] : memref<1x64xf32, #tpu.memory_space<vmem>>, vector<1x64xf32>
    %65 = vector.broadcast %64 : vector<1x64xf32> to vector<64x64xf32>
    %66 = arith.mulf %63, %65 : vector<64x64xf32>
    %c0_74 = arith.constant 0 : index
    %c0_75 = arith.constant 0 : index
    %67 = vector.load %arg4[%c0_74, %c0_75] : memref<1x64xf32, #tpu.memory_space<vmem>>, vector<1x64xf32>
    %68 = vector.broadcast %67 : vector<1x64xf32> to vector<64x64xf32>
    %69 = arith.addf %66, %68 : vector<64x64xf32>
    %cst_76 = arith.constant 1.000000e-01 : f32
    %70 = vector.broadcast %cst_76 : f32 to vector<64x64xf32>
    %71 = arith.mulf %70, %69 : vector<64x64xf32>
    %72 = arith.maximumf %69, %71 : vector<64x64xf32>
    %73 = vector.shape_cast %72 : vector<64x64xf32> to vector<8x8x64xf32>
    %74 = arith.truncf %73 : vector<8x8x64xf32> to vector<8x8x64xbf16>
    %c0_77 = arith.constant 0 : index
    %c0_78 = arith.constant 0 : index
    %c0_79 = arith.constant 0 : index
    %c0_80 = arith.constant 0 : index
    %75 = vector.load %arg5[%c0_77, %c0_78, %c0_79, %c0_80] : memref<1x8x8x64xbf16, #tpu.memory_space<vmem>>, vector<1x8x8x64xbf16>
    %76 = vector.shape_cast %75 : vector<1x8x8x64xbf16> to vector<8x8x64xbf16>
    %77 = vector.shape_cast %74 : vector<8x8x64xbf16> to vector<1x8x8x64xbf16>
    tpu.vector_store %arg5[%c0_77, %c0_78, %c0_79, %c0_80], %77 {strides = array<i32>} : memref<1x8x8x64xbf16, #tpu.memory_space<vmem>>, vector<1x8x8x64xbf16>,
    return
  }
  func.func @transform_0(%arg0: i32) -> (i32, i32, i32, i32, i32) {
    %c0_i32 = arith.constant 0 : i32
    %c0_i32_0 = arith.constant 0 : i32
    %c0_i32_1 = arith.constant 0 : i32
    %c0_i32_2 = arith.constant 0 : i32
    %c0_i32_3 = arith.constant 0 : i32
    return %arg0, %c0_i32, %c0_i32_0, %c0_i32_1, %c0_i32_2 : i32, i32, i32, i32, i32
  }
  func.func @transform_1(%arg0: i32) -> (i32, i32, i32) {
    %c0_i32 = arith.constant 0 : i32
    %c0_i32_0 = arith.constant 0 : i32
    %c0_i32_1 = arith.constant 0 : i32
    %c0_i32_2 = arith.constant 0 : i32
    return %c0_i32, %c0_i32_0, %c0_i32_1 : i32, i32, i32
  }
  func.func @transform_2(%arg0: i32) -> (i32, i32) {
    %c0_i32 = arith.constant 0 : i32
    %c0_i32_0 = arith.constant 0 : i32
    %c0_i32_1 = arith.constant 0 : i32
    return %c0_i32, %c0_i32_0 : i32, i32
  }
  func.func @transform_3(%arg0: i32) -> (i32, i32) {
    %c0_i32 = arith.constant 0 : i32
    %c0_i32_0 = arith.constant 0 : i32
    %c0_i32_1 = arith.constant 0 : i32
    return %c0_i32, %c0_i32_0 : i32, i32
  }
  func.func @transform_4(%arg0: i32) -> (i32, i32, i32, i32) {
    %c0_i32 = arith.constant 0 : i32
    %c0_i32_0 = arith.constant 0 : i32
    %c0_i32_1 = arith.constant 0 : i32
    %c0_i32_2 = arith.constant 0 : i32
    return %arg0, %c0_i32, %c0_i32_0, %c0_i32_1 : i32, i32, i32, i32
  }
}

module attributes {stable_mosaic.version = 11 : i64} {
  func.func @_tail_kernel(%arg0: i32, %arg1: memref<1x5x4x5x64xbf16, #tpu.memory_space<vmem>>, %arg2: memref<9x64x128xbf16, #tpu.memory_space<vmem>>, %arg3: memref<1x128xf32, #tpu.memory_space<vmem>>, %arg4: memref<1x128xf32, #tpu.memory_space<vmem>>, %arg5: memref<128x64xbf16, #tpu.memory_space<vmem>>, %arg6: memref<1x64xf32, #tpu.memory_space<vmem>>, %arg7: memref<1x64xf32, #tpu.memory_space<vmem>>, %arg8: memref<9x64x128xbf16, #tpu.memory_space<vmem>>, %arg9: memref<1x128xf32, #tpu.memory_space<vmem>>, %arg10: memref<1x128xf32, #tpu.memory_space<vmem>>, %arg11: memref<128x24xbf16, #tpu.memory_space<vmem>>, %arg12: memref<1x24xf32, #tpu.memory_space<vmem>>, %arg13: memref<1x4x4x24xf32, #tpu.memory_space<vmem>>, %arg14: memref<6x6x64xbf16, #tpu.memory_space<vmem>>) attributes {dimension_semantics = [#tpu.dimension_semantics<parallel>], iteration_bounds = array<i64: 2>, scalar_prefetch = 0 : i64, scratch_operands = 1 : i64, tpu.core_type = #tpu.core_type<tc>, window_params = [{transform_indices = @transform_0, window_bounds = array<i64: 1, 5, 4, 5, 64>}, {pipeline_mode = #tpu.pipeline_mode<synchronous>, transform_indices = @transform_1, window_bounds = array<i64: 9, 64, 128>}, {pipeline_mode = #tpu.pipeline_mode<synchronous>, transform_indices = @transform_2, window_bounds = array<i64: 1, 128>}, {pipeline_mode = #tpu.pipeline_mode<synchronous>, transform_indices = @transform_3, window_bounds = array<i64: 1, 128>}, {pipeline_mode = #tpu.pipeline_mode<synchronous>, transform_indices = @transform_4, window_bounds = array<i64: 128, 64>}, {pipeline_mode = #tpu.pipeline_mode<synchronous>, transform_indices = @transform_5, window_bounds = array<i64: 1, 64>}, {pipeline_mode = #tpu.pipeline_mode<synchronous>, transform_indices = @transform_6, window_bounds = array<i64: 1, 64>}, {pipeline_mode = #tpu.pipeline_mode<synchronous>, transform_indices = @transform_7, window_bounds = array<i64: 9, 64, 128>}, {pipeline_mode = #tpu.pipeline_mode<synchronous>, transform_indices = @transform_8, window_bounds = array<i64: 1, 128>}, {pipeline_mode = #tpu.pipeline_mode<synchronous>, transform_indices = @transform_9, window_bounds = array<i64: 1, 128>}, {pipeline_mode = #tpu.pipeline_mode<synchronous>, transform_indices = @transform_10, window_bounds = array<i64: 128, 24>}, {pipeline_mode = #tpu.pipeline_mode<synchronous>, transform_indices = @transform_11, window_bounds = array<i64: 1, 24>}, {transform_indices = @transform_12, window_bounds = array<i64: 1, 4, 4, 24>}]} {
    %cst = arith.constant 0.000000e+00 : f32
    %0 = vector.broadcast %cst : f32 to vector<16x128xf32>
    %c0 = arith.constant 0 : index
    %c0_0 = arith.constant 0 : index
    %c0_1 = arith.constant 0 : index
    %c0_2 = arith.constant 0 : index
    %c0_3 = arith.constant 0 : index
    %1 = vector.load %arg1[%c0, %c0_0, %c0_1, %c0_2, %c0_3] : memref<1x5x4x5x64xbf16, #tpu.memory_space<vmem>>, vector<1x4x1x4x64xbf16>
    %2 = vector.shape_cast %1 : vector<1x4x1x4x64xbf16> to vector<4x4x64xbf16>
    %3 = vector.shape_cast %2 : vector<4x4x64xbf16> to vector<16x64xbf16>
    %c0_4 = arith.constant 0 : index
    %c0_5 = arith.constant 0 : index
    %c0_6 = arith.constant 0 : index
    %4 = vector.load %arg2[%c0_4, %c0_5, %c0_6] : memref<9x64x128xbf16, #tpu.memory_space<vmem>>, vector<1x64x128xbf16>
    %5 = vector.shape_cast %4 : vector<1x64x128xbf16> to vector<64x128xbf16>
    %cst_7 = arith.constant dense<0.000000e+00> : vector<16x128xf32>
    %6 = tpu.matmul %3, %5, %cst_7 {dimension_numbers = #tpu.dot_dimension_numbers<[1], [0], [0], [1], [0, 0, 1, 1], [], []>} : vector<16x64xbf16>, vector<64x128xbf16>, vector<16x128xf32> -> vector<16x128xf32>
    %7 = arith.addf %0, %6 : vector<16x128xf32>
    %c0_8 = arith.constant 0 : index
    %c0_9 = arith.constant 0 : index
    %c1 = arith.constant 1 : index
    %c0_10 = arith.constant 0 : index
    %c0_11 = arith.constant 0 : index
    %8 = vector.load %arg1[%c0_8, %c0_9, %c1, %c0_10, %c0_11] : memref<1x5x4x5x64xbf16, #tpu.memory_space<vmem>>, vector<1x4x1x4x64xbf16>
    %9 = vector.shape_cast %8 : vector<1x4x1x4x64xbf16> to vector<4x4x64xbf16>
    %10 = vector.shape_cast %9 : vector<4x4x64xbf16> to vector<16x64xbf16>
    %c1_12 = arith.constant 1 : index
    %c0_13 = arith.constant 0 : index
    %c0_14 = arith.constant 0 : index
    %11 = vector.load %arg2[%c1_12, %c0_13, %c0_14] : memref<9x64x128xbf16, #tpu.memory_space<vmem>>, vector<1x64x128xbf16>
    %12 = vector.shape_cast %11 : vector<1x64x128xbf16> to vector<64x128xbf16>
    %cst_15 = arith.constant dense<0.000000e+00> : vector<16x128xf32>
    %13 = tpu.matmul %10, %12, %cst_15 {dimension_numbers = #tpu.dot_dimension_numbers<[1], [0], [0], [1], [0, 0, 1, 1], [], []>} : vector<16x64xbf16>, vector<64x128xbf16>, vector<16x128xf32> -> vector<16x128xf32>
    %14 = arith.addf %7, %13 : vector<16x128xf32>
    %c0_16 = arith.constant 0 : index
    %c0_17 = arith.constant 0 : index
    %c0_18 = arith.constant 0 : index
    %c1_19 = arith.constant 1 : index
    %c0_20 = arith.constant 0 : index
    %15 = vector.load %arg1[%c0_16, %c0_17, %c0_18, %c1_19, %c0_20] : memref<1x5x4x5x64xbf16, #tpu.memory_space<vmem>>, vector<1x4x1x4x64xbf16>
    %16 = vector.shape_cast %15 : vector<1x4x1x4x64xbf16> to vector<4x4x64xbf16>
    %17 = vector.shape_cast %16 : vector<4x4x64xbf16> to vector<16x64xbf16>
    %c2 = arith.constant 2 : index
    %c0_21 = arith.constant 0 : index
    %c0_22 = arith.constant 0 : index
    %18 = vector.load %arg2[%c2, %c0_21, %c0_22] : memref<9x64x128xbf16, #tpu.memory_space<vmem>>, vector<1x64x128xbf16>
    %19 = vector.shape_cast %18 : vector<1x64x128xbf16> to vector<64x128xbf16>
    %cst_23 = arith.constant dense<0.000000e+00> : vector<16x128xf32>
    %20 = tpu.matmul %17, %19, %cst_23 {dimension_numbers = #tpu.dot_dimension_numbers<[1], [0], [0], [1], [0, 0, 1, 1], [], []>} : vector<16x64xbf16>, vector<64x128xbf16>, vector<16x128xf32> -> vector<16x128xf32>
    %21 = arith.addf %14, %20 : vector<16x128xf32>
    %c0_24 = arith.constant 0 : index
    %c0_25 = arith.constant 0 : index
    %c2_26 = arith.constant 2 : index
    %c0_27 = arith.constant 0 : index
    %c0_28 = arith.constant 0 : index
    %22 = vector.load %arg1[%c0_24, %c0_25, %c2_26, %c0_27, %c0_28] : memref<1x5x4x5x64xbf16, #tpu.memory_space<vmem>>, vector<1x4x1x4x64xbf16>
    %23 = vector.shape_cast %22 : vector<1x4x1x4x64xbf16> to vector<4x4x64xbf16>
    %24 = vector.shape_cast %23 : vector<4x4x64xbf16> to vector<16x64xbf16>
    %c3 = arith.constant 3 : index
    %c0_29 = arith.constant 0 : index
    %c0_30 = arith.constant 0 : index
    %25 = vector.load %arg2[%c3, %c0_29, %c0_30] : memref<9x64x128xbf16, #tpu.memory_space<vmem>>, vector<1x64x128xbf16>
    %26 = vector.shape_cast %25 : vector<1x64x128xbf16> to vector<64x128xbf16>
    %cst_31 = arith.constant dense<0.000000e+00> : vector<16x128xf32>
    %27 = tpu.matmul %24, %26, %cst_31 {dimension_numbers = #tpu.dot_dimension_numbers<[1], [0], [0], [1], [0, 0, 1, 1], [], []>} : vector<16x64xbf16>, vector<64x128xbf16>, vector<16x128xf32> -> vector<16x128xf32>
    %28 = arith.addf %21, %27 : vector<16x128xf32>
    %c0_32 = arith.constant 0 : index
    %c0_33 = arith.constant 0 : index
    %c3_34 = arith.constant 3 : index
    %c0_35 = arith.constant 0 : index
    %c0_36 = arith.constant 0 : index
    %29 = vector.load %arg1[%c0_32, %c0_33, %c3_34, %c0_35, %c0_36] : memref<1x5x4x5x64xbf16, #tpu.memory_space<vmem>>, vector<1x4x1x4x64xbf16>
    %30 = vector.shape_cast %29 : vector<1x4x1x4x64xbf16> to vector<4x4x64xbf16>
    %31 = vector.shape_cast %30 : vector<4x4x64xbf16> to vector<16x64xbf16>
    %c4 = arith.constant 4 : index
    %c0_37 = arith.constant 0 : index
    %c0_38 = arith.constant 0 : index
    %32 = vector.load %arg2[%c4, %c0_37, %c0_38] : memref<9x64x128xbf16, #tpu.memory_space<vmem>>, vector<1x64x128xbf16>
    %33 = vector.shape_cast %32 : vector<1x64x128xbf16> to vector<64x128xbf16>
    %cst_39 = arith.constant dense<0.000000e+00> : vector<16x128xf32>
    %34 = tpu.matmul %31, %33, %cst_39 {dimension_numbers = #tpu.dot_dimension_numbers<[1], [0], [0], [1], [0, 0, 1, 1], [], []>} : vector<16x64xbf16>, vector<64x128xbf16>, vector<16x128xf32> -> vector<16x128xf32>
    %35 = arith.addf %28, %34 : vector<16x128xf32>
    %c0_40 = arith.constant 0 : index
    %c0_41 = arith.constant 0 : index
    %c2_42 = arith.constant 2 : index
    %c1_43 = arith.constant 1 : index
    %c0_44 = arith.constant 0 : index
    %36 = vector.load %arg1[%c0_40, %c0_41, %c2_42, %c1_43, %c0_44] : memref<1x5x4x5x64xbf16, #tpu.memory_space<vmem>>, vector<1x4x1x4x64xbf16>
    %37 = vector.shape_cast %36 : vector<1x4x1x4x64xbf16> to vector<4x4x64xbf16>
    %38 = vector.shape_cast %37 : vector<4x4x64xbf16> to vector<16x64xbf16>
    %c5 = arith.constant 5 : index
    %c0_45 = arith.constant 0 : index
    %c0_46 = arith.constant 0 : index
    %39 = vector.load %arg2[%c5, %c0_45, %c0_46] : memref<9x64x128xbf16, #tpu.memory_space<vmem>>, vector<1x64x128xbf16>
    %40 = vector.shape_cast %39 : vector<1x64x128xbf16> to vector<64x128xbf16>
    %cst_47 = arith.constant dense<0.000000e+00> : vector<16x128xf32>
    %41 = tpu.matmul %38, %40, %cst_47 {dimension_numbers = #tpu.dot_dimension_numbers<[1], [0], [0], [1], [0, 0, 1, 1], [], []>} : vector<16x64xbf16>, vector<64x128xbf16>, vector<16x128xf32> -> vector<16x128xf32>
    %42 = arith.addf %35, %41 : vector<16x128xf32>
    %c0_48 = arith.constant 0 : index
    %c1_49 = arith.constant 1 : index
    %c0_50 = arith.constant 0 : index
    %c0_51 = arith.constant 0 : index
    %c0_52 = arith.constant 0 : index
    %43 = vector.load %arg1[%c0_48, %c1_49, %c0_50, %c0_51, %c0_52] : memref<1x5x4x5x64xbf16, #tpu.memory_space<vmem>>, vector<1x4x1x4x64xbf16>
    %44 = vector.shape_cast %43 : vector<1x4x1x4x64xbf16> to vector<4x4x64xbf16>
    %45 = vector.shape_cast %44 : vector<4x4x64xbf16> to vector<16x64xbf16>
    %c6 = arith.constant 6 : index
    %c0_53 = arith.constant 0 : index
    %c0_54 = arith.constant 0 : index
    %46 = vector.load %arg2[%c6, %c0_53, %c0_54] : memref<9x64x128xbf16, #tpu.memory_space<vmem>>, vector<1x64x128xbf16>
    %47 = vector.shape_cast %46 : vector<1x64x128xbf16> to vector<64x128xbf16>
    %cst_55 = arith.constant dense<0.000000e+00> : vector<16x128xf32>
    %48 = tpu.matmul %45, %47, %cst_55 {dimension_numbers = #tpu.dot_dimension_numbers<[1], [0], [0], [1], [0, 0, 1, 1], [], []>} : vector<16x64xbf16>, vector<64x128xbf16>, vector<16x128xf32> -> vector<16x128xf32>
    %49 = arith.addf %42, %48 : vector<16x128xf32>
    %c0_56 = arith.constant 0 : index
    %c1_57 = arith.constant 1 : index
    %c1_58 = arith.constant 1 : index
    %c0_59 = arith.constant 0 : index
    %c0_60 = arith.constant 0 : index
    %50 = vector.load %arg1[%c0_56, %c1_57, %c1_58, %c0_59, %c0_60] : memref<1x5x4x5x64xbf16, #tpu.memory_space<vmem>>, vector<1x4x1x4x64xbf16>
    %51 = vector.shape_cast %50 : vector<1x4x1x4x64xbf16> to vector<4x4x64xbf16>
    %52 = vector.shape_cast %51 : vector<4x4x64xbf16> to vector<16x64xbf16>
    %c7 = arith.constant 7 : index
    %c0_61 = arith.constant 0 : index
    %c0_62 = arith.constant 0 : index
    %53 = vector.load %arg2[%c7, %c0_61, %c0_62] : memref<9x64x128xbf16, #tpu.memory_space<vmem>>, vector<1x64x128xbf16>
    %54 = vector.shape_cast %53 : vector<1x64x128xbf16> to vector<64x128xbf16>
    %cst_63 = arith.constant dense<0.000000e+00> : vector<16x128xf32>
    %55 = tpu.matmul %52, %54, %cst_63 {dimension_numbers = #tpu.dot_dimension_numbers<[1], [0], [0], [1], [0, 0, 1, 1], [], []>} : vector<16x64xbf16>, vector<64x128xbf16>, vector<16x128xf32> -> vector<16x128xf32>
    %56 = arith.addf %49, %55 : vector<16x128xf32>
    %c0_64 = arith.constant 0 : index
    %c1_65 = arith.constant 1 : index
    %c0_66 = arith.constant 0 : index
    %c1_67 = arith.constant 1 : index
    %c0_68 = arith.constant 0 : index
    %57 = vector.load %arg1[%c0_64, %c1_65, %c0_66, %c1_67, %c0_68] : memref<1x5x4x5x64xbf16, #tpu.memory_space<vmem>>, vector<1x4x1x4x64xbf16>
    %58 = vector.shape_cast %57 : vector<1x4x1x4x64xbf16> to vector<4x4x64xbf16>
    %59 = vector.shape_cast %58 : vector<4x4x64xbf16> to vector<16x64xbf16>
    %c8 = arith.constant 8 : index
    %c0_69 = arith.constant 0 : index
    %c0_70 = arith.constant 0 : index
    %60 = vector.load %arg2[%c8, %c0_69, %c0_70] : memref<9x64x128xbf16, #tpu.memory_space<vmem>>, vector<1x64x128xbf16>
    %61 = vector.shape_cast %60 : vector<1x64x128xbf16> to vector<64x128xbf16>
    %cst_71 = arith.constant dense<0.000000e+00> : vector<16x128xf32>
    %62 = tpu.matmul %59, %61, %cst_71 {dimension_numbers = #tpu.dot_dimension_numbers<[1], [0], [0], [1], [0, 0, 1, 1], [], []>} : vector<16x64xbf16>, vector<64x128xbf16>, vector<16x128xf32> -> vector<16x128xf32>
    %63 = arith.addf %56, %62 : vector<16x128xf32>
    %c0_72 = arith.constant 0 : index
    %c0_73 = arith.constant 0 : index
    %64 = vector.load %arg3[%c0_72, %c0_73] : memref<1x128xf32, #tpu.memory_space<vmem>>, vector<1x128xf32>
    %65 = vector.broadcast %64 : vector<1x128xf32> to vector<16x128xf32>
    %66 = arith.mulf %63, %65 : vector<16x128xf32>
    %c0_74 = arith.constant 0 : index
    %c0_75 = arith.constant 0 : index
    %67 = vector.load %arg4[%c0_74, %c0_75] : memref<1x128xf32, #tpu.memory_space<vmem>>, vector<1x128xf32>
    %68 = vector.broadcast %67 : vector<1x128xf32> to vector<16x128xf32>
    %69 = arith.addf %66, %68 : vector<16x128xf32>
    %cst_76 = arith.constant 1.000000e-01 : f32
    %70 = vector.broadcast %cst_76 : f32 to vector<16x128xf32>
    %71 = arith.mulf %70, %69 : vector<16x128xf32>
    %72 = arith.maximumf %69, %71 : vector<16x128xf32>
    %73 = arith.truncf %72 : vector<16x128xf32> to vector<16x128xbf16>
    %c0_77 = arith.constant 0 : index
    %c0_78 = arith.constant 0 : index
    %74 = vector.load %arg5[%c0_77, %c0_78] : memref<128x64xbf16, #tpu.memory_space<vmem>>, vector<128x64xbf16>
    %cst_79 = arith.constant dense<0.000000e+00> : vector<16x64xf32>
    %75 = tpu.matmul %73, %74, %cst_79 {dimension_numbers = #tpu.dot_dimension_numbers<[1], [0], [0], [1], [0, 0, 1, 1], [], []>} : vector<16x128xbf16>, vector<128x64xbf16>, vector<16x64xf32> -> vector<16x64xf32>
    %c0_80 = arith.constant 0 : index
    %c0_81 = arith.constant 0 : index
    %76 = vector.load %arg6[%c0_80, %c0_81] : memref<1x64xf32, #tpu.memory_space<vmem>>, vector<1x64xf32>
    %77 = vector.broadcast %76 : vector<1x64xf32> to vector<16x64xf32>
    %78 = arith.mulf %75, %77 : vector<16x64xf32>
    %c0_82 = arith.constant 0 : index
    %c0_83 = arith.constant 0 : index
    %79 = vector.load %arg7[%c0_82, %c0_83] : memref<1x64xf32, #tpu.memory_space<vmem>>, vector<1x64xf32>
    %80 = vector.broadcast %79 : vector<1x64xf32> to vector<16x64xf32>
    %81 = arith.addf %78, %80 : vector<16x64xf32>
    %cst_84 = arith.constant 1.000000e-01 : f32
    %82 = vector.broadcast %cst_84 : f32 to vector<16x64xf32>
    %83 = arith.mulf %82, %81 : vector<16x64xf32>
    %84 = arith.maximumf %81, %83 : vector<16x64xf32>
    %cst_85 = arith.constant 0.000000e+00 : bf16
    %85 = vector.broadcast %cst_85 : bf16 to vector<6x6x64xbf16>
    %c0_86 = arith.constant 0 : index
    %c0_87 = arith.constant 0 : index
    %c0_88 = arith.constant 0 : index
    %86 = vector.load %arg14[%c0_86, %c0_87, %c0_88] : memref<6x6x64xbf16, #tpu.memory_space<vmem>>, vector<6x6x64xbf16>
    tpu.vector_store %arg14[%c0_86, %c0_87, %c0_88], %85 {strides = array<i32>} : memref<6x6x64xbf16, #tpu.memory_space<vmem>>, vector<6x6x64xbf16>,
    %87 = arith.truncf %84 : vector<16x64xf32> to vector<16x64xbf16>
    %88 = vector.shape_cast %87 : vector<16x64xbf16> to vector<4x4x64xbf16>
    %c1_89 = arith.constant 1 : index
    %c1_90 = arith.constant 1 : index
    %c0_91 = arith.constant 0 : index
    %89 = vector.load %arg14[%c1_89, %c1_90, %c0_91] : memref<6x6x64xbf16, #tpu.memory_space<vmem>>, vector<4x4x64xbf16>
    tpu.vector_store %arg14[%c1_89, %c1_90, %c0_91], %88 {strides = array<i32>} : memref<6x6x64xbf16, #tpu.memory_space<vmem>>, vector<4x4x64xbf16>,
    %cst_92 = arith.constant 0.000000e+00 : f32
    %90 = vector.broadcast %cst_92 : f32 to vector<16x128xf32>
    %c0_93 = arith.constant 0 : index
    %c0_94 = arith.constant 0 : index
    %c0_95 = arith.constant 0 : index
    %91 = vector.load %arg14[%c0_93, %c0_94, %c0_95] : memref<6x6x64xbf16, #tpu.memory_space<vmem>>, vector<4x4x64xbf16>
    %92 = vector.shape_cast %91 : vector<4x4x64xbf16> to vector<16x64xbf16>
    %c0_96 = arith.constant 0 : index
    %c0_97 = arith.constant 0 : index
    %c0_98 = arith.constant 0 : index
    %93 = vector.load %arg8[%c0_96, %c0_97, %c0_98] : memref<9x64x128xbf16, #tpu.memory_space<vmem>>, vector<1x64x128xbf16>
    %94 = vector.shape_cast %93 : vector<1x64x128xbf16> to vector<64x128xbf16>
    %cst_99 = arith.constant dense<0.000000e+00> : vector<16x128xf32>
    %95 = tpu.matmul %92, %94, %cst_99 {dimension_numbers = #tpu.dot_dimension_numbers<[1], [0], [0], [1], [0, 0, 1, 1], [], []>} : vector<16x64xbf16>, vector<64x128xbf16>, vector<16x128xf32> -> vector<16x128xf32>
    %96 = arith.addf %90, %95 : vector<16x128xf32>
    %c0_100 = arith.constant 0 : index
    %c1_101 = arith.constant 1 : index
    %c0_102 = arith.constant 0 : index
    %97 = vector.load %arg14[%c0_100, %c1_101, %c0_102] : memref<6x6x64xbf16, #tpu.memory_space<vmem>>, vector<4x4x64xbf16>
    %98 = vector.shape_cast %97 : vector<4x4x64xbf16> to vector<16x64xbf16>
    %c1_103 = arith.constant 1 : index
    %c0_104 = arith.constant 0 : index
    %c0_105 = arith.constant 0 : index
    %99 = vector.load %arg8[%c1_103, %c0_104, %c0_105] : memref<9x64x128xbf16, #tpu.memory_space<vmem>>, vector<1x64x128xbf16>
    %100 = vector.shape_cast %99 : vector<1x64x128xbf16> to vector<64x128xbf16>
    %cst_106 = arith.constant dense<0.000000e+00> : vector<16x128xf32>
    %101 = tpu.matmul %98, %100, %cst_106 {dimension_numbers = #tpu.dot_dimension_numbers<[1], [0], [0], [1], [0, 0, 1, 1], [], []>} : vector<16x64xbf16>, vector<64x128xbf16>, vector<16x128xf32> -> vector<16x128xf32>
    %102 = arith.addf %96, %101 : vector<16x128xf32>
    %c0_107 = arith.constant 0 : index
    %c2_108 = arith.constant 2 : index
    %c0_109 = arith.constant 0 : index
    %103 = vector.load %arg14[%c0_107, %c2_108, %c0_109] : memref<6x6x64xbf16, #tpu.memory_space<vmem>>, vector<4x4x64xbf16>
    %104 = vector.shape_cast %103 : vector<4x4x64xbf16> to vector<16x64xbf16>
    %c2_110 = arith.constant 2 : index
    %c0_111 = arith.constant 0 : index
    %c0_112 = arith.constant 0 : index
    %105 = vector.load %arg8[%c2_110, %c0_111, %c0_112] : memref<9x64x128xbf16, #tpu.memory_space<vmem>>, vector<1x64x128xbf16>
    %106 = vector.shape_cast %105 : vector<1x64x128xbf16> to vector<64x128xbf16>
    %cst_113 = arith.constant dense<0.000000e+00> : vector<16x128xf32>
    %107 = tpu.matmul %104, %106, %cst_113 {dimension_numbers = #tpu.dot_dimension_numbers<[1], [0], [0], [1], [0, 0, 1, 1], [], []>} : vector<16x64xbf16>, vector<64x128xbf16>, vector<16x128xf32> -> vector<16x128xf32>
    %108 = arith.addf %102, %107 : vector<16x128xf32>
    %c1_114 = arith.constant 1 : index
    %c0_115 = arith.constant 0 : index
    %c0_116 = arith.constant 0 : index
    %109 = vector.load %arg14[%c1_114, %c0_115, %c0_116] : memref<6x6x64xbf16, #tpu.memory_space<vmem>>, vector<4x4x64xbf16>
    %110 = vector.shape_cast %109 : vector<4x4x64xbf16> to vector<16x64xbf16>
    %c3_117 = arith.constant 3 : index
    %c0_118 = arith.constant 0 : index
    %c0_119 = arith.constant 0 : index
    %111 = vector.load %arg8[%c3_117, %c0_118, %c0_119] : memref<9x64x128xbf16, #tpu.memory_space<vmem>>, vector<1x64x128xbf16>
    %112 = vector.shape_cast %111 : vector<1x64x128xbf16> to vector<64x128xbf16>
    %cst_120 = arith.constant dense<0.000000e+00> : vector<16x128xf32>
    %113 = tpu.matmul %110, %112, %cst_120 {dimension_numbers = #tpu.dot_dimension_numbers<[1], [0], [0], [1], [0, 0, 1, 1], [], []>} : vector<16x64xbf16>, vector<64x128xbf16>, vector<16x128xf32> -> vector<16x128xf32>
    %114 = arith.addf %108, %113 : vector<16x128xf32>
    %c1_121 = arith.constant 1 : index
    %c1_122 = arith.constant 1 : index
    %c0_123 = arith.constant 0 : index
    %115 = vector.load %arg14[%c1_121, %c1_122, %c0_123] : memref<6x6x64xbf16, #tpu.memory_space<vmem>>, vector<4x4x64xbf16>
    %116 = vector.shape_cast %115 : vector<4x4x64xbf16> to vector<16x64xbf16>
    %c4_124 = arith.constant 4 : index
    %c0_125 = arith.constant 0 : index
    %c0_126 = arith.constant 0 : index
    %117 = vector.load %arg8[%c4_124, %c0_125, %c0_126] : memref<9x64x128xbf16, #tpu.memory_space<vmem>>, vector<1x64x128xbf16>
    %118 = vector.shape_cast %117 : vector<1x64x128xbf16> to vector<64x128xbf16>
    %cst_127 = arith.constant dense<0.000000e+00> : vector<16x128xf32>
    %119 = tpu.matmul %116, %118, %cst_127 {dimension_numbers = #tpu.dot_dimension_numbers<[1], [0], [0], [1], [0, 0, 1, 1], [], []>} : vector<16x64xbf16>, vector<64x128xbf16>, vector<16x128xf32> -> vector<16x128xf32>
    %120 = arith.addf %114, %119 : vector<16x128xf32>
    %c1_128 = arith.constant 1 : index
    %c2_129 = arith.constant 2 : index
    %c0_130 = arith.constant 0 : index
    %121 = vector.load %arg14[%c1_128, %c2_129, %c0_130] : memref<6x6x64xbf16, #tpu.memory_space<vmem>>, vector<4x4x64xbf16>
    %122 = vector.shape_cast %121 : vector<4x4x64xbf16> to vector<16x64xbf16>
    %c5_131 = arith.constant 5 : index
    %c0_132 = arith.constant 0 : index
    %c0_133 = arith.constant 0 : index
    %123 = vector.load %arg8[%c5_131, %c0_132, %c0_133] : memref<9x64x128xbf16, #tpu.memory_space<vmem>>, vector<1x64x128xbf16>
    %124 = vector.shape_cast %123 : vector<1x64x128xbf16> to vector<64x128xbf16>
    %cst_134 = arith.constant dense<0.000000e+00> : vector<16x128xf32>
    %125 = tpu.matmul %122, %124, %cst_134 {dimension_numbers = #tpu.dot_dimension_numbers<[1], [0], [0], [1], [0, 0, 1, 1], [], []>} : vector<16x64xbf16>, vector<64x128xbf16>, vector<16x128xf32> -> vector<16x128xf32>
    %126 = arith.addf %120, %125 : vector<16x128xf32>
    %c2_135 = arith.constant 2 : index
    %c0_136 = arith.constant 0 : index
    %c0_137 = arith.constant 0 : index
    %127 = vector.load %arg14[%c2_135, %c0_136, %c0_137] : memref<6x6x64xbf16, #tpu.memory_space<vmem>>, vector<4x4x64xbf16>
    %128 = vector.shape_cast %127 : vector<4x4x64xbf16> to vector<16x64xbf16>
    %c6_138 = arith.constant 6 : index
    %c0_139 = arith.constant 0 : index
    %c0_140 = arith.constant 0 : index
    %129 = vector.load %arg8[%c6_138, %c0_139, %c0_140] : memref<9x64x128xbf16, #tpu.memory_space<vmem>>, vector<1x64x128xbf16>
    %130 = vector.shape_cast %129 : vector<1x64x128xbf16> to vector<64x128xbf16>
    %cst_141 = arith.constant dense<0.000000e+00> : vector<16x128xf32>
    %131 = tpu.matmul %128, %130, %cst_141 {dimension_numbers = #tpu.dot_dimension_numbers<[1], [0], [0], [1], [0, 0, 1, 1], [], []>} : vector<16x64xbf16>, vector<64x128xbf16>, vector<16x128xf32> -> vector<16x128xf32>
    %132 = arith.addf %126, %131 : vector<16x128xf32>
    %c2_142 = arith.constant 2 : index
    %c1_143 = arith.constant 1 : index
    %c0_144 = arith.constant 0 : index
    %133 = vector.load %arg14[%c2_142, %c1_143, %c0_144] : memref<6x6x64xbf16, #tpu.memory_space<vmem>>, vector<4x4x64xbf16>
    %134 = vector.shape_cast %133 : vector<4x4x64xbf16> to vector<16x64xbf16>
    %c7_145 = arith.constant 7 : index
    %c0_146 = arith.constant 0 : index
    %c0_147 = arith.constant 0 : index
    %135 = vector.load %arg8[%c7_145, %c0_146, %c0_147] : memref<9x64x128xbf16, #tpu.memory_space<vmem>>, vector<1x64x128xbf16>
    %136 = vector.shape_cast %135 : vector<1x64x128xbf16> to vector<64x128xbf16>
    %cst_148 = arith.constant dense<0.000000e+00> : vector<16x128xf32>
    %137 = tpu.matmul %134, %136, %cst_148 {dimension_numbers = #tpu.dot_dimension_numbers<[1], [0], [0], [1], [0, 0, 1, 1], [], []>} : vector<16x64xbf16>, vector<64x128xbf16>, vector<16x128xf32> -> vector<16x128xf32>
    %138 = arith.addf %132, %137 : vector<16x128xf32>
    %c2_149 = arith.constant 2 : index
    %c2_150 = arith.constant 2 : index
    %c0_151 = arith.constant 0 : index
    %139 = vector.load %arg14[%c2_149, %c2_150, %c0_151] : memref<6x6x64xbf16, #tpu.memory_space<vmem>>, vector<4x4x64xbf16>
    %140 = vector.shape_cast %139 : vector<4x4x64xbf16> to vector<16x64xbf16>
    %c8_152 = arith.constant 8 : index
    %c0_153 = arith.constant 0 : index
    %c0_154 = arith.constant 0 : index
    %141 = vector.load %arg8[%c8_152, %c0_153, %c0_154] : memref<9x64x128xbf16, #tpu.memory_space<vmem>>, vector<1x64x128xbf16>
    %142 = vector.shape_cast %141 : vector<1x64x128xbf16> to vector<64x128xbf16>
    %cst_155 = arith.constant dense<0.000000e+00> : vector<16x128xf32>
    %143 = tpu.matmul %140, %142, %cst_155 {dimension_numbers = #tpu.dot_dimension_numbers<[1], [0], [0], [1], [0, 0, 1, 1], [], []>} : vector<16x64xbf16>, vector<64x128xbf16>, vector<16x128xf32> -> vector<16x128xf32>
    %144 = arith.addf %138, %143 : vector<16x128xf32>
    %c0_156 = arith.constant 0 : index
    %c0_157 = arith.constant 0 : index
    %145 = vector.load %arg9[%c0_156, %c0_157] : memref<1x128xf32, #tpu.memory_space<vmem>>, vector<1x128xf32>
    %146 = vector.broadcast %145 : vector<1x128xf32> to vector<16x128xf32>
    %147 = arith.mulf %144, %146 : vector<16x128xf32>
    %c0_158 = arith.constant 0 : index
    %c0_159 = arith.constant 0 : index
    %148 = vector.load %arg10[%c0_158, %c0_159] : memref<1x128xf32, #tpu.memory_space<vmem>>, vector<1x128xf32>
    %149 = vector.broadcast %148 : vector<1x128xf32> to vector<16x128xf32>
    %150 = arith.addf %147, %149 : vector<16x128xf32>
    %cst_160 = arith.constant 1.000000e-01 : f32
    %151 = vector.broadcast %cst_160 : f32 to vector<16x128xf32>
    %152 = arith.mulf %151, %150 : vector<16x128xf32>
    %153 = arith.maximumf %150, %152 : vector<16x128xf32>
    %154 = arith.addf %72, %153 : vector<16x128xf32>
    %155 = arith.truncf %154 : vector<16x128xf32> to vector<16x128xbf16>
    %c0_161 = arith.constant 0 : index
    %c0_162 = arith.constant 0 : index
    %156 = vector.load %arg11[%c0_161, %c0_162] : memref<128x24xbf16, #tpu.memory_space<vmem>>, vector<128x24xbf16>
    %cst_163 = arith.constant dense<0.000000e+00> : vector<16x24xf32>
    %157 = tpu.matmul %155, %156, %cst_163 {dimension_numbers = #tpu.dot_dimension_numbers<[1], [0], [0], [1], [0, 0, 1, 1], [], []>} : vector<16x128xbf16>, vector<128x24xbf16>, vector<16x24xf32> -> vector<16x24xf32>
    %c0_164 = arith.constant 0 : index
    %c0_165 = arith.constant 0 : index
    %158 = vector.load %arg12[%c0_164, %c0_165] : memref<1x24xf32, #tpu.memory_space<vmem>>, vector<1x24xf32>
    %159 = vector.broadcast %158 : vector<1x24xf32> to vector<16x24xf32>
    %160 = arith.addf %157, %159 : vector<16x24xf32>
    %161 = vector.shape_cast %160 : vector<16x24xf32> to vector<4x4x24xf32>
    %c0_166 = arith.constant 0 : index
    %c0_167 = arith.constant 0 : index
    %c0_168 = arith.constant 0 : index
    %c0_169 = arith.constant 0 : index
    %162 = vector.load %arg13[%c0_166, %c0_167, %c0_168, %c0_169] : memref<1x4x4x24xf32, #tpu.memory_space<vmem>>, vector<1x4x4x24xf32>
    %163 = vector.shape_cast %162 : vector<1x4x4x24xf32> to vector<4x4x24xf32>
    %164 = vector.shape_cast %161 : vector<4x4x24xf32> to vector<1x4x4x24xf32>
    tpu.vector_store %arg13[%c0_166, %c0_167, %c0_168, %c0_169], %164 {strides = array<i32>} : memref<1x4x4x24xf32, #tpu.memory_space<vmem>>, vector<1x4x4x24xf32>,
    return
  }
  func.func @transform_0(%arg0: i32) -> (i32, i32, i32, i32, i32) {
    %c0_i32 = arith.constant 0 : i32
    %c0_i32_0 = arith.constant 0 : i32
    %c0_i32_1 = arith.constant 0 : i32
    %c0_i32_2 = arith.constant 0 : i32
    %c0_i32_3 = arith.constant 0 : i32
    return %arg0, %c0_i32, %c0_i32_0, %c0_i32_1, %c0_i32_2 : i32, i32, i32, i32, i32
  }
  func.func @transform_1(%arg0: i32) -> (i32, i32, i32) {
    %c0_i32 = arith.constant 0 : i32
    %c0_i32_0 = arith.constant 0 : i32
    %c0_i32_1 = arith.constant 0 : i32
    %c0_i32_2 = arith.constant 0 : i32
    return %c0_i32, %c0_i32_0, %c0_i32_1 : i32, i32, i32
  }
  func.func @transform_2(%arg0: i32) -> (i32, i32) {
    %c0_i32 = arith.constant 0 : i32
    %c0_i32_0 = arith.constant 0 : i32
    %c0_i32_1 = arith.constant 0 : i32
    return %c0_i32, %c0_i32_0 : i32, i32
  }
  func.func @transform_3(%arg0: i32) -> (i32, i32) {
    %c0_i32 = arith.constant 0 : i32
    %c0_i32_0 = arith.constant 0 : i32
    %c0_i32_1 = arith.constant 0 : i32
    return %c0_i32, %c0_i32_0 : i32, i32
  }
  func.func @transform_4(%arg0: i32) -> (i32, i32) {
    %c0_i32 = arith.constant 0 : i32
    %c0_i32_0 = arith.constant 0 : i32
    %c0_i32_1 = arith.constant 0 : i32
    return %c0_i32, %c0_i32_0 : i32, i32
  }
  func.func @transform_5(%arg0: i32) -> (i32, i32) {
    %c0_i32 = arith.constant 0 : i32
    %c0_i32_0 = arith.constant 0 : i32
    %c0_i32_1 = arith.constant 0 : i32
    return %c0_i32, %c0_i32_0 : i32, i32
  }
  func.func @transform_6(%arg0: i32) -> (i32, i32) {
    %c0_i32 = arith.constant 0 : i32
    %c0_i32_0 = arith.constant 0 : i32
    %c0_i32_1 = arith.constant 0 : i32
    return %c0_i32, %c0_i32_0 : i32, i32
  }
  func.func @transform_7(%arg0: i32) -> (i32, i32, i32) {
    %c0_i32 = arith.constant 0 : i32
    %c0_i32_0 = arith.constant 0 : i32
    %c0_i32_1 = arith.constant 0 : i32
    %c0_i32_2 = arith.constant 0 : i32
    return %c0_i32, %c0_i32_0, %c0_i32_1 : i32, i32, i32
  }
  func.func @transform_8(%arg0: i32) -> (i32, i32) {
    %c0_i32 = arith.constant 0 : i32
    %c0_i32_0 = arith.constant 0 : i32
    %c0_i32_1 = arith.constant 0 : i32
    return %c0_i32, %c0_i32_0 : i32, i32
  }
  func.func @transform_9(%arg0: i32) -> (i32, i32) {
    %c0_i32 = arith.constant 0 : i32
    %c0_i32_0 = arith.constant 0 : i32
    %c0_i32_1 = arith.constant 0 : i32
    return %c0_i32, %c0_i32_0 : i32, i32
  }
  func.func @transform_10(%arg0: i32) -> (i32, i32) {
    %c0_i32 = arith.constant 0 : i32
    %c0_i32_0 = arith.constant 0 : i32
    %c0_i32_1 = arith.constant 0 : i32
    return %c0_i32, %c0_i32_0 : i32, i32
  }
  func.func @transform_11(%arg0: i32) -> (i32, i32) {
    %c0_i32 = arith.constant 0 : i32
    %c0_i32_0 = arith.constant 0 : i32
    %c0_i32_1 = arith.constant 0 : i32
    return %c0_i32, %c0_i32_0 : i32, i32
  }
  func.func @transform_12(%arg0: i32) -> (i32, i32, i32, i32) {
    %c0_i32 = arith.constant 0 : i32
    %c0_i32_0 = arith.constant 0 : i32
    %c0_i32_1 = arith.constant 0 : i32
    %c0_i32_2 = arith.constant 0 : i32
    return %arg0, %c0_i32, %c0_i32_0, %c0_i32_1 : i32, i32, i32, i32
  }
}

</mosaic_0001>

<bundles_post_ra>
// kernel: yolov4_forward.4
= control target key start
LH: loop header
LB: loop body
LE: loop exit
PB: predicated region body
PF: predicated region fallthrough
CT: control target
= control target key end

     0   :  { %s1896_s15 = smov 0   ;;  %s2270_s0 = inlined_call_operand.vmem [shape: bf16[2,9,4,9,32], index: 0, kind: input, shape index: {}]   ;;  %s2271_s1 = inlined_call_operand.vmem [shape: bf16[9,32,64], index: 1, kind: input, shape index: {}]   ;;  %s2272_s2 = inlined_call_operand.vmem [shape: f32[1,64], index: 2, kind: input, shape index: {}]   ;;  %s2273_s3 = inlined_call_operand.vmem [shape: f32[1,64], index: 3, kind: input, shape index: {}]   ;;  %s2274_s4 = inlined_call_operand.vmem [shape: bf16[2,8,8,64], index: 4, kind: output, shape index: {}]  }
   0x1 LB: > { %s1485_s16 = sadd.s32 4294967295, %s1869_s15   ;;  %p1489_p0 = scmp.ge.s32.totalorder %s1869_s15, 1  ;;  %s1869_s15 = sphi %s1896_s15, %s14_s15  }
   0x2   : > { %p162_p1 = scmp.lt.s32.totalorder %s1869_s15, 3 }
   0x4   : > { %p163_p2 = pnand %p1489_p0, %p162_p1 }
   0x5   : > { %p188_p3 = scmp.lt.s32.totalorder (!%p163_p2), %s1485_s16, 1 }
   0x6   : > { %166 = sbr.rel (%p163_p2) target bundleno = 307 (0x133), region = 36 }
   0xb   : > { %v1815_v0 = vld [vmem:[%s2271_s1 + $0x18] sm:$0xff]  ;;  %v1814_v1 = vld [vmem:[%s2271_s1 + $0x10] sm:$0xff]  ;;  %s2278_s16 = smov (!%p188_p3, %s1485_s16), 1  ;;  %v1817_v2 = vld [vmem:[%s2271_s1 + $0x28] sm:$0xff]  ;;  %vm257_vm0 = vcmask 261120   ;;  %vm1421_vm4 = vcmask 519168  }
   0xc   : > { %1846 = vmatpush.bf16.msra.mxu1 %v1815_v0  ;;  %1847 = vmatpush.bf16.msra.mxu2 %v1815_v0  ;;  %s1852_s21 = smul.u32 288, %s2278_s16  ;;  %v1823_v3 = vld [vmem:[%s2271_s1 + $0x38] sm:$0xff]  ;;  %v1809_v4 = vld [vmem:[%s2271_s1 + $0x8] sm:$0xff]  ;;  %v1816_v6 = vld [vmem:[%s2271_s1 + $0x20] sm:$0xff]  ;;  %vm388_vm1 = vsmask.f32 3328 }
   0xd   : > { %1848 = vmatpush.bf16.msra.mxu3 %v1815_v0  ;;  %276 = vmatpush.bf16.msra.mxu0 %v1815_v0  ;;  %v1829_v5 = vld [vmem:[%s2271_s1 + $0x48] sm:$0xff]  ;;  %v1822_v10 = vld [vmem:[%s2271_s1 + $0x30] sm:$0xff]  ;;  %v1808_v11 = vld [vmem:[%s2271_s1] sm:$0xff]  ;;  %vm389_vm2 = vsmask.f32 7440  ;;  %s1803_s11 = sshll.u32 %s2278_s16, 5 }
   0xe   : > { %s1928_s6 = scalar_lea.vmem %s2270_s0, %s1852_s21  ;;  %v1828_v16 = vld [vmem:[%s2271_s1 + $0x40] sm:$0xff]  ;;  %v1837_v17 = vld [vmem:[%s2271_s1 + $0x68] sm:$0xff]  ;;  %v1843_v22 = vld [vmem:[%s2271_s1 + $0x78] sm:$0xff]  ;;  %s2213_s14 = scalar_lea.vmem %s2274_s4, %s1803_s11 }
   0xf   : > { %v1511_v7 = vld [vmem:[%s1928_s6 + $0x48] sm:$0xf]  ;;  %v372_v24 = vld [vmem:[%s1928_s6] sm:$0xf]  ;;  %v373_v25 = vld [vmem:[%s1928_s6 + $0x4] sm:$0x1] }
  0x10   : > { %1849 = vmatpush.bf16.msra.mxu1 %v1814_v1  ;;  %1850 = vmatpush.bf16.msra.mxu2 %v1814_v1  ;;  %v1811_v8 = vld [vmem:[%s1928_s6 + $0x64] sm:$0xf0]  ;;  %v1831_v26 = vld [vmem:[%s2271_s1 + $0x58] sm:$0xff]  ;;  %v374_v27 = vld [vmem:[%s1928_s6 + $0x20] sm:$0xf]  ;;  %v392_v29 = vshrl.u32 %v372_v24, 16 }
  0x11   : > { %1851 = vmatpush.bf16.msra.mxu3 %v1814_v1  ;;  %277 = vmatpush.bf16.msra.mxu0 %v1814_v1  ;;  %v1515_v9 = vld [vmem:[%s1928_s6 + $0x88] sm:$0xf]  ;;  %v1512_v12 = vor.u32 %v1811_v8, %v1511_v7  ;;  %v375_v28 = vld [vmem:[%s1928_s6 + $0x24] sm:$0x1]  ;;  %v395_v30 = vshll.u32 %v372_v24, 16  ;;  %v401_v31 = vshll.u32 %v373_v25, 16  ;;  %vm1971_vm3 = vmor %vm388_vm1, %vm389_vm2 }
  0x12   : > { %v1812_v13 = vld [vmem:[%s1928_s6 + $0xa4] sm:$0xf0]  ;;  %v406_v32 = vshrl.u32 %v374_v27, 16  ;;  %v409_v33 = vshll.u32 %v374_v27, 16  ;;  %v415_v34 = vshll.u32 %v375_v28, 16  ;;  %v394_v36 = vrot.slane %v392_v29, 4 }
  0x13   : > { %v1519_v14 = vld [vmem:[%s1928_s6 + $0xc8] sm:$0xf]  ;;  %v1516_v18 = vor.u32 %v1812_v13, %v1515_v9  ;;  %1530 = vmatmul.msk.bf16.vlgmr.msra.gmra.mxu1 %vm257_vm0, %v1512_v12  ;;  %v397_v37 = vrot.slane %v395_v30, 5  ;;  %v403_v41 = vrot.slane %v401_v31, 5  ;;  %v376_v42 = vld [vmem:[%s1928_s6 + $0x40] sm:$0xf] }
  0x14   : > { %v1813_v15 = vld [vmem:[%s1928_s6 + $0xe4] sm:$0xf0]  ;;  %550 = vmatpush.bf16.msrb.mxu2 %v1817_v2  ;;  %349 = vmatpush.bf16.msrb.mxu1 %v1809_v4  ;;  %v408_v38 = vrot.slane %v406_v32, 4  ;;  %v411_v39 = vrot.slane %v409_v33, 5  ;;  %v417_v45 = vrot.slane %v415_v34, 5  ;;  %v420_v48 = vshrl.u32 %v376_v42, 16 }
  0x15   : > { %645 = vmatpush.bf16.msrb.mxu3 %v1823_v3  ;;  %v1520_v19 = vor.u32 %v1813_v15, %v1519_v14  ;;  %v1507_v20 = vld [vmem:[%s1928_s6 + $0x8] sm:$0xf]  ;;  %740 = vmatpush.bf16.msrb.mxu0 %v1829_v5  ;;  %v398_v40 = vor.u32 %v397_v37, %v394_v36  ;;  %v378_v46 = vld [vmem:[%s1928_s6 + $0x60] sm:$0xf]  ;;  %v423_v49 = vshll.u32 %v376_v42, 16 }
  0x16   : > { %v1810_v21 = vld [vmem:[%s1928_s6 + $0x24] sm:$0xf0]  ;;  %1531 = vmatmul.msk.bf16.vlgmr.msra.gmra.mxu2 %vm257_vm0, %v1516_v18  ;;  %v412_v44 = vor.u32 %v411_v39, %v408_v38  ;;  %v1535_v50 = vld [vmem:[%s1928_s6] sm:$0xf]  ;;  %v434_v52 = vshrl.u32 %v378_v46, 16  ;;  %v437_v53 = vshll.u32 %v378_v46, 16 }
  0x17   : > { %v1508_v23 = vor.u32 %v1810_v21, %v1507_v20  ;;  %1532 = vmatmul.msk.bf16.vlgmr.msra.gmra.mxu3 %vm257_vm0, %v1520_v19  ;;  %v1845_v35 = vld [vmem:[%s2271_s1 + $0x88] sm:$0xff]  ;;  %v399_v47 = vrot.slane %v398_v40, 4  ;;  %v1804_v54 = vld [vmem:[%s1928_s6 + $0x1c] sm:$0xf0]  ;;  %v1591_v56 = vld [vmem:[%s1928_s6 + $0x10] sm:$0xf] }
  0x18   : > { %551 = vmatpush.bf16.msrb.mxu2 %v1816_v6  ;;  %350 = vmatpush.bf16.msrb.mxu1 %v1808_v11  ;;  %v413_v51 = vrot.slane %v412_v44, 4  ;;  %v422_v57 = vrot.slane %v420_v48, 4  ;;  %v425_v58 = vrot.slane %v423_v49, 5  ;;  %v1818_v61 = vld [vmem:[%s1928_s6 + $0x2c] sm:$0xf0]  ;;  %v436_v63 = vrot.slane %v434_v52, 4 }
  0x19   : > { %1529 = vmatmul.msk.bf16.vlgmr.msra.gmra.mxu0 %vm257_vm0, %v1508_v23  ;;  %646 = vmatpush.bf16.msrb.mxu3 %v1822_v10  ;;  %v404_v55 = vsel %vm1971_vm3, %v399_v47, %v403_v41  ;;  %v377_v62 = vld [vmem:[%s1928_s6 + $0x44] sm:$0x1]  ;;  %v439_v0 = vrot.slane %v437_v53, 5  ;;  %v1631_v2 = vld [vmem:[%s1928_s6 + $0x18] sm:$0xf]  ;;  %v1536_v5 = vor.u32 %v1804_v54, %v1535_v50  ;;  %v1592_v7 = vor.u32 %v1818_v61, %v1591_v56  ;;  %v1842_v19 = vld [vmem:[%s2271_s1 + $0x70] sm:$0xff] }
  0x1a   : > { %741 = vmatpush.bf16.msrb.mxu0 %v1828_v16  ;;  %v418_v59 = vsel %vm1971_vm3, %v413_v51, %v417_v45  ;;  %v508_v60 = vunpack.c.l.b16 %v404_v55  ;;  %v1824_v3 = vld [vmem:[%s1928_s6 + $0x34] sm:$0xf0]  ;;  %v379_v4 = vld [vmem:[%s1928_s6 + $0x64] sm:$0x1]  ;;  %v429_v8 = vshll.u32 %v377_v62, 16  ;;  %v426_v10 = vor.u32 %v425_v58, %v422_v57  ;;  %v1830_v20 = vld [vmem:[%s2271_s1 + $0x50] sm:$0xff] }
  0x1b   : > { %v509_v1 = vunpack.c.l.b16 %v418_v59  ;;  %v1632_v9 = vor.u32 %v1824_v3, %v1631_v2  ;;  %v440_v11 = vor.u32 %v439_v0, %v436_v63  ;;  %v443_v12 = vshll.u32 %v379_v4, 16  ;;  %v380_v14 = vld [vmem:[%s1928_s6 + $0x80] sm:$0xf]  ;;  %v1595_v33 = vld [vmem:[%s1928_s6 + $0x50] sm:$0xf] }
  0x1c   : > { %1041 = vmatpush.bf16.msra.mxu2 %v1837_v17  ;;  %946 = vmatpush.bf16.msra.mxu1 %v1831_v26  ;;  %v431_v13 = vrot.slane %v429_v8, 5  ;;  %v1836_v15 = vld [vmem:[%s2271_s1 + $0x60] sm:$0xff]  ;;  %v427_v16 = vrot.slane %v426_v10, 4  ;;  %v448_v23 = vshrl.u32 %v380_v14, 16  ;;  %v451_v24 = vshll.u32 %v380_v14, 16 }
  0x1d   : > { %1136 = vmatpush.bf16.msra.mxu3 %v1843_v22  ;;  %v516_v6 = vpack.c.b16 %v509_v1, %v508_v60  ;;  %v441_v17 = vrot.slane %v440_v11, 4  ;;  %v445_v18 = vrot.slane %v443_v12, 5  ;;  %v1844_v21 = vld [vmem:[%s2271_s1 + $0x80] sm:$0xff]  ;;  %v1819_v34 = vld [vmem:[%s1928_s6 + $0x6c] sm:$0xf0] }
  0x1e   : > { %1342 = vmatpush.bf16.msra.mxu0 %v1845_v35  ;;  %v382_v22 = vld [vmem:[%s1928_s6 + $0xa0] sm:$0xf]  ;;  %v432_v25 = vsel %vm1971_vm3, %v427_v16, %v431_v13  ;;  %v1635_v35 = vld [vmem:[%s1928_s6 + $0x58] sm:$0xf]  ;;  %v450_v37 = vrot.slane %v448_v23, 4  ;;  %v453_v38 = vrot.slane %v451_v24, 5  ;;  %v1596_v46 = vor.u32 %v1819_v34, %v1595_v33 }
  0x1f   : > { %v446_v26 = vsel %vm1971_vm3, %v441_v17, %v445_v18  ;;  %v462_v27 = vshrl.u32 %v382_v22, 16  ;;  %v465_v28 = vshll.u32 %v382_v22, 16  ;;  %v1539_v29 = vld [vmem:[%s1928_s6 + $0x40] sm:$0xf]  ;;  %v510_v31 = vunpack.c.l.b16 %v432_v25  ;;  %v1825_v36 = vld [vmem:[%s1928_s6 + $0x74] sm:$0xf0] }
  0x20   : > { %1042 = vmatpush.bf16.msra.mxu2 %v1836_v15  ;;  %947 = vmatpush.bf16.msra.mxu1 %v1830_v20  ;;  %v1805_v30 = vld [vmem:[%s1928_s6 + $0x5c] sm:$0xf0]  ;;  %v511_v32 = vunpack.c.l.b16 %v446_v26  ;;  %v381_v41 = vld [vmem:[%s1928_s6 + $0x84] sm:$0x1]  ;;  %v1636_v47 = vor.u32 %v1825_v36, %v1635_v35  ;;  %v454_v48 = vor.u32 %v453_v38, %v450_v37  ;;  %v1599_v10 = vld [vmem:[%s1928_s6 + $0x90] sm:$0xf] }
  0x21   : > { %1137 = vmatpush.bf16.msra.mxu3 %v1842_v19  ;;  %v464_v39 = vrot.slane %v462_v27, 4  ;;  %v467_v40 = vrot.slane %v465_v28, 5  ;;  %v383_v42 = vld [vmem:[%s1928_s6 + $0xa4] sm:$0x1]  ;;  %v1540_v44 = vor.u32 %v1805_v30, %v1539_v29  ;;  %v457_v49 = vshll.u32 %v381_v41, 16 }
  0x22   : > { %1343 = vmatpush.bf16.msra.mxu0 %v1844_v21  ;;  %v517_v45 = vpack.c.b16 %v511_v32, %v510_v31  ;;  %v471_v51 = vshll.u32 %v383_v42, 16  ;;  %v384_v52 = vld [vmem:[%s1928_s6 + $0xc0] sm:$0xf]  ;;  %v455_v54 = vrot.slane %v454_v48, 4  ;;  %v385_v4 = vld [vmem:[%s1928_s6 + $0xc4] sm:$0x1] }
  0x23   : > { %1557 = vmatmul.msk.bf16.vlgmr.msrb.gmra.mxu1 %vm257_vm0, %v1536_v5  ;;  %v468_v50 = vor.u32 %v467_v40, %v464_v39  ;;  %v386_v53 = vld [vmem:[%s1928_s6 + $0xe0] sm:$0xf]  ;;  %v459_v55 = vrot.slane %v457_v49, 5  ;;  %v476_v58 = vshrl.u32 %v384_v52, 16  ;;  %v479_v59 = vshll.u32 %v384_v52, 16 }
  0x24   : > { %v473_v57 = vrot.slane %v471_v51, 5  ;;  %v490_v60 = vshrl.u32 %v386_v53, 16  ;;  %v493_v61 = vshll.u32 %v386_v53, 16  ;;  %v387_v5 = vld [vmem:[%s1928_s6 + $0xe4] sm:$0x1]  ;;  %v485_v15 = vshll.u32 %v385_v4, 16 }
  0x25   : > { %v469_v56 = vrot.slane %v468_v50, 4  ;;  %v460_v62 = vsel %vm1971_vm3, %v455_v54, %v459_v55  ;;  %v478_v0 = vrot.slane %v476_v58, 4  ;;  %v481_v1 = vrot.slane %v479_v59, 5  ;;  %v1820_v11 = vld [vmem:[%s1928_s6 + $0xac] sm:$0xf0] }
  0x26   : > { %1573 = vmatmul.msk.bf16.vlgmr.msrb.gmra.mxu2 %vm257_vm0, %v516_v6  ;;  %v492_v2 = vrot.slane %v490_v60, 4  ;;  %v495_v3 = vrot.slane %v493_v61, 5  ;;  %v1543_v6 = vld [vmem:[%s1928_s6 + $0x80] sm:$0xf]  ;;  %v512_v8 = vunpack.c.l.b16 %v460_v62  ;;  %v1639_v12 = vld [vmem:[%s1928_s6 + $0x98] sm:$0xf]  ;;  %v1600_v20 = vor.u32 %v1820_v11, %v1599_v10 }
  0x27   : > { %1613 = vmatmul.msk.bf16.vlgmr.msrb.gmra.mxu3 %vm257_vm0, %v1592_v7  ;;  %v474_v63 = vsel %vm1971_vm3, %v469_v56, %v473_v57  ;;  %v1806_v7 = vld [vmem:[%s1928_s6 + $0x9c] sm:$0xf0]  ;;  %v1826_v13 = vld [vmem:[%s1928_s6 + $0xb4] sm:$0xf0]  ;;  %v482_v14 = vor.u32 %v481_v1, %v478_v0  ;;  %v499_v17 = vshll.u32 %v387_v5, 16  ;;  %v487_v23 = vrot.slane %v485_v15, 5 }
  0x28   : > { %v496_v16 = vor.u32 %v495_v3, %v492_v2  ;;  %v1544_v18 = vor.u32 %v1806_v7, %v1543_v6  ;;  %v1640_v21 = vor.u32 %v1826_v13, %v1639_v12  ;;  %v1657_v26 = vld [vmem:[%s1928_s6 + $0x10] sm:$0xf]  ;;  %v1769_v28 = vld [vmem:[%s1928_s6 + $0x20] sm:$0xf]  ;;  %v1660_v52 = vld [vmem:[%s1928_s6 + $0x34] sm:$0x1] }
  0x29   : > { %1653 = vmatmul.msk.bf16.vlgmr.msrb.gmra.mxu0 %vm257_vm0, %v1632_v9  ;;  %v513_v9 = vunpack.c.l.b16 %v474_v63  ;;  %v483_v22 = vrot.slane %v482_v14, 4  ;;  %v501_v25 = vrot.slane %v499_v17, 5  ;;  %v1659_v27 = vld [vmem:[%s1928_s6 + $0x30] sm:$0xf]  ;;  %v1771_v29 = vld [vmem:[%s1928_s6 + $0x40] sm:$0xf] }
  0x2a   : > { %v497_v24 = vrot.slane %v496_v16, 4  ;;  %v788_v32 = vshrl.u32 %v1657_v26, 16  ;;  %v791_v33 = vshll.u32 %v1657_v26, 16  ;;  %v802_v34 = vshrl.u32 %v1659_v27, 16  ;;  %v1547_v40 = vld [vmem:[%s1928_s6 + $0xc0] sm:$0xf] }
  0x2b   : > { %v518_v19 = vpack.c.b16 %v513_v9, %v512_v8  ;;  %v488_v30 = vsel %vm1971_vm3, %v483_v22, %v487_v23  ;;  %v805_v35 = vshll.u32 %v1659_v27, 16  ;;  %v1184_v36 = vshrl.u32 %v1769_v28, 16  ;;  %v1807_v41 = vld [vmem:[%s1928_s6 + $0xdc] sm:$0xf0]  ;;  %v1770_v57 = vld [vmem:[%s1928_s6 + $0x24] sm:$0x1] }
  0x2c   : > { %v502_v31 = vsel %vm1971_vm3, %v497_v24, %v501_v25  ;;  %v1187_v37 = vshll.u32 %v1769_v28, 16  ;;  %v1198_v38 = vshrl.u32 %v1771_v29, 16  ;;  %v1201_v39 = vshll.u32 %v1771_v29, 16  ;;  %v1772_v58 = vld [vmem:[%s1928_s6 + $0x44] sm:$0x1] }
  0x2d   : > { %v514_v42 = vunpack.c.l.b16 %v488_v30  ;;  %v790_v48 = vrot.slane %v788_v32, 4  ;;  %v793_v49 = vrot.slane %v791_v33, 5  ;;  %v804_v50 = vrot.slane %v802_v34, 4  ;;  %v1643_v62 = vld [vmem:[%s1928_s6 + $0xd8] sm:$0xf] }
  0x2e   : > { %v807_v51 = vrot.slane %v805_v35, 5  ;;  %v1186_v53 = vrot.slane %v1184_v36, 4  ;;  %v1189_v54 = vrot.slane %v1187_v37, 5  ;;  %v1200_v55 = vrot.slane %v1198_v38, 4  ;;  %v1827_v63 = vld [vmem:[%s1928_s6 + $0xf4] sm:$0xf0] }
  0x2f   : > { %v1203_v56 = vrot.slane %v1201_v39, 5  ;;  %v1548_v59 = vor.u32 %v1807_v41, %v1547_v40  ;;  %v794_v0 = vor.u32 %v793_v49, %v790_v48  ;;  %v811_v3 = vshll.u32 %v1660_v52, 16  ;;  %v1661_v9 = vld [vmem:[%s1928_s6 + $0x50] sm:$0xf]  ;;  %v1773_v23 = vld [vmem:[%s1928_s6 + $0x60] sm:$0xf] }
  0x30   : > { %v808_v2 = vor.u32 %v807_v51, %v804_v50  ;;  %v1190_v4 = vor.u32 %v1189_v54, %v1186_v53  ;;  %v1193_v5 = vshll.u32 %v1770_v57, 16  ;;  %v1207_v7 = vshll.u32 %v1772_v58, 16  ;;  %v1663_v10 = vld [vmem:[%s1928_s6 + $0x70] sm:$0xf]  ;;  %v1775_v24 = vld [vmem:[%s1928_s6 + $0x80] sm:$0xf] }
  0x31   : > { %v1204_v6 = vor.u32 %v1203_v56, %v1200_v55  ;;  %v1644_v8 = vor.u32 %v1827_v63, %v1643_v62  ;;  %v795_v11 = vrot.slane %v794_v0, 4  ;;  %v813_v14 = vrot.slane %v811_v3, 5  ;;  %v1662_v29 = vld [vmem:[%s1928_s6 + $0x54] sm:$0x1]  ;;  %v1703_v41 = vld [vmem:[%s1928_s6 + $0x20] sm:$0xf] }
  0x32   : > { %v809_v13 = vrot.slane %v808_v2, 4  ;;  %v1191_v15 = vrot.slane %v1190_v4, 4  ;;  %v1195_v16 = vrot.slane %v1193_v5, 5  ;;  %v833_v22 = vshll.u32 %v1663_v10, 16  ;;  %v1664_v34 = vld [vmem:[%s1928_s6 + $0x74] sm:$0x1] }
  0x33   : > { %1558 = vmatmul.msk.bf16.gmra.mxu1 %vm257_vm0, %v1540_v44  ;;  %v515_v44 = vunpack.c.l.b16 %v502_v31  ;;  %v1205_v17 = vrot.slane %v1204_v6, 4  ;;  %v1212_v35 = vshrl.u32 %v1773_v23, 16  ;;  %v1215_v36 = vshll.u32 %v1773_v23, 16  ;;  %v1774_v57 = vld [vmem:[%s1928_s6 + $0x64] sm:$0x1] }
  0x34   : > { %v814_v26 = vsel %vm1971_vm3, %v809_v13, %v813_v14  ;;  %v1196_v27 = vsel %vm1971_vm3, %v1191_v15, %v1195_v16  ;;  %v835_v33 = vrot.slane %v833_v22, 5  ;;  %v1226_v37 = vshrl.u32 %v1775_v24, 16  ;;  %v1776_v58 = vld [vmem:[%s1928_s6 + $0x84] sm:$0x1]  ;;  %v1665_v6 = vld [vmem:[%s1928_s6 + $0x90] sm:$0xf] }
  0x35   : > { %v519_v60 = vpack.c.b16 %v515_v44, %v514_v42  ;;  %v1229_v38 = vshll.u32 %v1775_v24, 16  ;;  %v905_v40 = vunpack.c.l.b16 %v814_v26  ;;  %v1832_v42 = vld [vmem:[%s1928_s6 + $0x3c] sm:$0xf0]  ;;  %v1300_v44 = vunpack.c.l.b16 %v1196_v27 }
  0x36   : > { %1574 = vmatmul.msk.bf16.gmra.mxu2 %vm257_vm0, %v517_v45  ;;  %v1603_v45 = vld [vmem:[%s1928_s6 + $0xd0] sm:$0xf]  ;;  %v825_v49 = vshll.u32 %v1662_v29, 16  ;;  %v839_v51 = vshll.u32 %v1664_v34, 16  ;;  %v1214_v52 = vrot.slane %v1212_v35, 4  ;;  %v1217_v53 = vrot.slane %v1215_v36, 5 }
  0x37   : > { %1614 = vmatmul.msk.bf16.gmra.mxu3 %vm257_vm0, %v1596_v46  ;;  %v1821_v46 = vld [vmem:[%s1928_s6 + $0xec] sm:$0xf0]  ;;  %v1228_v54 = vrot.slane %v1226_v37, 4  ;;  %v1231_v55 = vrot.slane %v1229_v38, 5  ;;  %v1221_v3 = vshll.u32 %v1774_v57, 16  ;;  %v1235_v5 = vshll.u32 %v1776_v58, 16 }
  0x38   : > { %v1604_v61 = vor.u32 %v1821_v46, %v1603_v45  ;;  %v1743_v46 = vld [vmem:[%s1928_s6 + $0x28] sm:$0xf]  ;;  %v827_v63 = vrot.slane %v825_v49, 5  ;;  %v1218_v2 = vor.u32 %v1217_v53, %v1214_v52  ;;  %v1779_v15 = vld [vmem:[%s1928_s6 + $0xc0] sm:$0xf]  ;;  %v844_v16 = vshrl.u32 %v1665_v6, 16 }
  0x39   : > { %1654 = vmatmul.msk.bf16.gmra.mxu0 %vm257_vm0, %v1636_v47  ;;  %v1658_v47 = vld [vmem:[%s1928_s6 + $0x14] sm:$0x1]  ;;  %v1232_v4 = vor.u32 %v1231_v55, %v1228_v54  ;;  %v1237_v14 = vrot.slane %v1235_v5, 5  ;;  %v1254_v22 = vshrl.u32 %v1779_v15, 16  ;;  %v1257_v23 = vshll.u32 %v1779_v15, 16 }
  0x3a   : > { %v797_v1 = vshll.u32 %v1658_v47, 16  ;;  %v1838_v47 = vld [vmem:[%s1928_s6 + $0x44] sm:$0xf0]  ;;  %v1833_v29 = vld [vmem:[%s1928_s6 + $0x7c] sm:$0xf0] }
  0x3b   : > { %v1233_v13 = vrot.slane %v1232_v4, 4  ;;  %v1666_v35 = vld [vmem:[%s1928_s6 + $0x94] sm:$0x1]  ;;  %v1671_v4 = vld [vmem:[%s1928_s6 + $0xf0] sm:$0xf] }
  0x3c   : > { %v799_v12 = vrot.slane %v797_v1, 5  ;;  %v841_v1 = vrot.slane %v839_v51, 5  ;;  %v1668_v36 = vld [vmem:[%s1928_s6 + $0xb4] sm:$0x1]  ;;  %v853_v49 = vshll.u32 %v1666_v35, 16 }
  0x3d   : > { %v1238_v27 = vsel %vm1971_vm3, %v1233_v13, %v1237_v14  ;;  %v867_v51 = vshll.u32 %v1668_v36, 16 }
  0x3e   : > { %v800_v25 = vsel %vm1971_vm3, %v795_v11, %v799_v12  ;;  %v1219_v11 = vrot.slane %v1218_v2, 4  ;;  %v1223_v12 = vrot.slane %v1221_v3, 5  ;;  %v1669_v3 = vld [vmem:[%s1928_s6 + $0xd0] sm:$0xf] }
  0x3f   : > { %v904_v39 = vunpack.c.l.b16 %v800_v25 }
  0x40   : > { %v1224_v26 = vsel %vm1971_vm3, %v1219_v11, %v1223_v12  ;;  %v886_v11 = vshrl.u32 %v1671_v4, 16  ;;  %v889_v12 = vshll.u32 %v1671_v4, 16  ;;  %v1755_v4 = vld [vmem:[%s1928_s6 + $0xe8] sm:$0xf] }
  0x41   : > { %v912_v56 = vpack.c.b16 %v905_v40, %v904_v39  ;;  %v1839_v39 = vld [vmem:[%s1928_s6 + $0x84] sm:$0xf0]  ;;  %v1302_v40 = vunpack.c.l.b16 %v1224_v26 }
  0x43   : > { %1559 = vmatmul.msk.bf16.gmra.mxu1 %vm257_vm0, %v1544_v18  ;;  %v1209_v18 = vrot.slane %v1207_v7, 5  ;;  %v1667_v7 = vld [vmem:[%s1928_s6 + $0xb0] sm:$0xf] }
  0x45   : > { %v1210_v28 = vsel %vm1971_vm3, %v1205_v17, %v1209_v18  ;;  %v847_v17 = vshll.u32 %v1665_v6, 16  ;;  %v858_v18 = vshrl.u32 %v1667_v7, 16 }
  0x46   : > { %1575 = vmatmul.msk.bf16.gmra.mxu2 %vm257_vm0, %v518_v19  ;;  %v816_v19 = vshrl.u32 %v1661_v9, 16  ;;  %v1301_v45 = vunpack.c.l.b16 %v1210_v28  ;;  %v1707_v28 = vld [vmem:[%s1928_s6 + $0x60] sm:$0xf] }
  0x47   : > { %1615 = vmatmul.msk.bf16.gmra.mxu3 %vm257_vm0, %v1600_v20  ;;  %v819_v20 = vshll.u32 %v1661_v9, 16  ;;  %v1708_v52 = vor.u32 %v1833_v29, %v1707_v28  ;;  %v891_v28 = vrot.slane %v889_v12, 5 }
  0x48   : > { %v818_v30 = vrot.slane %v816_v19, 4  ;;  %v861_v19 = vshll.u32 %v1667_v7, 16  ;;  %v1781_v7 = vld [vmem:[%s1928_s6 + $0xe0] sm:$0xf] }
  0x49   : > { %1655 = vmatmul.msk.bf16.gmra.mxu0 %vm257_vm0, %v1640_v21  ;;  %v830_v21 = vshrl.u32 %v1663_v10, 16  ;;  %v821_v31 = vrot.slane %v819_v20, 5  ;;  %v1777_v10 = vld [vmem:[%s1928_s6 + $0xa0] sm:$0xf]  ;;  %v1268_v15 = vshrl.u32 %v1781_v7, 16 }
  0x4a   : > { %v1240_v20 = vshrl.u32 %v1777_v10, 16  ;;  %v863_v34 = vrot.slane %v861_v19, 5 }
  0x4b   : > { %v832_v32 = vrot.slane %v830_v21, 4  ;;  %v822_v48 = vor.u32 %v821_v31, %v818_v30  ;;  %v1243_v21 = vshll.u32 %v1777_v10, 16  ;;  %v1747_v30 = vld [vmem:[%s1928_s6 + $0x68] sm:$0xf]  ;;  %v846_v31 = vrot.slane %v844_v16, 4 }
  0x4c   : > { %v1242_v37 = vrot.slane %v1240_v20, 4  ;;  %v1748_v53 = vor.u32 %v1839_v39, %v1747_v30  ;;  %v875_v10 = vshll.u32 %v1669_v3, 16  ;;  %v1271_v16 = vshll.u32 %v1781_v7, 16 }
  0x4d   : > { %v836_v50 = vor.u32 %v835_v33, %v832_v32  ;;  %v823_v62 = vrot.slane %v822_v48, 4  ;;  %v849_v32 = vrot.slane %v847_v17, 5  ;;  %v860_v33 = vrot.slane %v858_v18, 4 }
  0x4e   : > { %v1245_v38 = vrot.slane %v1243_v21, 5  ;;  %v1711_v21 = vld [vmem:[%s1928_s6 + $0xa0] sm:$0xf]  ;;  %v877_v26 = vrot.slane %v875_v10, 5 }
  0x4f   : > { %v837_v0 = vrot.slane %v836_v50, 4  ;;  %v850_v48 = vor.u32 %v849_v32, %v846_v31  ;;  %v864_v50 = vor.u32 %v863_v34, %v860_v33  ;;  %v1670_v31 = vld [vmem:[%s1928_s6 + $0xd4] sm:$0x1]  ;;  %v1270_v33 = vrot.slane %v1268_v15, 4 }
  0x50   : > { %v1246_v54 = vor.u32 %v1245_v38, %v1242_v37  ;;  %v1672_v32 = vld [vmem:[%s1928_s6 + $0xf4] sm:$0x1]  ;;  %v1273_v34 = vrot.slane %v1271_v16, 5 }
  0x51   : > { %v842_v9 = vsel %vm1971_vm3, %v837_v0, %v841_v1 }
  0x52   : > { %v907_v25 = vunpack.c.l.b16 %v842_v9  ;;  %v872_v9 = vshrl.u32 %v1669_v3, 16  ;;  %v1835_v3 = vld [vmem:[%s1928_s6 + $0xfc] sm:$0xf0] }
  0x53   : > { %1560 = vmatmul.msk.bf16.gmra.mxu1 %vm257_vm0, %v1548_v59  ;;  %v1704_v59 = vor.u32 %v1832_v42, %v1703_v41  ;;  %v1303_v41 = vunpack.c.l.b16 %v1238_v27  ;;  %v1778_v42 = vld [vmem:[%s1928_s6 + $0xa4] sm:$0x1]  ;;  %v888_v27 = vrot.slane %v886_v11, 4 }
  0x54   : > { %v1249_v55 = vshll.u32 %v1778_v42, 16 }
  0x56   : > { %1576 = vmatmul.msk.bf16.gmra.mxu2 %vm257_vm0, %v519_v60  ;;  %v1744_v60 = vor.u32 %v1838_v47, %v1743_v46  ;;  %v1780_v47 = vld [vmem:[%s1928_s6 + $0xc4] sm:$0x1]  ;;  %v1251_v0 = vrot.slane %v1249_v55, 5 }
  0x57   : > { %1616 = vmatmul.msk.bf16.gmra.mxu3 %vm257_vm0, %v1604_v61  ;;  %v1308_v61 = vpack.c.b16 %v1301_v45, %v1300_v44  ;;  %v1256_v44 = vrot.slane %v1254_v22, 4  ;;  %v1259_v45 = vrot.slane %v1257_v23, 5  ;;  %v1263_v58 = vshll.u32 %v1780_v47, 16  ;;  %v1834_v22 = vld [vmem:[%s1928_s6 + $0xbc] sm:$0xf0] }
  0x58   : > { %v1751_v23 = vld [vmem:[%s1928_s6 + $0xa8] sm:$0xf]  ;;  %v1712_v38 = vor.u32 %v1834_v22, %v1711_v21 }
  0x59   : > { %1656 = vmatmul.msk.bf16.gmra.mxu0 %vm257_vm0, %v1644_v8  ;;  %v828_v8 = vsel %vm1971_vm3, %v823_v62, %v827_v63  ;;  %v1260_v57 = vor.u32 %v1259_v45, %v1256_v44  ;;  %v869_v62 = vrot.slane %v867_v51, 5  ;;  %v1247_v63 = vrot.slane %v1246_v54, 4 }
  0x5a   : > { %v906_v24 = vunpack.c.l.b16 %v828_v8  ;;  %v1265_v2 = vrot.slane %v1263_v58, 5  ;;  %v1783_v8 = vld [vmem:[%s1928_s6 + $0x100] sm:$0xf]  ;;  %v881_v44 = vshll.u32 %v1670_v31, 16  ;;  %v892_v45 = vor.u32 %v891_v28, %v888_v27 }
  0x5b   : > { %v1261_v1 = vrot.slane %v1260_v57, 4  ;;  %v1252_v13 = vsel %vm1971_vm3, %v1247_v63, %v1251_v0  ;;  %v1282_v17 = vshrl.u32 %v1783_v8, 16  ;;  %v1285_v18 = vshll.u32 %v1783_v8, 16 }
  0x5c   : > { %v913_v46 = vpack.c.b16 %v907_v25, %v906_v24  ;;  %v1840_v24 = vld [vmem:[%s1928_s6 + $0xc4] sm:$0xf0]  ;;  %v874_v25 = vrot.slane %v872_v9, 4  ;;  %v1304_v29 = vunpack.c.l.b16 %v1252_v13  ;;  %v893_v54 = vrot.slane %v892_v45, 4 }
  0x5d   : > { %v1266_v14 = vsel %vm1971_vm3, %v1261_v1, %v1265_v2  ;;  %v1284_v35 = vrot.slane %v1282_v17, 4  ;;  %v1287_v36 = vrot.slane %v1285_v18, 5  ;;  %v1752_v39 = vor.u32 %v1840_v24, %v1751_v23  ;;  %v1715_v2 = vld [vmem:[%s1928_s6 + $0xe0] sm:$0xf] }
  0x5e   : > { %v1305_v30 = vunpack.c.l.b16 %v1266_v14  ;;  %v878_v42 = vor.u32 %v877_v26, %v874_v25  ;;  %v1716_v10 = vor.u32 %v1835_v3, %v1715_v2 }
  0x60   : > { %v1310_v47 = vpack.c.b16 %v1305_v30, %v1304_v29 }
  0x63   : > { %1685 = vmatmul.msk.bf16.vlgmr.msra.gmra.mxu1 %vm257_vm0, %v912_v56  ;;  %v1309_v56 = vpack.c.b16 %v1303_v41, %v1302_v40  ;;  %v1782_v40 = vld [vmem:[%s1928_s6 + $0xe4] sm:$0x1] }
  0x64   : > { %v1784_v41 = vld [vmem:[%s1928_s6 + $0x104] sm:$0x1] }
  0x65   : > { %v1291_v51 = vshll.u32 %v1784_v41, 16 }
  0x66   : > { %1725 = vmatmul.msk.bf16.vlgmr.msra.gmra.mxu2 %vm257_vm0, %v1704_v59  ;;  %v851_v59 = vrot.slane %v850_v48, 4  ;;  %v1274_v48 = vor.u32 %v1273_v34, %v1270_v33 }
  0x67   : > { %1765 = vmatmul.msk.bf16.vlgmr.msra.gmra.mxu3 %vm257_vm0, %v1744_v60  ;;  %v855_v60 = vrot.slane %v853_v49, 5  ;;  %v1277_v49 = vshll.u32 %v1782_v40, 16 }
  0x69   : > { %1797 = vmatmul.msk.bf16.vlgmr.msra.gmra.mxu0 %vm257_vm0, %v1308_v61  ;;  %v865_v61 = vrot.slane %v864_v50, 4  ;;  %v856_v5 = vsel %vm1971_vm3, %v851_v59, %v855_v60  ;;  %v1288_v50 = vor.u32 %v1287_v36, %v1284_v35  ;;  %v1279_v57 = vrot.slane %v1277_v49, 5 }
  0x6a   : > { %v908_v19 = vunpack.c.l.b16 %v856_v5  ;;  %v1293_v59 = vrot.slane %v1291_v51, 5  ;;  %v1841_v5 = vld [vmem:[%s1928_s6 + $0x104] sm:$0xf0] }
  0x6b   : > { %v870_v6 = vsel %vm1971_vm3, %v865_v61, %v869_v62  ;;  %v1289_v58 = vrot.slane %v1288_v50, 4  ;;  %v1756_v11 = vor.u32 %v1841_v5, %v1755_v4  ;;  %v2199_v4 = vld [vmem:[%s2272_s2] ss:$0 sm:$0xff] }
  0x6c   : > { %v909_v20 = vunpack.c.l.b16 %v870_v6 }
  0x6d   : > { %v1294_v63 = vsel %vm1971_vm3, %v1289_v58, %v1293_v59 }
  0x6e   : > { %v914_v37 = vpack.c.b16 %v909_v20, %v908_v19  ;;  %v1307_v7 = vunpack.c.l.b16 %v1294_v63 }
  0x73   : > { %1686 = vmatmul.msk.bf16.gmra.mxu1 %vm257_vm0, %v913_v46  ;;  %v895_v46 = vshll.u32 %v1672_v32, 16 }
  0x75   : > { %v897_v55 = vrot.slane %v895_v46, 5 }
  0x76   : > { %1726 = vmatmul.msk.bf16.gmra.mxu2 %vm257_vm0, %v1708_v52  ;;  %v879_v52 = vrot.slane %v878_v42, 4 }
  0x77   : > { %1766 = vmatmul.msk.bf16.gmra.mxu3 %vm257_vm0, %v1748_v53  ;;  %v883_v53 = vrot.slane %v881_v44, 5  ;;  %v898_v61 = vsel %vm1971_vm3, %v893_v54, %v897_v55 }
  0x78   : > { %v911_v1 = vunpack.c.l.b16 %v898_v61 }
  0x79   : > { %1798 = vmatmul.msk.bf16.gmra.mxu0 %vm257_vm0, %v1309_v56  ;;  %v1275_v56 = vrot.slane %v1274_v48, 4  ;;  %v884_v60 = vsel %vm1971_vm3, %v879_v52, %v883_v53 }
  0x7a   : > { %v910_v0 = vunpack.c.l.b16 %v884_v60 }
  0x7b   : > { %v1280_v62 = vsel %vm1971_vm3, %v1275_v56, %v1279_v57 }
  0x7c   : > { %v1306_v6 = vunpack.c.l.b16 %v1280_v62  ;;  %v915_v8 = vpack.c.b16 %v911_v1, %v910_v0 }
  0x7e   : > { %v1311_v12 = vpack.c.b16 %v1307_v7, %v1306_v6 }
  0x83   : > { %1687 = vmatmul.msk.bf16.gmra.mxu1 %vm257_vm0, %v914_v37 }
  0x86   : > { %1727 = vmatmul.msk.bf16.gmra.mxu2 %vm257_vm0, %v1712_v38 }
  0x87   : > { %1767 = vmatmul.msk.bf16.gmra.mxu3 %vm257_vm0, %v1752_v39 }
  0x89   : > { %1799 = vmatmul.msk.bf16.gmra.mxu0 %vm257_vm0, %v1310_v47 }
  0x90   : > { %v284_v9 = vpop.f32.mrf.mxu1 }
  0x93   : > { %1688 = vmatmul.msk.bf16.gmra.mxu1 %vm257_vm0, %v915_v8  ;;  %v2204_v8 = vld [vmem:[%s2273_s3] ss:$0 sm:$0xff] }
  0x96   : > { %v279_v13 = vpop.f32.mrf.mxu0  ;;  %1728 = vmatmul.msk.bf16.gmra.mxu2 %vm257_vm0, %v1716_v10 }
  0x97   : > { %1768 = vmatmul.msk.bf16.gmra.mxu3 %vm257_vm0, %v1756_v11 }
  0x98   : > { %v2154_v15 = vpop.f32.mrf.mxu1 }
  0x99   : > { %1800 = vmatmul.msk.bf16.gmra.mxu0 %vm257_vm0, %v1311_v12  ;;  %v2150_v43 = vpop.f32.mrf.mxu2 }
  0x9a   : > { %v2152_v14 = vpop.f32.mrf.mxu3 }
  0x9e   : > { %v281_v16 = vpop.f32.mrf.mxu0 }
  0xa0   : > { %v352_v19 = vpop.f32.mrf.mxu1 }
  0xa1   : > { %v2156_v17 = vpop.f32.mrf.mxu2  ;;  %v353_v49 = vadd.f32 %v352_v19, %v279_v13 }
  0xa2   : > { %v2158_v18 = vpop.f32.mrf.mxu3 }
  0xa6   : > { %v743_v20 = vpop.f32.mrf.mxu0 }
  0xa8   : > { %v354_v23 = vpop.f32.mrf.mxu1 }
  0xa9   : > { %v553_v21 = vpop.f32.mrf.mxu2  ;;  %v355_v56 = vadd.f32 %v354_v23, %v281_v16 }
  0xaa   : > { %v648_v22 = vpop.f32.mrf.mxu3  ;;  %v573_v51 = vadd.f32 %v553_v21, %v353_v49 }
  0xac   : > { %v668_v54 = vadd.f32 %v648_v22, %v573_v51 }
  0xae   : > { %v745_v24 = vpop.f32.mrf.mxu0  ;;  %v763_v59 = vadd.f32 %v743_v20, %v668_v54 }
  0xb0   : > { %v357_v27 = vpop.f32.mrf.mxu1 }
  0xb1   : > { %v555_v25 = vpop.f32.mrf.mxu2  ;;  %v358_v2 = vadd.f32 %v357_v27, %v284_v9 }
  0xb2   : > { %v650_v26 = vpop.f32.mrf.mxu3  ;;  %v574_v58 = vadd.f32 %v555_v25, %v355_v56 }
  0xb4   : > { %v669_v63 = vadd.f32 %v650_v26, %v574_v58 }
  0xb6   : > { %v748_v28 = vpop.f32.mrf.mxu0  ;;  %v764_v10 = vadd.f32 %v745_v24, %v669_v63 }
  0xb8   : > { %v359_v31 = vpop.f32.mrf.mxu1 }
  0xb9   : > { %v558_v29 = vpop.f32.mrf.mxu2  ;;  %v360_v22 = vadd.f32 %v359_v31, %v2154_v15 }
  0xba   : > { %v653_v30 = vpop.f32.mrf.mxu3  ;;  %v575_v6 = vadd.f32 %v558_v29, %v358_v2 }
  0xbc   : > { %v670_v16 = vadd.f32 %v653_v30, %v575_v6 }
  0xbe   : > { %v2160_v32 = vpop.f32.mrf.mxu0  ;;  %v765_v24 = vadd.f32 %v748_v28, %v670_v16 }
  0xc0   : > { %v2164_v35 = vpop.f32.mrf.mxu1 }
  0xc1   : > { %v560_v33 = vpop.f32.mrf.mxu2 }
  0xc2   : > { %v2162_v34 = vpop.f32.mrf.mxu3  ;;  %v576_v27 = vadd.f32 %v560_v33, %v360_v22 }
  0xc6   : > { %v2166_v36 = vpop.f32.mrf.mxu0 }
  0xc8   : > { %v2172_v39 = vpop.f32.mrf.mxu1 }
  0xc9   : > { %v2168_v37 = vpop.f32.mrf.mxu2 }
  0xca   : > { %v2170_v38 = vpop.f32.mrf.mxu3 }
  0xce   : > { %v2174_v40 = vpop.f32.mrf.mxu0 }
  0xd0   : > { %v2180_v44 = vpop.f32.mrf.mxu1 }
  0xd1   : > { %v2176_v41 = vpop.f32.mrf.mxu2 }
  0xd2   : > { %v2178_v42 = vpop.f32.mrf.mxu3 }
  0xd6   : > { %v2182_v45 = vpop.f32.mrf.mxu0 }
  0xd8   : > { %v2188_v48 = vpop.f32.mrf.mxu1 }
  0xd9   : > { %v2184_v46 = vpop.f32.mrf.mxu2 }
  0xda   : > { %v2186_v47 = vpop.f32.mrf.mxu3 }
  0xde   : > { %v2190_v50 = vpop.f32.mrf.mxu0 }
  0xe0   : > { %v949_v55 = vpop.f32.mrf.mxu1 }
  0xe1   : > { %v2192_v52 = vpop.f32.mrf.mxu2  ;;  %v969_v60 = vadd.f32 %v949_v55, %v763_v59  ;;  %v671_v55 = vadd.f32 %v2162_v34, %v576_v27 }
  0xe2   : > { %v2194_v53 = vpop.f32.mrf.mxu3 }
  0xe6   : > { %v1345_v57 = vpop.f32.mrf.mxu0 }
  0xe8   : > { %v951_v1 = vpop.f32.mrf.mxu1 }
  0xe9   : > { %v1044_v61 = vpop.f32.mrf.mxu2  ;;  %v970_v12 = vadd.f32 %v951_v1, %v764_v10 }
  0xea   : > { %v1139_v62 = vpop.f32.mrf.mxu3  ;;  %v1064_v0 = vadd.f32 %v1044_v61, %v969_v60 }
  0xec   : > { %v1159_v3 = vadd.f32 %v1139_v62, %v1064_v0  ;;  %v766_v0 = vadd.f32 %v2160_v32, %v671_v55 }
  0xee   : > { %v1347_v5 = vpop.f32.mrf.mxu0  ;;  %v1365_v7 = vadd.f32 %v1345_v57, %v1159_v3  ;;  %v363_v57 = vadd.f32 %v2164_v35, %v2150_v43 }
  0xf0   : > { %v1377_v11 = vmul.f32 %v2199_v4, %v1365_v7  ;;  %v954_v21 = vpop.f32.mrf.mxu1  ;;  %v577_v61 = vadd.f32 %v2168_v37, %v363_v57  ;;  %v365_v37 = vadd.f32 %v2172_v39, %v2156_v17 }
  0xf1   : > { %v1046_v9 = vpop.f32.mrf.mxu2  ;;  %v971_v54 = vadd.f32 %v954_v21, %v765_v24 }
  0xf2   : > { %v1141_v13 = vpop.f32.mrf.mxu3  ;;  %v1389_v19 = vadd.f32 %v2204_v8, %v1377_v11  ;;  %v1065_v20 = vadd.f32 %v1046_v9, %v970_v12  ;;  %v672_v6 = vadd.f32 %v2170_v38, %v577_v61  ;;  %v578_v11 = vadd.f32 %v2176_v41, %v365_v37 }
  0xf4   : > { %v1397_v23 = vmul.f32 0.1, %v1389_v19  ;;  %v1160_v25 = vadd.f32 %v1141_v13, %v1065_v20  ;;  %v767_v13 = vadd.f32 %v2166_v36, %v672_v6 }
  0xf6   : > { %v1350_v26 = vpop.f32.mrf.mxu0  ;;  %v1405_v29 = vmax.f32 %v1389_v19, %v1397_v23  ;;  %v1366_v49 = vadd.f32 %v1347_v5, %v1160_v25  ;;  %v673_v23 = vadd.f32 %v2178_v42, %v578_v11  ;;  %v368_v25 = vadd.f32 %v2180_v44, %v2152_v14 }
  0xf8   : > { %v1413_v30 = vpack.c.bf16 %v1405_v29, %v1405_v29  ;;  %v1378_v51 = vmul.f32 %v2199_v4, %v1366_v49  ;;  %v956_v56 = vpop.f32.mrf.mxu1  ;;  %v579_v27 = vadd.f32 %v2184_v46, %v368_v25  ;;  %v768_v24 = vadd.f32 %v2174_v40, %v673_v23 }
  0xf9   : > { %v1049_v15 = vpop.f32.mrf.mxu2  ;;  %v972_v2 = vadd.f32 %v956_v56, %v766_v0 }
  0xfa   : > { %v1144_v31 = vpop.f32.mrf.mxu3  ;;  %1422 = vst.msk [vmem:[%s2213_s14] sm:$0xf] %vm1421_vm4, %v1413_v30  ;;  %v1390_v33 = vadd.f32 %v2204_v8, %v1378_v51  ;;  %v1066_v28 = vadd.f32 %v1049_v15, %v971_v54  ;;  %v674_v55 = vadd.f32 %v2186_v47, %v579_v27 }
  0xfc   : > { %v1398_v58 = vmul.f32 0.1, %v1390_v33  ;;  %v1161_v59 = vadd.f32 %v1144_v31, %v1066_v28 }
  0xfe   : > { %v1352_v60 = vpop.f32.mrf.mxu0  ;;  %v1406_v62 = vmax.f32 %v1390_v33, %v1398_v58  ;;  %v1367_v63 = vadd.f32 %v1350_v26, %v1161_v59  ;;  %v370_v33 = vadd.f32 %v2188_v48, %v2158_v18  ;;  %v769_v59 = vadd.f32 %v2182_v45, %v674_v55 }
 0x100   : > { %v1414_v34 = vpack.c.bf16 %v1406_v62, %v1406_v62  ;;  %v1379_v1 = vmul.f32 %v2199_v4, %v1367_v63  ;;  %v959_v7 = vpop.f32.mrf.mxu1  ;;  %v580_v56 = vadd.f32 %v2192_v52, %v370_v33 }
 0x101   : > { %v1051_v3 = vpop.f32.mrf.mxu2  ;;  %v973_v20 = vadd.f32 %v959_v7, %v767_v13 }
 0x102   : > { %v1146_v5 = vpop.f32.mrf.mxu3  ;;  %1423 = vst.msk [vmem:[%s2213_s14 + $0x4] sm:$0xf] %vm1421_vm4, %v1414_v34  ;;  %v1391_v43 = vadd.f32 %v2204_v8, %v1379_v1  ;;  %v1067_v35 = vadd.f32 %v1051_v3, %v972_v2  ;;  %v675_v0 = vadd.f32 %v2194_v53, %v580_v56 }
 0x104   : > { %v1399_v10 = vmul.f32 0.1, %v1391_v43  ;;  %v1162_v32 = vadd.f32 %v1146_v5, %v1067_v35  ;;  %v770_v5 = vadd.f32 %v2190_v50, %v675_v0 }
 0x106   : > { %v1407_v12 = vmax.f32 %v1391_v43, %v1399_v10  ;;  %v1368_v9 = vadd.f32 %v1352_v60, %v1162_v32  ;;  %v1355_v16 = vpop.f32.mrf.mxu0 }
 0x108   : > { %v1415_v38 = vpack.c.bf16 %v1407_v12, %v1407_v12  ;;  %v1380_v19 = vmul.f32 %v2199_v4, %v1368_v9  ;;  %v961_v41 = vpop.f32.mrf.mxu1 }
 0x109   : > { %v1054_v21 = vpop.f32.mrf.mxu2  ;;  %v974_v51 = vadd.f32 %v961_v41, %v768_v24 }
 0x10a   : > { %v1149_v22 = vpop.f32.mrf.mxu3  ;;  %1424 = vst.msk [vmem:[%s2213_s14 + $0x8] sm:$0xf] %vm1421_vm4, %v1415_v38  ;;  %v1392_v17 = vadd.f32 %v2204_v8, %v1380_v19  ;;  %v1068_v39 = vadd.f32 %v1054_v21, %v973_v20 }
 0x10c   : > { %v1400_v36 = vmul.f32 0.1, %v1392_v17  ;;  %v1163_v26 = vadd.f32 %v1149_v22, %v1068_v39 }
 0x10e   : > { %v1408_v29 = vmax.f32 %v1392_v17, %v1400_v36  ;;  %v1369_v49 = vadd.f32 %v1355_v16, %v1163_v26  ;;  %v1357_v54 = vpop.f32.mrf.mxu0 }
 0x110   : > { %v1416_v30 = vpack.c.bf16 %v1408_v29, %v1408_v29  ;;  %v1381_v42 = vmul.f32 %v2199_v4, %v1369_v49  ;;  %v964_v46 = vpop.f32.mrf.mxu1 }
 0x111   : > { %v1056_v15 = vpop.f32.mrf.mxu2  ;;  %v975_v61 = vadd.f32 %v964_v46, %v769_v59 }
 0x112   : > { %v1151_v31 = vpop.f32.mrf.mxu3  ;;  %1425 = vst.msk [vmem:[%s2213_s14 + $0xc] sm:$0xf] %vm1421_vm4, %v1416_v30  ;;  %v1393_v14 = vadd.f32 %v2204_v8, %v1381_v42  ;;  %v1069_v44 = vadd.f32 %v1056_v15, %v974_v51 }
 0x114   : > { %v1401_v40 = vmul.f32 0.1, %v1393_v14  ;;  %v1164_v28 = vadd.f32 %v1151_v31, %v1069_v44 }
 0x116   : > { %v1409_v57 = vmax.f32 %v1393_v14, %v1401_v40  ;;  %v1370_v58 = vadd.f32 %v1357_v54, %v1164_v28  ;;  %v1360_v34 = vpop.f32.mrf.mxu0 }
 0x118   : > { %v1417_v60 = vpack.c.bf16 %v1409_v57, %v1409_v57  ;;  %v1382_v47 = vmul.f32 %v2199_v4, %v1370_v58  ;;  %v966_v2 = vpop.f32.mrf.mxu1 }
 0x119   : > { %v1059_v62 = vpop.f32.mrf.mxu2  ;;  %v976_v35 = vadd.f32 %v966_v2, %v770_v5 }
 0x11a   : > { %v1154_v63 = vpop.f32.mrf.mxu3  ;;  %1426 = vst.msk [vmem:[%s2213_s14 + $0x10] sm:$0xf] %vm1421_vm4, %v1417_v60  ;;  %v1394_v18 = vadd.f32 %v2204_v8, %v1382_v47  ;;  %v1070_v48 = vadd.f32 %v1059_v62, %v975_v61 }
 0x11c   : > { %v1402_v52 = vmul.f32 0.1, %v1394_v18  ;;  %v1165_v1 = vadd.f32 %v1154_v63, %v1070_v48 }
 0x11e   : > { %v1410_v3 = vmax.f32 %v1394_v18, %v1402_v52  ;;  %v1371_v45 = vadd.f32 %v1360_v34, %v1165_v1  ;;  %v1362_v12 = vpop.f32.mrf.mxu0 }
 0x120   : > { %v1418_v6 = vpack.c.bf16 %v1410_v3, %v1410_v3  ;;  %v1383_v43 = vmul.f32 %v2199_v4, %v1371_v45 }
 0x121   : > { %v1061_v7 = vpop.f32.mrf.mxu2 }
 0x122   : > { %1427 = vst.msk [vmem:[%s2213_s14 + $0x14] sm:$0xf] %vm1421_vm4, %v1418_v6  ;;  %v1395_v53 = vadd.f32 %v2204_v8, %v1383_v43  ;;  %v1071_v37 = vadd.f32 %v1061_v7, %v976_v35  ;;  %v1156_v10 = vpop.f32.mrf.mxu3 }
 0x124   : > { %v1403_v32 = vmul.f32 0.1, %v1395_v53  ;;  %v1166_v11 = vadd.f32 %v1156_v10, %v1071_v37 }
 0x126   : > { %v1411_v9 = vmax.f32 %v1395_v53, %v1403_v32  ;;  %v1372_v13 = vadd.f32 %v1362_v12, %v1166_v11 }
 0x128   : > { %v1419_v16 = vpack.c.bf16 %v1411_v9, %v1411_v9  ;;  %v1384_v50 = vmul.f32 %v2199_v4, %v1372_v13 }
 0x12a   : > { %1428 = vst.msk [vmem:[%s2213_s14 + $0x18] sm:$0xf] %vm1421_vm4, %v1419_v16  ;;  %v1396_v38 = vadd.f32 %v2204_v8, %v1384_v50 }
 0x12c   : > { %v1404_v19 = vmul.f32 0.1, %v1396_v38 }
 0x12e   : > { %v1412_v20 = vmax.f32 %v1396_v38, %v1404_v19 }
 0x130   : > { %v1420_v21 = vpack.c.bf16 %v1412_v20, %v1412_v20 }
 0x132   : > { %1429 = vst.msk [vmem:[%s2213_s14 + $0x1c] sm:$0xf] %vm1421_vm4, %v1420_v21 }
 0x133 PF: > { %s14_s15 = sadd.s32 1, %s1869_s15  }
 0x134   : > { %p11_p4 = scmp.ge.s32.totalorder %s14_s15, 4  }
 0x136   :  { %13 = sbr.rel (!%p11_p4) target bundleno = 1 (0x1), region = 79 }

// kernel: yolov4_forward.3
= control target key start
LH: loop header
LB: loop body
LE: loop exit
PB: predicated region body
PF: predicated region fallthrough
CT: control target
= control target key end

     0   :  { %s5113_s15 = smov 0   ;;  %s6558_s0 = inlined_call_operand.vmem [shape: bf16[2,18,18,3], index: 0, kind: input, shape index: {}]   ;;  %s6559_s1 = inlined_call_operand.vmem [shape: bf16[9,3,32], index: 1, kind: input, shape index: {}]   ;;  %s6560_s2 = inlined_call_operand.vmem [shape: f32[1,32], index: 2, kind: input, shape index: {}]   ;;  %s6561_s3 = inlined_call_operand.vmem [shape: f32[1,32], index: 3, kind: input, shape index: {}]   ;;  %s6562_s4 = inlined_call_operand.vmem [shape: bf16[2,16,16,32], index: 4, kind: output, shape index: {}]  }
   0x1 LB: > { %s4369_s16 = sadd.s32 4294967295, %s5085_s15   ;;  %p4373_p0 = scmp.ge.s32.totalorder %s5085_s15, 1  ;;  %s5085_s15 = sphi %s5113_s15, %s14_s15  }
   0x2   : > { %p162_p1 = scmp.lt.s32.totalorder %s5085_s15, 3 }
   0x4   : > { %p163_p2 = pnand %p4373_p0, %p162_p1 }
   0x6   : > { %166 = sbr.rel (%p163_p2) target bundleno = 764 (0x2fc), region = 36 }
   0xb   : > { %v4377_v0 = vld [vmem:[%s6559_s1 + $0x2] sm:$0x3]  ;;  %vm734_vm0 = vcmask 1040384   ;;  %vm735_vm1 = vcmask 1041408   ;;  %p188_p3 = scmp.lt.s32.totalorder %s4369_s16, 1  ;;  %v5087_v1 = vmov 65535  }
   0xc   : > { %v736_v2 = vsel %vm734_vm0, 4294967295, %v5087_v1  ;;  %v4490_v4 = vld [vmem:[%s6559_s1 + $0x4] sm:$0x3]  ;;  %v4539_v7 = vld [vmem:[%s6559_s1 + $0x6] sm:$0x3]  ;;  %vm685_vm5 = vcmask 23552  }
   0xd   : > { %v5124_v3 = vsel %vm735_vm1, %v736_v2, 0  ;;  %s6574_s16 = smov (!%p188_p3, %s4369_s16), 1  ;;  %v231_v8 = vld [vmem:[%s6559_s1] sm:$0x3]  ;;  %v4668_v9 = vld [vmem:[%s6559_s1 + $0x8] sm:$0x3] }
   0xe   : > { %v739_v5 = vand.u32 %v4377_v0, %v5124_v3  ;;  %v1312_v6 = vand.u32 %v4490_v4, %v5124_v3  ;;  %s5015_s27 = smul.u32 216, %s6574_s16  ;;  %v1599_v10 = vand.u32 %v4539_v7, %v5124_v3  ;;  %v959_v11 = vand.u32 %v5124_v3, %v231_v8  ;;  %s4963_s19 = sshll.u32 %s6574_s16, 7 }
   0xf   : > { %v2253_v12 = vand.u32 %v4668_v9, %v5124_v3  ;;  %vm248_vm2 = vsmask.f32 3328  ;;  %vm249_vm3 = vsmask.f32 7440  ;;  %vm1098_vm6 = vcmask 1042432   ;;  %s6202_s22 = scalar_lea.vmem %s6562_s4, %s4963_s19 }
  0x10   : > { %5012 = vmatpush.bf16.msra.mxu1 %v739_v5  ;;  %5013 = vmatpush.bf16.msra.mxu2 %v739_v5  ;;  %s5149_s30 = scalar_lea.vmem %s6558_s0, %s5015_s27  ;;  %vm5161_vm4 = vmor %vm248_vm2, %vm249_vm3  ;;  %vm1099_vm7 = vcmask 1046532   ;;  %vm4281_vm9 = vcmask 257024  }
  0x11   : > { %5014 = vmatpush.bf16.msra.mxu3 %v739_v5  ;;  %748 = vmatpush.bf16.msra.mxu0 %v739_v5  ;;  %v207_v13 = vld [vmem:[%s5149_s30 + $0x30] sm:$0xf]  ;;  %v208_v14 = vld [vmem:[%s5149_s30 + $0x34] sm:$0xf]  ;;  %v236_v15 = vld [vmem:[%s5149_s30 + $0x38] sm:$0x1] }
  0x12   : > { %v348_v16 = vshrl.u32 %v207_v13, 16  ;;  %v351_v17 = vshll.u32 %v207_v13, 16  ;;  %v357_v18 = vshll.u32 %v208_v14, 16  ;;  %v361_v19 = vshrl.u32 %v208_v14, 16  ;;  %v215_v20 = vld [vmem:[%s5149_s30 + $0x60] sm:$0xf]  ;;  %vm5335_vm8 = vmor %vm1098_vm6, %vm1099_vm7 }
  0x13   : > { %v367_v21 = vshll.u32 %v236_v15, 16  ;;  %v216_v22 = vld [vmem:[%s5149_s30 + $0x64] sm:$0xf]  ;;  %v240_v23 = vld [vmem:[%s5149_s30 + $0x68] sm:$0x1]  ;;  %v444_v24 = vshrl.u32 %v215_v20, 16 }
  0x14   : > { %1321 = vmatpush.bf16.msrb.mxu2 %v1312_v6  ;;  %968 = vmatpush.bf16.msrb.mxu1 %v959_v11  ;;  %v350_v25 = vrot.slane %v348_v16, 4  ;;  %v353_v26 = vrot.slane %v351_v17, 5  ;;  %v359_v27 = vrot.slane %v357_v18, 5  ;;  %v363_v28 = vrot.slane %v361_v19, 4  ;;  %v223_v29 = vld [vmem:[%s5149_s30 + $0x90] sm:$0xf] }
  0x15   : > { %1608 = vmatpush.bf16.msrb.mxu3 %v1599_v10  ;;  %2262 = vmatpush.bf16.msrb.mxu0 %v2253_v12  ;;  %v369_v30 = vrot.slane %v367_v21, 5  ;;  %v446_v31 = vrot.slane %v444_v24, 4  ;;  %v447_v32 = vshll.u32 %v215_v20, 16  ;;  %v453_v33 = vshll.u32 %v216_v22, 16  ;;  %v224_v38 = vld [vmem:[%s5149_s30 + $0x94] sm:$0xf] }
  0x16   : > { %v354_v34 = vor.u32 %v353_v26, %v350_v25  ;;  %v364_v35 = vor.u32 %v363_v28, %v359_v27  ;;  %v457_v36 = vshrl.u32 %v216_v22, 16  ;;  %v463_v37 = vshll.u32 %v240_v23, 16  ;;  %v244_v48 = vld [vmem:[%s5149_s30 + $0x98] sm:$0x1]  ;;  %v199_v0 = vld [vmem:[%s5149_s30] sm:$0xf] }
  0x17   : > { %v449_v40 = vrot.slane %v447_v32, 5  ;;  %v455_v41 = vrot.slane %v453_v33, 5  ;;  %v540_v42 = vshrl.u32 %v223_v29, 16  ;;  %v543_v50 = vshll.u32 %v223_v29, 16  ;;  %v5174_v5 = vld [vmem:[%s5149_s30 + $0x4] sm:$0xf] }
  0x18   : > { %v355_v43 = vrot.slane %v354_v34, 4  ;;  %v365_v44 = vrot.slane %v364_v35, 4  ;;  %v459_v45 = vrot.slane %v457_v36, 4  ;;  %v465_v46 = vrot.slane %v463_v37, 5  ;;  %v5177_v6 = vld [vmem:[%s5149_s30 + $0x8] sm:$0x1] }
  0x19   : > { %v450_v47 = vor.u32 %v449_v40, %v446_v31  ;;  %v542_v49 = vrot.slane %v540_v42, 4  ;;  %v549_v51 = vshll.u32 %v224_v38, 16  ;;  %v553_v55 = vshrl.u32 %v224_v38, 16  ;;  %v209_v23 = vld [vmem:[%s5149_s30 + $0x3c] sm:$0xf] }
  0x1a   : > { %v360_v52 = vsel %vm5161_vm4, %v355_v43, %v359_v27  ;;  %v370_v53 = vsel %vm5161_vm4, %v365_v44, %v369_v30  ;;  %v460_v54 = vor.u32 %v459_v45, %v455_v41  ;;  %v545_v59 = vrot.slane %v543_v50, 5  ;;  %v5189_v24 = vld [vmem:[%s5149_s30 + $0x40] sm:$0xf]  ;;  %v5194_v29 = vld [vmem:[%s5149_s30 + $0x44] sm:$0x1] }
  0x1b   : > { %v645_v56 = vunpack.c.l.b16 %v360_v52  ;;  %v646_v57 = vunpack.c.l.b16 %v370_v53  ;;  %v451_v58 = vrot.slane %v450_v47, 4  ;;  %v551_v61 = vrot.slane %v549_v51, 5  ;;  %v217_v37 = vld [vmem:[%s5149_s30 + $0x6c] sm:$0xf]  ;;  %v218_v47 = vld [vmem:[%s5149_s30 + $0x70] sm:$0xf] }
  0x1c   : > { %v461_v60 = vrot.slane %v460_v54, 4  ;;  %v555_v62 = vrot.slane %v553_v55, 4  ;;  %v559_v63 = vshll.u32 %v244_v48, 16  ;;  %v546_v4 = vor.u32 %v545_v59, %v542_v49  ;;  %v241_v51 = vld [vmem:[%s5149_s30 + $0x74] sm:$0x1] }
  0x1d   : > { %v673_v1 = vpack.c.b16 %v646_v57, %v645_v56  ;;  %v456_v2 = vsel %vm5161_vm4, %v451_v58, %v455_v41  ;;  %v252_v13 = vshrl.u32 %v199_v0, 16  ;;  %v255_v14 = vshll.u32 %v199_v0, 16 }
  0x1e   : > { %v466_v7 = vsel %vm5161_vm4, %v461_v60, %v465_v46  ;;  %v653_v8 = vunpack.c.l.b16 %v456_v2  ;;  %v556_v9 = vor.u32 %v555_v62, %v551_v61  ;;  %v561_v10 = vrot.slane %v559_v63, 5 }
  0x1f   : > { %4382 = vmatmul.msk.bf16.vlgmr.msra.gmra.mxu1 %vm685_vm5, %v673_v1  ;;  %v654_v11 = vunpack.c.l.b16 %v466_v7  ;;  %v547_v12 = vrot.slane %v546_v4, 4  ;;  %v261_v16 = vshll.u32 %v5174_v5, 16  ;;  %v265_v17 = vshrl.u32 %v5174_v5, 16  ;;  %v225_v1 = vld [vmem:[%s5149_s30 + $0x9c] sm:$0xf] }
  0x20   : > { %v557_v15 = vrot.slane %v556_v9, 4  ;;  %v271_v18 = vshll.u32 %v5177_v6, 16  ;;  %v254_v21 = vrot.slane %v252_v13, 4  ;;  %v257_v22 = vrot.slane %v255_v14, 5  ;;  %v245_v13 = vld [vmem:[%s5149_s30 + $0xa4] sm:$0x1] }
  0x21   : > { %v677_v19 = vpack.c.b16 %v654_v11, %v653_v8  ;;  %v552_v20 = vsel %vm5161_vm4, %v547_v12, %v551_v61  ;;  %v263_v27 = vrot.slane %v261_v16, 5  ;;  %v267_v28 = vrot.slane %v265_v17, 4  ;;  %v226_v8 = vld [vmem:[%s5149_s30 + $0xa0] sm:$0xf] }
  0x22   : > { %v562_v25 = vsel %vm5161_vm4, %v557_v15, %v561_v10  ;;  %v661_v26 = vunpack.c.l.b16 %v552_v20  ;;  %v258_v31 = vor.u32 %v257_v22, %v254_v21  ;;  %v273_v32 = vrot.slane %v271_v18, 5 }
  0x23   : > { %4386 = vmatmul.msk.bf16.vlgmr.msra.gmra.mxu2 %vm685_vm5, %v677_v19  ;;  %v662_v30 = vunpack.c.l.b16 %v562_v25  ;;  %v268_v33 = vor.u32 %v267_v28, %v263_v27  ;;  %v372_v34 = vshrl.u32 %v209_v23, 16  ;;  %v375_v35 = vshll.u32 %v209_v23, 16 }
  0x24   : > { %v381_v36 = vshll.u32 %v5189_v24, 16  ;;  %v259_v40 = vrot.slane %v258_v31, 4  ;;  %v385_v41 = vshrl.u32 %v5189_v24, 16  ;;  %v391_v42 = vshll.u32 %v5194_v29, 16 }
  0x25   : > { %v681_v38 = vpack.c.b16 %v662_v30, %v661_v26  ;;  %v269_v43 = vrot.slane %v268_v33, 4  ;;  %v374_v44 = vrot.slane %v372_v34, 4  ;;  %v377_v45 = vrot.slane %v375_v35, 5  ;;  %v5220_v33 = vld [vmem:[%s5149_s30 + $0x10] sm:$0xf] }
  0x26   : > { %v383_v46 = vrot.slane %v381_v36, 5  ;;  %v264_v48 = vsel %vm5161_vm4, %v259_v40, %v263_v27  ;;  %v387_v49 = vrot.slane %v385_v41, 4  ;;  %v393_v50 = vrot.slane %v391_v42, 5  ;;  %v201_v27 = vld [vmem:[%s5149_s30 + $0xc] sm:$0xf] }
  0x27   : > { %4390 = vmatmul.msk.bf16.vlgmr.msra.gmra.mxu3 %vm685_vm5, %v681_v38  ;;  %v468_v52 = vshrl.u32 %v217_v37, 16  ;;  %v274_v53 = vsel %vm5161_vm4, %v269_v43, %v273_v32  ;;  %v637_v54 = vunpack.c.l.b16 %v264_v48  ;;  %v378_v55 = vor.u32 %v377_v45, %v374_v44 }
  0x28   : > { %v471_v56 = vshll.u32 %v217_v37, 16  ;;  %v638_v57 = vunpack.c.l.b16 %v274_v53  ;;  %v388_v58 = vor.u32 %v387_v49, %v383_v46  ;;  %v477_v60 = vshll.u32 %v218_v47, 16  ;;  %v5223_v37 = vld [vmem:[%s5149_s30 + $0x14] sm:$0x1] }
  0x29   : > { %v470_v59 = vrot.slane %v468_v52, 4  ;;  %v379_v61 = vrot.slane %v378_v55, 4  ;;  %v481_v63 = vshrl.u32 %v218_v47, 16  ;;  %v487_v0 = vshll.u32 %v241_v51, 16  ;;  %v211_v47 = vld [vmem:[%s5149_s30 + $0x48] sm:$0xf] }
  0x2a   : > { %v473_v62 = vrot.slane %v471_v56, 5  ;;  %v669_v2 = vpack.c.b16 %v638_v57, %v637_v54  ;;  %v389_v4 = vrot.slane %v388_v58, 4  ;;  %v479_v7 = vrot.slane %v477_v60, 5  ;;  %v5233_v52 = vld [vmem:[%s5149_s30 + $0x4c] sm:$0xf] }
  0x2b   : > { %v384_v9 = vsel %vm5161_vm4, %v379_v61, %v383_v46  ;;  %v483_v11 = vrot.slane %v481_v63, 4  ;;  %v489_v12 = vrot.slane %v487_v0, 5  ;;  %v564_v16 = vshrl.u32 %v225_v1, 16  ;;  %v5238_v61 = vld [vmem:[%s5149_s30 + $0x50] sm:$0x1] }
  0x2c   : > { %v474_v10 = vor.u32 %v473_v62, %v470_v59  ;;  %4378 = vmatmul.msk.bf16.vlgmr.msra.gmra.mxu0 %vm685_vm5, %v669_v2  ;;  %v394_v14 = vsel %vm5161_vm4, %v389_v4, %v393_v50  ;;  %v647_v15 = vunpack.c.l.b16 %v384_v9  ;;  %v567_v17 = vshll.u32 %v225_v1, 16  ;;  %v219_v9 = vld [vmem:[%s5149_s30 + $0x78] sm:$0xf] }
  0x2d   : > { %v648_v18 = vunpack.c.l.b16 %v394_v14  ;;  %v484_v20 = vor.u32 %v483_v11, %v479_v7  ;;  %v573_v21 = vshll.u32 %v226_v8, 16  ;;  %v566_v22 = vrot.slane %v564_v16, 4  ;;  %v220_v14 = vld [vmem:[%s5149_s30 + $0x7c] sm:$0xf] }
  0x2e   : > { %v475_v19 = vrot.slane %v474_v10, 4  ;;  %v569_v23 = vrot.slane %v567_v17, 5  ;;  %v577_v25 = vshrl.u32 %v226_v8, 16  ;;  %v583_v26 = vshll.u32 %v245_v13, 16 }
  0x2f   : > { %v674_v28 = vpack.c.b16 %v648_v18, %v647_v15  ;;  %v485_v31 = vrot.slane %v484_v20, 4  ;;  %v575_v32 = vrot.slane %v573_v21, 5  ;;  %v276_v41 = vshrl.u32 %v201_v27, 16 }
  0x30   : > { %v480_v30 = vsel %vm5161_vm4, %v475_v19, %v479_v7  ;;  %v570_v35 = vor.u32 %v569_v23, %v566_v22  ;;  %v579_v36 = vrot.slane %v577_v25, 4  ;;  %v585_v40 = vrot.slane %v583_v26, 5  ;;  %v242_v22 = vld [vmem:[%s5149_s30 + $0x80] sm:$0x1] }
  0x31   : > { %v655_v34 = vunpack.c.l.b16 %v480_v30  ;;  %4383 = vmatmul.msk.bf16.gmra.mxu1 %vm685_vm5, %v674_v28  ;;  %v490_v38 = vsel %vm5161_vm4, %v485_v31, %v489_v12  ;;  %v279_v42 = vshll.u32 %v201_v27, 16  ;;  %v285_v46 = vshll.u32 %v5220_v33, 16 }
  0x32   : > { %v656_v43 = vunpack.c.l.b16 %v490_v38  ;;  %v571_v44 = vrot.slane %v570_v35, 4  ;;  %v580_v45 = vor.u32 %v579_v36, %v575_v32  ;;  %v278_v48 = vrot.slane %v276_v41, 4  ;;  %v227_v41 = vld [vmem:[%s5149_s30 + $0xa8] sm:$0xf] }
  0x33   : > { %v281_v49 = vrot.slane %v279_v42, 5  ;;  %v289_v50 = vshrl.u32 %v5220_v33, 16  ;;  %v295_v51 = vshll.u32 %v5223_v37, 16  ;;  %v287_v56 = vrot.slane %v285_v46, 5  ;;  %v246_v46 = vld [vmem:[%s5149_s30 + $0xb0] sm:$0x1] }
  0x34   : > { %v678_v53 = vpack.c.b16 %v656_v43, %v655_v34  ;;  %v576_v54 = vsel %vm5161_vm4, %v571_v44, %v575_v32  ;;  %v581_v55 = vrot.slane %v580_v45, 4  ;;  %v396_v63 = vshrl.u32 %v211_v47, 16  ;;  %v228_v45 = vld [vmem:[%s5149_s30 + $0xac] sm:$0xf] }
  0x35   : > { %v663_v57 = vunpack.c.l.b16 %v576_v54  ;;  %v282_v58 = vor.u32 %v281_v49, %v278_v48  ;;  %v291_v59 = vrot.slane %v289_v50, 4  ;;  %v297_v60 = vrot.slane %v295_v51, 5 }
  0x36   : > { %4387 = vmatmul.msk.bf16.gmra.mxu2 %vm685_vm5, %v678_v53  ;;  %v586_v62 = vsel %vm5161_vm4, %v581_v55, %v585_v40  ;;  %v399_v0 = vshll.u32 %v211_v47, 16  ;;  %v405_v1 = vshll.u32 %v5233_v52, 16  ;;  %v409_v8 = vshrl.u32 %v5233_v52, 16 }
  0x37   : > { %v664_v2 = vunpack.c.l.b16 %v586_v62  ;;  %v283_v4 = vrot.slane %v282_v58, 4  ;;  %v292_v7 = vor.u32 %v291_v59, %v287_v56  ;;  %v398_v10 = vrot.slane %v396_v63, 4 }
  0x38   : > { %v401_v11 = vrot.slane %v399_v0, 5  ;;  %v407_v12 = vrot.slane %v405_v1, 5  ;;  %v415_v13 = vshll.u32 %v5238_v61, 16  ;;  %v411_v18 = vrot.slane %v409_v8, 4  ;;  %v203_v1 = vld [vmem:[%s5149_s30 + $0x18] sm:$0xf] }
  0x39   : > { %v682_v15 = vpack.c.b16 %v664_v2, %v663_v57  ;;  %v288_v16 = vsel %vm5161_vm4, %v283_v4, %v287_v56  ;;  %v293_v17 = vrot.slane %v292_v7, 4  ;;  %v492_v23 = vshrl.u32 %v219_v9, 16  ;;  %v5266_v8 = vld [vmem:[%s5149_s30 + $0x1c] sm:$0xf] }
  0x3a   : > { %v639_v19 = vunpack.c.l.b16 %v288_v16  ;;  %v402_v20 = vor.u32 %v401_v11, %v398_v10  ;;  %v417_v21 = vrot.slane %v415_v13, 5  ;;  %v412_v26 = vor.u32 %v411_v18, %v407_v12 }
  0x3b   : > { %4391 = vmatmul.msk.bf16.gmra.mxu3 %vm685_vm5, %v682_v15  ;;  %v298_v25 = vsel %vm5161_vm4, %v293_v17, %v297_v60  ;;  %v495_v27 = vshll.u32 %v219_v9, 16  ;;  %v501_v28 = vshll.u32 %v220_v14, 16  ;;  %v494_v32 = vrot.slane %v492_v23, 4  ;;  %v5269_v9 = vld [vmem:[%s5149_s30 + $0x20] sm:$0x1] }
  0x3c   : > { %v640_v30 = vunpack.c.l.b16 %v298_v25  ;;  %v403_v31 = vrot.slane %v402_v20, 4  ;;  %v505_v34 = vshrl.u32 %v220_v14, 16  ;;  %v413_v35 = vrot.slane %v412_v26, 4 }
  0x3d   : > { %v497_v36 = vrot.slane %v495_v27, 5  ;;  %v503_v38 = vrot.slane %v501_v28, 5  ;;  %v511_v40 = vshll.u32 %v242_v22, 16  ;;  %v588_v54 = vshrl.u32 %v227_v41, 16  ;;  %v213_v22 = vld [vmem:[%s5149_s30 + $0x54] sm:$0xf] }
  0x3e   : > { %v670_v42 = vpack.c.b16 %v640_v30, %v639_v19  ;;  %v408_v43 = vsel %vm5161_vm4, %v403_v31, %v407_v12  ;;  %v507_v44 = vrot.slane %v505_v34, 4  ;;  %v418_v47 = vsel %vm5161_vm4, %v413_v35, %v417_v21  ;;  %v5279_v28 = vld [vmem:[%s5149_s30 + $0x58] sm:$0xf]  ;;  %v5284_v35 = vld [vmem:[%s5149_s30 + $0x5c] sm:$0x1] }
  0x3f   : > { %v649_v48 = vunpack.c.l.b16 %v408_v43  ;;  %v498_v49 = vor.u32 %v497_v36, %v494_v32  ;;  %v513_v50 = vrot.slane %v511_v40, 5  ;;  %v650_v51 = vunpack.c.l.b16 %v418_v47 }
  0x40   : > { %4379 = vmatmul.msk.bf16.gmra.mxu0 %vm685_vm5, %v670_v42  ;;  %v508_v53 = vor.u32 %v507_v44, %v503_v38  ;;  %v591_v55 = vshll.u32 %v227_v41, 16  ;;  %v597_v57 = vshll.u32 %v228_v45, 16  ;;  %v601_v58 = vshrl.u32 %v228_v45, 16 }
  0x41   : > { %v499_v56 = vrot.slane %v498_v49, 4  ;;  %v607_v59 = vshll.u32 %v246_v46, 16  ;;  %v675_v60 = vpack.c.b16 %v650_v51, %v649_v48  ;;  %v590_v63 = vrot.slane %v588_v54, 4  ;;  %v221_v46 = vld [vmem:[%s5149_s30 + $0x84] sm:$0xf] }
  0x42   : > { %v509_v62 = vrot.slane %v508_v53, 4  ;;  %v593_v0 = vrot.slane %v591_v55, 5  ;;  %v599_v4 = vrot.slane %v597_v57, 5  ;;  %v603_v7 = vrot.slane %v601_v58, 4 }
  0x43   : > { %v504_v2 = vsel %vm5161_vm4, %v499_v56, %v503_v38  ;;  %4384 = vmatmul.msk.bf16.gmra.mxu1 %vm685_vm5, %v675_v60  ;;  %v609_v13 = vrot.slane %v607_v59, 5  ;;  %v300_v16 = vshrl.u32 %v203_v1, 16  ;;  %v303_v17 = vshll.u32 %v203_v1, 16  ;;  %v222_v56 = vld [vmem:[%s5149_s30 + $0x88] sm:$0xf] }
  0x44   : > { %v514_v10 = vsel %vm5161_vm4, %v509_v62, %v513_v50  ;;  %v657_v11 = vunpack.c.l.b16 %v504_v2  ;;  %v594_v12 = vor.u32 %v593_v0, %v590_v63  ;;  %v604_v15 = vor.u32 %v603_v7, %v599_v4  ;;  %v243_v60 = vld [vmem:[%s5149_s30 + $0x8c] sm:$0x1] }
  0x45   : > { %v658_v14 = vunpack.c.l.b16 %v514_v10  ;;  %v309_v19 = vshll.u32 %v5266_v8, 16  ;;  %v313_v20 = vshrl.u32 %v5266_v8, 16  ;;  %v319_v21 = vshll.u32 %v5269_v9, 16 }
  0x46   : > { %v595_v18 = vrot.slane %v594_v12, 4  ;;  %v605_v25 = vrot.slane %v604_v15, 4  ;;  %v302_v26 = vrot.slane %v300_v16, 4  ;;  %v305_v27 = vrot.slane %v303_v17, 5  ;;  %v229_v16 = vld [vmem:[%s5149_s30 + $0xb4] sm:$0xf] }
  0x47   : > { %v679_v23 = vpack.c.b16 %v658_v14, %v657_v11  ;;  %v311_v31 = vrot.slane %v309_v19, 5  ;;  %v315_v32 = vrot.slane %v313_v20, 4  ;;  %v321_v34 = vrot.slane %v319_v21, 5  ;;  %v230_v20 = vld [vmem:[%s5149_s30 + $0xb8] sm:$0xf] }
  0x48   : > { %v600_v30 = vsel %vm5161_vm4, %v595_v18, %v599_v4  ;;  %v610_v36 = vsel %vm5161_vm4, %v605_v25, %v609_v13  ;;  %v306_v40 = vor.u32 %v305_v27, %v302_v26  ;;  %v420_v41 = vshrl.u32 %v213_v22, 16  ;;  %v247_v26 = vld [vmem:[%s5149_s30 + $0xbc] sm:$0x1] }
  0x49   : > { %4388 = vmatmul.msk.bf16.gmra.mxu2 %vm685_vm5, %v679_v23  ;;  %v665_v38 = vunpack.c.l.b16 %v600_v30  ;;  %v666_v42 = vunpack.c.l.b16 %v610_v36  ;;  %v316_v43 = vor.u32 %v315_v32, %v311_v31  ;;  %v423_v44 = vshll.u32 %v213_v22, 16 }
  0x4a   : > { %v429_v45 = vshll.u32 %v5279_v28, 16  ;;  %v307_v47 = vrot.slane %v306_v40, 4  ;;  %v422_v48 = vrot.slane %v420_v41, 4  ;;  %v433_v49 = vshrl.u32 %v5279_v28, 16 }
  0x4b   : > { %v439_v50 = vshll.u32 %v5284_v35, 16  ;;  %v683_v51 = vpack.c.b16 %v666_v42, %v665_v38  ;;  %v317_v53 = vrot.slane %v316_v43, 4  ;;  %v425_v54 = vrot.slane %v423_v44, 5 }
  0x4c   : > { %v431_v55 = vrot.slane %v429_v45, 5  ;;  %v312_v57 = vsel %vm5161_vm4, %v307_v47, %v311_v31  ;;  %v435_v58 = vrot.slane %v433_v49, 4  ;;  %v516_v62 = vshrl.u32 %v221_v46, 16  ;;  %v205_v45 = vld [vmem:[%s5149_s30 + $0x24] sm:$0xf] }
  0x4d   : > { %v441_v59 = vrot.slane %v439_v50, 5  ;;  %4392 = vmatmul.msk.bf16.gmra.mxu3 %vm685_vm5, %v683_v51  ;;  %v322_v63 = vsel %vm5161_vm4, %v317_v53, %v321_v34  ;;  %v641_v0 = vunpack.c.l.b16 %v312_v57  ;;  %v426_v1 = vor.u32 %v425_v54, %v422_v48  ;;  %v5312_v50 = vld [vmem:[%s5149_s30 + $0x28] sm:$0xf] }
  0x4e   : > { %v519_v2 = vshll.u32 %v221_v46, 16  ;;  %v642_v4 = vunpack.c.l.b16 %v322_v63  ;;  %v436_v7 = vor.u32 %v435_v58, %v431_v55  ;;  %v518_v10 = vrot.slane %v516_v62, 4 }
  0x4f   : > { %v525_v11 = vshll.u32 %v222_v56, 16  ;;  %v427_v12 = vrot.slane %v426_v1, 4  ;;  %v529_v14 = vshrl.u32 %v222_v56, 16  ;;  %v535_v15 = vshll.u32 %v243_v60, 16  ;;  %v5316_v56 = vld [vmem:[%s5149_s30 + $0x2c] sm:$0x1] }
  0x50   : > { %v521_v13 = vrot.slane %v519_v2, 5  ;;  %v671_v17 = vpack.c.b16 %v642_v4, %v641_v0  ;;  %v437_v18 = vrot.slane %v436_v7, 4  ;;  %v612_v31 = vshrl.u32 %v229_v16, 16 }
  0x51   : > { %v527_v19 = vrot.slane %v525_v11, 5  ;;  %v432_v21 = vsel %vm5161_vm4, %v427_v12, %v431_v55  ;;  %v531_v23 = vrot.slane %v529_v14, 4  ;;  %v537_v25 = vrot.slane %v535_v15, 5  ;;  %v4620_v15 = vld [vmem:[%s5149_s30 + $0xc] sm:$0xf] }
  0x52   : > { %v522_v22 = vor.u32 %v521_v13, %v518_v10  ;;  %4380 = vmatmul.msk.bf16.gmra.mxu0 %vm685_vm5, %v671_v17  ;;  %v442_v27 = vsel %vm5161_vm4, %v437_v18, %v441_v59  ;;  %v651_v30 = vunpack.c.l.b16 %v432_v21  ;;  %v615_v32 = vshll.u32 %v229_v16, 16  ;;  %v1050_v10 = vld [vmem:[%s5149_s30] sm:$0xe]  ;;  %v4621_v21 = vld [vmem:[%s5149_s30 + $0x10] sm:$0xf] }
  0x53   : > { %v652_v34 = vunpack.c.l.b16 %v442_v27  ;;  %v532_v38 = vor.u32 %v531_v23, %v527_v19  ;;  %v621_v40 = vshll.u32 %v230_v20, 16  ;;  %v614_v41 = vrot.slane %v612_v31, 4 }
  0x54   : > { %v523_v36 = vrot.slane %v522_v22, 4  ;;  %v617_v42 = vrot.slane %v615_v32, 5  ;;  %v625_v43 = vshrl.u32 %v230_v20, 16  ;;  %v631_v44 = vshll.u32 %v247_v26, 16  ;;  %v4766_v20 = vld [vmem:[%s6559_s1 + $0xc] sm:$0x3] }
  0x55   : > { %v676_v46 = vpack.c.b16 %v652_v34, %v651_v30  ;;  %v533_v48 = vrot.slane %v532_v38, 4  ;;  %v623_v49 = vrot.slane %v621_v40, 5  ;;  %v1106_v51 = vrot.slane %v5177_v6, 5 }
  0x56   : > { %v528_v47 = vsel %vm5161_vm4, %v523_v36, %v527_v19  ;;  %v618_v54 = vor.u32 %v617_v42, %v614_v41  ;;  %v627_v55 = vrot.slane %v625_v43, 4  ;;  %v633_v58 = vrot.slane %v631_v44, 5 }
  0x57   : > { %v659_v53 = vunpack.c.l.b16 %v528_v47  ;;  %4385 = vmatmul.msk.bf16.gmra.mxu1 %vm685_vm5, %v676_v46  ;;  %v538_v57 = vsel %vm5161_vm4, %v533_v48, %v537_v25  ;;  %v324_v59 = vshrl.u32 %v205_v45, 16  ;;  %v327_v60 = vshll.u32 %v205_v45, 16  ;;  %v4622_v47 = vld [vmem:[%s5149_s30 + $0x14] sm:$0x1] }
  0x58   : > { %v660_v62 = vunpack.c.l.b16 %v538_v57  ;;  %v619_v63 = vrot.slane %v618_v54, 4  ;;  %v628_v0 = vor.u32 %v627_v55, %v623_v49  ;;  %v333_v6 = vshll.u32 %v5312_v50, 16  ;;  %v4895_v55 = vld [vmem:[%s6559_s1 + $0xe] sm:$0x3] }
  0x59   : > { %v326_v1 = vrot.slane %v324_v59, 4  ;;  %v329_v2 = vrot.slane %v327_v60, 5  ;;  %v337_v4 = vshrl.u32 %v5312_v50, 16  ;;  %v343_v7 = vshll.u32 %v5316_v56, 16  ;;  %v4717_v59 = vld [vmem:[%s6559_s1 + $0xa] sm:$0x3] }
  0x5a   : > { %v680_v11 = vpack.c.b16 %v660_v62, %v659_v53  ;;  %v624_v12 = vsel %vm5161_vm4, %v619_v63, %v623_v49  ;;  %v629_v13 = vrot.slane %v628_v0, 4  ;;  %v335_v14 = vrot.slane %v333_v6, 5  ;;  %v4964_v60 = vld [vmem:[%s5149_s30] sm:$0xff] }
  0x5b   : > { %v667_v16 = vunpack.c.l.b16 %v624_v12  ;;  %v330_v17 = vor.u32 %v329_v2, %v326_v1  ;;  %v339_v18 = vrot.slane %v337_v4, 4  ;;  %v345_v19 = vrot.slane %v343_v7, 5  ;;  %v4944_v1 = vld [vmem:[%s6559_s1 + $0x10] sm:$0x3] }
  0x5c   : > { %4389 = vmatmul.msk.bf16.gmra.mxu2 %vm685_vm5, %v680_v11  ;;  %v634_v22 = vsel %vm5161_vm4, %v629_v13, %v633_v58  ;;  %v4474_v23 = vrot.slane %v1050_v10, 9  ;;  %v1103_v31 = vrot.slane %v5174_v5, 5  ;;  %v2938_v32 = vand.u32 %v4766_v20, %v5124_v3 }
  0x5d   : > { %v668_v25 = vunpack.c.l.b16 %v634_v22  ;;  %v331_v26 = vrot.slane %v330_v17, 4  ;;  %v340_v27 = vor.u32 %v339_v18, %v335_v14  ;;  %v1771_v34 = vshrl.u32 %v4620_v15, 16  ;;  %v1051_v18 = vld [vmem:[%s5149_s30 + $0xc] sm:$0xe] }
  0x5e   : > { %v1774_v36 = vshll.u32 %v4620_v15, 16  ;;  %v1780_v38 = vshll.u32 %v4621_v21, 16  ;;  %v1104_v43 = vsel %vm5335_vm8, %v4474_v23, %v1103_v31  ;;  %v1105_v45 = vrot.slane %v1103_v31, 4  ;;  %2947 = vmatpush.bf16.msra.mxu2 %v2938_v32  ;;  %v4623_v15 = vld [vmem:[%s5149_s30 + $0x18] sm:$0xf] }
  0x5f   : > { %v684_v40 = vpack.c.b16 %v668_v25, %v667_v16  ;;  %v336_v41 = vsel %vm5161_vm4, %v331_v26, %v335_v14  ;;  %v341_v42 = vrot.slane %v340_v27, 4  ;;  %v1215_v46 = vunpack.c.l.b16 %v1104_v43  ;;  %v4624_v16 = vld [vmem:[%s5149_s30 + $0x1c] sm:$0xf]  ;;  %v4980_v25 = vld [vmem:[%s5149_s30 + $0xc] sm:$0xff] }
  0x60   : > { %v643_v44 = vunpack.c.l.b16 %v336_v41  ;;  %v1773_v5 = vrot.slane %v1771_v34, 4  ;;  %v1776_v49 = vrot.slane %v1774_v36, 5  ;;  %v1782_v53 = vrot.slane %v1780_v38, 5  ;;  %v4625_v41 = vld [vmem:[%s5149_s30 + $0x20] sm:$0x1] }
  0x61   : > { %4393 = vmatmul.msk.bf16.gmra.mxu3 %vm685_vm5, %v684_v40  ;;  %v346_v48 = vsel %vm5161_vm4, %v341_v42, %v345_v19  ;;  %v1784_v54 = vshrl.u32 %v4621_v21, 16  ;;  %v1107_v58 = vsel %vm5335_vm8, %v1105_v45, %v1106_v51  ;;  %v1790_v6 = vshll.u32 %v4622_v47, 16 }
  0x62   : > { %v644_v57 = vunpack.c.l.b16 %v346_v48  ;;  %v1216_v62 = vunpack.c.l.b16 %v1107_v58  ;;  %v1777_v63 = vor.u32 %v1776_v49, %v1773_v5  ;;  %v3592_v4 = vand.u32 %v4895_v55, %v5124_v3  ;;  %v4626_v55 = vld [vmem:[%s5149_s30 + $0x24] sm:$0xf]  ;;  %v4627_v58 = vld [vmem:[%s5149_s30 + $0x28] sm:$0xf] }
  0x63   : > { %v1786_v0 = vrot.slane %v1784_v54, 4  ;;  %v2651_v10 = vand.u32 %v4717_v59, %v5124_v3  ;;  %v3990_v11 = vand.u32 %v4944_v1, %v5124_v3  ;;  %v1792_v14 = vrot.slane %v1790_v6, 5 }
  0x64   : > { %v672_v2 = vpack.c.b16 %v644_v57, %v643_v44  ;;  %v1247_v51 = vpack.c.b16 %v1216_v62, %v1215_v46  ;;  %3601 = vmatpush.bf16.msra.mxu3 %v3592_v4  ;;  %v1778_v12 = vrot.slane %v1777_v63, 4  ;;  %v1110_v17 = vrot.slane %v5220_v33, 5  ;;  %v1052_v62 = vld [vmem:[%s5149_s30 + $0x18] sm:$0xe] }
  0x65   : > { %v1787_v7 = vor.u32 %v1786_v0, %v1782_v53  ;;  %2660 = vmatpush.bf16.msra.mxu1 %v2651_v10  ;;  %3999 = vmatpush.bf16.msra.mxu0 %v3990_v11  ;;  %v1795_v19 = vshrl.u32 %v4623_v15, 16  ;;  %v1798_v20 = vshll.u32 %v4623_v15, 16  ;;  %v1804_v22 = vshll.u32 %v4624_v16, 16  ;;  %v4981_v4 = vld [vmem:[%s5149_s30 + $0x18] sm:$0xff] }
  0x66   : > { %4381 = vmatmul.msk.bf16.gmra.mxu0 %vm685_vm5, %v672_v2  ;;  %v1783_v21 = vsel %vm5161_vm4, %v1778_v12, %v1782_v53  ;;  %v1808_v23 = vshrl.u32 %v4624_v16, 16  ;;  %v4475_v26 = vrot.slane %v1051_v18, 9  ;;  %v1112_v27 = vrot.slane %v1110_v17, 4  ;;  %v4628_v16 = vld [vmem:[%s5149_s30 + $0x2c] sm:$0x1] }
  0x67   : > { %4458 = vmatmul.msk.bf16.vlgmr.msrb.gmra.mxu1 %vm685_vm5, %v4964_v60  ;;  %v1788_v13 = vrot.slane %v1787_v7, 4  ;;  %v1113_v33 = vrot.slane %v5223_v37, 5  ;;  %v2156_v31 = vunpack.c.l.b16 %v1783_v21  ;;  %v1797_v34 = vrot.slane %v1795_v19, 4  ;;  %v4965_v37 = vld [vmem:[%s5149_s30 + $0xc] sm:$0xff] }
  0x68   : > { %v1800_v36 = vrot.slane %v1798_v20, 5  ;;  %v1806_v38 = vrot.slane %v1804_v22, 5  ;;  %v1810_v40 = vrot.slane %v1808_v23, 4  ;;  %v1111_v42 = vsel %vm5335_vm8, %v4475_v26, %v1110_v17  ;;  %v4630_v26 = vld [vmem:[%s5149_s30 + $0x34] sm:$0xf] }
  0x69   : > { %v1793_v3 = vsel %vm5161_vm4, %v1788_v13, %v1792_v14  ;;  %v1114_v43 = vsel %vm5335_vm8, %v1112_v27, %v1113_v33  ;;  %v1814_v47 = vshll.u32 %v4625_v41, 16  ;;  %v1217_v5 = vunpack.c.l.b16 %v1111_v42 }
  0x6a   : > { %v2157_v32 = vunpack.c.l.b16 %v1793_v3  ;;  %v1801_v45 = vor.u32 %v1800_v36, %v1797_v34  ;;  %v1811_v46 = vor.u32 %v1810_v40, %v1806_v38  ;;  %v1218_v48 = vunpack.c.l.b16 %v1114_v43  ;;  %v1053_v36 = vld [vmem:[%s5149_s30 + $0x24] sm:$0xe] }
  0x6b   : > { %v1816_v54 = vrot.slane %v1814_v47, 5  ;;  %v1117_v59 = vrot.slane %v5266_v8, 5  ;;  %v1819_v63 = vshrl.u32 %v4626_v55, 16  ;;  %v1822_v6 = vshll.u32 %v4626_v55, 16  ;;  %v4631_v55 = vld [vmem:[%s5149_s30 + $0x38] sm:$0x1] }
  0x6c   : > { %4491 = vmatmul.msk.bf16.vlgmr.msrb.gmra.mxu2 %vm685_vm5, %v1247_v51  ;;  %v2188_v44 = vpack.c.b16 %v2157_v32, %v2156_v31  ;;  %v1802_v49 = vrot.slane %v1801_v45, 4  ;;  %v1812_v53 = vrot.slane %v1811_v46, 4  ;;  %v1248_v57 = vpack.c.b16 %v1218_v48, %v1217_v5 }
  0x6d   : > { %v1828_v1 = vshll.u32 %v4627_v58, 16  ;;  %v1832_v2 = vshrl.u32 %v4627_v58, 16  ;;  %v4476_v51 = vrot.slane %v1052_v62, 9  ;;  %v1119_v7 = vrot.slane %v1117_v59, 4 }
  0x6e   : > { %v1807_v60 = vsel %vm5161_vm4, %v1802_v49, %v1806_v38  ;;  %v1817_v0 = vsel %vm5161_vm4, %v1812_v53, %v1816_v54  ;;  %v1120_v8 = vrot.slane %v5269_v9, 5  ;;  %v1821_v12 = vrot.slane %v1819_v63, 4  ;;  %v4966_v9 = vld [vmem:[%s5149_s30 + $0x18] sm:$0xff]  ;;  %v4967_v63 = vld [vmem:[%s5149_s30 + $0x24] sm:$0xff] }
  0x6f   : > { %v2158_v10 = vunpack.c.l.b16 %v1807_v60  ;;  %v2159_v11 = vunpack.c.l.b16 %v1817_v0  ;;  %v1824_v13 = vrot.slane %v1822_v6, 5  ;;  %v1830_v14 = vrot.slane %v1828_v1, 5 }
  0x70   : > { %v1834_v15 = vrot.slane %v1832_v2, 4  ;;  %v1118_v17 = vsel %vm5335_vm8, %v4476_v51, %v1117_v59  ;;  %v1121_v18 = vsel %vm5335_vm8, %v1119_v7, %v1120_v8  ;;  %v1838_v3 = vshll.u32 %v4628_v16, 16  ;;  %v4632_v51 = vld [vmem:[%s5149_s30 + $0x3c] sm:$0xf]  ;;  %v4633_v7 = vld [vmem:[%s5149_s30 + $0x40] sm:$0xf] }
  0x71   : > { %4604 = vmatmul.msk.bf16.vlgmr.msrb.gmra.mxu3 %vm685_vm5, %v4980_v25  ;;  %v2189_v19 = vpack.c.b16 %v2159_v11, %v2158_v10  ;;  %v1825_v20 = vor.u32 %v1824_v13, %v1821_v12  ;;  %v1219_v22 = vunpack.c.l.b16 %v1118_v17  ;;  %v1220_v23 = vunpack.c.l.b16 %v1121_v18  ;;  %v4629_v25 = vld [vmem:[%s5149_s30 + $0x30] sm:$0xf]  ;;  %v5027_v12 = vld [vmem:[%s5149_s30 + $0x34] sm:$0xf] }
  0x72   : > { %v1835_v21 = vor.u32 %v1834_v15, %v1830_v14  ;;  %v1840_v31 = vrot.slane %v1838_v3, 5  ;;  %v1124_v34 = vrot.slane %v5312_v50, 5  ;;  %v1843_v38 = vshrl.u32 %v4629_v25, 16  ;;  %v4982_v50 = vld [vmem:[%s5149_s30 + $0x24] sm:$0xff]  ;;  %v1054_v15 = vld [vmem:[%s5149_s30 + $0x30] sm:$0xe] }
  0x73   : > { %v1826_v27 = vrot.slane %v1825_v20, 4  ;;  %v1249_v32 = vpack.c.b16 %v1220_v23, %v1219_v22  ;;  %v1846_v40 = vshll.u32 %v4629_v25, 16  ;;  %v1852_v41 = vshll.u32 %v4630_v26, 16  ;;  %v4983_v20 = vld [vmem:[%s5149_s30 + $0x30] sm:$0xff]  ;;  %v5028_v23 = vld [vmem:[%s5149_s30 + $0x38] sm:$0x1] }
  0x74   : > { %v1836_v33 = vrot.slane %v1835_v21, 4  ;;  %v1856_v42 = vshrl.u32 %v4630_v26, 16  ;;  %v4477_v45 = vrot.slane %v1053_v36, 9  ;;  %v1127_v46 = vrot.slane %v5316_v56, 5 }
  0x75   : > { %v1831_v43 = vsel %vm5161_vm4, %v1826_v27, %v1830_v14  ;;  %v1845_v47 = vrot.slane %v1843_v38, 4  ;;  %v1848_v5 = vrot.slane %v1846_v40, 5  ;;  %v1854_v48 = vrot.slane %v1852_v41, 5 }
  0x76   : > { %4669 = vmatmul.msk.bf16.vlgmr.msrb.gmra.mxu0 %vm685_vm5, %v2188_v44  ;;  %v1841_v44 = vsel %vm5161_vm4, %v1836_v33, %v1840_v31  ;;  %v1858_v49 = vrot.slane %v1856_v42, 4  ;;  %v2160_v53 = vunpack.c.l.b16 %v1831_v43  ;;  %v1862_v60 = vshll.u32 %v4631_v55, 16  ;;  %v4968_v43 = vld [vmem:[%s5149_s30 + $0x30] sm:$0xff] }
  0x77   : > { %4459 = vmatmul.msk.bf16.gmra.mxu1 %vm685_vm5, %v4965_v37  ;;  %v1126_v37 = vrot.slane %v1124_v34, 4  ;;  %v2161_v54 = vunpack.c.l.b16 %v1841_v44  ;;  %v1849_v56 = vor.u32 %v1848_v5, %v1845_v47  ;;  %v1131_v13 = vrot.slane %v5027_v12, 5 }
  0x78   : > { %v1859_v59 = vor.u32 %v1858_v49, %v1854_v48  ;;  %v1867_v16 = vshrl.u32 %v4632_v51, 16  ;;  %v1870_v17 = vshll.u32 %v4632_v51, 16  ;;  %v1876_v18 = vshll.u32 %v4633_v7, 16 }
  0x79   : > { %v1128_v58 = vsel %vm5335_vm8, %v1126_v37, %v1127_v46  ;;  %v2190_v62 = vpack.c.b16 %v2161_v54, %v2160_v53  ;;  %v1850_v1 = vrot.slane %v1849_v56, 4  ;;  %v4478_v3 = vrot.slane %v1054_v15, 9  ;;  %v4635_v53 = vld [vmem:[%s5149_s30 + $0x48] sm:$0xf]  ;;  %v4636_v54 = vld [vmem:[%s5149_s30 + $0x4c] sm:$0xf] }
  0x7a   : > { %v1222_v6 = vunpack.c.l.b16 %v1128_v58  ;;  %v1860_v2 = vrot.slane %v1859_v59, 4  ;;  %v1133_v22 = vrot.slane %v1131_v13, 4  ;;  %v1134_v25 = vrot.slane %v5028_v23, 5  ;;  %v1055_v59 = vld [vmem:[%s5149_s30 + $0x3c] sm:$0xe] }
  0x7b   : > { %v1855_v10 = vsel %vm5161_vm4, %v1850_v1, %v1854_v48  ;;  %v1869_v26 = vrot.slane %v1867_v16, 4  ;;  %v1872_v27 = vrot.slane %v1870_v17, 5  ;;  %v1878_v33 = vrot.slane %v1876_v18, 5  ;;  %v4637_v15 = vld [vmem:[%s5149_s30 + $0x50] sm:$0x1] }
  0x7c   : > { %4492 = vmatmul.msk.bf16.gmra.mxu2 %vm685_vm5, %v1248_v57  ;;  %v1125_v57 = vsel %vm5335_vm8, %v4477_v45, %v1124_v34  ;;  %v1132_v34 = vsel %vm5335_vm8, %v4478_v3, %v1131_v13  ;;  %v1135_v36 = vsel %vm5335_vm8, %v1133_v22, %v1134_v25  ;;  %v1910_v3 = vshll.u32 %v4637_v15, 16  ;;  %v4638_v25 = vld [vmem:[%s5149_s30 + $0x54] sm:$0xf] }
  0x7d   : > { %v1221_v0 = vunpack.c.l.b16 %v1125_v57  ;;  %v1873_v40 = vor.u32 %v1872_v27, %v1869_v26  ;;  %v1223_v45 = vunpack.c.l.b16 %v1132_v34  ;;  %v1224_v37 = vunpack.c.l.b16 %v1135_v36  ;;  %v4639_v26 = vld [vmem:[%s5149_s30 + $0x58] sm:$0xf] }
  0x7e   : > { %v1138_v57 = vrot.slane %v5189_v24, 5  ;;  %v1141_v24 = vrot.slane %v5194_v29, 5 }
  0x7f   : > { %v1250_v8 = vpack.c.b16 %v1222_v6, %v1221_v0  ;;  %v1251_v49 = vpack.c.b16 %v1224_v37, %v1223_v45  ;;  %v1904_v0 = vshrl.u32 %v4636_v54, 16  ;;  %v4984_v6 = vld [vmem:[%s5149_s30 + $0x3c] sm:$0xff]  ;;  %v1056_v45 = vld [vmem:[%s5149_s30 + $0x48] sm:$0xe] }
  0x81   : > { %4605 = vmatmul.msk.bf16.gmra.mxu3 %vm685_vm5, %v4981_v4  ;;  %v1864_v4 = vrot.slane %v1862_v60, 5  ;;  %v1891_v60 = vshrl.u32 %v4635_v53, 16  ;;  %v1906_v13 = vrot.slane %v1904_v0, 4 }
  0x83   : > { %v1865_v11 = vsel %vm5161_vm4, %v1860_v2, %v1864_v4  ;;  %v4479_v2 = vrot.slane %v1055_v59, 9  ;;  %v1140_v4 = vrot.slane %v1138_v57, 4 }
  0x84   : > { %v2163_v21 = vunpack.c.l.b16 %v1865_v11 }
  0x85   : > { %v1139_v16 = vsel %vm5335_vm8, %v4479_v2, %v1138_v57  ;;  %v1142_v17 = vsel %vm5335_vm8, %v1140_v4, %v1141_v24 }
  0x86   : > { %4670 = vmatmul.msk.bf16.gmra.mxu0 %vm685_vm5, %v2189_v19  ;;  %v1880_v19 = vshrl.u32 %v4633_v7, 16  ;;  %v1225_v22 = vunpack.c.l.b16 %v1139_v16  ;;  %v1226_v23 = vunpack.c.l.b16 %v1142_v17 }
  0x87   : > { %4460 = vmatmul.msk.bf16.gmra.mxu1 %vm685_vm5, %v4966_v9  ;;  %v2162_v9 = vunpack.c.l.b16 %v1855_v10  ;;  %v1893_v10 = vrot.slane %v1891_v60, 4 }
  0x88   : > { %v1882_v31 = vrot.slane %v1880_v19, 4  ;;  %v1252_v34 = vpack.c.b16 %v1226_v23, %v1225_v22  ;;  %v1152_v23 = vrot.slane %v5279_v28, 5  ;;  %v1155_v28 = vrot.slane %v5284_v35, 5 }
  0x89   : > { %v2191_v38 = vpack.c.b16 %v2163_v21, %v2162_v9  ;;  %v4969_v9 = vld [vmem:[%s5149_s30 + $0x3c] sm:$0xff] }
  0x8a   : > { %v1883_v41 = vor.u32 %v1882_v31, %v1878_v33 }
  0x8c   : > { %4493 = vmatmul.msk.bf16.gmra.mxu2 %vm685_vm5, %v1249_v32  ;;  %v4634_v32 = vld [vmem:[%s5149_s30 + $0x44] sm:$0x1]  ;;  %v1884_v47 = vrot.slane %v1883_v41, 4  ;;  %v1924_v41 = vshll.u32 %v4639_v26, 16 }
  0x8d   : > { %v1886_v42 = vshll.u32 %v4634_v32, 16  ;;  %v1912_v32 = vrot.slane %v1910_v3, 5 }
  0x8f   : > { %v1888_v5 = vrot.slane %v1886_v42, 5  ;;  %v1145_v42 = vrot.slane %v5233_v52, 5  ;;  %v4480_v52 = vrot.slane %v1056_v45, 9  ;;  %v1154_v45 = vrot.slane %v1152_v23, 4 }
  0x91   : > { %4606 = vmatmul.msk.bf16.gmra.mxu3 %vm685_vm5, %v4982_v50  ;;  %v1874_v50 = vrot.slane %v1873_v40, 4  ;;  %v1889_v56 = vsel %vm5161_vm4, %v1884_v47, %v1888_v5  ;;  %v1918_v40 = vshll.u32 %v4638_v25, 16  ;;  %v1146_v4 = vsel %vm5335_vm8, %v4480_v52, %v1145_v42 }
  0x92   : > { %v2165_v7 = vunpack.c.l.b16 %v1889_v56  ;;  %v1148_v56 = vrot.slane %v5238_v61, 5 }
  0x93   : > { %v1879_v58 = vsel %vm5161_vm4, %v1874_v50, %v1878_v33 }
  0x94   : > { %v2164_v51 = vunpack.c.l.b16 %v1879_v58  ;;  %v1147_v58 = vrot.slane %v1145_v42, 4 }
  0x96   : > { %4671 = vmatmul.msk.bf16.gmra.mxu0 %vm685_vm5, %v2190_v62  ;;  %v1894_v62 = vshll.u32 %v4635_v53, 16  ;;  %v2192_v29 = vpack.c.b16 %v2165_v7, %v2164_v51  ;;  %v1926_v53 = vrot.slane %v1924_v41, 5  ;;  %v1149_v24 = vsel %vm5335_vm8, %v1147_v58, %v1148_v56  ;;  %v4986_v41 = vld [vmem:[%s5149_s30 + $0x54] sm:$0xff] }
  0x97   : > { %4461 = vmatmul.msk.bf16.gmra.mxu1 %vm685_vm5, %v4967_v63  ;;  %v1900_v63 = vshll.u32 %v4636_v54, 16  ;;  %v4985_v54 = vld [vmem:[%s5149_s30 + $0x48] sm:$0xff]  ;;  %v1156_v56 = vsel %vm5335_vm8, %v1154_v45, %v1155_v28 }
  0x98   : > { %v1896_v11 = vrot.slane %v1894_v62, 5 }
  0x99   : > { %v1902_v12 = vrot.slane %v1900_v63, 5  ;;  %v4640_v63 = vld [vmem:[%s5149_s30 + $0x5c] sm:$0x1] }
  0x9a   : > { %v1934_v51 = vshll.u32 %v4640_v63, 16  ;;  %v4971_v63 = vld [vmem:[%s5149_s30 + $0x54] sm:$0xff] }
  0x9b   : > { %v1907_v21 = vor.u32 %v1906_v13, %v1902_v12 }
  0x9c   : > { %v5433_v14 = vpop.f32.mrf.mxu1  ;;  %4494 = vmatmul.msk.bf16.gmra.mxu2 %vm685_vm5, %v1250_v8  ;;  %v1936_v17 = vrot.slane %v1934_v51, 5 }
  0x9d   : > { %v1908_v31 = vrot.slane %v1907_v21, 4 }
  0x9f   : > { %v1913_v50 = vsel %vm5161_vm4, %v1908_v31, %v1912_v32 }
  0xa0   : > { %v2167_v62 = vunpack.c.l.b16 %v1913_v50 }
  0xa1   : > { %4607 = vmatmul.msk.bf16.gmra.mxu3 %vm685_vm5, %v4983_v20  ;;  %v1897_v20 = vor.u32 %v1896_v11, %v1893_v10  ;;  %v4970_v10 = vld [vmem:[%s5149_s30 + $0x48] sm:$0xff]  ;;  %v1227_v11 = vunpack.c.l.b16 %v1146_v4 }
  0xa3   : > { %v1898_v33 = vrot.slane %v1897_v20, 4  ;;  %v4642_v20 = vld [vmem:[%s5149_s30 + $0x64] sm:$0xf] }
  0xa4   : > { %v5446_v44 = vpop.f32.mrf.mxu1  ;;  %v1948_v32 = vshll.u32 %v4642_v20, 16 }
  0xa5   : > { %v1903_v37 = vsel %vm5161_vm4, %v1898_v33, %v1902_v12  ;;  %v1228_v12 = vunpack.c.l.b16 %v1149_v24  ;;  %v1230_v24 = vunpack.c.l.b16 %v1156_v56 }
  0xa6   : > { %v5448_v46 = vpop.f32.mrf.mxu2  ;;  %4672 = vmatmul.msk.bf16.gmra.mxu0 %vm685_vm5, %v2191_v38  ;;  %v1915_v38 = vshrl.u32 %v4638_v25, 16  ;;  %v2166_v60 = vunpack.c.l.b16 %v1903_v37 }
  0xa7   : > { %4462 = vmatmul.msk.bf16.gmra.mxu1 %vm685_vm5, %v4968_v43  ;;  %v1928_v43 = vshrl.u32 %v4639_v26, 16  ;;  %v1253_v21 = vpack.c.b16 %v1228_v12, %v1227_v11  ;;  %v1057_v26 = vld [vmem:[%s5149_s30 + $0x54] sm:$0xe]  ;;  %v4644_v12 = vld [vmem:[%s5149_s30 + $0x6c] sm:$0xf] }
  0xa8   : > { %v1917_v5 = vrot.slane %v1915_v38, 4  ;;  %v2193_v7 = vpack.c.b16 %v2167_v62, %v2166_v60 }
  0xa9   : > { %v5452_v48 = vpop.f32.mrf.mxu0  ;;  %v1930_v59 = vrot.slane %v1928_v43, 4  ;;  %v4481_v43 = vrot.slane %v1057_v26, 9  ;;  %v1966_v26 = vshll.u32 %v4644_v12, 16 }
  0xaa   : > { %v5456_v55 = vpop.f32.mrf.mxu3 }
  0xab   : > { %v1931_v61 = vor.u32 %v1930_v59, %v1926_v53  ;;  %v1153_v58 = vsel %vm5335_vm8, %v4481_v43, %v1152_v23  ;;  %v1963_v23 = vshrl.u32 %v4644_v12, 16 }
  0xac   : > { %4495 = vmatmul.msk.bf16.gmra.mxu2 %vm685_vm5, %v1251_v49  ;;  %v1920_v49 = vrot.slane %v1918_v40, 5  ;;  %v1229_v4 = vunpack.c.l.b16 %v1153_v58  ;;  %v4646_v58 = vld [vmem:[%s5149_s30 + $0x74] sm:$0x1] }
  0xad   : > { %v1932_v16 = vrot.slane %v1931_v61, 4 }
  0xae   : > { %v5466_v1 = vpop.f32.mrf.mxu1  ;;  %v5469_v8 = vpop.f32.mrf.mxu2  ;;  %v1254_v11 = vpack.c.b16 %v1230_v24, %v1229_v4  ;;  %v1982_v24 = vshll.u32 %v4646_v58, 16  ;;  %v4988_v58 = vld [vmem:[%s5149_s30 + $0x6c] sm:$0xff] }
  0xaf   : > { %v1937_v22 = vsel %vm5161_vm4, %v1932_v16, %v1936_v17  ;;  %v5029_v17 = vld [vmem:[%s5149_s30 + $0x64] sm:$0xf] }
  0xb0   : > { %v2169_v42 = vunpack.c.l.b16 %v1937_v22  ;;  %v1058_v22 = vld [vmem:[%s5149_s30 + $0x60] sm:$0xe] }
  0xb1   : > { %4608 = vmatmul.msk.bf16.gmra.mxu3 %vm685_vm5, %v4984_v6  ;;  %v5477_v18 = vpop.f32.mrf.mxu0  ;;  %v1921_v6 = vor.u32 %v1920_v49, %v1917_v5  ;;  %v1950_v5 = vrot.slane %v1948_v32, 5 }
  0xb2   : > { %v5479_v19 = vpop.f32.mrf.mxu3 }
  0xb3   : > { %v1922_v15 = vrot.slane %v1921_v6, 4 }
  0xb5   : > { %v1927_v3 = vsel %vm5161_vm4, %v1922_v15, %v1926_v53  ;;  %v4645_v15 = vld [vmem:[%s5149_s30 + $0x70] sm:$0xf] }
  0xb6   : > { %4673 = vmatmul.msk.bf16.gmra.mxu0 %vm685_vm5, %v2192_v29  ;;  %v5485_v27 = vpop.f32.mrf.mxu1  ;;  %v2168_v40 = vunpack.c.l.b16 %v1927_v3 }
  0xb7   : > { %4463 = vmatmul.msk.bf16.gmra.mxu1 %vm685_vm5, %v4969_v9  ;;  %v4641_v9 = vld [vmem:[%s5149_s30 + $0x60] sm:$0xf] }
  0xb8   : > { %v1939_v33 = vshrl.u32 %v4641_v9, 16  ;;  %v1942_v31 = vshll.u32 %v4641_v9, 16  ;;  %v2194_v59 = vpack.c.b16 %v2169_v42, %v2168_v40  ;;  %v1159_v9 = vrot.slane %v5029_v17, 5 }
  0xb9   : > { %v5488_v36 = vpop.f32.mrf.mxu2  ;;  %v4482_v42 = vrot.slane %v1058_v22, 9 }
  0xba   : > { %v1941_v37 = vrot.slane %v1939_v33, 4  ;;  %v1944_v50 = vrot.slane %v1942_v31, 5  ;;  %v1972_v33 = vshll.u32 %v4645_v15, 16  ;;  %v1976_v31 = vshrl.u32 %v4645_v15, 16 }
  0xbb   : > { %v1161_v43 = vrot.slane %v1159_v9, 4  ;;  %v1160_v56 = vsel %vm5335_vm8, %v4482_v42, %v1159_v9 }
  0xbc   : > { %4496 = vmatmul.msk.bf16.gmra.mxu2 %vm685_vm5, %v1252_v34  ;;  %v1952_v34 = vshrl.u32 %v4642_v20, 16  ;;  %v1945_v35 = vor.u32 %v1944_v50, %v1941_v37  ;;  %v1965_v50 = vrot.slane %v1963_v23, 4  ;;  %v4648_v23 = vld [vmem:[%s5149_s30 + $0x7c] sm:$0xf] }
  0xbd   : > { %v5496_v47 = vpop.f32.mrf.mxu0 }
  0xbe   : > { %v5500_v57 = vpop.f32.mrf.mxu3  ;;  %v1954_v49 = vrot.slane %v1952_v34, 4  ;;  %v1946_v51 = vrot.slane %v1945_v35, 4  ;;  %v5030_v34 = vld [vmem:[%s5149_s30 + $0x68] sm:$0x1] }
  0xbf   : > { %v1162_v40 = vrot.slane %v5030_v34, 5 }
  0xc0   : > { %v5504_v0 = vpop.f32.mrf.mxu1  ;;  %v1955_v60 = vor.u32 %v1954_v49, %v1950_v5  ;;  %v1974_v49 = vrot.slane %v1972_v33, 5 }
  0xc1   : > { %4609 = vmatmul.msk.bf16.gmra.mxu3 %vm685_vm5, %v4985_v54  ;;  %v5507_v2 = vpop.f32.mrf.mxu2  ;;  %v4643_v54 = vld [vmem:[%s5149_s30 + $0x68] sm:$0x1] }
  0xc2   : > { %v1958_v62 = vshll.u32 %v4643_v54, 16  ;;  %v1978_v54 = vrot.slane %v1976_v31, 4  ;;  %v1059_v31 = vld [vmem:[%s5149_s30 + $0x6c] sm:$0xe] }
  0xc4   : > { %v1979_v4 = vor.u32 %v1978_v54, %v1974_v49 }
  0xc5   : > { %v5514_v13 = vpop.f32.mrf.mxu0 }
  0xc6   : > { %4674 = vmatmul.msk.bf16.gmra.mxu0 %vm685_vm5, %v2193_v7  ;;  %v5517_v29 = vpop.f32.mrf.mxu3  ;;  %v1956_v7 = vrot.slane %v1955_v60, 4  ;;  %v1980_v9 = vrot.slane %v1979_v4, 4 }
  0xc7   : > { %4464 = vmatmul.msk.bf16.gmra.mxu1 %vm685_vm5, %v4970_v10  ;;  %v1960_v10 = vrot.slane %v1958_v62, 5  ;;  %v4972_v62 = vld [vmem:[%s5149_s30 + $0x60] sm:$0xff] }
  0xc8   : > { %v5527_v25 = vpop.f32.mrf.mxu1 }
  0xc9   : > { %v1961_v3 = vsel %vm5161_vm4, %v1956_v7, %v1960_v10  ;;  %v1231_v10 = vunpack.c.l.b16 %v1160_v56 }
  0xca   : > { %v2171_v28 = vunpack.c.l.b16 %v1961_v3  ;;  %v4647_v3 = vld [vmem:[%s5149_s30 + $0x78] sm:$0xf] }
  0xcb   : > { %v1987_v34 = vshrl.u32 %v4647_v3, 16 }
  0xcc   : > { %v5530_v38 = vpop.f32.mrf.mxu2  ;;  %4497 = vmatmul.msk.bf16.gmra.mxu2 %vm685_vm5, %v1253_v21  ;;  %v1951_v21 = vsel %vm5161_vm4, %v1946_v51, %v1950_v5  ;;  %v1968_v5 = vrot.slane %v1966_v26, 5  ;;  %v5031_v26 = vld [vmem:[%s5149_s30 + $0x70] sm:$0xf] }
  0xcd   : > { %v2170_v45 = vunpack.c.l.b16 %v1951_v21  ;;  %v1984_v21 = vrot.slane %v1982_v24, 5  ;;  %v1166_v33 = vrot.slane %v5031_v26, 5 }
  0xcf   : > { %v5535_v53 = vpop.f32.mrf.mxu0  ;;  %v2195_v35 = vpack.c.b16 %v2171_v28, %v2170_v45  ;;  %v1985_v42 = vsel %vm5161_vm4, %v1980_v9, %v1984_v21  ;;  %v2000_v45 = vshrl.u32 %v4648_v23, 16 }
  0xd0   : > { %v5538_v52 = vpop.f32.mrf.mxu3 }
  0xd1   : > { %4610 = vmatmul.msk.bf16.gmra.mxu3 %vm685_vm5, %v4986_v41  ;;  %v4987_v41 = vld [vmem:[%s5149_s30 + $0x60] sm:$0xff] }
  0xd4   : > { %v5546_v6 = vpop.f32.mrf.mxu1  ;;  %v5548_v61 = vpop.f32.mrf.mxu2 }
  0xd6   : > { %4675 = vmatmul.msk.bf16.gmra.mxu0 %vm685_vm5, %v2194_v59  ;;  %v1163_v59 = vsel %vm5335_vm8, %v1161_v43, %v1162_v40  ;;  %v1990_v40 = vshll.u32 %v4647_v3, 16  ;;  %v1996_v43 = vshll.u32 %v4648_v23, 16  ;;  %v4973_v23 = vld [vmem:[%s5149_s30 + $0x6c] sm:$0xff] }
  0xd7   : > { %4465 = vmatmul.msk.bf16.gmra.mxu1 %vm685_vm5, %v4971_v63  ;;  %v5554_v16 = vpop.f32.mrf.mxu0  ;;  %v1969_v63 = vor.u32 %v1968_v5, %v1965_v50  ;;  %v5032_v5 = vld [vmem:[%s5149_s30 + $0x74] sm:$0x1] }
  0xd8   : > { %v5557_v20 = vpop.f32.mrf.mxu3  ;;  %v1169_v54 = vrot.slane %v5032_v5, 5  ;;  %v1992_v4 = vrot.slane %v1990_v40, 5 }
  0xd9   : > { %v1970_v17 = vrot.slane %v1969_v63, 4  ;;  %v1989_v63 = vrot.slane %v1987_v34, 4 }
  0xdb   : > { %v1993_v3 = vor.u32 %v1992_v4, %v1989_v63  ;;  %v1060_v4 = vld [vmem:[%s5149_s30 + $0x78] sm:$0xe] }
  0xdc   : > { %4498 = vmatmul.msk.bf16.gmra.mxu2 %vm685_vm5, %v1254_v11  ;;  %v5565_v32 = vpop.f32.mrf.mxu1  ;;  %v1232_v11 = vunpack.c.l.b16 %v1163_v59  ;;  %v4483_v59 = vrot.slane %v1059_v31, 9 }
  0xde   : > { %v1255_v22 = vpack.c.b16 %v1232_v11, %v1231_v10  ;;  %v2002_v10 = vrot.slane %v2000_v45, 4  ;;  %v1167_v9 = vsel %vm5335_vm8, %v4483_v59, %v1166_v33 }
  0xdf   : > { %v5569_v37 = vpop.f32.mrf.mxu2 }
  0xe1   : > { %4611 = vmatmul.msk.bf16.gmra.mxu3 %vm685_vm5, %v4987_v41  ;;  %v1975_v41 = vsel %vm5161_vm4, %v1970_v17, %v1974_v49  ;;  %v4649_v17 = vld [vmem:[%s5149_s30 + $0x80] sm:$0x1] }
  0xe2   : > { %v2172_v49 = vunpack.c.l.b16 %v1975_v41  ;;  %v2006_v31 = vshll.u32 %v4649_v17, 16 }
  0xe3   : > { %v5577_v60 = vpop.f32.mrf.mxu0 }
  0xe4   : > { %v5580_v51 = vpop.f32.mrf.mxu3  ;;  %v970_v7 = vpop.f32.mrf.mxu1  ;;  %v2008_v5 = vrot.slane %v2006_v31, 5  ;;  %v4484_v31 = vrot.slane %v1060_v4, 9 }
  0xe5   : > { %v971_v12 = vadd.f32 %v970_v7, %v5452_v48  ;;  %v1998_v7 = vrot.slane %v1996_v43, 5  ;;  %v1994_v43 = vrot.slane %v1993_v3, 4 }
  0xe6   : > { %4676 = vmatmul.msk.bf16.gmra.mxu0 %vm685_vm5, %v2195_v35  ;;  %v1168_v35 = vrot.slane %v1166_v33, 4 }
  0xe7   : > { %v5584_v15 = vpop.f32.mrf.mxu2  ;;  %4466 = vmatmul.msk.bf16.gmra.mxu1 %vm685_vm5, %v4972_v62  ;;  %v2173_v62 = vunpack.c.l.b16 %v1985_v42  ;;  %v2003_v26 = vor.u32 %v2002_v10, %v1998_v7 }
  0xe9   : > { %v2196_v21 = vpack.c.b16 %v2173_v62, %v2172_v49  ;;  %v4651_v49 = vld [vmem:[%s5149_s30 + $0x88] sm:$0xf]  ;;  %v5033_v62 = vld [vmem:[%s5149_s30 + $0x7c] sm:$0xf] }
  0xea   : > { %v1173_v63 = vrot.slane %v5033_v62, 5 }
  0xeb   : > { %v5591_v48 = vpop.f32.mrf.mxu0 }
  0xec   : > { %v5597_v28 = vpop.f32.mrf.mxu3  ;;  %4499 = vmatmul.msk.bf16.gmra.mxu2 %vm685_vm5, %v1255_v22  ;;  %v972_v50 = vpop.f32.mrf.mxu1 }
  0xed   : > { %v973_v56 = vadd.f32 %v972_v50, %v5477_v18  ;;  %v1170_v18 = vsel %vm5335_vm8, %v1168_v35, %v1169_v54  ;;  %v2004_v50 = vrot.slane %v2003_v26, 4  ;;  %v4650_v54 = vld [vmem:[%s5149_s30 + $0x84] sm:$0xf]  ;;  %v4989_v26 = vld [vmem:[%s5149_s30 + $0x78] sm:$0xff] }
  0xee   : > { %v1234_v41 = vunpack.c.l.b16 %v1170_v18  ;;  %v2014_v17 = vshll.u32 %v4650_v54, 16  ;;  %v2024_v18 = vshrl.u32 %v4651_v49, 16 }
  0xef   : > { %v1323_v24 = vpop.f32.mrf.mxu2 }
  0xf0   : > { %v1403_v11 = vadd.f32 %v1323_v24, %v971_v12  ;;  %v1233_v12 = vunpack.c.l.b16 %v1167_v9  ;;  %v2011_v24 = vshrl.u32 %v4650_v54, 16  ;;  %v2020_v9 = vshll.u32 %v4651_v49, 16 }
  0xf1   : > { %4612 = vmatmul.msk.bf16.gmra.mxu3 %vm685_vm5, %v4988_v58 }
  0xf2   : > { %v1256_v35 = vpack.c.b16 %v1234_v41, %v1233_v12  ;;  %v2013_v41 = vrot.slane %v2011_v24, 4 }
  0xf3   : > { %v2264_v22 = vpop.f32.mrf.mxu0 }
  0xf4   : > { %v1610_v34 = vpop.f32.mrf.mxu3  ;;  %v975_v40 = vpop.f32.mrf.mxu1 }
  0xf5   : > { %v1690_v42 = vadd.f32 %v1610_v34, %v1403_v11  ;;  %v976_v33 = vadd.f32 %v975_v40, %v5496_v47  ;;  %v1999_v47 = vsel %vm5161_vm4, %v1994_v43, %v1998_v7  ;;  %v2009_v11 = vsel %vm5161_vm4, %v2004_v50, %v2008_v5 }
  0xf6   : > { %4677 = vmatmul.msk.bf16.gmra.mxu0 %vm685_vm5, %v2196_v21  ;;  %v5034_v21 = vld [vmem:[%s5149_s30 + $0x80] sm:$0x1]  ;;  %v1175_v34 = vrot.slane %v1173_v63, 4  ;;  %v2174_v40 = vunpack.c.l.b16 %v1999_v47  ;;  %v2175_v12 = vunpack.c.l.b16 %v2009_v11  ;;  %v2016_v43 = vrot.slane %v2014_v17, 5  ;;  %v4974_v47 = vld [vmem:[%s5149_s30 + $0x78] sm:$0xff] }
  0xf7   : > { %v1325_v45 = vpop.f32.mrf.mxu2  ;;  %4467 = vmatmul.msk.bf16.gmra.mxu1 %vm685_vm5, %v4973_v23  ;;  %v5614_v58 = vadd.f32 %v2264_v22, %v1690_v42  ;;  %v1176_v3 = vrot.slane %v5034_v21, 5  ;;  %v2026_v50 = vrot.slane %v2024_v18, 4 }
  0xf8   : > { %v1404_v59 = vadd.f32 %v1325_v45, %v973_v56  ;;  %v2022_v45 = vrot.slane %v2020_v9, 5  ;;  %v2197_v49 = vpack.c.b16 %v2175_v12, %v2174_v40  ;;  %v2017_v4 = vor.u32 %v2016_v43, %v2013_v41  ;;  %v4654_v40 = vld [vmem:[%s5149_s30 + $0x94] sm:$0xf]  ;;  %v5035_v12 = vld [vmem:[%s5149_s30 + $0x88] sm:$0xf] }
  0xf9   : > { %v1180_v41 = vrot.slane %v5035_v12, 5 }
  0xfa   : > { %v2027_v24 = vor.u32 %v2026_v50, %v2022_v45 }
  0xfb   : > { %v2266_v10 = vpop.f32.mrf.mxu0 }
  0xfc   : > { %v1612_v56 = vpop.f32.mrf.mxu3  ;;  %4500 = vmatmul.msk.bf16.gmra.mxu2 %vm685_vm5, %v1256_v35  ;;  %v977_v22 = vpop.f32.mrf.mxu1  ;;  %v4652_v35 = vld [vmem:[%s5149_s30 + $0x8c] sm:$0x1] }
  0xfd   : > { %v1691_v23 = vadd.f32 %v1612_v56, %v1404_v59  ;;  %v978_v7 = vadd.f32 %v977_v22, %v5514_v13  ;;  %v1174_v59 = vsel %vm5335_vm8, %v4484_v31, %v1173_v63  ;;  %v1177_v13 = vsel %vm5335_vm8, %v1175_v34, %v1176_v3 }
  0xfe   : > { %v2030_v11 = vshll.u32 %v4652_v35, 16  ;;  %v1236_v9 = vunpack.c.l.b16 %v1177_v13  ;;  %v2018_v3 = vrot.slane %v2017_v4, 4  ;;  %v2028_v56 = vrot.slane %v2027_v24, 4  ;;  %v4990_v24 = vld [vmem:[%s5149_s30 + $0x84] sm:$0xff] }
  0xff   : > { %v1328_v42 = vpop.f32.mrf.mxu2  ;;  %v5627_v5 = vadd.f32 %v2266_v10, %v1691_v23  ;;  %v4653_v23 = vld [vmem:[%s5149_s30 + $0x90] sm:$0xf]  ;;  %v2048_v13 = vshrl.u32 %v4654_v40, 16 }
 0x100   : > { %v1405_v54 = vadd.f32 %v1328_v42, %v976_v33  ;;  %v1235_v33 = vunpack.c.l.b16 %v1174_v59  ;;  %v2032_v22 = vrot.slane %v2030_v11, 5  ;;  %v1061_v42 = vld [vmem:[%s5149_s30 + $0x84] sm:$0xe]  ;;  %v2038_v43 = vshll.u32 %v4653_v23, 16 }
 0x101   : > { %4613 = vmatmul.msk.bf16.gmra.mxu3 %vm685_vm5, %v4989_v26  ;;  %v2044_v59 = vshll.u32 %v4654_v40, 16 }
 0x102   : > { %v1257_v34 = vpack.c.b16 %v1236_v9, %v1235_v33  ;;  %v2033_v35 = vsel %vm5161_vm4, %v2028_v56, %v2032_v22  ;;  %v2050_v56 = vrot.slane %v2048_v13, 4 }
 0x103   : > { %v2269_v62 = vpop.f32.mrf.mxu0 }
 0x104   : > { %v1615_v17 = vpop.f32.mrf.mxu3  ;;  %v980_v10 = vpop.f32.mrf.mxu1 }
 0x105   : > { %v1692_v18 = vadd.f32 %v1615_v17, %v1405_v54  ;;  %v981_v63 = vadd.f32 %v980_v10, %v5535_v53  ;;  %v2035_v53 = vshrl.u32 %v4653_v23, 16  ;;  %v2023_v54 = vsel %vm5161_vm4, %v2018_v3, %v2022_v45 }
 0x106   : > { %4678 = vmatmul.msk.bf16.gmra.mxu0 %vm685_vm5, %v2197_v49  ;;  %v5036_v49 = vld [vmem:[%s5149_s30 + $0x8c] sm:$0x1]  ;;  %v4485_v17 = vrot.slane %v1061_v42, 9  ;;  %v1182_v10 = vrot.slane %v1180_v41, 4  ;;  %v2176_v33 = vunpack.c.l.b16 %v2023_v54  ;;  %v2177_v45 = vunpack.c.l.b16 %v2033_v35 }
 0x107   : > { %v1330_v21 = vpop.f32.mrf.mxu2  ;;  %4468 = vmatmul.msk.bf16.gmra.mxu1 %vm685_vm5, %v4974_v47  ;;  %v5640_v26 = vadd.f32 %v2269_v62, %v1692_v18  ;;  %v1183_v62 = vrot.slane %v5036_v49, 5  ;;  %v2037_v9 = vrot.slane %v2035_v53, 4  ;;  %v2040_v18 = vrot.slane %v2038_v43, 5  ;;  %v4975_v53 = vld [vmem:[%s5149_s30 + $0x84] sm:$0xff] }
 0x108   : > { %v1406_v31 = vadd.f32 %v1330_v21, %v978_v7  ;;  %v2046_v3 = vrot.slane %v2044_v59, 5  ;;  %v2198_v40 = vpack.c.b16 %v2177_v45, %v2176_v33  ;;  %v4657_v33 = vld [vmem:[%s5149_s30 + $0xa0] sm:$0xf]  ;;  %v5037_v45 = vld [vmem:[%s5149_s30 + $0x94] sm:$0xf] }
 0x109   : > { %v2041_v12 = vor.u32 %v2040_v18, %v2037_v9  ;;  %v1187_v9 = vrot.slane %v5037_v45, 5  ;;  %v1062_v18 = vld [vmem:[%s5149_s30 + $0x90] sm:$0xe] }
 0x10a   : > { %v2051_v43 = vor.u32 %v2050_v56, %v2046_v3 }
 0x10b   : > { %v2271_v50 = vpop.f32.mrf.mxu0  ;;  %v2042_v49 = vrot.slane %v2041_v12, 4 }
 0x10c   : > { %v1617_v7 = vpop.f32.mrf.mxu3  ;;  %4501 = vmatmul.msk.bf16.gmra.mxu2 %vm685_vm5, %v1257_v34  ;;  %v982_v47 = vpop.f32.mrf.mxu1  ;;  %v4655_v34 = vld [vmem:[%s5149_s30 + $0x98] sm:$0x1] }
 0x10d   : > { %v1693_v4 = vadd.f32 %v1617_v7, %v1406_v31  ;;  %v983_v11 = vadd.f32 %v982_v47, %v5554_v16  ;;  %v1181_v31 = vsel %vm5335_vm8, %v4485_v17, %v1180_v41  ;;  %v1184_v16 = vsel %vm5335_vm8, %v1182_v10, %v1183_v62 }
 0x10e   : > { %v2054_v54 = vshll.u32 %v4655_v34, 16  ;;  %v1238_v59 = vunpack.c.l.b16 %v1184_v16  ;;  %v2052_v7 = vrot.slane %v2051_v43, 4  ;;  %v2072_v16 = vshrl.u32 %v4657_v33, 16  ;;  %v4991_v43 = vld [vmem:[%s5149_s30 + $0x90] sm:$0xff] }
 0x10f   : > { %v1333_v21 = vpop.f32.mrf.mxu2  ;;  %v5653_v22 = vadd.f32 %v2271_v50, %v1693_v4  ;;  %v4656_v4 = vld [vmem:[%s5149_s30 + $0x9c] sm:$0xf] }
 0x110   : > { %v1407_v23 = vadd.f32 %v1333_v21, %v981_v63  ;;  %v1237_v63 = vunpack.c.l.b16 %v1181_v31  ;;  %v2056_v47 = vrot.slane %v2054_v54, 5  ;;  %v2059_v21 = vshrl.u32 %v4656_v4, 16 }
 0x111   : > { %4614 = vmatmul.msk.bf16.gmra.mxu3 %vm685_vm5, %v4990_v24  ;;  %v2062_v34 = vshll.u32 %v4656_v4, 16  ;;  %v2068_v31 = vshll.u32 %v4657_v33, 16  ;;  %v4486_v54 = vrot.slane %v1062_v18, 9 }
 0x112   : > { %v1258_v10 = vpack.c.b16 %v1238_v59, %v1237_v63  ;;  %v2061_v59 = vrot.slane %v2059_v21, 4 }
 0x113   : > { %v2274_v42 = vpop.f32.mrf.mxu0 }
 0x114   : > { %v1620_v35 = vpop.f32.mrf.mxu3  ;;  %v985_v50 = vpop.f32.mrf.mxu1 }
 0x115   : > { %v1694_v13 = vadd.f32 %v1620_v35, %v1407_v23  ;;  %v986_v41 = vadd.f32 %v985_v50, %v5577_v60  ;;  %v2047_v60 = vsel %vm5161_vm4, %v2042_v49, %v2046_v3  ;;  %v2057_v23 = vsel %vm5161_vm4, %v2052_v7, %v2056_v47 }
 0x116   : > { %4679 = vmatmul.msk.bf16.gmra.mxu0 %vm685_vm5, %v2198_v40  ;;  %v5038_v40 = vld [vmem:[%s5149_s30 + $0x98] sm:$0x1]  ;;  %v1189_v35 = vrot.slane %v1187_v9, 4  ;;  %v2178_v50 = vunpack.c.l.b16 %v2047_v60  ;;  %v2179_v63 = vunpack.c.l.b16 %v2057_v23  ;;  %v2064_v49 = vrot.slane %v2062_v34, 5  ;;  %v4976_v60 = vld [vmem:[%s5149_s30 + $0x90] sm:$0xff] }
 0x117   : > { %v1335_v62 = vpop.f32.mrf.mxu2  ;;  %4469 = vmatmul.msk.bf16.gmra.mxu1 %vm685_vm5, %v4975_v53  ;;  %v5666_v24 = vadd.f32 %v2274_v42, %v1694_v13  ;;  %v1190_v12 = vrot.slane %v5038_v40, 5  ;;  %v2074_v7 = vrot.slane %v2072_v16, 4  ;;  %v4659_v40 = vld [vmem:[%s5149_s30 + $0xa8] sm:$0xf] }
 0x118   : > { %v1408_v17 = vadd.f32 %v1335_v62, %v983_v11  ;;  %v2070_v62 = vrot.slane %v2068_v31, 5  ;;  %v2199_v33 = vpack.c.b16 %v2179_v63, %v2178_v50  ;;  %v2065_v18 = vor.u32 %v2064_v49, %v2061_v59  ;;  %v5039_v63 = vld [vmem:[%s5149_s30 + $0xa0] sm:$0xf]  ;;  %v1063_v49 = vld [vmem:[%s5149_s30 + $0x9c] sm:$0xe] }
 0x119   : > { %v2083_v50 = vshrl.u32 %v4659_v40, 16  ;;  %v1194_v59 = vrot.slane %v5039_v63, 5 }
 0x11a   : > { %v2075_v21 = vor.u32 %v2074_v7, %v2070_v62 }
 0x11b   : > { %v2276_v56 = vpop.f32.mrf.mxu0 }
 0x11c   : > { %v1622_v11 = vpop.f32.mrf.mxu3  ;;  %4502 = vmatmul.msk.bf16.gmra.mxu2 %vm685_vm5, %v1258_v10  ;;  %v987_v42 = vpop.f32.mrf.mxu1  ;;  %v4658_v10 = vld [vmem:[%s5149_s30 + $0xa4] sm:$0x1] }
 0x11d   : > { %v1695_v53 = vadd.f32 %v1622_v11, %v1408_v17  ;;  %v988_v3 = vadd.f32 %v987_v42, %v5591_v48  ;;  %v1188_v48 = vsel %vm5335_vm8, %v4486_v54, %v1187_v9  ;;  %v1191_v17 = vsel %vm5335_vm8, %v1189_v35, %v1190_v12  ;;  %v4660_v35 = vld [vmem:[%s5149_s30 + $0xac] sm:$0xf] }
 0x11e   : > { %v2078_v23 = vshll.u32 %v4658_v10, 16  ;;  %v1240_v31 = vunpack.c.l.b16 %v1191_v17  ;;  %v2066_v12 = vrot.slane %v2065_v18, 4  ;;  %v2076_v11 = vrot.slane %v2075_v21, 4 }
 0x11f   : > { %v1338_v13 = vpop.f32.mrf.mxu2  ;;  %v5679_v47 = vadd.f32 %v2276_v56, %v1695_v53  ;;  %v2096_v17 = vshrl.u32 %v4660_v35, 16  ;;  %v2085_v18 = vrot.slane %v2083_v50, 4 }
 0x120   : > { %v1409_v4 = vadd.f32 %v1338_v13, %v986_v41  ;;  %v1239_v41 = vunpack.c.l.b16 %v1188_v48  ;;  %v2080_v42 = vrot.slane %v2078_v23, 5  ;;  %v2086_v13 = vshll.u32 %v4659_v40, 16  ;;  %v4992_v23 = vld [vmem:[%s5149_s30 + $0x9c] sm:$0xff] }
 0x121   : > { %4615 = vmatmul.msk.bf16.gmra.mxu3 %vm685_vm5, %v4991_v43  ;;  %v2092_v48 = vshll.u32 %v4660_v35, 16 }
 0x122   : > { %v1259_v54 = vpack.c.b16 %v1240_v31, %v1239_v41  ;;  %v2081_v10 = vsel %vm5161_vm4, %v2076_v11, %v2080_v42  ;;  %v1196_v41 = vrot.slane %v1194_v59, 4  ;;  %v2088_v31 = vrot.slane %v2086_v13, 5  ;;  %v4977_v13 = vld [vmem:[%s5149_s30 + $0x9c] sm:$0xff] }
 0x123   : > { %v2279_v45 = vpop.f32.mrf.mxu0  ;;  %v2181_v40 = vunpack.c.l.b16 %v2081_v10  ;;  %v2098_v11 = vrot.slane %v2096_v17, 4 }
 0x124   : > { %v1625_v56 = vpop.f32.mrf.mxu3  ;;  %v990_v34 = vpop.f32.mrf.mxu1  ;;  %v2089_v63 = vor.u32 %v2088_v31, %v2085_v18 }
 0x125   : > { %v1696_v16 = vadd.f32 %v1625_v56, %v1409_v4  ;;  %v2071_v4 = vsel %vm5161_vm4, %v2066_v12, %v2070_v62  ;;  %v4487_v56 = vrot.slane %v1063_v49, 9  ;;  %v991_v62 = vadd.f32 %v990_v34, %v5433_v14 }
 0x126   : > { %4680 = vmatmul.msk.bf16.gmra.mxu0 %vm685_vm5, %v2199_v33  ;;  %v5040_v33 = vld [vmem:[%s5149_s30 + $0xa4] sm:$0x1]  ;;  %v2094_v12 = vrot.slane %v2092_v48, 5 }
 0x127   : > { %v1340_v9 = vpop.f32.mrf.mxu2  ;;  %4470 = vmatmul.msk.bf16.gmra.mxu1 %vm685_vm5, %v4976_v60  ;;  %v5691_v53 = vadd.f32 %v2279_v45, %v1696_v16  ;;  %v1197_v45 = vrot.slane %v5040_v33, 5  ;;  %v2180_v16 = vunpack.c.l.b16 %v2071_v4 }
 0x128   : > { %v1410_v43 = vadd.f32 %v1340_v9, %v988_v3  ;;  %v2099_v49 = vor.u32 %v2098_v11, %v2094_v12 }
 0x129   : > { %v1198_v50 = vsel %vm5335_vm8, %v1196_v41, %v1197_v45  ;;  %v2200_v14 = vpack.c.b16 %v2181_v40, %v2180_v16 }
 0x12a   : > { %v1242_v17 = vunpack.c.l.b16 %v1198_v50  ;;  %v2100_v18 = vrot.slane %v2099_v49, 4 }
 0x12b   : > { %v2281_v7 = vpop.f32.mrf.mxu0 }
 0x12c   : > { %v1627_v3 = vpop.f32.mrf.mxu3  ;;  %4503 = vmatmul.msk.bf16.gmra.mxu2 %vm685_vm5, %v1259_v54  ;;  %v992_v60 = vpop.f32.mrf.mxu1  ;;  %v4661_v54 = vld [vmem:[%s5149_s30 + $0xb0] sm:$0x1] }
 0x12d   : > { %v1697_v21 = vadd.f32 %v1627_v3, %v1410_v43  ;;  %v1195_v43 = vsel %vm5335_vm8, %v4487_v56, %v1194_v59  ;;  %v2102_v4 = vshll.u32 %v4661_v54, 16  ;;  %v2090_v3 = vrot.slane %v2089_v63, 4  ;;  %v4663_v56 = vld [vmem:[%s5149_s30 + $0xb8] sm:$0xf]  ;;  %v5042_v63 = vld [vmem:[%s5149_s30 + $0xb0] sm:$0x1] }
 0x12e   : > { %v1241_v48 = vunpack.c.l.b16 %v1195_v43  ;;  %v993_v59 = vadd.f32 %v992_v60, %v5446_v44  ;;  %v1064_v44 = vld [vmem:[%s5149_s30 + $0xa8] sm:$0xe]  ;;  %v2116_v60 = vshll.u32 %v4663_v56, 16  ;;  %v2120_v54 = vshrl.u32 %v4663_v56, 16 }
 0x12f   : > { %v1343_v9 = vpop.f32.mrf.mxu2  ;;  %v5704_v42 = vadd.f32 %v2281_v7, %v1697_v21  ;;  %v4662_v21 = vld [vmem:[%s5149_s30 + $0xb4] sm:$0xf]  ;;  %v2095_v40 = vsel %vm5161_vm4, %v2090_v3, %v2094_v12 }
 0x130   : > { %v1411_v35 = vadd.f32 %v1343_v9, %v991_v62  ;;  %v1260_v62 = vpack.c.b16 %v1242_v17, %v1241_v48  ;;  %v2107_v16 = vshrl.u32 %v4662_v21, 16  ;;  %v5041_v9 = vld [vmem:[%s5149_s30 + $0xac] sm:$0xf]  ;;  %v4488_v48 = vrot.slane %v1064_v44, 9 }
 0x131   : > { %4616 = vmatmul.msk.bf16.gmra.mxu3 %vm685_vm5, %v4992_v23  ;;  %v2104_v23 = vrot.slane %v2102_v4, 5  ;;  %v1201_v11 = vrot.slane %v5041_v9, 5  ;;  %v4978_v44 = vld [vmem:[%s5149_s30 + $0xa8] sm:$0xff] }
 0x132   : > { %v2109_v12 = vrot.slane %v2107_v16, 4 }
 0x133   : > { %v2284_v34 = vpop.f32.mrf.mxu0  ;;  %v2105_v50 = vsel %vm5161_vm4, %v2100_v18, %v2104_v23  ;;  %v1203_v17 = vrot.slane %v1201_v11, 4  ;;  %v4664_v23 = vld [vmem:[%s5149_s30 + $0xbc] sm:$0x1] }
 0x134   : > { %v1630_v7 = vpop.f32.mrf.mxu3  ;;  %v995_v10 = vpop.f32.mrf.mxu1 }
 0x135   : > { %v1698_v33 = vadd.f32 %v1630_v7, %v1411_v35  ;;  %v2110_v35 = vshll.u32 %v4662_v21, 16  ;;  %v4993_v7 = vld [vmem:[%s5149_s30 + $0xa8] sm:$0xff]  ;;  %v996_v3 = vadd.f32 %v995_v10, %v5466_v1  ;;  %v2183_v21 = vunpack.c.l.b16 %v2105_v50 }
 0x136   : > { %4681 = vmatmul.msk.bf16.gmra.mxu0 %vm685_vm5, %v2200_v14  ;;  %v1204_v14 = vrot.slane %v5042_v63, 5 }
 0x137   : > { %v1345_v45 = vpop.f32.mrf.mxu2  ;;  %4471 = vmatmul.msk.bf16.gmra.mxu1 %vm685_vm5, %v4977_v13  ;;  %v5718_v41 = vadd.f32 %v2284_v34, %v1698_v33  ;;  %v2182_v13 = vunpack.c.l.b16 %v2095_v40  ;;  %v2112_v33 = vrot.slane %v2110_v35, 5  ;;  %v2126_v40 = vshll.u32 %v4664_v23, 16 }
 0x138   : > { %v1412_v31 = vadd.f32 %v1345_v45, %v993_v59  ;;  %v2118_v59 = vrot.slane %v2116_v60, 5  ;;  %v2122_v45 = vrot.slane %v2120_v54, 4 }
 0x139   : > { %v2113_v16 = vor.u32 %v2112_v33, %v2109_v12  ;;  %v2201_v1 = vpack.c.b16 %v2183_v21, %v2182_v13  ;;  %v2128_v13 = vrot.slane %v2126_v40, 5  ;;  %v5043_v12 = vld [vmem:[%s5149_s30 + $0x10] sm:$0xf]  ;;  %v1065_v21 = vld [vmem:[%s5149_s30 + $0xb4] sm:$0xe] }
 0x13a   : > { %v2123_v10 = vor.u32 %v2122_v45, %v2118_v59  ;;  %v5044_v45 = vld [vmem:[%s5149_s30 + $0xb8] sm:$0xf] }
 0x13b   : > { %v2286_v43 = vpop.f32.mrf.mxu0 }
 0x13c   : > { %v1632_v34 = vpop.f32.mrf.mxu3  ;;  %4504 = vmatmul.msk.bf16.gmra.mxu2 %vm685_vm5, %v1260_v62  ;;  %v997_v49 = vpop.f32.mrf.mxu1  ;;  %v1205_v62 = vsel %vm5335_vm8, %v1203_v17, %v1204_v14  ;;  %v4666_v17 = vld [vmem:[%s5149_s30 + $0xc4] sm:$0xf] }
 0x13d   : > { %v1699_v4 = vadd.f32 %v1632_v34, %v1412_v31  ;;  %v1202_v31 = vsel %vm5335_vm8, %v4488_v48, %v1201_v11  ;;  %v1244_v50 = vunpack.c.l.b16 %v1205_v62  ;;  %v2114_v11 = vrot.slane %v2113_v16, 4  ;;  %v4665_v48 = vld [vmem:[%s5149_s30 + $0xc0] sm:$0xf] }
 0x13e   : > { %v998_v14 = vadd.f32 %v997_v49, %v5485_v27  ;;  %v2124_v34 = vrot.slane %v2123_v10, 4  ;;  %v2140_v62 = vshll.u32 %v4666_v17, 16 }
 0x13f   : > { %v1348_v18 = vpop.f32.mrf.mxu2  ;;  %v5731_v56 = vadd.f32 %v2286_v43, %v1699_v4  ;;  %v1243_v43 = vunpack.c.l.b16 %v1202_v31  ;;  %v2442_v4 = vrot.slane %v5043_v12, 5  ;;  %v2119_v27 = vsel %vm5161_vm4, %v2114_v11, %v2118_v59  ;;  %v4685_v11 = vld [vmem:[%s5149_s30 + $0xc] sm:$0xe] }
 0x140   : > { %v1413_v9 = vadd.f32 %v1348_v18, %v996_v3  ;;  %v1208_v18 = vrot.slane %v5044_v45, 5  ;;  %v2129_v49 = vsel %vm5161_vm4, %v2124_v34, %v2128_v13  ;;  %v2134_v31 = vshll.u32 %v4665_v48, 16  ;;  %v4994_v34 = vld [vmem:[%s5149_s30 + $0xb4] sm:$0xff] }
 0x141   : > { %4617 = vmatmul.msk.bf16.gmra.mxu3 %vm685_vm5, %v4993_v7  ;;  %v1261_v3 = vpack.c.b16 %v1244_v50, %v1243_v43  ;;  %v2444_v16 = vrot.slane %v2442_v4, 4  ;;  %v5046_v43 = vld [vmem:[%s5149_s30 + $0xbc] sm:$0x1]  ;;  %v2184_v13 = vunpack.c.l.b16 %v2119_v27  ;;  %v2185_v12 = vunpack.c.l.b16 %v2129_v49 }
 0x143   : > { %v2289_v35 = vpop.f32.mrf.mxu0 }
 0x144   : > { %v1635_v60 = vpop.f32.mrf.mxu3  ;;  %v1000_v54 = vpop.f32.mrf.mxu1 }
 0x145   : > { %v1700_v63 = vadd.f32 %v1635_v60, %v1413_v9  ;;  %v2131_v9 = vshrl.u32 %v4665_v48, 16  ;;  %v2144_v60 = vshrl.u32 %v4666_v17, 16  ;;  %v1001_v48 = vadd.f32 %v1000_v54, %v5504_v0  ;;  %v4667_v0 = vld [vmem:[%s5149_s30 + $0xc8] sm:$0x1] }
 0x146   : > { %4682 = vmatmul.msk.bf16.gmra.mxu0 %vm685_vm5, %v2201_v1  ;;  %v5045_v1 = vld [vmem:[%s5149_s30 + $0x14] sm:$0x1]  ;;  %v2142_v17 = vrot.slane %v2140_v62, 5 }
 0x147   : > { %v1350_v7 = vpop.f32.mrf.mxu2  ;;  %4472 = vmatmul.msk.bf16.gmra.mxu1 %vm685_vm5, %v4978_v44  ;;  %v5747_v23 = vadd.f32 %v2289_v35, %v1700_v63  ;;  %v2445_v10 = vrot.slane %v5045_v1, 5  ;;  %v4489_v44 = vrot.slane %v1065_v21, 9  ;;  %v1211_v35 = vrot.slane %v5046_v43, 5 }
 0x148   : > { %v1414_v33 = vadd.f32 %v1350_v7, %v998_v14  ;;  %v1210_v63 = vrot.slane %v1208_v18, 4  ;;  %v4701_v7 = vrot.slane %v4685_v11, 9  ;;  %v2133_v45 = vrot.slane %v2131_v9, 4  ;;  %v4979_v11 = vld [vmem:[%s5149_s30 + $0xb4] sm:$0xff] }
 0x149   : > { %v2136_v21 = vrot.slane %v2134_v31, 5  ;;  %v1209_v43 = vsel %vm5335_vm8, %v4489_v44, %v1208_v18  ;;  %v2446_v27 = vsel %vm5335_vm8, %v2444_v16, %v2445_v10  ;;  %v4847_v31 = vld [vmem:[%s5149_s30 + $0x18] sm:$0xf]  ;;  %v2202_v18 = vpack.c.b16 %v2185_v12, %v2184_v13 }
 0x14a   : > { %v2555_v9 = vunpack.c.l.b16 %v2446_v27  ;;  %v1245_v16 = vunpack.c.l.b16 %v1209_v43  ;;  %v3113_v27 = vshll.u32 %v4847_v31, 16 }
 0x14b   : > { %v2291_v40 = vpop.f32.mrf.mxu0  ;;  %v2137_v62 = vor.u32 %v2136_v21, %v2133_v45 }
 0x14c   : > { %v1637_v50 = vpop.f32.mrf.mxu3  ;;  %4505 = vmatmul.msk.bf16.gmra.mxu2 %vm685_vm5, %v1261_v3  ;;  %v1002_v59 = vpop.f32.mrf.mxu1  ;;  %v2146_v3 = vrot.slane %v2144_v60, 4 }
 0x14d   : > { %v1701_v14 = vadd.f32 %v1637_v50, %v1414_v33  ;;  %v2443_v33 = vsel %vm5335_vm8, %v4701_v7, %v2442_v4  ;;  %v1212_v50 = vsel %vm5335_vm8, %v1210_v63, %v1211_v35  ;;  %v5776_v35 = vld [vmem:[%s5149_s30 + $0x1c] sm:$0xf]  ;;  %v1003_v13 = vadd.f32 %v1002_v59, %v5527_v25 }
 0x14e   : > { %v2554_v54 = vunpack.c.l.b16 %v2443_v33  ;;  %v1246_v10 = vunpack.c.l.b16 %v1212_v50  ;;  %v2147_v7 = vor.u32 %v2146_v3, %v2142_v17  ;;  %v3110_v33 = vshrl.u32 %v4847_v31, 16 }
 0x14f   : > { %v1353_v1 = vpop.f32.mrf.mxu2  ;;  %v5772_v60 = vadd.f32 %v2291_v40, %v1701_v14  ;;  %v2138_v12 = vrot.slane %v2137_v62, 4  ;;  %v3119_v40 = vshll.u32 %v5776_v35, 16  ;;  %v3123_v14 = vshrl.u32 %v5776_v35, 16  ;;  %v4849_v62 = vld [vmem:[%s5149_s30 + $0x20] sm:$0x1] }
 0x150   : > { %v1415_v49 = vadd.f32 %v1353_v1, %v1001_v48  ;;  %v5770_v44 = vpack.c.b16 %v2555_v9, %v2554_v54  ;;  %v2150_v48 = vshll.u32 %v4667_v0, 16  ;;  %v1262_v21 = vpack.c.b16 %v1246_v10, %v1245_v16 }
 0x151   : > { %4618 = vmatmul.msk.bf16.gmra.mxu3 %vm685_vm5, %v4994_v34  ;;  %v2148_v43 = vrot.slane %v2147_v7, 4  ;;  %v3112_v0 = vrot.slane %v3110_v33, 4  ;;  %v2143_v25 = vsel %vm5161_vm4, %v2138_v12, %v2142_v17  ;;  %v3121_v59 = vrot.slane %v3119_v40, 5 }
 0x152   : > { %v2152_v3 = vrot.slane %v2150_v48, 5  ;;  %v3125_v9 = vrot.slane %v3123_v14, 4  ;;  %v2186_v48 = vunpack.c.l.b16 %v2143_v25 }
 0x153   : > { %v2294_v4 = vpop.f32.mrf.mxu0 }
 0x154   : > { %v1640_v63 = vpop.f32.mrf.mxu3  ;;  %v1005_v1 = vpop.f32.mrf.mxu1  ;;  %v3126_v33 = vor.u32 %v3125_v9, %v3121_v59  ;;  %v5047_v9 = vld [vmem:[%s5149_s30 + $0x1c] sm:$0xf] }
 0x155   : > { %v1702_v34 = vadd.f32 %v1640_v63, %v1415_v49  ;;  %v3115_v49 = vrot.slane %v3113_v27, 5  ;;  %v1006_v63 = vadd.f32 %v1005_v1, %v5546_v6  ;;  %v3129_v27 = vshll.u32 %v4849_v62, 16  ;;  %v5800_v1 = vld [vmem:[%s5149_s30 + $0x28] sm:$0xf] }
 0x156   : > { %4683 = vmatmul.msk.bf16.gmra.mxu0 %vm685_vm5, %v2202_v18  ;;  %v2153_v18 = vsel %vm5161_vm4, %v2148_v43, %v2152_v3  ;;  %v3127_v14 = vrot.slane %v3126_v33, 4  ;;  %v4850_v43 = vld [vmem:[%s5149_s30 + $0x24] sm:$0xf]  ;;  %v3781_v6 = vrot.slane %v5776_v35, 5 }
 0x157   : > { %v1355_v45 = vpop.f32.mrf.mxu2  ;;  %4473 = vmatmul.msk.bf16.gmra.mxu1 %vm685_vm5, %v4979_v11  ;;  %v5783_v54 = vadd.f32 %v2294_v4, %v1702_v34  ;;  %v3116_v10 = vor.u32 %v3115_v49, %v3112_v0  ;;  %v4995_v4 = vld [vmem:[%s5149_s30 + $0xc0] sm:$0xff]  ;;  %v2187_v17 = vunpack.c.l.b16 %v2153_v18  ;;  %v2449_v18 = vrot.slane %v5047_v9, 5 }
 0x158   : > { %v1416_v50 = vadd.f32 %v1355_v45, %v1003_v13  ;;  %v3131_v45 = vrot.slane %v3129_v27, 5 }
 0x159   : > { %6567 = vst [vmem:[#allocation2_spill] sm:$0xff] %v5783_v54  ;;  %v3117_v12 = vrot.slane %v3116_v10, 4  ;;  %v2203_v40 = vpack.c.b16 %v2187_v17, %v2186_v48  ;;  %v3134_v48 = vshrl.u32 %v4850_v43, 16  ;;  %v3147_v17 = vshrl.u32 %v5800_v1, 16 }
 0x15b   : > { %v2296_v31 = vpop.f32.mrf.mxu0  ;;  %v3122_v25 = vsel %vm5161_vm4, %v3117_v12, %v3121_v59  ;;  %v5048_v59 = vld [vmem:[%s5149_s30 + $0x20] sm:$0x1] }
 0x15c   : > { %v1642_v11 = vpop.f32.mrf.mxu3  ;;  %4506 = vmatmul.msk.bf16.gmra.mxu2 %vm685_vm5, %v1262_v21  ;;  %v1007_v16 = vpop.f32.mrf.mxu1  ;;  %v4912_v21 = vld [vmem:[%s5149_s30 + $0x18] sm:$0xe]  ;;  %v2452_v33 = vrot.slane %v5048_v59, 5 }
 0x15d   : > { %v1703_v7 = vadd.f32 %v1642_v11, %v1416_v50  ;;  %v4928_v10 = vrot.slane %v4912_v21, 9  ;;  %v1008_v35 = vadd.f32 %v1007_v16, %v5565_v32  ;;  %v2451_v32 = vrot.slane %v2449_v18, 4 }
 0x15f   : > { %v1358_v34 = vpop.f32.mrf.mxu2  ;;  %v5796_v3 = vadd.f32 %v2296_v31, %v1703_v7  ;;  %v3137_v31 = vshll.u32 %v4850_v43, 16  ;;  %v3132_v7 = vsel %vm5161_vm4, %v3127_v14, %v3131_v45  ;;  %v3495_v14 = vunpack.c.l.b16 %v3122_v25 }
 0x160   : > { %v1417_v13 = vadd.f32 %v1358_v34, %v1006_v63  ;;  %v3143_v63 = vshll.u32 %v5800_v1, 16  ;;  %v3783_v34 = vrot.slane %v3781_v6, 4  ;;  %v3496_v45 = vunpack.c.l.b16 %v3132_v7 }
 0x161   : > { %4619 = vmatmul.msk.bf16.gmra.mxu3 %vm685_vm5, %v4995_v4  ;;  %6568 = vst [vmem:[#allocation3_spill] sm:$0xff] %v5796_v3  ;;  %v4686_v4 = vld [vmem:[%s5149_s30 + $0x18] sm:$0xe]  ;;  %v3136_v43 = vrot.slane %v3134_v48, 4  ;;  %v3782_v9 = vsel %vm5335_vm8, %v4928_v10, %v3781_v6  ;;  %v3149_v3 = vrot.slane %v3147_v17, 4 }
 0x162   : > { %v4702_v21 = vrot.slane %v4686_v4, 9  ;;  %v3145_v59 = vrot.slane %v3143_v63, 5  ;;  %v3527_v10 = vpack.c.b16 %v3496_v45, %v3495_v14  ;;  %v3893_v4 = vunpack.c.l.b16 %v3782_v9  ;;  %v4853_v14 = vld [vmem:[%s5149_s30 + $0x30] sm:$0xf] }
 0x163   : > { %v2299_v50 = vpop.f32.mrf.mxu0  ;;  %v3788_v45 = vrot.slane %v5800_v1, 5 }
 0x164   : > { %v1645_v0 = vpop.f32.mrf.mxu3  ;;  %v1010_v49 = vpop.f32.mrf.mxu1  ;;  %v2450_v25 = vsel %vm5335_vm8, %v4702_v21, %v2449_v18  ;;  %v3150_v63 = vor.u32 %v3149_v3, %v3145_v59 }
 0x165   : > { %v1704_v11 = vadd.f32 %v1645_v0, %v1417_v13  ;;  %v3784_v13 = vrot.slane %v4849_v62, 5  ;;  %v3139_v0 = vrot.slane %v3137_v31, 5  ;;  %v5823_v62 = vld [vmem:[%s5149_s30 + $0x2c] sm:$0x1]  ;;  %v1011_v31 = vadd.f32 %v1010_v49, %v5448_v46 }
 0x166   : > { %4684 = vmatmul.msk.bf16.gmra.mxu0 %vm685_vm5, %v2203_v40  ;;  %v4996_v40 = vld [vmem:[%s5149_s30 + $0x18] sm:$0xff]  ;;  %v3153_v17 = vshll.u32 %v5823_v62, 16  ;;  %v3151_v21 = vrot.slane %v3150_v63, 4  ;;  %v5050_v63 = vld [vmem:[%s5149_s30 + $0x2c] sm:$0x1] }
 0x167   : > { %v1360_v27 = vpop.f32.mrf.mxu2  ;;  %4718 = vmatmul.msk.bf16.vlgmr.msra.gmra.mxu1 %vm685_vm5, %v5770_v44  ;;  %v5816_v16 = vadd.f32 %v2299_v50, %v1704_v11  ;;  %v3785_v44 = vsel %vm5335_vm8, %v3783_v34, %v3784_v13  ;;  %v2453_v11 = vsel %vm5335_vm8, %v2451_v32, %v2452_v33  ;;  %v3140_v48 = vor.u32 %v3139_v0, %v3136_v43  ;;  %v5839_v43 = vld [vmem:[%s5149_s30 + $0x34] sm:$0xf] }
 0x168   : > { %v1418_v12 = vadd.f32 %v1360_v27, %v1008_v35  ;;  %v3894_v7 = vunpack.c.l.b16 %v3785_v44  ;;  %v2556_v34 = vunpack.c.l.b16 %v2450_v25  ;;  %v2557_v13 = vunpack.c.l.b16 %v2453_v11 }
 0x169   : > { %v3141_v33 = vrot.slane %v3140_v48, 4  ;;  %v3155_v32 = vrot.slane %v3153_v17, 5  ;;  %v2459_v17 = vrot.slane %v5050_v63, 5 }
 0x16a   : > { %v2587_v49 = vpack.c.b16 %v2557_v13, %v2556_v34  ;;  %v3791_v34 = vrot.slane %v5823_v62, 5  ;;  %v5862_v62 = vld [vmem:[%s5149_s30 + $0x38] sm:$0x1] }
 0x16b   : > { %v2301_v54 = vpop.f32.mrf.mxu0  ;;  %v3156_v48 = vsel %vm5161_vm4, %v3151_v21, %v3155_v32 }
 0x16c   : > { %v1647_v35 = vpop.f32.mrf.mxu3  ;;  %4831 = vmatmul.msk.bf16.vlgmr.msra.gmra.mxu2 %vm685_vm5, %v4996_v40  ;;  %v1012_v50 = vpop.f32.mrf.mxu1  ;;  %v3925_v40 = vpack.c.b16 %v3894_v7, %v3893_v4  ;;  %v4687_v4 = vld [vmem:[%s5149_s30 + $0x24] sm:$0xe]  ;;  %v3171_v7 = vshrl.u32 %v5839_v43, 16 }
 0x16d   : > { %v1705_v6 = vadd.f32 %v1647_v35, %v1418_v12  ;;  %v4913_v12 = vld [vmem:[%s5149_s30 + $0x24] sm:$0xe]  ;;  %v5049_v35 = vld [vmem:[%s5149_s30 + $0x28] sm:$0xf]  ;;  %v1013_v1 = vadd.f32 %v1012_v50, %v5469_v8 }
 0x16e   : > { %v4929_v44 = vrot.slane %v4913_v12, 9  ;;  %v2456_v25 = vrot.slane %v5049_v35, 5  ;;  %v3173_v35 = vrot.slane %v3171_v7, 4  ;;  %v3177_v7 = vshll.u32 %v5862_v62, 16 }
 0x16f   : > { %v1363_v27 = vpop.f32.mrf.mxu2  ;;  %v5835_v46 = vadd.f32 %v2301_v54, %v1705_v6  ;;  %v3158_v54 = vshrl.u32 %v4853_v14, 16  ;;  %v3161_v6 = vshll.u32 %v4853_v14, 16 }
 0x170   : > { %v1419_v18 = vadd.f32 %v1363_v27, %v1011_v31  ;;  %v3167_v31 = vshll.u32 %v5839_v43, 16  ;;  %v2458_v8 = vrot.slane %v2456_v25, 4  ;;  %v3789_v14 = vsel %vm5335_vm8, %v4929_v44, %v3788_v45 }
 0x171   : > { %4896 = vmatmul.msk.bf16.vlgmr.msra.gmra.mxu3 %vm685_vm5, %v3527_v10  ;;  %v3146_v10 = vsel %vm5161_vm4, %v3141_v33, %v3145_v59  ;;  %v3790_v59 = vrot.slane %v3788_v45, 4  ;;  %v4703_v33 = vrot.slane %v4687_v4, 9  ;;  %v3160_v21 = vrot.slane %v3158_v54, 4 }
 0x172   : > { %v3497_v12 = vunpack.c.l.b16 %v3146_v10  ;;  %v3163_v32 = vrot.slane %v3161_v6, 5  ;;  %v2460_v10 = vsel %vm5335_vm8, %v2458_v8, %v2459_v17  ;;  %v3895_v4 = vunpack.c.l.b16 %v3789_v14 }
 0x173   : > { %v2304_v3 = vpop.f32.mrf.mxu0  ;;  %v3792_v63 = vsel %vm5335_vm8, %v3790_v59, %v3791_v34  ;;  %v2559_v34 = vunpack.c.l.b16 %v2460_v10  ;;  %v3179_v8 = vrot.slane %v3177_v7, 5 }
 0x174   : > { %v1650_v0 = vpop.f32.mrf.mxu3  ;;  %v1015_v9 = vpop.f32.mrf.mxu1  ;;  %v3164_v54 = vor.u32 %v3163_v32, %v3160_v21  ;;  %v3795_v21 = vrot.slane %v5839_v43, 5  ;;  %v5878_v32 = vld [vmem:[%s5149_s30 + $0x40] sm:$0xf] }
 0x175   : > { %v1706_v11 = vadd.f32 %v1650_v0, %v1419_v18  ;;  %v4997_v18 = vld [vmem:[%s5149_s30 + $0x24] sm:$0xff]  ;;  %v3169_v0 = vrot.slane %v3167_v31, 5  ;;  %v1016_v6 = vadd.f32 %v1015_v9, %v5488_v36 }
 0x176   : > { %4945 = vmatmul.msk.bf16.vlgmr.msra.gmra.mxu0 %vm685_vm5, %v3925_v40  ;;  %v3498_v40 = vunpack.c.l.b16 %v3156_v48  ;;  %v3896_v48 = vunpack.c.l.b16 %v3792_v63  ;;  %v3165_v17 = vrot.slane %v3164_v54, 4 }
 0x177   : > { %v1365_v27 = vpop.f32.mrf.mxu2  ;;  %4719 = vmatmul.msk.bf16.gmra.mxu1 %vm685_vm5, %v2587_v49  ;;  %v5855_v50 = vadd.f32 %v2304_v3, %v1706_v11  ;;  %v2457_v11 = vsel %vm5335_vm8, %v4703_v33, %v2456_v25  ;;  %v3174_v31 = vor.u32 %v3173_v35, %v3169_v0 }
 0x178   : > { %v1420_v13 = vadd.f32 %v1365_v27, %v1013_v1  ;;  %v3528_v44 = vpack.c.b16 %v3498_v40, %v3497_v12  ;;  %v2558_v59 = vunpack.c.l.b16 %v2457_v11  ;;  %v4856_v12 = vld [vmem:[%s5149_s30 + $0x3c] sm:$0xf] }
 0x179   : > { %v3175_v33 = vrot.slane %v3174_v31, 4  ;;  %v5052_v31 = vld [vmem:[%s5149_s30 + $0x38] sm:$0x1] }
 0x17a   : > { %v2588_v40 = vpack.c.b16 %v2559_v34, %v2558_v59  ;;  %v2466_v7 = vrot.slane %v5052_v31, 5  ;;  %v3798_v59 = vrot.slane %v5862_v62, 5  ;;  %v5901_v62 = vld [vmem:[%s5149_s30 + $0x44] sm:$0x1] }
 0x17b   : > { %v2306_v49 = vpop.f32.mrf.mxu0  ;;  %v3180_v54 = vsel %vm5161_vm4, %v3175_v33, %v3179_v8 }
 0x17c   : > { %v1652_v1 = vpop.f32.mrf.mxu3  ;;  %4832 = vmatmul.msk.bf16.gmra.mxu2 %vm685_vm5, %v4997_v18  ;;  %v1017_v3 = vpop.f32.mrf.mxu1  ;;  %v3926_v18 = vpack.c.b16 %v3896_v48, %v3895_v4  ;;  %v4688_v4 = vld [vmem:[%s5149_s30 + $0x30] sm:$0xe]  ;;  %v3195_v48 = vshrl.u32 %v5878_v32, 16 }
 0x17d   : > { %v1707_v45 = vadd.f32 %v1652_v1, %v1420_v13  ;;  %v4914_v13 = vld [vmem:[%s5149_s30 + $0x30] sm:$0xe]  ;;  %v5051_v1 = vld [vmem:[%s5149_s30 + $0x34] sm:$0xf]  ;;  %v1018_v43 = vadd.f32 %v1017_v3, %v5507_v2 }
 0x17e   : > { %v4930_v63 = vrot.slane %v4914_v13, 9  ;;  %v2463_v11 = vrot.slane %v5051_v1, 5  ;;  %v3197_v1 = vrot.slane %v3195_v48, 4  ;;  %v3201_v48 = vshll.u32 %v5901_v62, 16 }
 0x17f   : > { %v1368_v27 = vpop.f32.mrf.mxu2  ;;  %v5874_v36 = vadd.f32 %v2306_v49, %v1707_v45  ;;  %v3182_v49 = vshrl.u32 %v4856_v12, 16  ;;  %v3185_v45 = vshll.u32 %v4856_v12, 16 }
 0x180   : > { %v1421_v25 = vadd.f32 %v1368_v27, %v1016_v6  ;;  %v3191_v6 = vshll.u32 %v5878_v32, 16  ;;  %v2465_v2 = vrot.slane %v2463_v11, 4  ;;  %v3796_v12 = vsel %vm5335_vm8, %v4930_v63, %v3795_v21 }
 0x181   : > { %4897 = vmatmul.msk.bf16.gmra.mxu3 %vm685_vm5, %v3528_v44  ;;  %v3170_v44 = vsel %vm5161_vm4, %v3165_v17, %v3169_v0  ;;  %v3797_v0 = vrot.slane %v3795_v21, 4  ;;  %v4704_v17 = vrot.slane %v4688_v4, 9  ;;  %v3184_v33 = vrot.slane %v3182_v49, 4 }
 0x182   : > { %v3499_v13 = vunpack.c.l.b16 %v3170_v44  ;;  %v3187_v8 = vrot.slane %v3185_v45, 5  ;;  %v2467_v44 = vsel %vm5335_vm8, %v2465_v2, %v2466_v7  ;;  %v3897_v4 = vunpack.c.l.b16 %v3796_v12 }
 0x183   : > { %v2309_v9 = vpop.f32.mrf.mxu0  ;;  %v3799_v31 = vsel %vm5335_vm8, %v3797_v0, %v3798_v59  ;;  %v2561_v59 = vunpack.c.l.b16 %v2467_v44  ;;  %v3203_v2 = vrot.slane %v3201_v48, 5 }
 0x184   : > { %v1655_v14 = vpop.f32.mrf.mxu3  ;;  %v1020_v35 = vpop.f32.mrf.mxu1  ;;  %v3188_v49 = vor.u32 %v3187_v8, %v3184_v33  ;;  %v3802_v33 = vrot.slane %v5878_v32, 5  ;;  %v5917_v8 = vld [vmem:[%s5149_s30 + $0x4c] sm:$0xf] }
 0x185   : > { %v1708_v10 = vadd.f32 %v1655_v14, %v1421_v25  ;;  %v4998_v25 = vld [vmem:[%s5149_s30 + $0x30] sm:$0xff]  ;;  %v3193_v14 = vrot.slane %v3191_v6, 5  ;;  %v1021_v45 = vadd.f32 %v1020_v35, %v5530_v38 }
 0x186   : > { %4946 = vmatmul.msk.bf16.gmra.mxu0 %vm685_vm5, %v3926_v18  ;;  %v3500_v18 = vunpack.c.l.b16 %v3180_v54  ;;  %v3898_v54 = vunpack.c.l.b16 %v3799_v31  ;;  %v3189_v7 = vrot.slane %v3188_v49, 4 }
 0x187   : > { %v1370_v27 = vpop.f32.mrf.mxu2  ;;  %4720 = vmatmul.msk.bf16.gmra.mxu1 %vm685_vm5, %v2588_v40  ;;  %v5894_v3 = vadd.f32 %v2309_v9, %v1708_v10  ;;  %v2464_v10 = vsel %vm5335_vm8, %v4704_v17, %v2463_v11  ;;  %v3198_v6 = vor.u32 %v3197_v1, %v3193_v14 }
 0x188   : > { %v1422_v34 = vadd.f32 %v1370_v27, %v1018_v43  ;;  %v3529_v63 = vpack.c.b16 %v3500_v18, %v3499_v13  ;;  %v2560_v0 = vunpack.c.l.b16 %v2464_v10  ;;  %v4859_v13 = vld [vmem:[%s5149_s30 + $0x48] sm:$0xf] }
 0x189   : > { %v3199_v17 = vrot.slane %v3198_v6, 4  ;;  %v5054_v6 = vld [vmem:[%s5149_s30 + $0x44] sm:$0x1] }
 0x18a   : > { %v2589_v18 = vpack.c.b16 %v2561_v59, %v2560_v0  ;;  %v2473_v48 = vrot.slane %v5054_v6, 5  ;;  %v3805_v0 = vrot.slane %v5901_v62, 5  ;;  %v5940_v62 = vld [vmem:[%s5149_s30 + $0x50] sm:$0x1] }
 0x18b   : > { %v2311_v40 = vpop.f32.mrf.mxu0  ;;  %v3204_v49 = vsel %vm5161_vm4, %v3199_v17, %v3203_v2 }
 0x18c   : > { %v1657_v43 = vpop.f32.mrf.mxu3  ;;  %4833 = vmatmul.msk.bf16.gmra.mxu2 %vm685_vm5, %v4998_v25  ;;  %v1022_v9 = vpop.f32.mrf.mxu1  ;;  %v3927_v25 = vpack.c.b16 %v3898_v54, %v3897_v4  ;;  %v4689_v4 = vld [vmem:[%s5149_s30 + $0x3c] sm:$0xe]  ;;  %v3219_v54 = vshrl.u32 %v5917_v8, 16 }
 0x18d   : > { %v1709_v21 = vadd.f32 %v1657_v43, %v1422_v34  ;;  %v4915_v34 = vld [vmem:[%s5149_s30 + $0x3c] sm:$0xe]  ;;  %v5053_v43 = vld [vmem:[%s5149_s30 + $0x40] sm:$0xf]  ;;  %v1023_v32 = vadd.f32 %v1022_v9, %v5548_v61 }
 0x18e   : > { %v4931_v31 = vrot.slane %v4915_v34, 9  ;;  %v2470_v10 = vrot.slane %v5053_v43, 5  ;;  %v3221_v43 = vrot.slane %v3219_v54, 4  ;;  %v3225_v54 = vshll.u32 %v5940_v62, 16 }
 0x18f   : > { %v1373_v27 = vpop.f32.mrf.mxu2  ;;  %v5913_v38 = vadd.f32 %v2311_v40, %v1709_v21  ;;  %v3206_v40 = vshrl.u32 %v4859_v13, 16  ;;  %v3209_v21 = vshll.u32 %v4859_v13, 16 }
 0x190   : > { %v1423_v11 = vadd.f32 %v1373_v27, %v1021_v45  ;;  %v3215_v45 = vshll.u32 %v5917_v8, 16  ;;  %v2472_v61 = vrot.slane %v2470_v10, 4  ;;  %v3803_v13 = vsel %vm5335_vm8, %v4931_v31, %v3802_v33 }
 0x191   : > { %4898 = vmatmul.msk.bf16.gmra.mxu3 %vm685_vm5, %v3529_v63  ;;  %v3194_v63 = vsel %vm5161_vm4, %v3189_v7, %v3193_v14  ;;  %v3804_v14 = vrot.slane %v3802_v33, 4  ;;  %v4705_v7 = vrot.slane %v4689_v4, 9  ;;  %v3208_v17 = vrot.slane %v3206_v40, 4 }
 0x192   : > { %v3501_v34 = vunpack.c.l.b16 %v3194_v63  ;;  %v3211_v2 = vrot.slane %v3209_v21, 5  ;;  %v2474_v63 = vsel %vm5335_vm8, %v2472_v61, %v2473_v48  ;;  %v3899_v4 = vunpack.c.l.b16 %v3803_v13 }
 0x193   : > { %v2314_v35 = vpop.f32.mrf.mxu0  ;;  %v3806_v6 = vsel %vm5335_vm8, %v3804_v14, %v3805_v0  ;;  %v2563_v0 = vunpack.c.l.b16 %v2474_v63  ;;  %v3227_v61 = vrot.slane %v3225_v54, 5 }
 0x194   : > { %v1660_v12 = vpop.f32.mrf.mxu3  ;;  %v1025_v1 = vpop.f32.mrf.mxu1  ;;  %v3212_v40 = vor.u32 %v3211_v2, %v3208_v17  ;;  %v3809_v17 = vrot.slane %v5917_v8, 5  ;;  %v5956_v2 = vld [vmem:[%s5149_s30 + $0x58] sm:$0xf] }
 0x195   : > { %v1710_v44 = vadd.f32 %v1660_v12, %v1423_v11  ;;  %v4999_v11 = vld [vmem:[%s5149_s30 + $0x3c] sm:$0xff]  ;;  %v3217_v12 = vrot.slane %v3215_v45, 5  ;;  %v1026_v21 = vadd.f32 %v1025_v1, %v5569_v37 }
 0x196   : > { %4947 = vmatmul.msk.bf16.gmra.mxu0 %vm685_vm5, %v3927_v25  ;;  %v3502_v25 = vunpack.c.l.b16 %v3204_v49  ;;  %v3900_v49 = vunpack.c.l.b16 %v3806_v6  ;;  %v3213_v48 = vrot.slane %v3212_v40, 4 }
 0x197   : > { %v1375_v27 = vpop.f32.mrf.mxu2  ;;  %4721 = vmatmul.msk.bf16.gmra.mxu1 %vm685_vm5, %v2589_v18  ;;  %v5933_v9 = vadd.f32 %v2314_v35, %v1710_v44  ;;  %v2471_v44 = vsel %vm5335_vm8, %v4705_v7, %v2470_v10  ;;  %v3222_v45 = vor.u32 %v3221_v43, %v3217_v12 }
 0x198   : > { %v1424_v59 = vadd.f32 %v1375_v27, %v1023_v32  ;;  %v3530_v31 = vpack.c.b16 %v3502_v25, %v3501_v34  ;;  %v2562_v14 = vunpack.c.l.b16 %v2471_v44  ;;  %v4862_v34 = vld [vmem:[%s5149_s30 + $0x54] sm:$0xf] }
 0x199   : > { %v3223_v7 = vrot.slane %v3222_v45, 4  ;;  %v5056_v45 = vld [vmem:[%s5149_s30 + $0x50] sm:$0x1] }
 0x19a   : > { %v2590_v25 = vpack.c.b16 %v2563_v0, %v2562_v14  ;;  %v2480_v54 = vrot.slane %v5056_v45, 5  ;;  %v3812_v14 = vrot.slane %v5940_v62, 5  ;;  %v5979_v62 = vld [vmem:[%s5149_s30 + $0x5c] sm:$0x1] }
 0x19b   : > { %v2316_v18 = vpop.f32.mrf.mxu0  ;;  %v3228_v40 = vsel %vm5161_vm4, %v3223_v7, %v3227_v61 }
 0x19c   : > { %v1662_v32 = vpop.f32.mrf.mxu3  ;;  %4834 = vmatmul.msk.bf16.gmra.mxu2 %vm685_vm5, %v4999_v11  ;;  %v1027_v35 = vpop.f32.mrf.mxu1  ;;  %v3928_v11 = vpack.c.b16 %v3900_v49, %v3899_v4  ;;  %v4690_v4 = vld [vmem:[%s5149_s30 + $0x48] sm:$0xe]  ;;  %v3243_v49 = vshrl.u32 %v5956_v2, 16 }
 0x19d   : > { %v1711_v33 = vadd.f32 %v1662_v32, %v1424_v59  ;;  %v4916_v59 = vld [vmem:[%s5149_s30 + $0x48] sm:$0xe]  ;;  %v5055_v32 = vld [vmem:[%s5149_s30 + $0x4c] sm:$0xf]  ;;  %v1028_v8 = vadd.f32 %v1027_v35, %v5584_v15 }
 0x19e   : > { %v4932_v6 = vrot.slane %v4916_v59, 9  ;;  %v2477_v44 = vrot.slane %v5055_v32, 5  ;;  %v3245_v32 = vrot.slane %v3243_v49, 4  ;;  %v3249_v49 = vshll.u32 %v5979_v62, 16 }
 0x19f   : > { %v1378_v27 = vpop.f32.mrf.mxu2  ;;  %v5952_v37 = vadd.f32 %v2316_v18, %v1711_v33  ;;  %v3230_v18 = vshrl.u32 %v4862_v34, 16  ;;  %v3233_v33 = vshll.u32 %v4862_v34, 16 }
 0x1a0   : > { %v1425_v10 = vadd.f32 %v1378_v27, %v1026_v21  ;;  %v3239_v21 = vshll.u32 %v5956_v2, 16  ;;  %v2479_v15 = vrot.slane %v2477_v44, 4  ;;  %v3810_v34 = vsel %vm5335_vm8, %v4932_v6, %v3809_v17 }
 0x1a1   : > { %4899 = vmatmul.msk.bf16.gmra.mxu3 %vm685_vm5, %v3530_v31  ;;  %v3218_v31 = vsel %vm5161_vm4, %v3213_v48, %v3217_v12  ;;  %v3811_v12 = vrot.slane %v3809_v17, 4  ;;  %v4706_v48 = vrot.slane %v4690_v4, 9  ;;  %v3232_v7 = vrot.slane %v3230_v18, 4 }
 0x1a2   : > { %v3503_v59 = vunpack.c.l.b16 %v3218_v31  ;;  %v3235_v61 = vrot.slane %v3233_v33, 5  ;;  %v2481_v31 = vsel %vm5335_vm8, %v2479_v15, %v2480_v54  ;;  %v3901_v4 = vunpack.c.l.b16 %v3810_v34 }
 0x1a3   : > { %v2319_v1 = vpop.f32.mrf.mxu0  ;;  %v3813_v45 = vsel %vm5335_vm8, %v3811_v12, %v3812_v14  ;;  %v2565_v14 = vunpack.c.l.b16 %v2481_v31  ;;  %v3251_v15 = vrot.slane %v3249_v49, 5 }
 0x1a4   : > { %v1665_v13 = vpop.f32.mrf.mxu3  ;;  %v1030_v43 = vpop.f32.mrf.mxu1  ;;  %v3236_v18 = vor.u32 %v3235_v61, %v3232_v7  ;;  %v3816_v7 = vrot.slane %v5956_v2, 5  ;;  %v5995_v61 = vld [vmem:[%s5149_s30 + $0x64] sm:$0xf] }
 0x1a5   : > { %v1712_v63 = vadd.f32 %v1665_v13, %v1425_v10  ;;  %v5000_v10 = vld [vmem:[%s5149_s30 + $0x48] sm:$0xff]  ;;  %v3241_v13 = vrot.slane %v3239_v21, 5  ;;  %v1031_v33 = vadd.f32 %v1030_v43, %v5456_v55 }
 0x1a6   : > { %4948 = vmatmul.msk.bf16.gmra.mxu0 %vm685_vm5, %v3928_v11  ;;  %v3504_v11 = vunpack.c.l.b16 %v3228_v40  ;;  %v3902_v40 = vunpack.c.l.b16 %v3813_v45  ;;  %v3237_v54 = vrot.slane %v3236_v18, 4 }
 0x1a7   : > { %v1380_v27 = vpop.f32.mrf.mxu2  ;;  %4722 = vmatmul.msk.bf16.gmra.mxu1 %vm685_vm5, %v2590_v25  ;;  %v5972_v35 = vadd.f32 %v2319_v1, %v1712_v63  ;;  %v2478_v63 = vsel %vm5335_vm8, %v4706_v48, %v2477_v44  ;;  %v3246_v21 = vor.u32 %v3245_v32, %v3241_v13 }
 0x1a8   : > { %v1426_v0 = vadd.f32 %v1380_v27, %v1028_v8  ;;  %v3531_v6 = vpack.c.b16 %v3504_v11, %v3503_v59  ;;  %v2564_v12 = vunpack.c.l.b16 %v2478_v63  ;;  %v4865_v59 = vld [vmem:[%s5149_s30 + $0x60] sm:$0xf] }
 0x1a9   : > { %v3247_v48 = vrot.slane %v3246_v21, 4  ;;  %v5058_v21 = vld [vmem:[%s5149_s30 + $0x5c] sm:$0x1] }
 0x1aa   : > { %v2591_v11 = vpack.c.b16 %v2565_v14, %v2564_v12  ;;  %v2487_v49 = vrot.slane %v5058_v21, 5  ;;  %v3819_v12 = vrot.slane %v5979_v62, 5  ;;  %v6018_v62 = vld [vmem:[%s5149_s30 + $0x68] sm:$0x1] }
 0x1ab   : > { %v2321_v25 = vpop.f32.mrf.mxu0  ;;  %v3252_v18 = vsel %vm5161_vm4, %v3247_v48, %v3251_v15 }
 0x1ac   : > { %v1667_v8 = vpop.f32.mrf.mxu3  ;;  %4835 = vmatmul.msk.bf16.gmra.mxu2 %vm685_vm5, %v5000_v10  ;;  %v1032_v1 = vpop.f32.mrf.mxu1  ;;  %v3929_v10 = vpack.c.b16 %v3902_v40, %v3901_v4  ;;  %v4691_v4 = vld [vmem:[%s5149_s30 + $0x54] sm:$0xe]  ;;  %v3267_v40 = vshrl.u32 %v5995_v61, 16 }
 0x1ad   : > { %v1713_v17 = vadd.f32 %v1667_v8, %v1426_v0  ;;  %v4917_v0 = vld [vmem:[%s5149_s30 + $0x54] sm:$0xe]  ;;  %v5057_v8 = vld [vmem:[%s5149_s30 + $0x58] sm:$0xf]  ;;  %v1033_v2 = vadd.f32 %v1032_v1, %v5479_v19 }
 0x1ae   : > { %v4933_v45 = vrot.slane %v4917_v0, 9  ;;  %v2484_v63 = vrot.slane %v5057_v8, 5  ;;  %v3269_v8 = vrot.slane %v3267_v40, 4  ;;  %v3273_v40 = vshll.u32 %v6018_v62, 16 }
 0x1af   : > { %v1383_v27 = vpop.f32.mrf.mxu2  ;;  %v5991_v55 = vadd.f32 %v2321_v25, %v1713_v17  ;;  %v3254_v25 = vshrl.u32 %v4865_v59, 16  ;;  %v3257_v17 = vshll.u32 %v4865_v59, 16 }
 0x1b0   : > { %v1427_v44 = vadd.f32 %v1383_v27, %v1031_v33  ;;  %v3263_v33 = vshll.u32 %v5995_v61, 16  ;;  %v2486_v19 = vrot.slane %v2484_v63, 4  ;;  %v3817_v59 = vsel %vm5335_vm8, %v4933_v45, %v3816_v7 }
 0x1b1   : > { %4900 = vmatmul.msk.bf16.gmra.mxu3 %vm685_vm5, %v3531_v6  ;;  %v3242_v6 = vsel %vm5161_vm4, %v3237_v54, %v3241_v13  ;;  %v3818_v13 = vrot.slane %v3816_v7, 4  ;;  %v4707_v54 = vrot.slane %v4691_v4, 9  ;;  %v3256_v48 = vrot.slane %v3254_v25, 4 }
 0x1b2   : > { %v3505_v0 = vunpack.c.l.b16 %v3242_v6  ;;  %v3259_v15 = vrot.slane %v3257_v17, 5  ;;  %v2488_v6 = vsel %vm5335_vm8, %v2486_v19, %v2487_v49  ;;  %v3903_v4 = vunpack.c.l.b16 %v3817_v59 }
 0x1b3   : > { %v2324_v43 = vpop.f32.mrf.mxu0  ;;  %v3820_v21 = vsel %vm5335_vm8, %v3818_v13, %v3819_v12  ;;  %v2567_v12 = vunpack.c.l.b16 %v2488_v6  ;;  %v3275_v19 = vrot.slane %v3273_v40, 5 }
 0x1b4   : > { %v1670_v34 = vpop.f32.mrf.mxu3  ;;  %v1035_v32 = vpop.f32.mrf.mxu1  ;;  %v3260_v25 = vor.u32 %v3259_v15, %v3256_v48  ;;  %v3823_v48 = vrot.slane %v5995_v61, 5  ;;  %v6034_v15 = vld [vmem:[%s5149_s30 + $0x70] sm:$0xf] }
 0x1b5   : > { %v1714_v31 = vadd.f32 %v1670_v34, %v1427_v44  ;;  %v5001_v44 = vld [vmem:[%s5149_s30 + $0x54] sm:$0xff]  ;;  %v3265_v34 = vrot.slane %v3263_v33, 5  ;;  %v1036_v17 = vadd.f32 %v1035_v32, %v5500_v57 }
 0x1b6   : > { %4949 = vmatmul.msk.bf16.gmra.mxu0 %vm685_vm5, %v3929_v10  ;;  %v3506_v10 = vunpack.c.l.b16 %v3252_v18  ;;  %v3904_v18 = vunpack.c.l.b16 %v3820_v21  ;;  %v3261_v49 = vrot.slane %v3260_v25, 4 }
 0x1b7   : > { %v1385_v27 = vpop.f32.mrf.mxu2  ;;  %4723 = vmatmul.msk.bf16.gmra.mxu1 %vm685_vm5, %v2591_v11  ;;  %v6011_v1 = vadd.f32 %v2324_v43, %v1714_v31  ;;  %v2485_v31 = vsel %vm5335_vm8, %v4707_v54, %v2484_v63  ;;  %v3270_v33 = vor.u32 %v3269_v8, %v3265_v34 }
 0x1b8   : > { %v1428_v14 = vadd.f32 %v1385_v27, %v1033_v2  ;;  %v3532_v45 = vpack.c.b16 %v3506_v10, %v3505_v0  ;;  %v2566_v13 = vunpack.c.l.b16 %v2485_v31  ;;  %v4868_v0 = vld [vmem:[%s5149_s30 + $0x6c] sm:$0xf] }
 0x1b9   : > { %v3271_v54 = vrot.slane %v3270_v33, 4  ;;  %v5060_v33 = vld [vmem:[%s5149_s30 + $0x68] sm:$0x1] }
 0x1ba   : > { %v2592_v10 = vpack.c.b16 %v2567_v12, %v2566_v13  ;;  %v2494_v40 = vrot.slane %v5060_v33, 5  ;;  %v3826_v13 = vrot.slane %v6018_v62, 5  ;;  %v6057_v62 = vld [vmem:[%s5149_s30 + $0x74] sm:$0x1] }
 0x1bb   : > { %v2326_v11 = vpop.f32.mrf.mxu0  ;;  %v3276_v25 = vsel %vm5161_vm4, %v3271_v54, %v3275_v19 }
 0x1bc   : > { %v1672_v2 = vpop.f32.mrf.mxu3  ;;  %4836 = vmatmul.msk.bf16.gmra.mxu2 %vm685_vm5, %v5001_v44  ;;  %v1037_v43 = vpop.f32.mrf.mxu1  ;;  %v3930_v44 = vpack.c.b16 %v3904_v18, %v3903_v4  ;;  %v4692_v4 = vld [vmem:[%s5149_s30 + $0x60] sm:$0xe]  ;;  %v3291_v18 = vshrl.u32 %v6034_v15, 16 }
 0x1bd   : > { %v1715_v7 = vadd.f32 %v1672_v2, %v1428_v14  ;;  %v4918_v14 = vld [vmem:[%s5149_s30 + $0x60] sm:$0xe]  ;;  %v5059_v2 = vld [vmem:[%s5149_s30 + $0x64] sm:$0xf]  ;;  %v1038_v61 = vadd.f32 %v1037_v43, %v5517_v29 }
 0x1be   : > { %v4934_v21 = vrot.slane %v4918_v14, 9  ;;  %v2491_v31 = vrot.slane %v5059_v2, 5  ;;  %v3293_v2 = vrot.slane %v3291_v18, 4  ;;  %v3297_v18 = vshll.u32 %v6057_v62, 16 }
 0x1bf   : > { %v1388_v27 = vpop.f32.mrf.mxu2  ;;  %v6030_v57 = vadd.f32 %v2326_v11, %v1715_v7  ;;  %v3278_v11 = vshrl.u32 %v4868_v0, 16  ;;  %v3281_v7 = vshll.u32 %v4868_v0, 16 }
 0x1c0   : > { %v1429_v63 = vadd.f32 %v1388_v27, %v1036_v17  ;;  %v3287_v17 = vshll.u32 %v6034_v15, 16  ;;  %v2493_v29 = vrot.slane %v2491_v31, 4  ;;  %v3824_v0 = vsel %vm5335_vm8, %v4934_v21, %v3823_v48 }
 0x1c1   : > { %4901 = vmatmul.msk.bf16.gmra.mxu3 %vm685_vm5, %v3532_v45  ;;  %v3266_v45 = vsel %vm5161_vm4, %v3261_v49, %v3265_v34  ;;  %v3825_v34 = vrot.slane %v3823_v48, 4  ;;  %v4708_v49 = vrot.slane %v4692_v4, 9  ;;  %v3280_v54 = vrot.slane %v3278_v11, 4 }
 0x1c2   : > { %v3507_v14 = vunpack.c.l.b16 %v3266_v45  ;;  %v3283_v19 = vrot.slane %v3281_v7, 5  ;;  %v2495_v45 = vsel %vm5335_vm8, %v2493_v29, %v2494_v40  ;;  %v3905_v4 = vunpack.c.l.b16 %v3824_v0 }
 0x1c3   : > { %v2329_v32 = vpop.f32.mrf.mxu0  ;;  %v3827_v33 = vsel %vm5335_vm8, %v3825_v34, %v3826_v13  ;;  %v2569_v13 = vunpack.c.l.b16 %v2495_v45  ;;  %v3299_v29 = vrot.slane %v3297_v18, 5  ;;  %v5061_v45 = vld [vmem:[%s5149_s30 + $0x70] sm:$0xf] }
 0x1c4   : > { %v1675_v59 = vpop.f32.mrf.mxu3  ;;  %v1040_v8 = vpop.f32.mrf.mxu1  ;;  %v3284_v11 = vor.u32 %v3283_v19, %v3280_v54  ;;  %v3830_v19 = vrot.slane %v6034_v15, 5 }
 0x1c5   : > { %v1716_v6 = vadd.f32 %v1675_v59, %v1429_v63  ;;  %v5002_v63 = vld [vmem:[%s5149_s30 + $0x60] sm:$0xff]  ;;  %v3289_v59 = vrot.slane %v3287_v17, 5  ;;  %v1041_v7 = vadd.f32 %v1040_v8, %v5538_v52 }
 0x1c6   : > { %4950 = vmatmul.msk.bf16.gmra.mxu0 %vm685_vm5, %v3930_v44  ;;  %v3508_v44 = vunpack.c.l.b16 %v3276_v25  ;;  %v3906_v25 = vunpack.c.l.b16 %v3827_v33  ;;  %v3285_v40 = vrot.slane %v3284_v11, 4 }
 0x1c7   : > { %v1390_v27 = vpop.f32.mrf.mxu2  ;;  %4724 = vmatmul.msk.bf16.gmra.mxu1 %vm685_vm5, %v2592_v10  ;;  %v6050_v43 = vadd.f32 %v2329_v32, %v1716_v6  ;;  %v2492_v6 = vsel %vm5335_vm8, %v4708_v49, %v2491_v31  ;;  %v3294_v17 = vor.u32 %v3293_v2, %v3289_v59  ;;  %v4871_v31 = vld [vmem:[%s5149_s30 + $0x78] sm:$0xf] }
 0x1c8   : > { %v1430_v12 = vadd.f32 %v1390_v27, %v1038_v61  ;;  %v3533_v21 = vpack.c.b16 %v3508_v44, %v3507_v14  ;;  %v2568_v34 = vunpack.c.l.b16 %v2492_v6  ;;  %v4919_v14 = vld [vmem:[%s5149_s30 + $0x6c] sm:$0xe]  ;;  %v6070_v44 = vld [vmem:[%s5149_s30 + $0x7c] sm:$0xf]  ;;  %v3302_v0 = vshrl.u32 %v4871_v31, 16 }
 0x1c9   : > { %v3295_v49 = vrot.slane %v3294_v17, 4  ;;  %v3305_v2 = vshll.u32 %v4871_v31, 16  ;;  %v4693_v6 = vld [vmem:[%s5149_s30 + $0x6c] sm:$0xe]  ;;  %v3290_v15 = vsel %vm5161_vm4, %v3285_v40, %v3289_v59  ;;  %v3833_v17 = vrot.slane %v6057_v62, 5 }
 0x1ca   : > { %v2593_v54 = vpack.c.b16 %v2569_v13, %v2568_v34  ;;  %v4709_v34 = vrot.slane %v4693_v6, 9  ;;  %v3304_v13 = vrot.slane %v3302_v0, 4  ;;  %v3509_v59 = vunpack.c.l.b16 %v3290_v15  ;;  %v6096_v0 = vld [vmem:[%s5149_s30 + $0x80] sm:$0x1] }
 0x1cb   : > { %v2331_v10 = vpop.f32.mrf.mxu0 }
 0x1cc   : > { %v1677_v61 = vpop.f32.mrf.mxu3  ;;  %4837 = vmatmul.msk.bf16.gmra.mxu2 %vm685_vm5, %v5002_v63  ;;  %v1042_v32 = vpop.f32.mrf.mxu1 }
 0x1cd   : > { %v1717_v48 = vadd.f32 %v1677_v61, %v1430_v12  ;;  %v3931_v12 = vpack.c.b16 %v3906_v25, %v3905_v4  ;;  %v4935_v4 = vrot.slane %v4919_v14, 9  ;;  %v3300_v25 = vsel %vm5161_vm4, %v3295_v49, %v3299_v29 }
 0x1ce   : > { %v3510_v40 = vunpack.c.l.b16 %v3300_v25 }
 0x1cf   : > { %v1393_v27 = vpop.f32.mrf.mxu2  ;;  %v6072_v52 = vadd.f32 %v2331_v10, %v1717_v48  ;;  %v3315_v10 = vshrl.u32 %v6070_v44, 16  ;;  %v1043_v48 = vadd.f32 %v1042_v32, %v5557_v20  ;;  %v5062_v20 = vld [vmem:[%s5149_s30 + $0x74] sm:$0x1] }
 0x1d0   : > { %v1431_v63 = vadd.f32 %v1393_v27, %v1041_v7  ;;  %v3311_v7 = vshll.u32 %v6070_v44, 16  ;;  %v3832_v27 = vrot.slane %v3830_v19, 4  ;;  %v2501_v32 = vrot.slane %v5062_v20, 5 }
 0x1d1   : > { %4902 = vmatmul.msk.bf16.gmra.mxu3 %vm685_vm5, %v3533_v21  ;;  %v2498_v21 = vrot.slane %v5061_v45, 5  ;;  %v3317_v29 = vrot.slane %v3315_v10, 4 }
 0x1d2   : > { %v3313_v49 = vrot.slane %v3311_v7, 5  ;;  %v3834_v6 = vsel %vm5335_vm8, %v3832_v27, %v3833_v17  ;;  %v3321_v17 = vshll.u32 %v6096_v0, 16 }
 0x1d3   : > { %v2334_v8 = vpop.f32.mrf.mxu0  ;;  %v2500_v14 = vrot.slane %v2498_v21, 4  ;;  %v3908_v25 = vunpack.c.l.b16 %v3834_v6 }
 0x1d4   : > { %v1680_v33 = vpop.f32.mrf.mxu3  ;;  %v1045_v61 = vpop.f32.mrf.mxu1 }
 0x1d5   : > { %v1718_v11 = vadd.f32 %v1680_v33, %v1431_v63  ;;  %v3307_v63 = vrot.slane %v3305_v2, 5 }
 0x1d6   : > { %4951 = vmatmul.msk.bf16.gmra.mxu0 %vm685_vm5, %v3931_v12  ;;  %v5003_v12 = vld [vmem:[%s5149_s30 + $0x6c] sm:$0xff] }
 0x1d7   : > { %v1395_v18 = vpop.f32.mrf.mxu2  ;;  %4725 = vmatmul.msk.bf16.gmra.mxu1 %vm685_vm5, %v2593_v54  ;;  %v6089_v33 = vadd.f32 %v2334_v8, %v1718_v11  ;;  %v3831_v54 = vsel %vm5335_vm8, %v4935_v4, %v3830_v19  ;;  %v2499_v8 = vsel %vm5335_vm8, %v4709_v34, %v2498_v21  ;;  %v2502_v11 = vsel %vm5335_vm8, %v2500_v14, %v2501_v32  ;;  %v4874_v34 = vld [vmem:[%s5149_s30 + $0x84] sm:$0xf]  ;;  %v4920_v14 = vld [vmem:[%s5149_s30 + $0x78] sm:$0xe] }
 0x1d8   : > { %v1432_v31 = vadd.f32 %v1395_v18, %v1043_v48  ;;  %v3308_v7 = vor.u32 %v3307_v63, %v3304_v13  ;;  %v3534_v48 = vpack.c.b16 %v3510_v40, %v3509_v59  ;;  %v3318_v19 = vor.u32 %v3317_v29, %v3313_v49 }
 0x1d9   : > { %v1046_v4 = vadd.f32 %v1045_v61, %v5580_v51  ;;  %v3907_v15 = vunpack.c.l.b16 %v3831_v54  ;;  %v2570_v27 = vunpack.c.l.b16 %v2499_v8  ;;  %v3837_v51 = vrot.slane %v6070_v44, 5  ;;  %v6110_v61 = vld [vmem:[%s5149_s30 + $0x88] sm:$0xf] }
 0x1da   : > { %v3309_v21 = vrot.slane %v3308_v7, 4  ;;  %v3319_v13 = vrot.slane %v3318_v19, 4  ;;  %v3326_v29 = vshrl.u32 %v4874_v34, 16  ;;  %v3329_v54 = vshll.u32 %v4874_v34, 16  ;;  %v5063_v7 = vld [vmem:[%s5149_s30 + $0x7c] sm:$0xf] }
 0x1db   : > { %v2336_v62 = vpop.f32.mrf.mxu0  ;;  %v3932_v63 = vpack.c.b16 %v3908_v25, %v3907_v15  ;;  %v3335_v44 = vshll.u32 %v6110_v61, 16  ;;  %v3839_v25 = vrot.slane %v3837_v51, 4  ;;  %v5004_v34 = vld [vmem:[%s5149_s30 + $0x78] sm:$0xff] }
 0x1dc   : > { %v1682_v2 = vpop.f32.mrf.mxu3  ;;  %4838 = vmatmul.msk.bf16.gmra.mxu2 %vm685_vm5, %v5003_v12  ;;  %v1047_v45 = vpop.f32.mrf.mxu1  ;;  %v2571_v12 = vunpack.c.l.b16 %v2502_v11  ;;  %v3314_v8 = vsel %vm5161_vm4, %v3309_v21, %v3313_v49  ;;  %v4694_v11 = vld [vmem:[%s5149_s30 + $0x78] sm:$0xe]  ;;  %v3840_v49 = vrot.slane %v6096_v0, 5 }
 0x1dd   : > { %v1719_v10 = vadd.f32 %v1682_v2, %v1432_v31  ;;  %v3323_v31 = vrot.slane %v3321_v17, 5  ;;  %v3337_v0 = vrot.slane %v3335_v44, 5 }
 0x1de   : > { %v2594_v40 = vpack.c.b16 %v2571_v12, %v2570_v27  ;;  %v4710_v27 = vrot.slane %v4694_v11, 9  ;;  %v3328_v12 = vrot.slane %v3326_v29, 4  ;;  %v6135_v11 = vld [vmem:[%s5149_s30 + $0x8c] sm:$0x1] }
 0x1df   : > { %v1398_v18 = vpop.f32.mrf.mxu2  ;;  %v6112_v32 = vadd.f32 %v2336_v62, %v1719_v10  ;;  %v3339_v62 = vshrl.u32 %v6110_v61, 16  ;;  %v1048_v10 = vadd.f32 %v1047_v45, %v5597_v28  ;;  %v3324_v15 = vsel %vm5161_vm4, %v3319_v13, %v3323_v31 }
 0x1e0   : > { %v1433_v20 = vadd.f32 %v1398_v18, %v1046_v4  ;;  %v4936_v4 = vrot.slane %v4920_v14, 9  ;;  %v3511_v18 = vunpack.c.l.b16 %v3314_v8  ;;  %v3512_v45 = vunpack.c.l.b16 %v3324_v15 }
 0x1e1   : > { %4903 = vmatmul.msk.bf16.gmra.mxu3 %vm685_vm5, %v3534_v48  ;;  %v2505_v48 = vrot.slane %v5063_v7, 5  ;;  %v3341_v31 = vrot.slane %v3339_v62, 4  ;;  %v3345_v15 = vshll.u32 %v6135_v11, 16 }
 0x1e2   : > { %v3838_v13 = vsel %vm5335_vm8, %v4936_v4, %v3837_v51  ;;  %v3535_v44 = vpack.c.b16 %v3512_v45, %v3511_v18 }
 0x1e3   : > { %v2339_v59 = vpop.f32.mrf.mxu0  ;;  %v2507_v14 = vrot.slane %v2505_v48, 4 }
 0x1e4   : > { %v1685_v6 = vpop.f32.mrf.mxu3  ;;  %v2662_v2 = vpop.f32.mrf.mxu1 }
 0x1e5   : > { %v1720_v19 = vadd.f32 %v1685_v6, %v1433_v20  ;;  %v3331_v20 = vrot.slane %v3329_v54, 5 }
 0x1e6   : > { %4952 = vmatmul.msk.bf16.gmra.mxu0 %vm685_vm5, %v3932_v63  ;;  %v5064_v63 = vld [vmem:[%s5149_s30 + $0x80] sm:$0x1] }
 0x1e7   : > { %v1400_v17 = vpop.f32.mrf.mxu2  ;;  %4726 = vmatmul.msk.bf16.gmra.mxu1 %vm685_vm5, %v2594_v40  ;;  %v2508_v6 = vrot.slane %v5064_v63, 5  ;;  %v6128_v28 = vadd.f32 %v2339_v59, %v1720_v19  ;;  %v3841_v40 = vsel %vm5335_vm8, %v3839_v25, %v3840_v49  ;;  %v3332_v29 = vor.u32 %v3331_v20, %v3328_v12  ;;  %v4921_v63 = vld [vmem:[%s5149_s30 + $0x84] sm:$0xe] }
 0x1e8   : > { %v1434_v21 = vadd.f32 %v1400_v17, %v1048_v10  ;;  %v3909_v59 = vunpack.c.l.b16 %v3838_v13  ;;  %v2506_v19 = vsel %vm5335_vm8, %v4710_v27, %v2505_v48  ;;  %v3910_v62 = vunpack.c.l.b16 %v3841_v40 }
 0x1e9   : > { %v2509_v51 = vsel %vm5335_vm8, %v2507_v14, %v2508_v6  ;;  %v3342_v10 = vor.u32 %v3341_v31, %v3337_v0  ;;  %v2742_v25 = vadd.f32 %v2662_v2, %v5614_v58  ;;  %v2572_v17 = vunpack.c.l.b16 %v2506_v19  ;;  %v6149_v14 = vld [vmem:[%s5149_s30 + $0x94] sm:$0xf]  ;;  %v4695_v19 = vld [vmem:[%s5149_s30 + $0x84] sm:$0xe] }
 0x1ea   : > { %v2573_v12 = vunpack.c.l.b16 %v2509_v51  ;;  %v3333_v20 = vrot.slane %v3332_v29, 4  ;;  %v3933_v48 = vpack.c.b16 %v3910_v62, %v3909_v59  ;;  %v3347_v6 = vrot.slane %v3345_v15, 5  ;;  %v5065_v51 = vld [vmem:[%s5149_s30 + $0x88] sm:$0xf] }
 0x1eb   : > { %v2341_v8 = vpop.f32.mrf.mxu0  ;;  %v3343_v18 = vrot.slane %v3342_v10, 4  ;;  %v4937_v29 = vrot.slane %v4921_v63, 9  ;;  %v3363_v62 = vshrl.u32 %v6149_v14, 16 }
 0x1ec   : > { %v1687_v54 = vpop.f32.mrf.mxu3  ;;  %4839 = vmatmul.msk.bf16.gmra.mxu2 %vm685_vm5, %v5004_v34  ;;  %v2664_v7 = vpop.f32.mrf.mxu1  ;;  %v4877_v34 = vld [vmem:[%s5149_s30 + $0x90] sm:$0xf]  ;;  %v2595_v31 = vpack.c.b16 %v2573_v12, %v2572_v17  ;;  %v3338_v40 = vsel %vm5161_vm4, %v3333_v20, %v3337_v0  ;;  %v3847_v0 = vrot.slane %v6135_v11, 5  ;;  %v6171_v20 = vld [vmem:[%s6561_s3] ss:$0 sm:$0xff] }
 0x1ed   : > { %v1721_v4 = vadd.f32 %v1687_v54, %v1434_v21  ;;  %v3844_v21 = vrot.slane %v6110_v61, 5  ;;  %v3350_v45 = vshrl.u32 %v4877_v34, 16  ;;  %v3353_v58 = vshll.u32 %v4877_v34, 16 }
 0x1ee   : > { %v3359_v61 = vshll.u32 %v6149_v14, 16  ;;  %v3348_v15 = vsel %vm5161_vm4, %v3343_v18, %v3347_v6  ;;  %v2743_v34 = vadd.f32 %v2664_v7, %v5627_v5  ;;  %v5066_v6 = vld [vmem:[%s5149_s30 + $0x8c] sm:$0x1]  ;;  %v6185_v7 = vld [vmem:[%s5149_s30 + $0x98] sm:$0x1] }
 0x1ef   : > { %v2949_v49 = vpop.f32.mrf.mxu2  ;;  %v6151_v2 = vadd.f32 %v2341_v8, %v1721_v4  ;;  %v6162_v8 = vld [vmem:[%s6560_s2] ss:$0 sm:$0xff]  ;;  %v3846_v4 = vrot.slane %v3844_v21, 4  ;;  %v3355_v17 = vrot.slane %v3353_v58, 5  ;;  %v3845_v11 = vsel %vm5335_vm8, %v4937_v29, %v3844_v21 }
 0x1f0   : > { %v3029_v27 = vadd.f32 %v2949_v49, %v2742_v25  ;;  %v3513_v25 = vunpack.c.l.b16 %v3338_v40  ;;  %v3352_v49 = vrot.slane %v3350_v45, 4  ;;  %v2515_v45 = vrot.slane %v5066_v6, 5 }
 0x1f1   : > { %4904 = vmatmul.msk.bf16.gmra.mxu3 %vm685_vm5, %v3535_v44  ;;  %6569 = vst [vmem:[#allocation4_spill] sm:$0xff] %v6151_v2  ;;  %v2512_v44 = vrot.slane %v5065_v51, 5  ;;  %v6179_v58 = vrot.slane %v3359_v61, 5  ;;  %v3514_v51 = vunpack.c.l.b16 %v3348_v15  ;;  %v3848_v5 = vsel %vm5335_vm8, %v3846_v4, %v3847_v0  ;;  %v4880_v2 = vld [vmem:[%s5149_s30 + $0x9c] sm:$0xf] }
 0x1f2   : > { %v3369_v15 = vshll.u32 %v6185_v7, 16 }
 0x1f3   : > { %v4001_v13 = vpop.f32.mrf.mxu0  ;;  %v2514_v18 = vrot.slane %v2512_v44, 4 }
 0x1f4   : > { %v3603_v54 = vpop.f32.mrf.mxu3  ;;  %v2667_v59 = vpop.f32.mrf.mxu1 }
 0x1f5   : > { %v3683_v10 = vadd.f32 %v3603_v54, %v3029_v27  ;;  %v5005_v27 = vld [vmem:[%s5149_s30 + $0x84] sm:$0xff]  ;;  %v2516_v4 = vsel %vm5335_vm8, %v2514_v18, %v2515_v45  ;;  %v2744_v6 = vadd.f32 %v2667_v59, %v5640_v26  ;;  %v3371_v45 = vrot.slane %v3369_v15, 5 }
 0x1f6   : > { %4953 = vmatmul.msk.bf16.gmra.mxu0 %vm685_vm5, %v3933_v48  ;;  %v4711_v48 = vrot.slane %v4695_v19, 9  ;;  %v3911_v19 = vunpack.c.l.b16 %v3845_v11  ;;  %v3854_v15 = vrot.slane %v6185_v7, 5 }
 0x1f7   : > { %v4081_v12 = vadd.f32 %v4001_v13, %v3683_v10  ;;  %v2951_v63 = vpop.f32.mrf.mxu2  ;;  %4727 = vmatmul.msk.bf16.gmra.mxu1 %vm685_vm5, %v2595_v31  ;;  %v3365_v13 = vrot.slane %v3363_v62, 4  ;;  %v3356_v31 = vor.u32 %v3355_v17, %v3352_v49  ;;  %v3912_v10 = vunpack.c.l.b16 %v3848_v5 }
 0x1f8   : > { %v3030_v54 = vadd.f32 %v2951_v63, %v2743_v34  ;;  %v2513_v61 = vsel %vm5335_vm8, %v4711_v48, %v2512_v44  ;;  %v3536_v34 = vpack.c.b16 %v3514_v51, %v3513_v25  ;;  %v4922_v44 = vld [vmem:[%s5149_s30 + $0x90] sm:$0xe]  ;;  %v2575_v5 = vunpack.c.l.b16 %v2516_v4  ;;  %v6207_v51 = vld [vmem:[%s5149_s30 + $0xa0] sm:$0xf] }
 0x1f9   : > { %v4117_v40 = vmul.f32 %v6162_v8, %v4081_v12  ;;  %v3366_v0 = vor.u32 %v3365_v13, %v6179_v58  ;;  %v2574_v63 = vunpack.c.l.b16 %v2513_v61  ;;  %v3357_v11 = vrot.slane %v3356_v31, 4 }
 0x1fa   : > { %v3934_v18 = vpack.c.b16 %v3912_v10, %v3911_v19  ;;  %v4938_v59 = vrot.slane %v4922_v44, 9  ;;  %v3377_v19 = vshll.u32 %v4880_v2, 16  ;;  %v3383_v44 = vshll.u32 %v6207_v51, 16 }
 0x1fb   : > { %v4153_v21 = vadd.f32 %v6171_v20, %v4117_v40  ;;  %v4003_v29 = vpop.f32.mrf.mxu0  ;;  %v3367_v25 = vrot.slane %v3366_v0, 4  ;;  %v3362_v31 = vsel %vm5161_vm4, %v3357_v11, %v6179_v58  ;;  %v2596_v10 = vpack.c.b16 %v2575_v5, %v2574_v63 }
 0x1fc   : > { %v3605_v62 = vpop.f32.mrf.mxu3  ;;  %4840 = vmatmul.msk.bf16.gmra.mxu2 %vm685_vm5, %v5005_v27  ;;  %v2669_v12 = vpop.f32.mrf.mxu1  ;;  %v3387_v58 = vshrl.u32 %v6207_v51, 16 }
 0x1fd   : > { %v4185_v49 = vmul.f32 0.1, %v4153_v21  ;;  %v3684_v17 = vadd.f32 %v3605_v62, %v3030_v54  ;;  %v3372_v11 = vsel %vm5161_vm4, %v3367_v25, %v3371_v45  ;;  %v5006_v25 = vld [vmem:[%s5149_s30 + $0x90] sm:$0xff] }
 0x1ff   : > { %v4217_v48 = vmax.f32 %v4153_v21, %v4185_v49  ;;  %v4082_v27 = vadd.f32 %v4003_v29, %v3684_v17  ;;  %v2954_v40 = vpop.f32.mrf.mxu2  ;;  %v3851_v21 = vrot.slane %v6149_v14, 5  ;;  %v3374_v29 = vshrl.u32 %v4880_v2, 16  ;;  %v4696_v49 = vld [vmem:[%s5149_s30 + $0x90] sm:$0xe]  ;;  %v5067_v17 = vld [vmem:[%s5149_s30 + $0x94] sm:$0xf] }
 0x200   : > { %v3031_v26 = vadd.f32 %v2954_v40, %v2744_v6  ;;  %v3379_v6 = vrot.slane %v3377_v19, 5  ;;  %v3516_v19 = vunpack.c.l.b16 %v3372_v11 }
 0x201   : > { %v4249_v13 = vpack.c.bf16 %v4217_v48, %v4217_v48  ;;  %v4118_v54 = vmul.f32 %v6162_v8, %v4082_v27  ;;  %4905 = vmatmul.msk.bf16.gmra.mxu3 %vm685_vm5, %v3536_v34  ;;  %v2519_v34 = vrot.slane %v5067_v17, 5  ;;  %v3515_v48 = vunpack.c.l.b16 %v3362_v31  ;;  %v5068_v31 = vld [vmem:[%s5149_s30 + $0x98] sm:$0x1] }
 0x202   : > { %v3852_v7 = vsel %vm5335_vm8, %v4938_v59, %v3851_v21  ;;  %v3853_v63 = vrot.slane %v3851_v21, 4  ;;  %v3376_v27 = vrot.slane %v3374_v29, 4  ;;  %v3389_v17 = vrot.slane %v3387_v58, 4 }
 0x203   : > { %4282 = vst.msk [vmem:[%s6202_s22] sm:$0xf] %vm4281_vm9, %v4249_v13  ;;  %v4154_v61 = vadd.f32 %v6171_v20, %v4118_v54  ;;  %v4006_v62 = vpop.f32.mrf.mxu0  ;;  %v2745_v13 = vadd.f32 %v2669_v12, %v5653_v22  ;;  %v2521_v45 = vrot.slane %v2519_v34, 4  ;;  %v3913_v58 = vunpack.c.l.b16 %v3852_v7 }
 0x204   : > { %v3608_v4 = vpop.f32.mrf.mxu3  ;;  %v2672_v0 = vpop.f32.mrf.mxu1  ;;  %v3855_v22 = vsel %vm5335_vm8, %v3853_v63, %v3854_v15  ;;  %v3380_v12 = vor.u32 %v3379_v6, %v3376_v27  ;;  %v3537_v6 = vpack.c.b16 %v3516_v19, %v3515_v48  ;;  %v3858_v19 = vrot.slane %v6207_v51, 5 }
 0x205   : > { %v4186_v14 = vmul.f32 0.1, %v4154_v61  ;;  %v3685_v2 = vadd.f32 %v3608_v4, %v3031_v26  ;;  %v4712_v26 = vrot.slane %v4696_v49, 9  ;;  %v3385_v4 = vrot.slane %v3383_v44, 5 }
 0x206   : > { %4954 = vmatmul.msk.bf16.gmra.mxu0 %vm685_vm5, %v3934_v18  ;;  %v2522_v18 = vrot.slane %v5068_v31, 5  ;;  %v2746_v7 = vadd.f32 %v2672_v0, %v5666_v24  ;;  %v4883_v31 = vld [vmem:[%s5149_s30 + $0xa8] sm:$0xf]  ;;  %v4923_v0 = vld [vmem:[%s5149_s30 + $0x9c] sm:$0xe] }
 0x207   : > { %v4218_v40 = vmax.f32 %v4154_v61, %v4186_v14  ;;  %v4083_v5 = vadd.f32 %v4006_v62, %v3685_v2  ;;  %v2956_v54 = vpop.f32.mrf.mxu2  ;;  %4728 = vmatmul.msk.bf16.gmra.mxu1 %vm685_vm5, %v2596_v10  ;;  %v6232_v61 = vld [vmem:[%s5149_s30 + $0xa4] sm:$0x1]  ;;  %v2520_v49 = vsel %vm5335_vm8, %v4712_v26, %v2519_v34  ;;  %v3390_v11 = vor.u32 %v3389_v17, %v3385_v4 }
 0x208   : > { %v3032_v29 = vadd.f32 %v2956_v54, %v2745_v13  ;;  %v2523_v2 = vsel %vm5335_vm8, %v2521_v45, %v2522_v18  ;;  %v3393_v15 = vshll.u32 %v6232_v61, 16  ;;  %v3381_v13 = vrot.slane %v3380_v12, 4 }
 0x209   : > { %v4250_v59 = vpack.c.bf16 %v4218_v40, %v4218_v40  ;;  %v4119_v21 = vmul.f32 %v6162_v8, %v4083_v5  ;;  %v3914_v40 = vunpack.c.l.b16 %v3855_v22  ;;  %v2576_v5 = vunpack.c.l.b16 %v2520_v49 }
 0x20a   : > { %v3391_v45 = vrot.slane %v3390_v11, 4  ;;  %v3395_v18 = vrot.slane %v3393_v15, 5  ;;  %v3386_v24 = vsel %vm5161_vm4, %v3381_v13, %v3385_v4  ;;  %v3398_v22 = vshrl.u32 %v4883_v31, 16  ;;  %v4697_v11 = vld [vmem:[%s5149_s30 + $0x9c] sm:$0xe] }
 0x20b   : > { %4283 = vst.msk [vmem:[%s6202_s22 + $0x4] sm:$0xf] %vm4281_vm9, %v4250_v59  ;;  %v4155_v62 = vadd.f32 %v6171_v20, %v4119_v21  ;;  %v4008_v10 = vpop.f32.mrf.mxu0  ;;  %v3935_v48 = vpack.c.b16 %v3914_v40, %v3913_v58  ;;  %v3401_v12 = vshll.u32 %v4883_v31, 16  ;;  %v5069_v15 = vld [vmem:[%s5149_s30 + $0xa0] sm:$0xf]  ;;  %v3517_v40 = vunpack.c.l.b16 %v3386_v24 }
 0x20c   : > { %v3610_v44 = vpop.f32.mrf.mxu3  ;;  %4841 = vmatmul.msk.bf16.gmra.mxu2 %vm685_vm5, %v5006_v25  ;;  %v2674_v14 = vpop.f32.mrf.mxu1  ;;  %v2577_v25 = vunpack.c.l.b16 %v2523_v2  ;;  %v3396_v2 = vsel %vm5161_vm4, %v3391_v45, %v3395_v18  ;;  %v4939_v13 = vrot.slane %v4923_v0, 9  ;;  %v4713_v18 = vrot.slane %v4697_v11, 9 }
 0x20d   : > { %v4187_v63 = vmul.f32 0.1, %v4155_v62  ;;  %v3686_v27 = vadd.f32 %v3610_v44, %v3032_v29  ;;  %v6250_v29 = vld [vmem:[%s5149_s30 + $0xac] sm:$0xf]  ;;  %v2747_v31 = vadd.f32 %v2674_v14, %v5679_v47 }
 0x20e   : > { %v2597_v49 = vpack.c.b16 %v2577_v25, %v2576_v5  ;;  %v3407_v4 = vshll.u32 %v6250_v29, 16  ;;  %v3411_v51 = vshrl.u32 %v6250_v29, 16  ;;  %v3860_v5 = vrot.slane %v3858_v19, 4 }
 0x20f   : > { %v4219_v34 = vmax.f32 %v4155_v62, %v4187_v63  ;;  %v4084_v54 = vadd.f32 %v4008_v10, %v3686_v27  ;;  %v2959_v26 = vpop.f32.mrf.mxu2  ;;  %v2526_v63 = vrot.slane %v5069_v15, 5 }
 0x210   : > { %v3033_v21 = vadd.f32 %v2959_v26, %v2746_v7  ;;  %v3403_v7 = vrot.slane %v3401_v12, 5  ;;  %v3413_v0 = vrot.slane %v3411_v51, 4 }
 0x211   : > { %v4251_v17 = vpack.c.bf16 %v4219_v34, %v4219_v34  ;;  %v4120_v59 = vmul.f32 %v6162_v8, %v4084_v54  ;;  %4906 = vmatmul.msk.bf16.gmra.mxu3 %vm685_vm5, %v3537_v6  ;;  %v3861_v34 = vrot.slane %v6232_v61, 5  ;;  %v3400_v54 = vrot.slane %v3398_v22, 4 }
 0x212   : > { %v2527_v11 = vsel %vm5335_vm8, %v4713_v18, %v2526_v63 }
 0x213   : > { %4284 = vst.msk [vmem:[%s6202_s22 + $0x8] sm:$0xf] %vm4281_vm9, %v4251_v17  ;;  %v4156_v62 = vadd.f32 %v6171_v20, %v4120_v59  ;;  %v4011_v10 = vpop.f32.mrf.mxu0  ;;  %v5007_v17 = vld [vmem:[%s5149_s30 + $0x9c] sm:$0xff]  ;;  %v2528_v59 = vrot.slane %v2526_v63, 4  ;;  %v3404_v51 = vor.u32 %v3403_v7, %v3400_v54  ;;  %v2578_v63 = vunpack.c.l.b16 %v2527_v11  ;;  %v6294_v54 = vld [vmem:[%s5149_s30 + $0xb8] sm:$0xf] }
 0x214   : > { %v3613_v44 = vpop.f32.mrf.mxu3  ;;  %v2677_v58 = vpop.f32.mrf.mxu1 }
 0x215   : > { %v4188_v27 = vmul.f32 0.1, %v4156_v62  ;;  %v3687_v6 = vadd.f32 %v3613_v44, %v3033_v21  ;;  %v5070_v21 = vld [vmem:[%s5149_s30 + $0xa4] sm:$0x1]  ;;  %v3862_v44 = vsel %vm5335_vm8, %v3860_v5, %v3861_v34  ;;  %v4886_v5 = vld [vmem:[%s5149_s30 + $0xb4] sm:$0xf]  ;;  %v2748_v18 = vadd.f32 %v2677_v58, %v5691_v53 }
 0x216   : > { %4955 = vmatmul.msk.bf16.gmra.mxu0 %vm685_vm5, %v3935_v48  ;;  %v2529_v24 = vrot.slane %v5070_v21, 5  ;;  %v6271_v48 = vrot.slane %v3407_v4, 5  ;;  %v3405_v7 = vrot.slane %v3404_v51, 4  ;;  %v4924_v53 = vld [vmem:[%s5149_s30 + $0xa8] sm:$0xe]  ;;  %v3865_v58 = vrot.slane %v6250_v29, 5 }
 0x217   : > { %v4220_v26 = vmax.f32 %v4156_v62, %v4188_v27  ;;  %v4085_v25 = vadd.f32 %v4011_v10, %v3687_v6  ;;  %v2961_v45 = vpop.f32.mrf.mxu2  ;;  %4729 = vmatmul.msk.bf16.gmra.mxu1 %vm685_vm5, %v2597_v49  ;;  %v3518_v62 = vunpack.c.l.b16 %v3396_v2  ;;  %v6275_v10 = vld [vmem:[%s5149_s30 + $0xb0] sm:$0x1]  ;;  %v3859_v49 = vsel %vm5335_vm8, %v4939_v13, %v3858_v19 }
 0x218   : > { %v3034_v12 = vadd.f32 %v2961_v45, %v2747_v31  ;;  %v2530_v4 = vsel %vm5335_vm8, %v2528_v59, %v2529_v24  ;;  %v3414_v27 = vor.u32 %v3413_v0, %v6271_v48  ;;  %v3417_v13 = vshll.u32 %v6275_v10, 16 }
 0x219   : > { %v4252_v61 = vpack.c.bf16 %v4220_v26, %v4220_v26  ;;  %v4121_v22 = vmul.f32 %v6162_v8, %v4085_v25  ;;  %v3538_v19 = vpack.c.b16 %v3518_v62, %v3517_v40  ;;  %v3915_v34 = vunpack.c.l.b16 %v3859_v49 }
 0x21a   : > { %v3916_v25 = vunpack.c.l.b16 %v3862_v44  ;;  %v2579_v59 = vunpack.c.l.b16 %v2530_v4  ;;  %v3415_v21 = vrot.slane %v3414_v27, 4  ;;  %v3422_v24 = vshrl.u32 %v4886_v5, 16  ;;  %v4698_v27 = vld [vmem:[%s5149_s30 + $0xa8] sm:$0xe] }
 0x21b   : > { %4285 = vst.msk [vmem:[%s6202_s22 + $0xc] sm:$0xf] %vm4281_vm9, %v4252_v61  ;;  %v4157_v47 = vadd.f32 %v6171_v20, %v4121_v22  ;;  %v4013_v14 = vpop.f32.mrf.mxu0  ;;  %v3425_v40 = vshll.u32 %v4886_v5, 16  ;;  %v3410_v51 = vsel %vm5161_vm4, %v3405_v7, %v6271_v48 }
 0x21c   : > { %v3615_v15 = vpop.f32.mrf.mxu3  ;;  %4842 = vmatmul.msk.bf16.gmra.mxu2 %vm685_vm5, %v5007_v17  ;;  %v2679_v2 = vpop.f32.mrf.mxu1  ;;  %v3936_v62 = vpack.c.b16 %v3916_v25, %v3915_v34  ;;  %v2598_v11 = vpack.c.b16 %v2579_v59, %v2578_v63  ;;  %v3424_v29 = vrot.slane %v3422_v24, 4  ;;  %v4940_v25 = vrot.slane %v4924_v53, 9 }
 0x21d   : > { %v4189_v6 = vmul.f32 0.1, %v4157_v47  ;;  %v3688_v26 = vadd.f32 %v3615_v15, %v3034_v12  ;;  %v3419_v12 = vrot.slane %v3417_v13, 5  ;;  %v3867_v63 = vrot.slane %v3865_v58, 4 }
 0x21e   : > { %v2749_v59 = vadd.f32 %v2679_v2, %v5704_v42  ;;  %v4714_v24 = vrot.slane %v4698_v27, 9  ;;  %v3866_v42 = vsel %vm5335_vm8, %v4940_v25, %v3865_v58  ;;  %v4889_v25 = vld [vmem:[%s5149_s30 + $0xc0] sm:$0xf] }
 0x21f   : > { %v4221_v31 = vmax.f32 %v4157_v47, %v4189_v6  ;;  %v4086_v45 = vadd.f32 %v4013_v14, %v3688_v26  ;;  %v2964_v17 = vpop.f32.mrf.mxu2  ;;  %v3431_v47 = vshll.u32 %v6294_v54, 16  ;;  %v3435_v14 = vshrl.u32 %v6294_v54, 16  ;;  %v5071_v6 = vld [vmem:[%s5149_s30 + $0xac] sm:$0xf] }
 0x220   : > { %v3035_v22 = vadd.f32 %v2964_v17, %v2748_v18  ;;  %v2533_v26 = vrot.slane %v5071_v6, 5  ;;  %v3420_v34 = vsel %vm5161_vm4, %v3415_v21, %v3419_v12  ;;  %v6319_v21 = vld [vmem:[%s5149_s30 + $0xbc] sm:$0x1] }
 0x221   : > { %v4253_v0 = vpack.c.bf16 %v4221_v31, %v4221_v31  ;;  %v4122_v61 = vmul.f32 %v6162_v8, %v4086_v45  ;;  %4907 = vmatmul.msk.bf16.gmra.mxu3 %vm685_vm5, %v3538_v19  ;;  %v3427_v19 = vrot.slane %v3425_v40, 5  ;;  %v3868_v31 = vrot.slane %v6275_v10, 5  ;;  %v5008_v40 = vld [vmem:[%s5149_s30 + $0xa8] sm:$0xff] }
 0x222   : > { %v6314_v48 = vrot.slane %v3431_v47, 5  ;;  %v3437_v45 = vrot.slane %v3435_v14, 4  ;;  %v3520_v14 = vunpack.c.l.b16 %v3420_v34  ;;  %v3917_v34 = vunpack.c.l.b16 %v3866_v42  ;;  %v4925_v42 = vld [vmem:[%s5149_s30 + $0xb4] sm:$0xe] }
 0x223   : > { %4286 = vst.msk [vmem:[%s6202_s22 + $0x10] sm:$0xf] %vm4281_vm9, %v4253_v0  ;;  %v4158_v49 = vadd.f32 %v6171_v20, %v4122_v61  ;;  %v4016_v44 = vpop.f32.mrf.mxu0  ;;  %v3519_v0 = vunpack.c.l.b16 %v3410_v51  ;;  %v2535_v61 = vrot.slane %v2533_v26, 4  ;;  %v3428_v10 = vor.u32 %v3427_v19, %v3424_v29 }
 0x224   : > { %v3618_v15 = vpop.f32.mrf.mxu3  ;;  %v2682_v4 = vpop.f32.mrf.mxu1  ;;  %v3438_v2 = vor.u32 %v3437_v45, %v6314_v48  ;;  %v2534_v51 = vsel %vm5335_vm8, %v4714_v24, %v2533_v26 }
 0x225   : > { %v4190_v13 = vmul.f32 0.1, %v4158_v49  ;;  %v3689_v5 = vadd.f32 %v3618_v15, %v3035_v22  ;;  %v5072_v22 = vld [vmem:[%s5149_s30 + $0xb0] sm:$0x1]  ;;  %v3869_v15 = vsel %vm5335_vm8, %v3867_v63, %v3868_v31  ;;  %v3429_v29 = vrot.slane %v3428_v10, 4 }
 0x226   : > { %4956 = vmatmul.msk.bf16.gmra.mxu0 %vm685_vm5, %v3936_v62  ;;  %v2536_v12 = vrot.slane %v5072_v22, 5  ;;  %v3918_v45 = vunpack.c.l.b16 %v3869_v15  ;;  %v3439_v63 = vrot.slane %v3438_v2, 4  ;;  %v6346_v10 = vld [vmem:[%s5149_s30 + $0xc4] sm:$0xf]  ;;  %v5073_v15 = vld [vmem:[%s5149_s30 + $0xb8] sm:$0xf] }
 0x227   : > { %v4222_v18 = vmax.f32 %v4158_v49, %v4190_v13  ;;  %v4087_v17 = vadd.f32 %v4016_v44, %v3689_v5  ;;  %v2966_v7 = vpop.f32.mrf.mxu2  ;;  %4730 = vmatmul.msk.bf16.gmra.mxu1 %vm685_vm5, %v2598_v11  ;;  %v3441_v49 = vshll.u32 %v6319_v21, 16  ;;  %v3539_v5 = vpack.c.b16 %v3520_v14, %v3519_v0 }
 0x228   : > { %v3036_v47 = vadd.f32 %v2966_v7, %v2749_v59  ;;  %v2537_v6 = vsel %vm5335_vm8, %v2535_v61, %v2536_v12  ;;  %v2750_v59 = vadd.f32 %v2682_v4, %v5718_v41  ;;  %v3446_v0 = vshrl.u32 %v4889_v25, 16 }
 0x229   : > { %v4254_v62 = vpack.c.bf16 %v4222_v18, %v4222_v18  ;;  %v4123_v53 = vmul.f32 %v6162_v8, %v4087_v17  ;;  %v2580_v18 = vunpack.c.l.b16 %v2534_v51  ;;  %v3443_v31 = vrot.slane %v3441_v49, 5 }
 0x22a   : > { %v2581_v24 = vunpack.c.l.b16 %v2537_v6  ;;  %v3937_v41 = vpack.c.b16 %v3918_v45, %v3917_v34  ;;  %v3872_v4 = vrot.slane %v6294_v54, 5  ;;  %v2540_v51 = vrot.slane %v5073_v15, 5 }
 0x22b   : > { %4287 = vst.msk [vmem:[%s6202_s22 + $0x14] sm:$0xf] %vm4281_vm9, %v4254_v62  ;;  %v4159_v44 = vadd.f32 %v6171_v20, %v4123_v53  ;;  %v4018_v11 = vpop.f32.mrf.mxu0  ;;  %v3449_v62 = vshll.u32 %v4889_v25, 16  ;;  %v3444_v14 = vsel %vm5161_vm4, %v3439_v63, %v3443_v31  ;;  %v3459_v54 = vshrl.u32 %v6346_v10, 16 }
 0x22c   : > { %v3620_v27 = vpop.f32.mrf.mxu3  ;;  %4843 = vmatmul.msk.bf16.gmra.mxu2 %vm685_vm5, %v5008_v40  ;;  %v2684_v58 = vpop.f32.mrf.mxu1  ;;  %v3434_v40 = vsel %vm5161_vm4, %v3429_v29, %v6314_v48  ;;  %v4941_v34 = vrot.slane %v4925_v42, 9  ;;  %v3874_v25 = vrot.slane %v3872_v4, 4  ;;  %v3875_v45 = vrot.slane %v6319_v21, 5 }
 0x22d   : > { %v4191_v19 = vmul.f32 0.1, %v4159_v44  ;;  %v3690_v13 = vadd.f32 %v3620_v27, %v3036_v47  ;;  %v2599_v47 = vpack.c.b16 %v2581_v24, %v2580_v18  ;;  %v3455_v27 = vshll.u32 %v6346_v10, 16  ;;  %v5074_v24 = vld [vmem:[%s5149_s30 + $0xbc] sm:$0x1] }
 0x22e   : > { %v2751_v31 = vadd.f32 %v2684_v58, %v5731_v56 }
 0x22f   : > { %v4223_v26 = vmax.f32 %v4159_v44, %v4191_v19  ;;  %v4088_v17 = vadd.f32 %v4018_v11, %v3690_v13  ;;  %v2969_v7 = vpop.f32.mrf.mxu2  ;;  %v3521_v44 = vunpack.c.l.b16 %v3434_v40  ;;  %v4699_v11 = vld [vmem:[%s5149_s30 + $0xb4] sm:$0xe]  ;;  %v3448_v19 = vrot.slane %v3446_v0, 4 }
 0x230   : > { %v3037_v12 = vadd.f32 %v2969_v7, %v2750_v59  ;;  %v3451_v13 = vrot.slane %v3449_v62, 5  ;;  %v5009_v59 = vld [vmem:[%s5149_s30 + $0xb4] sm:$0xff]  ;;  %v2542_v7 = vrot.slane %v2540_v51, 4  ;;  %v2543_v40 = vrot.slane %v5074_v24, 5  ;;  %v6367_v62 = vld [vmem:[%s5149_s30 + $0xc8] sm:$0x1] }
 0x231   : > { %v4255_v61 = vpack.c.bf16 %v4223_v26, %v4223_v26  ;;  %v4124_v22 = vmul.f32 %v6162_v8, %v4088_v17  ;;  %4908 = vmatmul.msk.bf16.gmra.mxu3 %vm685_vm5, %v3539_v5  ;;  %v3522_v5 = vunpack.c.l.b16 %v3444_v14  ;;  %v4715_v17 = vrot.slane %v4699_v11, 9  ;;  %v4926_v24 = vld [vmem:[%s5149_s30 + $0xc0] sm:$0xe] }
 0x232   : > { %v3457_v0 = vrot.slane %v3455_v27, 5  ;;  %v3465_v15 = vshll.u32 %v6367_v62, 16 }
 0x233   : > { %4288 = vst.msk [vmem:[%s6202_s22 + $0x18] sm:$0xf] %vm4281_vm9, %v4255_v61  ;;  %v4160_v53 = vadd.f32 %v6171_v20, %v4124_v22  ;;  %v4021_v48 = vpop.f32.mrf.mxu0  ;;  %v3461_v61 = vrot.slane %v3459_v54, 4 }
 0x234   : > { %v3623_v2 = vpop.f32.mrf.mxu3  ;;  %v2687_v49 = vpop.f32.mrf.mxu1 }
 0x235   : > { %v4192_v6 = vmul.f32 0.1, %v4160_v53  ;;  %v3691_v29 = vadd.f32 %v3623_v2, %v3037_v12  ;;  %v2544_v2 = vsel %vm5335_vm8, %v2542_v7, %v2543_v40  ;;  %v3462_v11 = vor.u32 %v3461_v61, %v3457_v0 }
 0x236   : > { %4957 = vmatmul.msk.bf16.gmra.mxu0 %vm685_vm5, %v3937_v41  ;;  %v3452_v41 = vor.u32 %v3451_v13, %v3448_v19 }
 0x237   : > { %v4224_v18 = vmax.f32 %v4160_v53, %v4192_v6  ;;  %v4089_v63 = vadd.f32 %v4021_v48, %v3691_v29  ;;  %v2971_v26 = vpop.f32.mrf.mxu2  ;;  %4731 = vmatmul.msk.bf16.gmra.mxu1 %vm685_vm5, %v2599_v47  ;;  %v3873_v53 = vsel %vm5335_vm8, %v4941_v34, %v3872_v4  ;;  %v3876_v48 = vsel %vm5335_vm8, %v3874_v25, %v3875_v45 }
 0x238   : > { %v3038_v21 = vadd.f32 %v2971_v26, %v2751_v31  ;;  %v2541_v47 = vsel %vm5335_vm8, %v4715_v17, %v2540_v51  ;;  %v3540_v6 = vpack.c.b16 %v3522_v5, %v3521_v44  ;;  %v3453_v4 = vrot.slane %v3452_v41, 4 }
 0x239   : > { %v4256_v22 = vpack.c.bf16 %v4224_v18, %v4224_v18  ;;  %v4125_v12 = vmul.f32 %v6162_v8, %v4089_v63  ;;  %v3919_v29 = vunpack.c.l.b16 %v3873_v53  ;;  %v3920_v19 = vunpack.c.l.b16 %v3876_v48 }
 0x23a   : > { %v2582_v13 = vunpack.c.l.b16 %v2541_v47  ;;  %v2752_v25 = vadd.f32 %v2687_v49, %v5747_v23  ;;  %v2583_v18 = vunpack.c.l.b16 %v2544_v2  ;;  %v3463_v63 = vrot.slane %v3462_v11, 4 }
 0x23b   : > { %4289 = vst.msk [vmem:[%s6202_s22 + $0x1c] sm:$0xf] %vm4281_vm9, %v4256_v22  ;;  %v4161_v56 = vadd.f32 %v6171_v20, %v4125_v12  ;;  %v4023_v58 = vpop.f32.mrf.mxu0  ;;  %v3467_v31 = vrot.slane %v3465_v15, 5  ;;  %v3458_v5 = vsel %vm5161_vm4, %v3453_v4, %v3457_v0  ;;  %v3938_v7 = vpack.c.b16 %v3920_v19, %v3919_v29  ;;  %v6394_v22 = vld [vmem:[%s5149_s30 + $0xd0] sm:$0xf] }
 0x23c   : > { %v3625_v14 = vpop.f32.mrf.mxu3  ;;  %4844 = vmatmul.msk.bf16.gmra.mxu2 %vm685_vm5, %v5009_v59  ;;  %v2689_v42 = vpop.f32.mrf.mxu1  ;;  %v4892_v59 = vld [vmem:[%s5149_s30 + $0xcc] sm:$0xf]  ;;  %v3879_v23 = vrot.slane %v6346_v10, 5  ;;  %v2600_v61 = vpack.c.b16 %v2583_v18, %v2582_v13  ;;  %v4700_v0 = vld [vmem:[%s5149_s30 + $0xc0] sm:$0xe]  ;;  %v3882_v15 = vrot.slane %v6367_v62, 5 }
 0x23d   : > { %v4193_v27 = vmul.f32 0.1, %v4161_v56  ;;  %v3692_v54 = vadd.f32 %v3625_v14, %v3038_v21  ;;  %v3468_v41 = vsel %vm5161_vm4, %v3463_v63, %v3467_v31  ;;  %v3470_v48 = vshrl.u32 %v4892_v59, 16 }
 0x23e   : > { %v4942_v14 = vrot.slane %v4926_v24, 9  ;;  %v3473_v2 = vshll.u32 %v4892_v59, 16  ;;  %v3881_v11 = vrot.slane %v3879_v23, 4  ;;  %v2753_v29 = vadd.f32 %v2689_v42, %v5772_v60 }
 0x23f   : > { %v4225_v51 = vmax.f32 %v4161_v56, %v4193_v27  ;;  %v4090_v34 = vadd.f32 %v4023_v58, %v3692_v54  ;;  %v2974_v45 = vpop.f32.mrf.mxu2  ;;  %v3523_v56 = vunpack.c.l.b16 %v3458_v5  ;;  %v5075_v58 = vld [vmem:[%s5149_s30 + $0xc4] sm:$0xf]  ;;  %v3479_v27 = vshll.u32 %v6394_v22, 16 }
 0x240   : > { %v3039_v44 = vadd.f32 %v2974_v45, %v2752_v25  ;;  %v2547_v53 = vrot.slane %v5075_v58, 5  ;;  %v3483_v54 = vshrl.u32 %v6394_v22, 16  ;;  %v4716_v13 = vrot.slane %v4700_v0, 9  ;;  %v5076_v45 = vld [vmem:[%s5149_s30 + $0xc8] sm:$0x1] }
 0x241   : > { %v4257_v26 = vpack.c.bf16 %v4225_v51, %v4225_v51  ;;  %v4126_v17 = vmul.f32 %v6162_v8, %v4090_v34  ;;  %4909 = vmatmul.msk.bf16.gmra.mxu3 %vm685_vm5, %v3540_v6  ;;  %v5010_v51 = vld [vmem:[%s5149_s30 + $0xc0] sm:$0xff]  ;;  %v3524_v34 = vunpack.c.l.b16 %v3468_v41  ;;  %v2550_v18 = vrot.slane %v5076_v45, 5 }
 0x242   : > { %v2549_v25 = vrot.slane %v2547_v53, 4  ;;  %v3472_v62 = vrot.slane %v3470_v48, 4  ;;  %v3880_v60 = vsel %vm5335_vm8, %v4942_v14, %v3879_v23  ;;  %v3481_v42 = vrot.slane %v3479_v27, 5 }
 0x243   : > { %4290 = vst.msk [vmem:[%s6202_s22 + $0x20] sm:$0xf] %vm4281_vm9, %v4257_v26  ;;  %v4162_v49 = vadd.f32 %v6171_v20, %v4126_v17  ;;  %v4026_v40 = vpop.f32.mrf.mxu0  ;;  %v3475_v17 = vrot.slane %v3473_v2, 5  ;;  %v2548_v24 = vsel %vm5335_vm8, %v4716_v13, %v2547_v53  ;;  %v3921_v58 = vunpack.c.l.b16 %v3880_v60 }
 0x244   : > { %v3628_v12 = vpop.f32.mrf.mxu3  ;;  %v2692_v21 = vpop.f32.mrf.mxu1  ;;  %v2551_v23 = vsel %vm5335_vm8, %v2549_v25, %v2550_v18 }
 0x245   : > { %v4194_v10 = vmul.f32 0.1, %v4162_v49  ;;  %v3693_v47 = vadd.f32 %v3628_v12, %v3039_v44  ;;  %v3485_v44 = vrot.slane %v3483_v54, 4  ;;  %v3476_v48 = vor.u32 %v3475_v17, %v3472_v62  ;;  %v4927_v62 = vld [vmem:[%s5149_s30 + $0xcc] sm:$0xe] }
 0x246   : > { %4958 = vmatmul.msk.bf16.gmra.mxu0 %vm685_vm5, %v3938_v7  ;;  %v3883_v7 = vsel %vm5335_vm8, %v3881_v11, %v3882_v15  ;;  %v6570_v15 = vld [vmem:[#allocation2_spill] sm:$0xff] }
 0x247   : > { %v4226_v6 = vmax.f32 %v4162_v49, %v4194_v10  ;;  %v4091_v4 = vadd.f32 %v4026_v40, %v3693_v47  ;;  %v2976_v19 = vpop.f32.mrf.mxu2  ;;  %4732 = vmatmul.msk.bf16.gmra.mxu1 %vm685_vm5, %v2600_v61  ;;  %v4894_v49 = vld [vmem:[%s5149_s30 + $0xd4] sm:$0x1]  ;;  %v3541_v61 = vpack.c.b16 %v3524_v34, %v3523_v56  ;;  %v3922_v10 = vunpack.c.l.b16 %v3883_v7 }
 0x248   : > { %v3040_v26 = vadd.f32 %v2976_v19, %v2753_v29  ;;  %v2584_v47 = vunpack.c.l.b16 %v2548_v24  ;;  %v3486_v14 = vor.u32 %v3485_v44, %v3481_v42  ;;  %v3489_v2 = vshll.u32 %v4894_v49, 16 }
 0x249   : > { %v4258_v63 = vpack.c.bf16 %v4226_v6, %v4226_v6  ;;  %v4127_v31 = vmul.f32 %v6162_v8, %v4091_v4  ;;  %v2754_v27 = vadd.f32 %v2692_v21, %v6570_v15  ;;  %v2585_v56 = vunpack.c.l.b16 %v2551_v23 }
 0x24a   : > { %v3477_v19 = vrot.slane %v3476_v48, 4  ;;  %v3939_v13 = vpack.c.b16 %v3922_v10, %v3921_v58  ;;  %v3491_v34 = vrot.slane %v3489_v2, 5  ;;  %v3886_v21 = vrot.slane %v6394_v22, 5 }
 0x24b   : > { %4291 = vst.msk [vmem:[%s6202_s22 + $0x24] sm:$0xf] %vm4281_vm9, %v4258_v63  ;;  %v4163_v5 = vadd.f32 %v6171_v20, %v4127_v31  ;;  %v4028_v59 = vpop.f32.mrf.mxu0  ;;  %v2601_v18 = vpack.c.b16 %v2585_v56, %v2584_v47 }
 0x24c   : > { %v3630_v40 = vpop.f32.mrf.mxu3  ;;  %4845 = vmatmul.msk.bf16.gmra.mxu2 %vm685_vm5, %v5010_v51  ;;  %v2694_v12 = vpop.f32.mrf.mxu1  ;;  %v3487_v51 = vrot.slane %v3486_v14, 4  ;;  %v3482_v60 = vsel %vm5161_vm4, %v3477_v19, %v3481_v42  ;;  %v3888_v23 = vrot.slane %v3886_v21, 4 }
 0x24d   : > { %v4195_v41 = vmul.f32 0.1, %v4163_v5  ;;  %v3694_v0 = vadd.f32 %v3630_v40, %v3040_v26  ;;  %v6571_v40 = vld [vmem:[#allocation3_spill] sm:$0xff] }
 0x24e   : > { %v3492_v44 = vsel %vm5161_vm4, %v3487_v51, %v3491_v34  ;;  %v2755_v22 = vadd.f32 %v2694_v12, %v6571_v40 }
 0x24f   : > { %v4227_v11 = vmax.f32 %v4163_v5, %v4195_v41  ;;  %v4092_v53 = vadd.f32 %v4028_v59, %v3694_v0  ;;  %v2979_v54 = vpop.f32.mrf.mxu2  ;;  %v4943_v5 = vrot.slane %v4927_v62, 9  ;;  %v3889_v59 = vrot.slane %v4894_v49, 5  ;;  %v5011_v41 = vld [vmem:[%s5149_s30 + $0xcc] sm:$0xff] }
 0x250   : > { %v3041_v29 = vadd.f32 %v2979_v54, %v2754_v27  ;;  %v3525_v0 = vunpack.c.l.b16 %v3482_v60  ;;  %v3526_v10 = vunpack.c.l.b16 %v3492_v44 }
 0x251   : > { %v4259_v6 = vpack.c.bf16 %v4227_v11, %v4227_v11  ;;  %v4128_v4 = vmul.f32 %v6162_v8, %v4092_v53  ;;  %4910 = vmatmul.msk.bf16.gmra.mxu3 %vm685_vm5, %v3541_v61  ;;  %v3887_v47 = vsel %vm5335_vm8, %v4943_v5, %v3886_v21  ;;  %v3890_v12 = vsel %vm5335_vm8, %v3888_v23, %v3889_v59 }
 0x252   : > { %v3542_v15 = vpack.c.b16 %v3526_v10, %v3525_v0  ;;  %v3923_v27 = vunpack.c.l.b16 %v3887_v47  ;;  %v3924_v54 = vunpack.c.l.b16 %v3890_v12 }
 0x253   : > { %4292 = vst.msk [vmem:[%s6202_s22 + $0x28] sm:$0xf] %vm4281_vm9, %v4259_v6  ;;  %v4164_v25 = vadd.f32 %v6171_v20, %v4128_v4  ;;  %v4031_v45 = vpop.f32.mrf.mxu0 }
 0x254   : > { %v3633_v63 = vpop.f32.mrf.mxu3  ;;  %v2697_v31 = vpop.f32.mrf.mxu1  ;;  %v3940_v51 = vpack.c.b16 %v3924_v54, %v3923_v27 }
 0x255   : > { %v4196_v26 = vmul.f32 0.1, %v4164_v25  ;;  %v3695_v17 = vadd.f32 %v3633_v63, %v3041_v29  ;;  %v2756_v4 = vadd.f32 %v2697_v31, %v5816_v16 }
 0x256   : > { %4959 = vmatmul.msk.bf16.gmra.mxu0 %vm685_vm5, %v3939_v13 }
 0x257   : > { %v4228_v7 = vmax.f32 %v4164_v25, %v4196_v26  ;;  %v4093_v24 = vadd.f32 %v4031_v45, %v3695_v17  ;;  %v2981_v61 = vpop.f32.mrf.mxu2  ;;  %4733 = vmatmul.msk.bf16.gmra.mxu1 %vm685_vm5, %v2601_v18 }
 0x258   : > { %v3042_v48 = vadd.f32 %v2981_v61, %v2755_v22 }
 0x259   : > { %v4260_v58 = vpack.c.bf16 %v4228_v7, %v4228_v7  ;;  %v4129_v42 = vmul.f32 %v6162_v8, %v4093_v24 }
 0x25b   : > { %4293 = vst.msk [vmem:[%s6202_s22 + $0x2c] sm:$0xf] %vm4281_vm9, %v4260_v58  ;;  %v4165_v39 = vadd.f32 %v6171_v20, %v4129_v42  ;;  %v4033_v49 = vpop.f32.mrf.mxu0 }
 0x25c   : > { %v3635_v14 = vpop.f32.mrf.mxu3  ;;  %4846 = vmatmul.msk.bf16.gmra.mxu2 %vm685_vm5, %v5011_v41  ;;  %v2699_v2 = vpop.f32.mrf.mxu1 }
 0x25d   : > { %v4197_v11 = vmul.f32 0.1, %v4165_v39  ;;  %v3696_v53 = vadd.f32 %v3635_v14, %v3042_v48  ;;  %v2757_v31 = vadd.f32 %v2699_v2, %v5835_v46 }
 0x25f   : > { %v4229_v56 = vmax.f32 %v4165_v39, %v4197_v11  ;;  %v4094_v6 = vadd.f32 %v4033_v49, %v3696_v53  ;;  %v2984_v29 = vpop.f32.mrf.mxu2 }
 0x260   : > { %v3043_v30 = vadd.f32 %v2984_v29, %v2756_v4 }
 0x261   : > { %v4261_v19 = vpack.c.bf16 %v4229_v56, %v4229_v56  ;;  %v4130_v13 = vmul.f32 %v6162_v8, %v4094_v6  ;;  %4911 = vmatmul.msk.bf16.gmra.mxu3 %vm685_vm5, %v3542_v15 }
 0x263   : > { %4294 = vst.msk [vmem:[%s6202_s22 + $0x30] sm:$0xf] %vm4281_vm9, %v4261_v19  ;;  %v4166_v34 = vadd.f32 %v6171_v20, %v4130_v13  ;;  %v4036_v25 = vpop.f32.mrf.mxu0 }
 0x264   : > { %v3638_v45 = vpop.f32.mrf.mxu3  ;;  %v2702_v18 = vpop.f32.mrf.mxu1 }
 0x265   : > { %v4198_v62 = vmul.f32 0.1, %v4166_v34  ;;  %v3697_v21 = vadd.f32 %v3638_v45, %v3043_v30  ;;  %v2758_v41 = vadd.f32 %v2702_v18, %v5855_v50 }
 0x266   : > { %4960 = vmatmul.msk.bf16.gmra.mxu0 %vm685_vm5, %v3940_v51 }
 0x267   : > { %v4230_v16 = vmax.f32 %v4166_v34, %v4198_v62  ;;  %v4095_v63 = vadd.f32 %v4036_v25, %v3697_v21  ;;  %v2986_v26 = vpop.f32.mrf.mxu2 }
 0x268   : > { %v3044_v44 = vadd.f32 %v2986_v26, %v2757_v31 }
 0x269   : > { %v4262_v17 = vpack.c.bf16 %v4230_v16, %v4230_v16  ;;  %v4131_v60 = vmul.f32 %v6162_v8, %v4095_v63 }
 0x26b   : > { %4295 = vst.msk [vmem:[%s6202_s22 + $0x34] sm:$0xf] %vm4281_vm9, %v4262_v17  ;;  %v4167_v5 = vadd.f32 %v6171_v20, %v4131_v60  ;;  %v4038_v59 = vpop.f32.mrf.mxu0 }
 0x26c   : > { %v3640_v7 = vpop.f32.mrf.mxu3  ;;  %v2704_v24 = vpop.f32.mrf.mxu1 }
 0x26d   : > { %v4199_v40 = vmul.f32 0.1, %v4167_v5  ;;  %v3698_v22 = vadd.f32 %v3640_v7, %v3044_v44  ;;  %v2759_v11 = vadd.f32 %v2704_v24, %v5874_v36 }
 0x26f   : > { %v4231_v61 = vmax.f32 %v4167_v5, %v4199_v40  ;;  %v4096_v23 = vadd.f32 %v4038_v59, %v3698_v22  ;;  %v2989_v46 = vpop.f32.mrf.mxu2 }
 0x270   : > { %v3045_v42 = vadd.f32 %v2989_v46, %v2758_v41 }
 0x271   : > { %v4263_v0 = vpack.c.bf16 %v4231_v61, %v4231_v61  ;;  %v4132_v58 = vmul.f32 %v6162_v8, %v4096_v23  ;;  %v6468_v8 = vld [vmem:[%s6560_s2] ss:$0 sm:$0xff] }
 0x273   : > { %4296 = vst.msk [vmem:[%s6202_s22 + $0x38] sm:$0xf] %vm4281_vm9, %v4263_v0  ;;  %v4168_v48 = vadd.f32 %v6171_v20, %v4132_v58  ;;  %v4041_v10 = vpop.f32.mrf.mxu0  ;;  %v6476_v20 = vld [vmem:[%s6561_s3] ss:$0 sm:$0xff] }
 0x274   : > { %v3643_v39 = vpop.f32.mrf.mxu3  ;;  %v2707_v49 = vpop.f32.mrf.mxu1 }
 0x275   : > { %v4200_v47 = vmul.f32 0.1, %v4168_v48  ;;  %v3699_v12 = vadd.f32 %v3643_v39, %v3045_v42  ;;  %v2760_v30 = vadd.f32 %v2707_v49, %v5894_v3 }
 0x277   : > { %v4232_v14 = vmax.f32 %v4168_v48, %v4200_v47  ;;  %v4097_v2 = vadd.f32 %v4041_v10, %v3699_v12  ;;  %v2991_v50 = vpop.f32.mrf.mxu2 }
 0x278   : > { %v3046_v27 = vadd.f32 %v2991_v50, %v2759_v11 }
 0x279   : > { %v4264_v53 = vpack.c.bf16 %v4232_v14, %v4232_v14  ;;  %v4133_v15 = vmul.f32 %v6468_v8, %v4097_v2 }
 0x27b   : > { %4297 = vst.msk [vmem:[%s6202_s22 + $0x3c] sm:$0xf] %vm4281_vm9, %v4264_v53  ;;  %v4169_v36 = vadd.f32 %v6476_v20, %v4133_v15  ;;  %v4043_v54 = vpop.f32.mrf.mxu0 }
 0x27c   : > { %v3645_v56 = vpop.f32.mrf.mxu3  ;;  %v2709_v6 = vpop.f32.mrf.mxu1 }
 0x27d   : > { %v4201_v4 = vmul.f32 0.1, %v4169_v36  ;;  %v3700_v29 = vadd.f32 %v3645_v56, %v3046_v27  ;;  %v2761_v60 = vadd.f32 %v2709_v6, %v5913_v38 }
 0x27f   : > { %v4233_v19 = vmax.f32 %v4169_v36, %v4201_v4  ;;  %v4098_v13 = vadd.f32 %v4043_v54, %v3700_v29  ;;  %v2994_v51 = vpop.f32.mrf.mxu2 }
 0x280   : > { %v3047_v45 = vadd.f32 %v2994_v51, %v2760_v30 }
 0x281   : > { %v4265_v34 = vpack.c.bf16 %v4233_v19, %v4233_v19  ;;  %v4134_v25 = vmul.f32 %v6468_v8, %v4098_v13 }
 0x283   : > { %4298 = vst.msk [vmem:[%s6202_s22 + $0x40] sm:$0xf] %vm4281_vm9, %v4265_v34  ;;  %v4170_v18 = vadd.f32 %v6476_v20, %v4134_v25  ;;  %v4046_v62 = vpop.f32.mrf.mxu0 }
 0x284   : > { %v3648_v21 = vpop.f32.mrf.mxu3  ;;  %v2712_v16 = vpop.f32.mrf.mxu1 }
 0x285   : > { %v4202_v63 = vmul.f32 0.1, %v4170_v18  ;;  %v3701_v31 = vadd.f32 %v3648_v21, %v3047_v45  ;;  %v2762_v0 = vadd.f32 %v2712_v16, %v5933_v9 }
 0x287   : > { %v4234_v26 = vmax.f32 %v4170_v18, %v4202_v63  ;;  %v4099_v17 = vadd.f32 %v4046_v62, %v3701_v31  ;;  %v2996_v3 = vpop.f32.mrf.mxu2 }
 0x288   : > { %v3048_v59 = vadd.f32 %v2996_v3, %v2761_v60 }
 0x289   : > { %v4266_v44 = vpack.c.bf16 %v4234_v26, %v4234_v26  ;;  %v4135_v5 = vmul.f32 %v6468_v8, %v4099_v17 }
 0x28b   : > { %4299 = vst.msk [vmem:[%s6202_s22 + $0x44] sm:$0xf] %vm4281_vm9, %v4266_v44  ;;  %v4171_v7 = vadd.f32 %v6476_v20, %v4135_v5  ;;  %v4048_v24 = vpop.f32.mrf.mxu0 }
 0x28c   : > { %v3650_v40 = vpop.f32.mrf.mxu3  ;;  %v2714_v22 = vpop.f32.mrf.mxu1 }
 0x28d   : > { %v4203_v61 = vmul.f32 0.1, %v4171_v7  ;;  %v3702_v23 = vadd.f32 %v3650_v40, %v3048_v59  ;;  %v2763_v50 = vadd.f32 %v2714_v22, %v5952_v37 }
 0x28f   : > { %v4235_v41 = vmax.f32 %v4171_v7, %v4203_v61  ;;  %v4100_v46 = vadd.f32 %v4048_v24, %v3702_v23  ;;  %v2999_v38 = vpop.f32.mrf.mxu2 }
 0x290   : > { %v3049_v48 = vadd.f32 %v2999_v38, %v2762_v0 }
 0x291   : > { %v4267_v58 = vpack.c.bf16 %v4235_v41, %v4235_v41  ;;  %v4136_v42 = vmul.f32 %v6468_v8, %v4100_v46 }
 0x293   : > { %4300 = vst.msk [vmem:[%s6202_s22 + $0x48] sm:$0xf] %vm4281_vm9, %v4267_v58  ;;  %v4172_v10 = vadd.f32 %v6476_v20, %v4136_v42  ;;  %v4051_v39 = vpop.f32.mrf.mxu0 }
 0x294   : > { %v3653_v49 = vpop.f32.mrf.mxu3  ;;  %v2717_v47 = vpop.f32.mrf.mxu1 }
 0x295   : > { %v4204_v12 = vmul.f32 0.1, %v4172_v10  ;;  %v3703_v14 = vadd.f32 %v3653_v49, %v3049_v48  ;;  %v2764_v30 = vadd.f32 %v2717_v47, %v5972_v35 }
 0x297   : > { %v4236_v2 = vmax.f32 %v4172_v10, %v4204_v12  ;;  %v4101_v11 = vadd.f32 %v4051_v39, %v3703_v14  ;;  %v3001_v9 = vpop.f32.mrf.mxu2 }
 0x298   : > { %v3050_v27 = vadd.f32 %v3001_v9, %v2763_v50 }
 0x299   : > { %v4268_v53 = vpack.c.bf16 %v4236_v2, %v4236_v2  ;;  %v4137_v15 = vmul.f32 %v6468_v8, %v4101_v11 }
 0x29b   : > { %4301 = vst.msk [vmem:[%s6202_s22 + $0x4c] sm:$0xf] %vm4281_vm9, %v4268_v53  ;;  %v4173_v36 = vadd.f32 %v6476_v20, %v4137_v15  ;;  %v4053_v54 = vpop.f32.mrf.mxu0 }
 0x29c   : > { %v3655_v56 = vpop.f32.mrf.mxu3  ;;  %v2719_v6 = vpop.f32.mrf.mxu1 }
 0x29d   : > { %v4205_v4 = vmul.f32 0.1, %v4173_v36  ;;  %v3704_v29 = vadd.f32 %v3655_v56, %v3050_v27  ;;  %v2765_v17 = vadd.f32 %v2719_v6, %v5991_v55 }
 0x29f   : > { %v4237_v19 = vmax.f32 %v4173_v36, %v4205_v4  ;;  %v4102_v13 = vadd.f32 %v4053_v54, %v3704_v29  ;;  %v3004_v37 = vpop.f32.mrf.mxu2 }
 0x2a0   : > { %v3051_v25 = vadd.f32 %v3004_v37, %v2764_v30 }
 0x2a1   : > { %v4269_v51 = vpack.c.bf16 %v4237_v19, %v4237_v19  ;;  %v4138_v34 = vmul.f32 %v6468_v8, %v4102_v13 }
 0x2a3   : > { %4302 = vst.msk [vmem:[%s6202_s22 + $0x50] sm:$0xf] %vm4281_vm9, %v4269_v51  ;;  %v4174_v45 = vadd.f32 %v6476_v20, %v4138_v34  ;;  %v4056_v18 = vpop.f32.mrf.mxu0 }
 0x2a4   : > { %v3658_v62 = vpop.f32.mrf.mxu3  ;;  %v2722_v21 = vpop.f32.mrf.mxu1 }
 0x2a5   : > { %v4206_v16 = vmul.f32 0.1, %v4174_v45  ;;  %v3705_v63 = vadd.f32 %v3658_v62, %v3051_v25  ;;  %v2766_v41 = vadd.f32 %v2722_v21, %v6011_v1 }
 0x2a7   : > { %v4238_v31 = vmax.f32 %v4174_v45, %v4206_v16  ;;  %v4103_v26 = vadd.f32 %v4056_v18, %v3705_v63  ;;  %v3006_v35 = vpop.f32.mrf.mxu2 }
 0x2a8   : > { %v3052_v44 = vadd.f32 %v3006_v35, %v2765_v17 }
 0x2a9   : > { %v4270_v60 = vpack.c.bf16 %v4238_v31, %v4238_v31  ;;  %v4139_v3 = vmul.f32 %v6468_v8, %v4103_v26 }
 0x2ab   : > { %4303 = vst.msk [vmem:[%s6202_s22 + $0x54] sm:$0xf] %vm4281_vm9, %v4270_v60  ;;  %v4175_v5 = vadd.f32 %v6476_v20, %v4139_v3  ;;  %v4058_v59 = vpop.f32.mrf.mxu0 }
 0x2ac   : > { %v3660_v7 = vpop.f32.mrf.mxu3  ;;  %v2724_v24 = vpop.f32.mrf.mxu1 }
 0x2ad   : > { %v4207_v40 = vmul.f32 0.1, %v4175_v5  ;;  %v3706_v22 = vadd.f32 %v3660_v7, %v3052_v44  ;;  %v2767_v14 = vadd.f32 %v2724_v24, %v6030_v57 }
 0x2af   : > { %v4239_v61 = vmax.f32 %v4175_v5, %v4207_v40  ;;  %v4104_v23 = vadd.f32 %v4058_v59, %v3706_v22  ;;  %v3009_v55 = vpop.f32.mrf.mxu2 }
 0x2b0   : > { %v3053_v38 = vadd.f32 %v3009_v55, %v2766_v41 }
 0x2b1   : > { %v4271_v46 = vpack.c.bf16 %v4239_v61, %v4239_v61  ;;  %v4140_v0 = vmul.f32 %v6468_v8, %v4104_v23 }
 0x2b3   : > { %4304 = vst.msk [vmem:[%s6202_s22 + $0x58] sm:$0xf] %vm4281_vm9, %v4271_v46  ;;  %v4176_v58 = vadd.f32 %v6476_v20, %v4140_v0  ;;  %v4061_v42 = vpop.f32.mrf.mxu0 }
 0x2b4   : > { %v3663_v48 = vpop.f32.mrf.mxu3  ;;  %v2727_v10 = vpop.f32.mrf.mxu1 }
 0x2b5   : > { %v4208_v39 = vmul.f32 0.1, %v4176_v58  ;;  %v3707_v49 = vadd.f32 %v3663_v48, %v3053_v38  ;;  %v2768_v4 = vadd.f32 %v2727_v10, %v6050_v43 }
 0x2b7   : > { %v4240_v47 = vmax.f32 %v4176_v58, %v4208_v39  ;;  %v4105_v12 = vadd.f32 %v4061_v42, %v3707_v49  ;;  %v3011_v1 = vpop.f32.mrf.mxu2 }
 0x2b8   : > { %v3054_v50 = vadd.f32 %v3011_v1, %v2767_v14 }
 0x2b9   : > { %v4272_v2 = vpack.c.bf16 %v4240_v47, %v4240_v47  ;;  %v4141_v11 = vmul.f32 %v6468_v8, %v4105_v12 }
 0x2bb   : > { %4305 = vst.msk [vmem:[%s6202_s22 + $0x5c] sm:$0xf] %vm4281_vm9, %v4272_v2  ;;  %v4177_v9 = vadd.f32 %v6476_v20, %v4141_v11  ;;  %v4063_v53 = vpop.f32.mrf.mxu0 }
 0x2bc   : > { %v3665_v15 = vpop.f32.mrf.mxu3  ;;  %v2729_v27 = vpop.f32.mrf.mxu1 }
 0x2bd   : > { %v4209_v36 = vmul.f32 0.1, %v4177_v9  ;;  %v3708_v54 = vadd.f32 %v3665_v15, %v3054_v50  ;;  %v2769_v21 = vadd.f32 %v2729_v27, %v6072_v52 }
 0x2bf   : > { %v4241_v56 = vmax.f32 %v4177_v9, %v4209_v36  ;;  %v4106_v6 = vadd.f32 %v4063_v53, %v3708_v54  ;;  %v3014_v57 = vpop.f32.mrf.mxu2 }
 0x2c0   : > { %v3055_v13 = vadd.f32 %v3014_v57, %v2768_v4 }
 0x2c1   : > { %v4273_v29 = vpack.c.bf16 %v4241_v56, %v4241_v56  ;;  %v4142_v19 = vmul.f32 %v6468_v8, %v4106_v6 }
 0x2c3   : > { %4306 = vst.msk [vmem:[%s6202_s22 + $0x60] sm:$0xf] %vm4281_vm9, %v4273_v29  ;;  %v4178_v30 = vadd.f32 %v6476_v20, %v4142_v19  ;;  %v4066_v37 = vpop.f32.mrf.mxu0  ;;  %v6572_v19 = vld [vmem:[#allocation4_spill] sm:$0xff] }
 0x2c4   : > { %v3668_v51 = vpop.f32.mrf.mxu3  ;;  %v2732_v45 = vpop.f32.mrf.mxu1 }
 0x2c5   : > { %v4210_v34 = vmul.f32 0.1, %v4178_v30  ;;  %v3709_v25 = vadd.f32 %v3668_v51, %v3055_v13  ;;  %v2770_v59 = vadd.f32 %v2732_v45, %v6089_v33 }
 0x2c7   : > { %v4242_v18 = vmax.f32 %v4178_v30, %v4210_v34  ;;  %v4107_v62 = vadd.f32 %v4066_v37, %v3709_v25  ;;  %v3016_v43 = vpop.f32.mrf.mxu2 }
 0x2c8   : > { %v3056_v31 = vadd.f32 %v3016_v43, %v2769_v21 }
 0x2c9   : > { %v4274_v16 = vpack.c.bf16 %v4242_v18, %v4242_v18  ;;  %v4143_v63 = vmul.f32 %v6468_v8, %v4107_v62 }
 0x2cb   : > { %4307 = vst.msk [vmem:[%s6202_s22 + $0x64] sm:$0xf] %vm4281_vm9, %v4274_v16  ;;  %v4179_v26 = vadd.f32 %v6476_v20, %v4143_v63  ;;  %v4068_v17 = vpop.f32.mrf.mxu0 }
 0x2cc   : > { %v3670_v35 = vpop.f32.mrf.mxu3  ;;  %v2734_v52 = vpop.f32.mrf.mxu1 }
 0x2cd   : > { %v4211_v60 = vmul.f32 0.1, %v4179_v26  ;;  %v3710_v3 = vadd.f32 %v3670_v35, %v3056_v31  ;;  %v2771_v58 = vadd.f32 %v2734_v52, %v6112_v32 }
 0x2cf   : > { %v4243_v44 = vmax.f32 %v4179_v26, %v4211_v60  ;;  %v4108_v5 = vadd.f32 %v4068_v17, %v3710_v3  ;;  %v3019_v7 = vpop.f32.mrf.mxu2 }
 0x2d0   : > { %v3057_v22 = vadd.f32 %v3019_v7, %v2770_v59 }
 0x2d1   : > { %v4275_v24 = vpack.c.bf16 %v4243_v44, %v4243_v44  ;;  %v4144_v40 = vmul.f32 %v6468_v8, %v4108_v5 }
 0x2d3   : > { %4308 = vst.msk [vmem:[%s6202_s22 + $0x68] sm:$0xf] %vm4281_vm9, %v4275_v24  ;;  %v4180_v61 = vadd.f32 %v6476_v20, %v4144_v40  ;;  %v4071_v23 = vpop.f32.mrf.mxu0 }
 0x2d4   : > { %v3673_v41 = vpop.f32.mrf.mxu3  ;;  %v2737_v39 = vpop.f32.mrf.mxu1 }
 0x2d5   : > { %v4212_v55 = vmul.f32 0.1, %v4180_v61  ;;  %v3711_v46 = vadd.f32 %v3673_v41, %v3057_v22  ;;  %v2772_v50 = vadd.f32 %v2737_v39, %v6128_v28 }
 0x2d7   : > { %v4244_v0 = vmax.f32 %v4180_v61, %v4212_v55  ;;  %v4109_v38 = vadd.f32 %v4071_v23, %v3711_v46  ;;  %v3021_v33 = vpop.f32.mrf.mxu2 }
 0x2d8   : > { %v3058_v10 = vadd.f32 %v3021_v33, %v2771_v58 }
 0x2d9   : > { %v4276_v42 = vpack.c.bf16 %v4244_v0, %v4244_v0  ;;  %v4145_v48 = vmul.f32 %v6468_v8, %v4109_v38 }
 0x2db   : > { %4309 = vst.msk [vmem:[%s6202_s22 + $0x6c] sm:$0xf] %vm4281_vm9, %v4276_v42  ;;  %v4181_v49 = vadd.f32 %v6476_v20, %v4145_v48  ;;  %v4073_v47 = vpop.f32.mrf.mxu0 }
 0x2dc   : > { %v3675_v12 = vpop.f32.mrf.mxu3  ;;  %v2739_v36 = vpop.f32.mrf.mxu1 }
 0x2dd   : > { %v4213_v14 = vmul.f32 0.1, %v4181_v49  ;;  %v3712_v1 = vadd.f32 %v3675_v12, %v3058_v10  ;;  %v2773_v28 = vadd.f32 %v2739_v36, %v6572_v19 }
 0x2df   : > { %v4245_v2 = vmax.f32 %v4181_v49, %v4213_v14  ;;  %v4110_v11 = vadd.f32 %v4073_v47, %v3712_v1  ;;  %v3024_v32 = vpop.f32.mrf.mxu2 }
 0x2e0   : > { %v3059_v15 = vadd.f32 %v3024_v32, %v2772_v50 }
 0x2e1   : > { %v4277_v9 = vpack.c.bf16 %v4245_v2, %v4245_v2  ;;  %v4146_v53 = vmul.f32 %v6468_v8, %v4110_v11 }
 0x2e3   : > { %4310 = vst.msk [vmem:[%s6202_s22 + $0x70] sm:$0xf] %vm4281_vm9, %v4277_v9  ;;  %v4182_v27 = vadd.f32 %v6476_v20, %v4146_v53  ;;  %v4076_v54 = vpop.f32.mrf.mxu0 }
 0x2e4   : > { %v3678_v56 = vpop.f32.mrf.mxu3 }
 0x2e5   : > { %v4214_v6 = vmul.f32 0.1, %v4182_v27  ;;  %v3713_v4 = vadd.f32 %v3678_v56, %v3059_v15 }
 0x2e7   : > { %v4246_v57 = vmax.f32 %v4182_v27, %v4214_v6  ;;  %v4111_v29 = vadd.f32 %v4076_v54, %v3713_v4  ;;  %v3026_v13 = vpop.f32.mrf.mxu2 }
 0x2e8   : > { %v3060_v51 = vadd.f32 %v3026_v13, %v2773_v28 }
 0x2e9   : > { %v4278_v30 = vpack.c.bf16 %v4246_v57, %v4246_v57  ;;  %v4147_v37 = vmul.f32 %v6468_v8, %v4111_v29 }
 0x2eb   : > { %4311 = vst.msk [vmem:[%s6202_s22 + $0x74] sm:$0xf] %vm4281_vm9, %v4278_v30  ;;  %v4183_v34 = vadd.f32 %v6476_v20, %v4147_v37  ;;  %v4078_v62 = vpop.f32.mrf.mxu0 }
 0x2ec   : > { %v3680_v25 = vpop.f32.mrf.mxu3 }
 0x2ed   : > { %v4215_v45 = vmul.f32 0.1, %v4183_v34  ;;  %v3714_v18 = vadd.f32 %v3680_v25, %v3060_v51 }
 0x2ef   : > { %v4247_v21 = vmax.f32 %v4183_v34, %v4215_v45  ;;  %v4112_v43 = vadd.f32 %v4078_v62, %v3714_v18 }
 0x2f1   : > { %v4279_v16 = vpack.c.bf16 %v4247_v21, %v4247_v21  ;;  %v4148_v63 = vmul.f32 %v6468_v8, %v4112_v43 }
 0x2f3   : > { %4312 = vst.msk [vmem:[%s6202_s22 + $0x78] sm:$0xf] %vm4281_vm9, %v4279_v16  ;;  %v4184_v31 = vadd.f32 %v6476_v20, %v4148_v63 }
 0x2f5   : > { %v4216_v26 = vmul.f32 0.1, %v4184_v31 }
 0x2f7   : > { %v4248_v17 = vmax.f32 %v4184_v31, %v4216_v26 }
 0x2f9   : > { %v4280_v35 = vpack.c.bf16 %v4248_v17, %v4248_v17 }
 0x2fb   : > { %4313 = vst.msk [vmem:[%s6202_s22 + $0x7c] sm:$0xf] %vm4281_vm9, %v4280_v35 }
 0x2fc PF: > { %s14_s15 = sadd.s32 1, %s5085_s15  }
 0x2fd   : > { %p11_p4 = scmp.ge.s32.totalorder %s14_s15, 4  }
 0x2ff   :  { %13 = sbr.rel (!%p11_p4) target bundleno = 1 (0x1), region = 76 }

// kernel: yolov4_forward.5
= control target key start
LH: loop header
LB: loop body
LE: loop exit
PB: predicated region body
PF: predicated region fallthrough
CT: control target
= control target key end

     0   :  { %s3394_s21 = smov 0   ;;  %s3976_s0 = inlined_call_operand.vmem [shape: bf16[2,5,4,5,64], index: 0, kind: input, shape index: {}]   ;;  %s3977_s1 = inlined_call_operand.vmem [shape: bf16[9,64,128], index: 1, kind: input, shape index: {}]   ;;  %s3978_s2 = inlined_call_operand.vmem [shape: f32[1,128], index: 2, kind: input, shape index: {}]   ;;  %s3979_s3 = inlined_call_operand.vmem [shape: f32[1,128], index: 3, kind: input, shape index: {}]   ;;  %s3980_s4 = inlined_call_operand.vmem [shape: bf16[128,64], index: 4, kind: input, shape index: {}]   ;;  %s3981_s5 = inlined_call_operand.vmem [shape: f32[1,64], index: 5, kind: input, shape index: {}]   ;;  %s3982_s6 = inlined_call_operand.vmem [shape: f32[1,64], index: 6, kind: input, shape index: {}]   ;;  %s3983_s7 = inlined_call_operand.vmem [shape: bf16[9,64,128], index: 7, kind: input, shape index: {}]   ;;  %s3984_s8 = inlined_call_operand.vmem [shape: f32[1,128], index: 8, kind: input, shape index: {}]   ;;  %s3985_s9 = inlined_call_operand.vmem [shape: f32[1,128], index: 9, kind: input, shape index: {}]   ;;  %s3986_s10 = inlined_call_operand.vmem [shape: bf16[128,24], index: 10, kind: input, shape index: {}]   ;;  %s3987_s11 = inlined_call_operand.vmem [shape: f32[1,24], index: 11, kind: input, shape index: {}]   ;;  %s3988_s12 = inlined_call_operand.vmem [shape: f32[2,4,4,24], index: 12, kind: output, shape index: {}]  }
   0x1 LB: > { %s2654_s22 = sadd.s32 4294967295, %s3326_s21   ;;  %p2658_p0 = scmp.ge.s32.totalorder %s3326_s21, 1  ;;  %s3326_s21 = sphi %s3394_s21, %s22_s21  }
   0x2   : > { %p362_p1 = scmp.lt.s32.totalorder %s3326_s21, 3 }
   0x4   : > { %p363_p2 = pnand %p2658_p0, %p362_p1 }
   0x5   : > { %p404_p3 = scmp.lt.s32.totalorder (!%p363_p2), %s2654_s22, 1 }
   0x6   : > { %366 = sbr.rel (%p363_p2) target bundleno = 832 (0x340), region = 68 }
   0xb   : > { %v3222_v0 = vld [vmem:[%s3977_s1 + $0x38] sm:$0xff]  ;;  %v3221_v2 = vld [vmem:[%s3977_s1 + $0x30] sm:$0xff]  ;;  %s4000_s22 = smov (!%p404_p3, %s2654_s22), 1  ;;  %v3220_v5 = vld [vmem:[%s3977_s1 + $0x28] sm:$0xff]  ;;  %vm477_vm0 = vcmask 523264   ;;  %vm558_vm1 = vcmask 1041408  }
   0xc   : > { %v3226_v1 = vld [vmem:[%s3977_s1 + $0x58] sm:$0xff]  ;;  %484 = vmatpush.bf16.msra.mxu1 %v3222_v0  ;;  %v3225_v3 = vld [vmem:[%s3977_s1 + $0x50] sm:$0xff]  ;;  %s3303_s17 = smul.u32 80, %s4000_s22  ;;  %v3224_v7 = vld [vmem:[%s3977_s1 + $0x48] sm:$0xff]  ;;  %vm584_vm2 = vsmask.f32 1280 }
   0xd   : > { %694 = vmatpush.bf16.msra.mxu2 %v3226_v1  ;;  %v3230_v4 = vld [vmem:[%s3977_s1 + $0x78] sm:$0xff]  ;;  %v3229_v6 = vld [vmem:[%s3977_s1 + $0x70] sm:$0xff]  ;;  %v3219_v11 = vld [vmem:[%s3977_s1 + $0x20] sm:$0xff]  ;;  %vm585_vm3 = vsmask.f32 3336  ;;  %vm562_vm4 = vcmask 1043458  }
   0xe   : > { %762 = vmatpush.bf16.msra.mxu3 %v3230_v4  ;;  %s3429_s24 = scalar_lea.vmem %s3976_s0, %s3303_s17  ;;  %v3218_v13 = vld [vmem:[%s3977_s1 + $0x18] sm:$0xff]  ;;  %v3223_v14 = vld [vmem:[%s3977_s1 + $0x40] sm:$0xff]  ;;  %v3228_v22 = vld [vmem:[%s3977_s1 + $0x68] sm:$0xff]  ;;  %vm587_vm5 = vsmask.f32 5392  ;;  %vm1391_vm10 = vcmask 518144  }
   0xf   : > { %v2662_v8 = vld [vmem:[%s3429_s24 + $0x4] sm:$0x3]  ;;  %v2663_v9 = vld [vmem:[%s3429_s24 + $0x14] sm:$0x3]  ;;  %v546_v15 = vld [vmem:[%s3429_s24] sm:$0x7] }
  0x10   : > { %485 = vmatpush.bf16.msra.mxu1 %v3221_v2  ;;  %v2664_v10 = vld [vmem:[%s3429_s24 + $0x24] sm:$0x3]  ;;  %v2665_v12 = vld [vmem:[%s3429_s24 + $0x34] sm:$0x3]  ;;  %442 = vst [vmem:[#allocation1] ss:$4 sm:$0xff] %v2662_v8  ;;  %vm3483_vm7 = vmor %vm584_vm2, %vm585_vm3 }
  0x11   : > { %695 = vmatpush.bf16.msra.mxu2 %v3225_v3  ;;  %445 = vst [vmem:[#allocation1 + $0x1] ss:$4 sm:$0xff] %v2663_v9  ;;  %v547_v16 = vld [vmem:[%s3429_s24 + $0x10] sm:$0x7]  ;;  %v548_v17 = vld [vmem:[%s3429_s24 + $0x20] sm:$0x7]  ;;  %vm3491_vm8 = vmor %vm3483_vm7, %vm587_vm5 }
  0x12   : > { %763 = vmatpush.bf16.msra.mxu3 %v3229_v6  ;;  %448 = vst [vmem:[#allocation1 + $0x2] ss:$4 sm:$0xff] %v2664_v10  ;;  %v549_v18 = vld [vmem:[%s3429_s24 + $0x30] sm:$0x7]  ;;  %v554_v19 = vrot.slane %v546_v15, 2  ;;  %v555_v20 = vrot.slane %v547_v16, 2 }
  0x13   : > { %451 = vst [vmem:[#allocation1 + $0x3] ss:$4 sm:$0xff] %v2665_v12  ;;  %v556_v21 = vrot.slane %v548_v17, 2  ;;  %v557_v23 = vrot.slane %v549_v18, 2  ;;  %vm589_vm6 = vsmask.f32 7448 }
  0x14   : > { %486 = vmatpush.bf16.msra.mxu1 %v3220_v5  ;;  %v3234_v24 = vld [vmem:[%s3977_s1 + $0x98] sm:$0xff]  ;;  %v415_v25 = vld [vmem:[%s3429_s24] sm:$0x3]  ;;  %v561_v26 = vsel %vm558_vm1, %v546_v15, %v554_v19  ;;  %v563_v27 = vsel %vm562_vm4, %v546_v15, %v554_v19  ;;  %v568_v28 = vsel %vm558_vm1, %v547_v16, %v555_v20  ;;  %v569_v29 = vsel %vm562_vm4, %v547_v16, %v555_v20  ;;  %v3217_v30 = vld [vmem:[%s3977_s1 + $0x10] sm:$0xff]  ;;  %s3214_s26 = sshll.u32 %s4000_s22, 4 }
  0x15   : > { %696 = vmatpush.bf16.msra.mxu2 %v3224_v7  ;;  %v416_v31 = vld [vmem:[%s3429_s24 + $0x10] sm:$0x3]  ;;  %v565_v32 = vrot.slane %v563_v27, 2  ;;  %v571_v33 = vrot.slane %v569_v29, 2  ;;  %v575_v34 = vsel %vm562_vm4, %v548_v17, %v556_v21  ;;  %v3227_v35 = vld [vmem:[%s3977_s1 + $0x60] sm:$0xff]  ;;  %v574_v37 = vsel %vm558_vm1, %v548_v17, %v556_v21  ;;  %830 = vmatpush.bf16.msra.mxu0 %v3234_v24  ;;  %v3216_v46 = vld [vmem:[%s3977_s1 + $0x8] sm:$0xff]  ;;  %s413_s13 = scalar_lea.vmem %s3988_s12, %s3214_s26 }
  0x16   : > { %v417_v36 = vld [vmem:[%s3429_s24 + $0x20] sm:$0x3]  ;;  %v577_v38 = vrot.slane %v575_v34, 2  ;;  %v581_v39 = vsel %vm562_vm4, %v549_v18, %v557_v23  ;;  %v591_v40 = vshrl.u32 %v561_v26, 16  ;;  %764 = vmatpush.bf16.msra.mxu3 %v3228_v22  ;;  %v418_v41 = vld [vmem:[%s3429_s24 + $0x30] sm:$0x3]  ;;  %v580_v47 = vsel %vm558_vm1, %v549_v18, %v557_v23  ;;  %vm3504_vm9 = vmor %vm3491_vm8, %vm589_vm6 }
  0x17   : > { %v594_v42 = vshll.u32 %v561_v26, 16  ;;  %v604_v43 = vshrl.u32 %v568_v28, 16  ;;  %v3233_v44 = vld [vmem:[%s3977_s1 + $0x90] sm:$0xff]  ;;  %v583_v48 = vrot.slane %v581_v39, 2  ;;  %v607_v51 = vshll.u32 %v568_v28, 16  ;;  %v3232_v1 = vld [vmem:[%s3977_s1 + $0x88] sm:$0xff] }
  0x18   : > { %487 = vmatpush.bf16.msra.mxu1 %v3219_v11  ;;  %v593_v50 = vrot.slane %v591_v40, 6  ;;  %v600_v53 = vshll.u32 %v565_v32, 16  ;;  %v617_v55 = vshrl.u32 %v574_v37, 16  ;;  %v613_v57 = vshll.u32 %v571_v33, 16  ;;  %v3215_v9 = vld [vmem:[%s3977_s1] sm:$0xff]  ;;  %v3238_v16 = vld [vmem:[%s3977_s1 + $0xb8] sm:$0xff] }
  0x19   : > { %697 = vmatpush.bf16.msra.mxu2 %v3223_v14  ;;  %v596_v52 = vrot.slane %v594_v42, 7  ;;  %v606_v54 = vrot.slane %v604_v43, 6  ;;  %v609_v56 = vrot.slane %v607_v51, 7  ;;  %v620_v58 = vshll.u32 %v574_v37, 16  ;;  %831 = vmatpush.bf16.msra.mxu0 %v3233_v44  ;;  %v3231_v17 = vld [vmem:[%s3977_s1 + $0x80] sm:$0xff]  ;;  %v3242_v27 = vld [vmem:[%s3977_s1 + $0xd8] sm:$0xff] }
  0x1a   : > { %v452_v45 = vld.sshfl [vmem:[#allocation1] sm:$0xff pattern:$0x73625140]  ;;  %v626_v59 = vshll.u32 %v577_v38, 16  ;;  %765 = vmatpush.bf16.msra.mxu3 %v3227_v35  ;;  %v619_v62 = vrot.slane %v617_v55, 6  ;;  %v630_v63 = vshrl.u32 %v580_v47, 16 }
  0x1b   : > { %2690 = vmatmul.msk.bf16.vlgmr.msra.gmra.mxu1 %vm477_vm0, %v452_v45  ;;  %495 = vst [vmem:[#allocation1] ss:$4 sm:$0xff] %v415_v25  ;;  %v597_v61 = vor.u32 %v596_v52, %v593_v50  ;;  %v633_v0 = vshll.u32 %v580_v47, 16  ;;  %v610_v2 = vor.u32 %v609_v56, %v606_v54  ;;  %v622_v3 = vrot.slane %v620_v58, 7  ;;  %v3237_v25 = vld [vmem:[%s3977_s1 + $0xb0] sm:$0xff]  ;;  %v3236_v29 = vld [vmem:[%s3977_s1 + $0xa8] sm:$0xff] }
  0x1c   : > { %536 = vmatpush.bf16.msrb.mxu1 %v3218_v13  ;;  %498 = vst [vmem:[#allocation1 + $0x1] ss:$4 sm:$0xff] %v416_v31  ;;  %v639_v4 = vshll.u32 %v583_v48, 16  ;;  %v602_v6 = vrot.slane %v600_v53, 7  ;;  %v632_v7 = vrot.slane %v630_v63, 6  ;;  %v615_v12 = vrot.slane %v613_v57, 7 }
  0x1d   : > { %501 = vst [vmem:[#allocation1 + $0x2] ss:$4 sm:$0xff] %v417_v36  ;;  %v598_v5 = vrot.slane %v597_v61, 2  ;;  %v635_v8 = vrot.slane %v633_v0, 7  ;;  %v611_v11 = vrot.slane %v610_v2, 2  ;;  %v623_v13 = vor.u32 %v622_v3, %v619_v62  ;;  %832 = vmatpush.bf16.msra.mxu0 %v3232_v1  ;;  %1049 = vmatpush.bf16.msrb.mxu2 %v3242_v27  ;;  %v3241_v28 = vld [vmem:[%s3977_s1 + $0xd0] sm:$0xff] }
  0x1e   : > { %504 = vst [vmem:[#allocation1 + $0x3] ss:$4 sm:$0xff] %v418_v41  ;;  %v628_v14 = vrot.slane %v626_v59, 7  ;;  %v641_v19 = vrot.slane %v639_v4, 7  ;;  %v2792_v31 = vld [vmem:[%s3429_s24 + $0x18] sm:$0x7] }
  0x1f   : > { %v636_v15 = vor.u32 %v635_v8, %v632_v7  ;;  %v624_v18 = vrot.slane %v623_v13, 2  ;;  %v603_v20 = vsel %vm3504_vm9, %v598_v5, %v602_v6  ;;  %v616_v22 = vsel %vm3504_vm9, %v611_v11, %v615_v12  ;;  %v2793_v32 = vld [vmem:[%s3429_s24 + $0x28] sm:$0x7]  ;;  %v3235_v33 = vld [vmem:[%s3977_s1 + $0xa0] sm:$0xff]  ;;  %v2794_v34 = vld [vmem:[%s3429_s24 + $0x38] sm:$0x7] }
  0x20   : > { %537 = vmatpush.bf16.msrb.mxu1 %v3217_v30  ;;  %v2791_v30 = vld [vmem:[%s3429_s24 + $0x8] sm:$0x7]  ;;  %v851_v37 = vrot.slane %v2792_v31, 2  ;;  %v2734_v38 = vld [vmem:[%s3429_s24 + $0x18] sm:$0x3]  ;;  %v852_v39 = vrot.slane %v2793_v32, 2 }
  0x21   : > { %v637_v21 = vrot.slane %v636_v15, 2  ;;  %v629_v24 = vsel %vm3504_vm9, %v624_v18, %v628_v14  ;;  %833 = vmatpush.bf16.msra.mxu0 %v3231_v17  ;;  %1050 = vmatpush.bf16.msrb.mxu2 %v3241_v28  ;;  %v850_v35 = vrot.slane %v2791_v30, 2  ;;  %v2733_v36 = vld [vmem:[%s3429_s24 + $0x8] sm:$0x3]  ;;  %v853_v42 = vrot.slane %v2794_v34, 2  ;;  %v3246_v45 = vld [vmem:[%s3977_s1 + $0xf8] sm:$0xff] }
  0x22   : > { %v2735_v41 = vld [vmem:[%s3429_s24 + $0x28] sm:$0x3]  ;;  %v2736_v43 = vld [vmem:[%s3429_s24 + $0x38] sm:$0x3]  ;;  %v862_v47 = vsel %vm558_vm1, %v2792_v31, %v851_v37  ;;  %v868_v48 = vsel %vm558_vm1, %v2793_v32, %v852_v39  ;;  %1117 = vmatpush.bf16.msrb.mxu3 %v3246_v45  ;;  %v3245_v49 = vld [vmem:[%s3977_s1 + $0xf0] sm:$0xff]  ;;  %v863_v57 = vsel %vm562_vm4, %v2792_v31, %v851_v37  ;;  %v869_v61 = vsel %vm562_vm4, %v2793_v32, %v852_v39 }
  0x23   : > { %v642_v26 = vsel %vm3504_vm9, %v637_v21, %v641_v19  ;;  %v856_v44 = vsel %vm558_vm1, %v2791_v30, %v850_v35  ;;  %v3239_v50 = vld [vmem:[%s3977_s1 + $0xc0] sm:$0xff]  ;;  %v874_v51 = vsel %vm558_vm1, %v2794_v34, %v853_v42  ;;  %v857_v54 = vsel %vm562_vm4, %v2791_v30, %v850_v35  ;;  %v2762_v60 = vld [vmem:[%s3429_s24 + $0xc] sm:$0x3]  ;;  %v2763_v0 = vld [vmem:[%s3429_s24 + $0x1c] sm:$0x3] }
  0x24   : > { %538 = vmatpush.bf16.msrb.mxu1 %v3216_v46  ;;  %v3240_v46 = vld [vmem:[%s3977_s1 + $0xc8] sm:$0xff]  ;;  %v878_v52 = vshrl.u32 %v856_v44, 16  ;;  %v881_v53 = vshll.u32 %v856_v44, 16  ;;  %v891_v55 = vshrl.u32 %v862_v47, 16  ;;  %v894_v56 = vshll.u32 %v862_v47, 16  ;;  %v3250_v21 = vld [vmem:[%s3977_s1 + $0x118] sm:$0xff] }
  0x25   : > { %v505_v23 = vld.sshfl [vmem:[#allocation1] sm:$0xff pattern:$0x73625140]  ;;  %1051 = vmatpush.bf16.msrb.mxu2 %v3240_v46  ;;  %v904_v58 = vshrl.u32 %v868_v48, 16  ;;  %v907_v59 = vshll.u32 %v868_v48, 16  ;;  %v917_v62 = vshrl.u32 %v874_v51, 16  ;;  %v875_v2 = vsel %vm562_vm4, %v2794_v34, %v853_v42  ;;  %1268 = vmatpush.bf16.msrb.mxu0 %v3250_v21 }
  0x26   : > { %653 = vst [vmem:[#allocation1] ss:$4 sm:$0xff] %v603_v20  ;;  %v920_v63 = vshll.u32 %v874_v51, 16  ;;  %1118 = vmatpush.bf16.msrb.mxu3 %v3245_v49  ;;  %v859_v1 = vrot.slane %v857_v54, 2  ;;  %v880_v3 = vrot.slane %v878_v52, 6  ;;  %v883_v4 = vrot.slane %v881_v53, 7 }
  0x27   : > { %656 = vst [vmem:[#allocation1 + $0x1] ss:$4 sm:$0xff] %v616_v22  ;;  %v2764_v5 = vld [vmem:[%s3429_s24 + $0x2c] sm:$0x3]  ;;  %v865_v6 = vrot.slane %v863_v57, 2  ;;  %v893_v7 = vrot.slane %v891_v55, 6 }
  0x28   : > { %539 = vmatpush.bf16.msrb.mxu1 %v3215_v9  ;;  %659 = vst [vmem:[#allocation1 + $0x2] ss:$4 sm:$0xff] %v629_v24  ;;  %v896_v8 = vrot.slane %v894_v56, 7  ;;  %v2765_v9 = vld [vmem:[%s3429_s24 + $0x3c] sm:$0x3]  ;;  %v871_v11 = vrot.slane %v869_v61, 2  ;;  %v884_v18 = vor.u32 %v883_v4, %v880_v3 }
  0x29   : > { %662 = vst [vmem:[#allocation1 + $0x3] ss:$4 sm:$0xff] %v642_v26  ;;  %1052 = vmatpush.bf16.msrb.mxu2 %v3239_v50  ;;  %v906_v12 = vrot.slane %v904_v58, 6  ;;  %v909_v13 = vrot.slane %v907_v59, 7  ;;  %v877_v15 = vrot.slane %v875_v2, 2  ;;  %v922_v17 = vrot.slane %v920_v63, 7 }
  0x2a   : > { %v887_v19 = vshll.u32 %v859_v1, 16  ;;  %v3244_v20 = vld [vmem:[%s3977_s1 + $0xe8] sm:$0xff]  ;;  %v897_v22 = vor.u32 %v896_v8, %v893_v7  ;;  %v3243_v26 = vld [vmem:[%s3977_s1 + $0xe0] sm:$0xff]  ;;  %v3249_v27 = vld [vmem:[%s3977_s1 + $0x110] sm:$0xff]  ;;  %v885_v30 = vrot.slane %v884_v18, 2  ;;  %vm1726_vm13 = vcmask 1040384  }
  0x2b   : > { %2707 = vmatmul.msk.bf16.vlgmr.msrb.gmra.mxu1 %vm477_vm0, %v505_v23  ;;  %v900_v23 = vshll.u32 %v865_v6, 16  ;;  %v910_v24 = vor.u32 %v909_v13, %v906_v12  ;;  %1119 = vmatpush.bf16.msrb.mxu3 %v3244_v20  ;;  %v3247_v44 = vld [vmem:[%s3977_s1 + $0x100] sm:$0xff]  ;;  %v2878_v45 = vld [vmem:[%s3429_s24 + $0x10] sm:$0x7]  ;;  %vm1459_vm11 = vsmask.f32 2306 }
  0x2c   : > { %981 = vmatpush.bf16.msra.mxu1 %v3238_v16  ;;  %v919_v16 = vrot.slane %v917_v62, 6  ;;  %v889_v31 = vrot.slane %v887_v19, 7  ;;  %v898_v32 = vrot.slane %v897_v22, 2  ;;  %1269 = vmatpush.bf16.msrb.mxu0 %v3249_v27  ;;  %v2879_v46 = vld [vmem:[%s3429_s24 + $0x20] sm:$0x7]  ;;  %v1137_v49 = vrot.slane %v2878_v45, 2  ;;  %vm3688_vm12 = vmand %vm1391_vm10, %vm1459_vm11 }
  0x2d   : > { %v911_v34 = vrot.slane %v910_v24, 2  ;;  %v2880_v47 = vld [vmem:[%s3429_s24 + $0x30] sm:$0x7]  ;;  %v2881_v48 = vld [vmem:[%s3429_s24 + $0x40] sm:$0x7]  ;;  %v1138_v51 = vrot.slane %v2879_v46, 2 }
  0x2e   : > { %v923_v28 = vor.u32 %v922_v17, %v919_v16  ;;  %v2820_v50 = vld [vmem:[%s3429_s24 + $0x10] sm:$0x3]  ;;  %v2821_v52 = vld [vmem:[%s3429_s24 + $0x20] sm:$0x3]  ;;  %v1139_v53 = vrot.slane %v2880_v47, 2  ;;  %v1140_v56 = vrot.slane %v2881_v48, 2  ;;  %v1143_v58 = vsel %vm558_vm1, %v2878_v45, %v1137_v49 }
  0x2f   : > { %1120 = vmatpush.bf16.msrb.mxu3 %v3243_v26  ;;  %v2822_v55 = vld [vmem:[%s3429_s24 + $0x30] sm:$0x3]  ;;  %v2823_v57 = vld [vmem:[%s3429_s24 + $0x40] sm:$0x3]  ;;  %v1149_v59 = vsel %vm558_vm1, %v2879_v46, %v1138_v51  ;;  %v1165_v62 = vshrl.u32 %v1143_v58, 16  ;;  %v1168_v63 = vshll.u32 %v1143_v58, 16  ;;  %v1150_v3 = vsel %vm562_vm4, %v2879_v46, %v1138_v51 }
  0x30   : > { %982 = vmatpush.bf16.msra.mxu1 %v3237_v25  ;;  %v663_v40 = vld.sshfl [vmem:[#allocation1] sm:$0xff pattern:$0x73625140]  ;;  %v913_v25 = vshll.u32 %v871_v11, 16  ;;  %v1161_v61 = vsel %vm558_vm1, %v2881_v48, %v1140_v56  ;;  %v1178_v1 = vshrl.u32 %v1149_v59, 16  ;;  %v1181_v2 = vshll.u32 %v1149_v59, 16 }
  0x31   : > { %2732 = vmatmul.msk.bf16.vlgmr.msra.gmra.mxu2 %vm477_vm0, %v663_v40  ;;  %721 = vst [vmem:[#allocation1] ss:$4 sm:$0xff] %v2733_v36  ;;  %v924_v36 = vrot.slane %v923_v28, 2  ;;  %v1156_v6 = vsel %vm562_vm4, %v2880_v47, %v1139_v53  ;;  %v1204_v7 = vshrl.u32 %v1161_v61, 16  ;;  %v1207_v8 = vshll.u32 %v1161_v61, 16  ;;  %v3258_v51 = vld [vmem:[%s3980_s4 + $0x38] sm:$0xff] }
  0x32   : > { %724 = vst [vmem:[#allocation1 + $0x1] ss:$4 sm:$0xff] %v2734_v38  ;;  %v915_v35 = vrot.slane %v913_v25, 7  ;;  %v890_v38 = vsel %vm3504_vm9, %v885_v30, %v889_v31  ;;  %v1162_v12 = vsel %vm562_vm4, %v2881_v48, %v1140_v56  ;;  %v1167_v13 = vrot.slane %v1165_v62, 6  ;;  %v2851_v19 = vld [vmem:[%s3429_s24 + $0x34] sm:$0x3] }
  0x33   : > { %727 = vst [vmem:[#allocation1 + $0x2] ss:$4 sm:$0xff] %v2735_v41  ;;  %v1152_v16 = vrot.slane %v1150_v3, 2  ;;  %v1180_v17 = vrot.slane %v1178_v1, 6  ;;  %v1183_v18 = vrot.slane %v1181_v2, 7  ;;  %v1158_v20 = vrot.slane %v1156_v6, 2 }
  0x34   : > { %983 = vmatpush.bf16.msra.mxu1 %v3236_v29  ;;  %730 = vst [vmem:[#allocation1 + $0x3] ss:$4 sm:$0xff] %v2736_v43  ;;  %v926_v29 = vshll.u32 %v877_v15, 16  ;;  %v916_v41 = vsel %vm3504_vm9, %v911_v34, %v915_v35  ;;  %v3248_v43 = vld [vmem:[%s3977_s1 + $0x108] sm:$0xff]  ;;  %v2850_v15 = vld [vmem:[%s3429_s24 + $0x24] sm:$0x3] }
  0x35   : > { %1270 = vmatpush.bf16.msrb.mxu0 %v3248_v43  ;;  %v1164_v24 = vrot.slane %v1162_v12, 2  ;;  %v1206_v25 = vrot.slane %v1204_v7, 6  ;;  %v1209_v26 = vrot.slane %v1207_v8, 7  ;;  %v2852_v27 = vld [vmem:[%s3429_s24 + $0x44] sm:$0x3]  ;;  %v1184_v30 = vor.u32 %v1183_v18, %v1180_v17  ;;  %v3254_v58 = vld [vmem:[%s3980_s4 + $0x18] sm:$0xff] }
  0x36   : > { %v928_v37 = vrot.slane %v926_v29, 7  ;;  %v1187_v31 = vshll.u32 %v1152_v16, 16  ;;  %v3253_v59 = vld [vmem:[%s3980_s4 + $0x10] sm:$0xff]  ;;  %v3251_v3 = vld [vmem:[%s3980_s4] sm:$0xff]  ;;  %vm1727_vm14 = vcmask 1042434   ;;  %vm1729_vm2 = vcmask 1044484  }
  0x37   : > { %v1210_v34 = vor.u32 %v1209_v26, %v1206_v25  ;;  %v1213_v35 = vshll.u32 %v1164_v24, 16  ;;  %v3313_v24 = vld [vmem:[%s3978_s2] ss:$0 sm:$0xff]  ;;  %vm1728_vm15 = vmor %vm1726_vm13, %vm1727_vm14  ;;  %vm1731_vm3 = vcmask 1046534  }
  0x38   : > { %984 = vmatpush.bf16.msra.mxu1 %v3235_v33  ;;  %v902_v33 = vrot.slane %v900_v23, 7  ;;  %v929_v42 = vsel %vm3504_vm9, %v924_v36, %v928_v37  ;;  %vm1730_vm5 = vmor %vm1728_vm15, %vm1729_vm2 }
  0x39   : > { %1271 = vmatpush.bf16.msrb.mxu0 %v3247_v44  ;;  %v1215_v43 = vrot.slane %v1213_v35, 7  ;;  %vm3752_vm6 = vmor %vm1730_vm5, %vm1731_vm3 }
  0x3a   : > { %v903_v39 = vsel %vm3504_vm9, %v898_v32, %v902_v33  ;;  %v1200_v33 = vshll.u32 %v1158_v20, 16 }
  0x3b   : > { %v731_v14 = vld.sshfl [vmem:[#allocation1] sm:$0xff pattern:$0x73625140] }
  0x3c   : > { %2761 = vmatmul.msk.bf16.vlgmr.msra.gmra.mxu3 %vm477_vm0, %v731_v14  ;;  %789 = vst [vmem:[#allocation1] ss:$4 sm:$0xff] %v2762_v60  ;;  %v1155_v60 = vsel %vm558_vm1, %v2880_v47, %v1139_v53  ;;  %v1170_v14 = vrot.slane %v1168_v63, 7  ;;  %1361 = vmatpush.bf16.msrb.mxu1 %v3258_v51  ;;  %v3252_v63 = vld [vmem:[%s3980_s4 + $0x8] sm:$0xff] }
  0x3d   : > { %792 = vst [vmem:[#allocation1 + $0x1] ss:$4 sm:$0xff] %v2763_v0  ;;  %v1144_v0 = vsel %vm562_vm4, %v2878_v45, %v1137_v49  ;;  %v1191_v4 = vshrl.u32 %v1155_v60, 16 }
  0x3e   : > { %795 = vst [vmem:[#allocation1 + $0x2] ss:$4 sm:$0xff] %v2764_v5  ;;  %v1194_v5 = vshll.u32 %v1155_v60, 16  ;;  %v1146_v11 = vrot.slane %v1144_v0, 2  ;;  %v1171_v28 = vor.u32 %v1170_v14, %v1167_v13 }
  0x3f   : > { %798 = vst [vmem:[#allocation1 + $0x3] ss:$4 sm:$0xff] %v2765_v9  ;;  %v2849_v9 = vld [vmem:[%s3429_s24 + $0x14] sm:$0x3]  ;;  %v1193_v21 = vrot.slane %v1191_v4, 6 }
  0x40   : > { %v1196_v22 = vrot.slane %v1194_v5, 7  ;;  %v1174_v29 = vshll.u32 %v1146_v11, 16  ;;  %v1172_v36 = vrot.slane %v1171_v28, 2  ;;  %v3314_v28 = vld [vmem:[%s3979_s3] ss:$0 sm:$0xff] }
  0x42   : > { %v1197_v32 = vor.u32 %v1196_v22, %v1193_v21  ;;  %v1176_v37 = vrot.slane %v1174_v29, 7 }
  0x44   : > { %v1177_v44 = vsel %vm3504_vm9, %v1172_v36, %v1176_v37 }
  0x46   : > { %v799_v40 = vld.sshfl [vmem:[#allocation1] sm:$0xff pattern:$0x73625140] }
  0x47   : > { %2790 = vmatmul.msk.bf16.vlgmr.msra.gmra.mxu0 %vm477_vm0, %v799_v40  ;;  %940 = vst [vmem:[#allocation1] ss:$4 sm:$0xff] %v890_v38  ;;  %v1185_v38 = vrot.slane %v1184_v30, 2  ;;  %v1198_v40 = vrot.slane %v1197_v32, 2 }
  0x48   : > { %943 = vst [vmem:[#allocation1 + $0x1] ss:$4 sm:$0xff] %v903_v39  ;;  %v1189_v39 = vrot.slane %v1187_v31, 7 }
  0x49   : > { %946 = vst [vmem:[#allocation1 + $0x2] ss:$4 sm:$0xff] %v916_v41  ;;  %v1202_v41 = vrot.slane %v1200_v33, 7 }
  0x4a   : > { %949 = vst [vmem:[#allocation1 + $0x3] ss:$4 sm:$0xff] %v929_v42  ;;  %v1211_v42 = vrot.slane %v1210_v34, 2  ;;  %v1190_v45 = vsel %vm3504_vm9, %v1185_v38, %v1189_v39 }
  0x4b   : > { %v1203_v47 = vsel %vm3504_vm9, %v1198_v40, %v1202_v41  ;;  %v3328_v40 = vmov 0   ;;  %v3315_v41 = vld [vmem:[%s3981_s5] ss:$0 sm:$0xff] }
  0x4c   : > { %v1216_v48 = vsel %vm3504_vm9, %v1211_v42, %v1215_v43  ;;  %1392 = vst.msk [vmem:[#allocation2] sm:$0x7] %vm1391_vm10, %v3328_v40  ;;  %v3316_v42 = vld [vmem:[%s3982_s6] ss:$0 sm:$0xff] }
  0x4d   : > { %1393 = vst.msk [vmem:[#allocation2 + $0x4] sm:$0x7] %vm1391_vm10, %v3328_v40 }
  0x4e   : > { %1394 = vst.msk [vmem:[#allocation2 + $0x8] sm:$0x7] %vm1391_vm10, %v3328_v40 }
  0x4f   : > { %1395 = vst.msk [vmem:[#allocation2 + $0xc] sm:$0x7] %vm1391_vm10, %v3328_v40 }
  0x50   : > { %1396 = vst.msk [vmem:[#allocation2 + $0x10] sm:$0x7] %vm1391_vm10, %v3328_v40 }
  0x51   : > { %v950_v54 = vld.sshfl [vmem:[#allocation1] sm:$0xff pattern:$0x73625140]  ;;  %1397 = vst.msk [vmem:[#allocation2 + $0x14] sm:$0x7] %vm1391_vm10, %v3328_v40 }
  0x52   : > { %2819 = vmatmul.msk.bf16.vlgmr.msra.gmra.mxu1 %vm477_vm0, %v950_v54  ;;  %1008 = vst [vmem:[#allocation1] ss:$4 sm:$0xff] %v2820_v50  ;;  %v3256_v54 = vld [vmem:[%s3980_s4 + $0x28] sm:$0xff] }
  0x53   : > { %1011 = vst [vmem:[#allocation1 + $0x1] ss:$4 sm:$0xff] %v2821_v52  ;;  %v3257_v52 = vld [vmem:[%s3980_s4 + $0x30] sm:$0xff] }
  0x54   : > { %1014 = vst [vmem:[#allocation1 + $0x2] ss:$4 sm:$0xff] %v2822_v55  ;;  %1362 = vmatpush.bf16.msrb.mxu1 %v3257_v52  ;;  %v3255_v55 = vld [vmem:[%s3980_s4 + $0x20] sm:$0xff] }
  0x55   : > { %1017 = vst [vmem:[#allocation1 + $0x3] ss:$4 sm:$0xff] %v2823_v57 }
  0x58   : > { %1363 = vmatpush.bf16.msrb.mxu1 %v3256_v54 }
  0x5c   : > { %v1018_v23 = vld.sshfl [vmem:[#allocation1] sm:$0xff pattern:$0x73625140]  ;;  %1364 = vmatpush.bf16.msrb.mxu1 %v3255_v55 }
  0x5d   : > { %2848 = vmatmul.msk.bf16.vlgmr.msrb.gmra.mxu2 %vm477_vm0, %v1018_v23  ;;  %1076 = vst [vmem:[#allocation1] ss:$4 sm:$0xff] %v2849_v9 }
  0x5e   : > { %1079 = vst [vmem:[#allocation1 + $0x1] ss:$4 sm:$0xff] %v2850_v15 }
  0x5f   : > { %1082 = vst [vmem:[#allocation1 + $0x2] ss:$4 sm:$0xff] %v2851_v19 }
  0x60   : > { %1085 = vst [vmem:[#allocation1 + $0x3] ss:$4 sm:$0xff] %v2852_v27  ;;  %1365 = vmatpush.bf16.msrb.mxu1 %v3254_v58 }
  0x64   : > { %1366 = vmatpush.bf16.msrb.mxu1 %v3253_v59 }
  0x67   : > { %v1086_v46 = vld.sshfl [vmem:[#allocation1] sm:$0xff pattern:$0x73625140] }
  0x68   : > { %2877 = vmatmul.msk.bf16.vlgmr.msrb.gmra.mxu3 %vm477_vm0, %v1086_v46  ;;  %1227 = vst [vmem:[#allocation1] ss:$4 sm:$0xff] %v1177_v44  ;;  %1367 = vmatpush.bf16.msrb.mxu1 %v3252_v63 }
  0x69   : > { %1230 = vst [vmem:[#allocation1 + $0x1] ss:$4 sm:$0xff] %v1190_v45 }
  0x6a   : > { %1233 = vst [vmem:[#allocation1 + $0x2] ss:$4 sm:$0xff] %v1203_v47 }
  0x6b   : > { %1236 = vst [vmem:[#allocation1 + $0x3] ss:$4 sm:$0xff] %v1216_v48 }
  0x6c   : > { %1368 = vmatpush.bf16.msrb.mxu1 %v3251_v3 }
  0x72   : > { %v1237_v49 = vld.sshfl [vmem:[#allocation1] sm:$0xff pattern:$0x73625140] }
  0x73   : > { %2906 = vmatmul.msk.bf16.vlgmr.msrb.gmra.mxu0 %vm477_vm0, %v1237_v49 }
  0x98   : > { %v489_v50 = vpop.f32.mrf.mxu1 }
  0xa0   : > { %v491_v53 = vpop.f32.mrf.mxu1 }
  0xa8   : > { %v541_v56 = vpop.f32.mrf.mxu1 }
  0xa9   : > { %v542_v61 = vadd.f32 %v541_v56, %v489_v50 }
  0xb0   : > { %v543_v62 = vpop.f32.mrf.mxu1 }
  0xb1   : > { %v544_v8 = vadd.f32 %v543_v62, %v491_v53  ;;  %v1485_v53 = vld [vmem:[#allocation2] sm:$0x7] }
  0xb4   : > { %v699_v57 = vpop.f32.mrf.mxu2 }
  0xb5   : > { %v704_v2 = vadd.f32 %v699_v57, %v542_v61  ;;  %v1493_v57 = vrot.slane %v1485_v53, 2 }
  0xb7   : > { %v1500_v61 = vsel %vm562_vm4, %v1485_v53, %v1493_v57 }
  0xb8   : > { %v1502_v62 = vrot.slane %v1500_v61, 2 }
  0xbc   : > { %v701_v0 = vpop.f32.mrf.mxu2 }
  0xbd   : > { %v705_v12 = vadd.f32 %v701_v0, %v544_v8 }
  0xbf   : > { %v767_v60 = vpop.f32.mrf.mxu3 }
  0xc0   : > { %v772_v4 = vadd.f32 %v767_v60, %v704_v2  ;;  %v1499_v60 = vsel %vm558_vm1, %v1485_v53, %v1493_v57 }
  0xc1   : > { %v1521_v63 = vshrl.u32 %v1499_v60, 16  ;;  %v1524_v0 = vshll.u32 %v1499_v60, 16 }
  0xc3   : > { %v1523_v2 = vrot.slane %v1521_v63, 6  ;;  %v1526_v3 = vrot.slane %v1524_v0, 7 }
  0xc4   : > { %v835_v1 = vpop.f32.mrf.mxu0 }
  0xc5   : > { %v840_v9 = vadd.f32 %v835_v1, %v772_v4  ;;  %v1530_v4 = vshll.u32 %v1502_v62, 16 }
  0xc7   : > { %v769_v5 = vpop.f32.mrf.mxu3 }
  0xc8   : > { %v773_v14 = vadd.f32 %v769_v5, %v705_v12 }
  0xcc   : > { %v837_v11 = vpop.f32.mrf.mxu0 }
  0xcd   : > { %v841_v19 = vadd.f32 %v837_v11, %v773_v14 }
  0xcf   : > { %v986_v6 = vpop.f32.mrf.mxu1 }
  0xd0   : > { %v991_v13 = vadd.f32 %v986_v6, %v840_v9  ;;  %v1527_v6 = vor.u32 %v1526_v3, %v1523_v2 }
  0xd2   : > { %v1528_v14 = vrot.slane %v1527_v6, 2 }
  0xd7   : > { %v988_v18 = vpop.f32.mrf.mxu1 }
  0xd8   : > { %v992_v22 = vadd.f32 %v988_v18, %v841_v19 }
  0xe0   : > { %v1054_v7 = vpop.f32.mrf.mxu2 }
  0xe1   : > { %v1059_v15 = vadd.f32 %v1054_v7, %v991_v13  ;;  %v1532_v7 = vrot.slane %v1530_v4, 7 }
  0xe3   : > { %v1533_v19 = vsel %vm3504_vm9, %v1528_v14, %v1532_v7 }
  0xe8   : > { %v1056_v20 = vpop.f32.mrf.mxu2 }
  0xe9   : > { %v1060_v25 = vadd.f32 %v1056_v20, %v992_v22 }
  0xeb   : > { %v1122_v16 = vpop.f32.mrf.mxu3 }
  0xec   : > { %v1127_v17 = vadd.f32 %v1122_v16, %v1059_v15 }
  0xf0   : > { %v1273_v21 = vpop.f32.mrf.mxu0 }
  0xf1   : > { %v1278_v23 = vadd.f32 %v1273_v21, %v1127_v17  ;;  %v1461_v21 = vld [vmem:[#allocation2 + $0x4] sm:$0x7] }
  0xf3   : > { %v1124_v26 = vpop.f32.mrf.mxu3  ;;  %v1284_v27 = vmul.f32 %v3313_v24, %v1278_v23 }
  0xf4   : > { %v1128_v29 = vadd.f32 %v1124_v26, %v1060_v25  ;;  %v1464_v25 = vld [vmem:[#allocation2 + $0x8] sm:$0x7] }
  0xf5   : > { %v1290_v31 = vadd.f32 %v3314_v28, %v1284_v27 }
  0xf7   : > { %v1292_v34 = vmul.f32 0.1, %v1290_v31 }
  0xf8   : > { %v1275_v30 = vpop.f32.mrf.mxu0 }
  0xf9   : > { %v1279_v32 = vadd.f32 %v1275_v30, %v1128_v29  ;;  %v3661_v37 = vmax.f32 %v1290_v31, %v1292_v34 }
  0xfb   : > { %v1285_v33 = vmul.f32 %v3313_v24, %v1279_v32 }
  0xfd   : > { %v1291_v35 = vadd.f32 %v3314_v28, %v1285_v33 }
  0xff   : > { %v1293_v36 = vmul.f32 0.1, %v1291_v35 }
 0x101   : > { %v3663_v38 = vmax.f32 %v1291_v35, %v1293_v36  ;;  %v1467_v35 = vld [vmem:[#allocation2 + $0xc] sm:$0x7] }
 0x103   : > { %v1296_v39 = vpack.c.bf16 %v3663_v38, %v3661_v37 }
 0x105   : > { %1369 = vmatmul.bf16.vlgmr.msrb.gmra.mxu1 %v1296_v39 }
 0x182   : > { %v1370_v43 = vpop.f32.mrf.mxu1 }
 0x183   : > { %v1379_v44 = vmul.f32 %v3315_v41, %v1370_v43 }
 0x185   : > { %v1385_v45 = vadd.f32 %v3316_v42, %v1379_v44 }
 0x187   : > { %v1387_v46 = vmul.f32 0.1, %v1385_v45 }
 0x189   : > { %v1389_v47 = vmax.f32 %v1385_v45, %v1387_v46 }
 0x18a   : > { %v1372_v48 = vpop.f32.mrf.mxu1 }
 0x18b   : > { %v1398_v49 = vpack.c.bf16 %v1389_v47, %v1389_v47  ;;  %v1380_v50 = vmul.f32 %v3315_v41, %v1372_v48  ;;  %v1470_v41 = vld [vmem:[#allocation2 + $0x10] sm:$0x7] }
 0x18d   : > { %v1402_v51 = vrot.slane %v1398_v49, 2  ;;  %v1386_v52 = vadd.f32 %v3316_v42, %v1380_v50 }
 0x18f   : > { %v1406_v54 = vsel %vm558_vm1, %v1398_v49, %v1402_v51  ;;  %v1407_v55 = vsel %vm562_vm4, %v1398_v49, %v1402_v51  ;;  %v1388_v56 = vmul.f32 0.1, %v1386_v52 }
 0x190   : > { %v1409_v58 = vrot.slane %v1407_v55, 2  ;;  %1416 = vst [vmem:[#allocation1] ss:$2 sm:$0xff] %v1406_v54 }
 0x191   : > { %v1390_v59 = vmax.f32 %v1386_v52, %v1388_v56 }
 0x192   : > { %1420 = vst [vmem:[#allocation1 + $0x10] ss:$2 sm:$0xff] %v1409_v58 }
 0x193   : > { %v1399_v1 = vpack.c.bf16 %v1390_v59, %v1390_v59 }
 0x195   : > { %v1403_v5 = vrot.slane %v1399_v1, 2 }
 0x197   : > { %v1417_v8 = vld.sshfl [vmem:[#allocation1] sm:$0xff pattern:$0x75643120]  ;;  %v1412_v9 = vsel %vm558_vm1, %v1399_v1, %v1403_v5  ;;  %v1413_v11 = vsel %vm562_vm4, %v1399_v1, %v1403_v5 }
 0x198   : > { %v1415_v12 = vrot.slane %v1413_v11, 2  ;;  %1423 = vst [vmem:[#allocation1 + $0x20] ss:$2 sm:$0xff] %v1412_v9  ;;  %v1429_v13 = vshrl.u32 %v1417_v8, 16  ;;  %v1432_v17 = vshll.u32 %v1417_v8, 16 }
 0x199   : > { %v1421_v15 = vld.sshfl [vmem:[#allocation1 + $0x10] sm:$0xff pattern:$0x75643120] }
 0x19a   : > { %1427 = vst [vmem:[#allocation1 + $0x30] ss:$2 sm:$0xff] %v1415_v12  ;;  %v1431_v16 = vrot.slane %v1429_v13, 7  ;;  %v1435_v18 = vshrl.u32 %v1421_v15, 16  ;;  %v1438_v24 = vshll.u32 %v1421_v15, 16 }
 0x19b   : > { %1583 = vst [vmem:[#allocation1] ss:$4 sm:$0xff] %v1533_v19 }
 0x19c   : > { %v1434_v22 = vor.u32 %v1432_v17, %v1431_v16  ;;  %v1437_v23 = vrot.slane %v1435_v18, 7 }
 0x19e   : > { %v1440_v26 = vor.u32 %v1438_v24, %v1437_v23  ;;  %v1462_v27 = vsel %vm3688_vm12, %v1434_v22, %v1461_v21  ;;  %v1686_v24 = vld [vmem:[#allocation2] sm:$0x6] }
 0x19f   : > { %v1424_v28 = vld.sshfl [vmem:[#allocation1 + $0x20] sm:$0xff pattern:$0x75643120]  ;;  %1463 = vst [vmem:[#allocation2 + $0x4] sm:$0x7] %v1462_v27 }
 0x1a0   : > { %v1441_v29 = vshrl.u32 %v1424_v28, 16  ;;  %v1465_v30 = vsel %vm3688_vm12, %v1440_v26, %v1464_v25  ;;  %v1444_v33 = vshll.u32 %v1424_v28, 16  ;;  %v1473_v25 = vld [vmem:[#allocation2] sm:$0x3]  ;;  %v3266_v26 = vld [vmem:[%s3983_s7 + $0x38] sm:$0xff]  ;;  %v1694_v28 = vrot.slane %v1686_v24, 2 }
 0x1a1   : > { %v1428_v31 = vld.sshfl [vmem:[#allocation1 + $0x30] sm:$0xff pattern:$0x75643120]  ;;  %1466 = vst [vmem:[#allocation2 + $0x8] sm:$0x7] %v1465_v30  ;;  %1624 = vmatpush.bf16.msra.mxu2 %v3266_v26 }
 0x1a2   : > { %v1443_v32 = vrot.slane %v1441_v29, 7  ;;  %v1447_v34 = vshrl.u32 %v1428_v31, 16  ;;  %v1450_v40 = vshll.u32 %v1428_v31, 16  ;;  %v3262_v29 = vld [vmem:[%s3983_s7 + $0x18] sm:$0xff] }
 0x1a3   : > { %1676 = vmatpush.bf16.msra.mxu3 %v3262_v29 }
 0x1a4   : > { %v1446_v36 = vor.u32 %v1444_v33, %v1443_v32  ;;  %v1449_v39 = vrot.slane %v1447_v34, 7  ;;  %v3270_v32 = vld [vmem:[%s3983_s7 + $0x58] sm:$0xff] }
 0x1a5   : > { %1800 = vmatpush.bf16.msra.mxu0 %v3270_v32 }
 0x1a6   : > { %v1452_v42 = vor.u32 %v1450_v40, %v1449_v39  ;;  %v1468_v43 = vsel %vm3688_vm12, %v1446_v36, %v1467_v35  ;;  %v1486_v44 = vld [vmem:[#allocation2 + $0x4] sm:$0x7]  ;;  %v3265_v36 = vld [vmem:[%s3983_s7 + $0x30] sm:$0xff] }
 0x1a7   : > { %1469 = vst [vmem:[#allocation2 + $0xc] sm:$0x7] %v1468_v43  ;;  %v1494_v45 = vrot.slane %v1486_v44, 2  ;;  %v1687_v27 = vld [vmem:[#allocation2 + $0x4] sm:$0x6]  ;;  %v3261_v39 = vld [vmem:[%s3983_s7 + $0x10] sm:$0xff]  ;;  %v1702_v43 = vsel %vm562_vm4, %v1686_v24, %v1694_v28  ;;  %1625 = vmatpush.bf16.msra.mxu2 %v3265_v36 }
 0x1a8   : > { %v1471_v46 = vsel %vm3688_vm12, %v1452_v42, %v1470_v41  ;;  %v1487_v47 = vld [vmem:[#allocation2 + $0x8] sm:$0x7]  ;;  %v1474_v30 = vld [vmem:[#allocation2 + $0x4] sm:$0x3]  ;;  %v1695_v35 = vrot.slane %v1687_v27, 2  ;;  %v1700_v42 = vsel %vm558_vm1, %v1686_v24, %v1694_v28  ;;  %1677 = vmatpush.bf16.msra.mxu3 %v3261_v39 }
 0x1a9   : > { %1472 = vst [vmem:[#allocation2 + $0x10] sm:$0x7] %v1471_v46  ;;  %v1495_v48 = vrot.slane %v1487_v47, 2  ;;  %v1505_v49 = vsel %vm558_vm1, %v1486_v44, %v1494_v45  ;;  %v1506_v50 = vsel %vm562_vm4, %v1486_v44, %v1494_v45  ;;  %v1688_v31 = vld [vmem:[#allocation2 + $0x8] sm:$0x6]  ;;  %v3276_v36 = vld [vmem:[%s3983_s7 + $0x88] sm:$0xff] }
 0x1aa   : > { %v1508_v51 = vrot.slane %v1506_v50, 2  ;;  %v1534_v52 = vshrl.u32 %v1505_v49, 16  ;;  %v1537_v53 = vshll.u32 %v1505_v49, 16  ;;  %v1475_v40 = vld [vmem:[#allocation2 + $0x8] sm:$0x3]  ;;  %v1696_v41 = vrot.slane %v1688_v31, 2 }
 0x1ab   : > { %v1511_v54 = vsel %vm558_vm1, %v1487_v47, %v1495_v48  ;;  %v1512_v55 = vsel %vm562_vm4, %v1487_v47, %v1495_v48  ;;  %v3269_v46 = vld [vmem:[%s3983_s7 + $0x50] sm:$0xff]  ;;  %v1707_v47 = vsel %vm558_vm1, %v1687_v27, %v1695_v35  ;;  %v1709_v48 = vsel %vm562_vm4, %v1687_v27, %v1695_v35  ;;  %v3286_v27 = vld [vmem:[%s3983_s7 + $0xd8] sm:$0xff]  ;;  %v1812_v39 = vld [vmem:[#allocation2 + $0x4] sm:$0x3] }
 0x1ac   : > { %v1514_v56 = vrot.slane %v1512_v55, 2  ;;  %v1536_v57 = vrot.slane %v1534_v52, 6  ;;  %v1539_v58 = vrot.slane %v1537_v53, 7  ;;  %v1543_v59 = vshll.u32 %v1508_v51, 16  ;;  %v3264_v51 = vld [vmem:[%s3983_s7 + $0x28] sm:$0xff]  ;;  %1801 = vmatpush.bf16.msra.mxu0 %v3269_v46  ;;  %v3281_v24 = vld [vmem:[%s3983_s7 + $0xb0] sm:$0xff]  ;;  %2205 = vmatpush.bf16.msra.mxu1 %v3286_v27 }
 0x1ad   : > { %v1547_v60 = vshrl.u32 %v1511_v54, 16  ;;  %v1550_v61 = vshll.u32 %v1511_v54, 16  ;;  %v2981_v49 = vrot.slane %v1700_v42, 9  ;;  %v2982_v50 = vrot.slane %v1702_v43, 9  ;;  %v3260_v52 = vld [vmem:[%s3983_s7 + $0x8] sm:$0xff]  ;;  %1626 = vmatpush.bf16.msra.mxu2 %v3264_v51 }
 0x1ae   : > { %v1488_v62 = vld [vmem:[#allocation2 + $0xc] sm:$0x7]  ;;  %v1540_v63 = vor.u32 %v1539_v58, %v1536_v57  ;;  %v1556_v3 = vshll.u32 %v1514_v56, 16  ;;  %v1545_v5 = vrot.slane %v1543_v59, 7  ;;  %v1714_v53 = vsel %vm558_vm1, %v1688_v31, %v1696_v41  ;;  %v3268_v55 = vld [vmem:[%s3983_s7 + $0x48] sm:$0xff]  ;;  %1678 = vmatpush.bf16.msra.mxu3 %v3260_v52 }
 0x1af   : > { %v1496_v0 = vrot.slane %v1488_v62, 2  ;;  %v1549_v1 = vrot.slane %v1547_v60, 6  ;;  %v1552_v2 = vrot.slane %v1550_v61, 7  ;;  %v1689_v34 = vld [vmem:[#allocation2 + $0xc] sm:$0x6]  ;;  %v1716_v54 = vsel %vm562_vm4, %v1688_v31, %v1696_v41  ;;  %v3272_v31 = vld [vmem:[%s3983_s7 + $0x68] sm:$0xff] }
 0x1b0   : > { %v1541_v4 = vrot.slane %v1540_v63, 2  ;;  %v1558_v15 = vrot.slane %v1556_v3, 7  ;;  %v1476_v44 = vld [vmem:[#allocation2 + $0xc] sm:$0x3]  ;;  %v1697_v45 = vrot.slane %v1689_v34, 2  ;;  %v2983_v59 = vrot.slane %v1707_v47, 9  ;;  %1802 = vmatpush.bf16.msra.mxu0 %v3268_v55 }
 0x1b1   : > { %v1517_v6 = vsel %vm558_vm1, %v1488_v62, %v1496_v0  ;;  %v1518_v7 = vsel %vm562_vm4, %v1488_v62, %v1496_v0  ;;  %v1553_v8 = vor.u32 %v1552_v2, %v1549_v1  ;;  %v2984_v60 = vrot.slane %v1709_v48, 9  ;;  %v1879_v61 = vld [vmem:[#allocation2 + $0x4] sm:$0x7]  ;;  %v3756_v62 = vld [vmem:[#allocation2 + $0x8] sm:$0x7]  ;;  %v3263_v3 = vld [vmem:[%s3983_s7 + $0x20] sm:$0xff] }
 0x1b2   : > { %v1520_v9 = vrot.slane %v1518_v7, 2  ;;  %v1546_v11 = vsel %vm3504_vm9, %v1541_v4, %v1545_v5  ;;  %v1560_v12 = vshrl.u32 %v1517_v6, 16  ;;  %v1563_v13 = vshll.u32 %v1517_v6, 16  ;;  %v3760_v2 = vld [vmem:[#allocation2 + $0xc] sm:$0x7]  ;;  %v3259_v4 = vld [vmem:[%s3983_s7] sm:$0xff]  ;;  %1627 = vmatpush.bf16.msra.mxu2 %v3263_v3 }
 0x1b3   : > { %v1554_v14 = vrot.slane %v1553_v8, 2  ;;  %1586 = vst [vmem:[#allocation1 + $0x1] ss:$4 sm:$0xff] %v1546_v11  ;;  %v1721_v56 = vsel %vm558_vm1, %v1689_v34, %v1697_v45  ;;  %v1723_v57 = vsel %vm562_vm4, %v1689_v34, %v1697_v45  ;;  %v1736_v63 = vsel %vm3752_vm6, %v2981_v49, %v2982_v50  ;;  %v3768_v7 = vld [vmem:[#allocation2 + $0x10] sm:$0x7]  ;;  %1679 = vmatpush.bf16.msra.mxu3 %v3259_v4  ;;  %v3280_v43 = vld [vmem:[%s3983_s7 + $0xa8] sm:$0xff] }
 0x1b4   : > { %v1562_v16 = vrot.slane %v1560_v12, 6  ;;  %v1565_v17 = vrot.slane %v1563_v13, 7  ;;  %v1569_v18 = vshll.u32 %v1520_v9, 16  ;;  %v2985_v0 = vrot.slane %v1714_v53, 9  ;;  %v3274_v8 = vld [vmem:[%s3983_s7 + $0x78] sm:$0xff]  ;;  %v3267_v9 = vld [vmem:[%s3983_s7 + $0x40] sm:$0xff] }
 0x1b5   : > { %v1559_v19 = vsel %vm3504_vm9, %v1554_v14, %v1558_v15  ;;  %v2986_v1 = vrot.slane %v1716_v54, 9  ;;  %v2987_v5 = vrot.slane %v1721_v56, 9  ;;  %v2988_v6 = vrot.slane %v1723_v57, 9  ;;  %v3278_v13 = vld [vmem:[%s3983_s7 + $0x98] sm:$0xff]  ;;  %1803 = vmatpush.bf16.msra.mxu0 %v3267_v9  ;;  %v3271_v49 = vld [vmem:[%s3983_s7 + $0x60] sm:$0xff] }
 0x1b6   : > { %v1566_v20 = vor.u32 %v1565_v17, %v1562_v16  ;;  %1589 = vst [vmem:[#allocation1 + $0x2] ss:$4 sm:$0xff] %v1559_v19  ;;  %v1571_v22 = vrot.slane %v1569_v18, 7  ;;  %v1887_v12 = vrot.slane %v1879_v61, 2  ;;  %v3282_v14 = vld [vmem:[%s3983_s7 + $0xb8] sm:$0xff]  ;;  %v1740_v15 = vsel %vm3752_vm6, %v2983_v59, %v2984_v60  ;;  %1867 = vmatpush.bf16.msrb.mxu2 %v3274_v8  ;;  %v3275_v60 = vld [vmem:[%s3983_s7 + $0x80] sm:$0xff] }
 0x1b7   : > { %v1888_v16 = vrot.slane %v3756_v62, 2  ;;  %v1744_v17 = vsel %vm3752_vm6, %v2985_v0, %v2986_v1  ;;  %v1889_v18 = vrot.slane %v3760_v2, 2  ;;  %v1748_v19 = vsel %vm3752_vm6, %v2987_v5, %v2988_v6  ;;  %2018 = vmatpush.bf16.msrb.mxu3 %v3278_v13  ;;  %v1813_v50 = vld [vmem:[#allocation2 + $0x8] sm:$0x3]  ;;  %v1814_v51 = vld [vmem:[#allocation2 + $0xc] sm:$0x3] }
 0x1b8   : > { %v1567_v21 = vrot.slane %v1566_v20, 2  ;;  %v1890_v20 = vrot.slane %v3768_v7, 2  ;;  %v3279_v0 = vld [vmem:[%s3983_s7 + $0xa0] sm:$0xff]  ;;  %v1815_v1 = vld [vmem:[#allocation2 + $0x10] sm:$0x3]  ;;  %v3284_v8 = vld [vmem:[%s3983_s7 + $0xc8] sm:$0xff] }
 0x1b9   : > { %2137 = vmatpush.bf16.msrb.mxu0 %v3282_v14  ;;  %v1905_v26 = vsel %vm558_vm1, %v3760_v2, %v1889_v18  ;;  %v1900_v45 = vsel %vm562_vm4, %v3756_v62, %v1888_v16  ;;  %v1906_v52 = vsel %vm562_vm4, %v3760_v2, %v1889_v18  ;;  %v3290_v9 = vld [vmem:[%s3983_s7 + $0xf8] sm:$0xff] }
 0x1ba   : > { %v1572_v23 = vsel %vm3504_vm9, %v1567_v21, %v1571_v22  ;;  %v3273_v21 = vld [vmem:[%s3983_s7 + $0x70] sm:$0xff]  ;;  %v1893_v22 = vsel %vm558_vm1, %v1879_v61, %v1887_v12  ;;  %v1911_v28 = vsel %vm558_vm1, %v3768_v7, %v1890_v20  ;;  %v1941_v34 = vshrl.u32 %v1905_v26, 16 }
 0x1bb   : > { %1592 = vst [vmem:[#allocation1 + $0x3] ss:$4 sm:$0xff] %v1572_v23  ;;  %v3277_v23 = vld [vmem:[%s3983_s7 + $0x90] sm:$0xff]  ;;  %v1915_v29 = vshrl.u32 %v1893_v22, 16  ;;  %1868 = vmatpush.bf16.msrb.mxu2 %v3273_v21  ;;  %v1944_v35 = vshll.u32 %v1905_v26, 16  ;;  %v1954_v41 = vshrl.u32 %v1911_v28, 16  ;;  %v1912_v56 = vsel %vm562_vm4, %v3768_v7, %v1890_v20 }
 0x1bc   : > { %2019 = vmatpush.bf16.msrb.mxu3 %v3277_v23  ;;  %v1957_v42 = vshll.u32 %v1911_v28, 16  ;;  %v1943_v57 = vrot.slane %v1941_v34, 6  ;;  %v1908_v2 = vrot.slane %v1906_v52, 2  ;;  %v1914_v4 = vrot.slane %v1912_v56, 2  ;;  %v2033_v26 = vld [vmem:[#allocation2 + $0x10] sm:$0x6] }
 0x1bd   : > { %2138 = vmatpush.bf16.msrb.mxu0 %v3281_v24  ;;  %v1917_v46 = vrot.slane %v1915_v29, 6  ;;  %v1946_v59 = vrot.slane %v1944_v35, 7 }
 0x1be   : > { %v1950_v14 = vshll.u32 %v1908_v2, 16  ;;  %v1963_v18 = vshll.u32 %v1914_v4, 16 }
 0x1bf   : > { %1869 = vmatpush.bf16.msrb.mxu2 %v3272_v31  ;;  %v1947_v7 = vor.u32 %v1946_v59, %v1943_v57  ;;  %v2220_v59 = vld [vmem:[#allocation2 + $0x14] sm:$0x7] }
 0x1c0   : > { %2020 = vmatpush.bf16.msrb.mxu3 %v3276_v36  ;;  %v1952_v28 = vrot.slane %v1950_v14, 7  ;;  %v2228_v4 = vrot.slane %v2220_v59, 2 }
 0x1c1   : > { %2139 = vmatpush.bf16.msrb.mxu0 %v3280_v43  ;;  %v1948_v21 = vrot.slane %v1947_v7, 2 }
 0x1c2   : > { %v3721_v33 = vld.sshfl [vmem:[#allocation1] sm:$0xff pattern:$0x73625140] }
 0x1c3   : > { %1635 = vst [vmem:[#allocation1] ss:$4 sm:$0xff] %v1473_v25  ;;  %v1899_v25 = vsel %vm558_vm1, %v3756_v62, %v1888_v16  ;;  %2963 = vmatmul.msk.bf16.vlgmr.msra.gmra.mxu2 %vm477_vm0, %v3721_v33  ;;  %v1956_v62 = vrot.slane %v1954_v41, 6  ;;  %v3289_v16 = vld [vmem:[%s3983_s7 + $0xf0] sm:$0xff]  ;;  %v1953_v34 = vsel %vm3504_vm9, %v1948_v21, %v1952_v28 }
 0x1c4   : > { %1638 = vst [vmem:[#allocation1 + $0x1] ss:$4 sm:$0xff] %v1474_v30  ;;  %v1918_v30 = vshll.u32 %v1893_v22, 16  ;;  %v1928_v32 = vshrl.u32 %v1899_v25, 16  ;;  %v1931_v33 = vshll.u32 %v1899_v25, 16  ;;  %1870 = vmatpush.bf16.msrb.mxu2 %v3271_v49  ;;  %2021 = vmatpush.bf16.msrb.mxu3 %v3275_v60 }
 0x1c5   : > { %1641 = vst [vmem:[#allocation1 + $0x2] ss:$4 sm:$0xff] %v1475_v40  ;;  %v1894_v40 = vsel %vm562_vm4, %v1879_v61, %v1887_v12  ;;  %v1902_v61 = vrot.slane %v1900_v45, 2  ;;  %2140 = vmatpush.bf16.msrb.mxu0 %v3279_v0  ;;  %v2031_v22 = vld [vmem:[#allocation2 + $0x8] sm:$0x6]  ;;  %v3288_v45 = vld [vmem:[%s3983_s7 + $0xe8] sm:$0xff] }
 0x1c6   : > { %1644 = vst [vmem:[#allocation1 + $0x3] ss:$4 sm:$0xff] %v1476_v44  ;;  %v3285_v44 = vld [vmem:[%s3983_s7 + $0xd0] sm:$0xff]  ;;  %v1920_v47 = vrot.slane %v1918_v30, 7  ;;  %v1930_v53 = vrot.slane %v1928_v32, 6  ;;  %v1933_v54 = vrot.slane %v1931_v33, 7 }
 0x1c7   : > { %v1896_v55 = vrot.slane %v1894_v40, 2  ;;  %2206 = vmatpush.bf16.msra.mxu1 %v3285_v44  ;;  %v2032_v25 = vld [vmem:[#allocation2 + $0xc] sm:$0x6]  ;;  %v1965_v32 = vrot.slane %v1963_v18, 7  ;;  %v2039_v33 = vrot.slane %v2031_v22, 2  ;;  %v3294_v44 = vld [vmem:[%s3983_s7 + $0x118] sm:$0xff] }
 0x1c8   : > { %v1921_v3 = vor.u32 %v1920_v47, %v1917_v46  ;;  %v1934_v5 = vor.u32 %v1933_v54, %v1930_v53  ;;  %2356 = vmatpush.bf16.msra.mxu2 %v3290_v9  ;;  %v2040_v35 = vrot.slane %v2032_v25, 2  ;;  %v2218_v53 = vld [vmem:[#allocation2 + $0xc] sm:$0x7] }
 0x1c9   : > { %v1924_v6 = vshll.u32 %v1896_v55, 16  ;;  %v2053_v43 = vsel %vm562_vm4, %v2031_v22, %v2039_v33  ;;  %v3293_v54 = vld [vmem:[%s3983_s7 + $0x110] sm:$0xff]  ;;  %v3287_v55 = vld [vmem:[%s3983_s7 + $0xe0] sm:$0xff]  ;;  %v2226_v2 = vrot.slane %v2218_v53, 2 }
 0x1ca   : > { %v1922_v13 = vrot.slane %v1921_v3, 2  ;;  %v2058_v46 = vsel %vm558_vm1, %v2032_v25, %v2040_v35  ;;  %v2060_v47 = vsel %vm562_vm4, %v2032_v25, %v2040_v35  ;;  %v3067_v57 = vrot.slane %v2053_v43, 9 }
 0x1cb   : > { %2207 = vmatpush.bf16.msra.mxu1 %v3284_v8  ;;  %v1926_v20 = vrot.slane %v1924_v6, 7  ;;  %v3068_v60 = vrot.slane %v2058_v46, 9  ;;  %v2238_v28 = vsel %vm562_vm4, %v2218_v53, %v2226_v2 }
 0x1cc   : > { %2357 = vmatpush.bf16.msra.mxu2 %v3289_v16  ;;  %v2240_v46 = vrot.slane %v2238_v28, 2 }
 0x1cd   : > { %v1645_v11 = vld.sshfl [vmem:[#allocation1] sm:$0xff pattern:$0x73625140]  ;;  %v1927_v27 = vsel %vm3504_vm9, %v1922_v13, %v1926_v20  ;;  %v2249_v13 = vsel %vm558_vm1, %v2220_v59, %v2228_v4 }
 0x1ce   : > { %1759 = vst [vmem:[#allocation1] ss:$4 sm:$0xff] %v1736_v63  ;;  %2980 = vmatmul.msk.bf16.vlgmr.msra.gmra.mxu3 %vm477_vm0, %v1645_v11  ;;  %v1959_v63 = vrot.slane %v1957_v42, 7  ;;  %v1937_v11 = vshll.u32 %v1902_v61, 16  ;;  %v2051_v42 = vsel %vm558_vm1, %v2031_v22, %v2039_v33  ;;  %v3069_v61 = vrot.slane %v2060_v47, 9 }
 0x1cf   : > { %1762 = vst [vmem:[#allocation1 + $0x1] ss:$4 sm:$0xff] %v1740_v15  ;;  %v3283_v15 = vld [vmem:[%s3983_s7 + $0xc0] sm:$0xff]  ;;  %2475 = vmatpush.bf16.msra.mxu3 %v3294_v44  ;;  %v3066_v56 = vrot.slane %v2051_v42, 9  ;;  %v2292_v21 = vshrl.u32 %v2249_v13, 16  ;;  %v2295_v22 = vshll.u32 %v2249_v13, 16 }
 0x1d0   : > { %1765 = vst [vmem:[#allocation1 + $0x2] ss:$4 sm:$0xff] %v1744_v17  ;;  %v1960_v12 = vor.u32 %v1959_v63, %v1956_v62  ;;  %v1935_v17 = vrot.slane %v1934_v5, 2  ;;  %v1939_v23 = vrot.slane %v1937_v11, 7  ;;  %2208 = vmatpush.bf16.msra.mxu1 %v3283_v15  ;;  %2358 = vmatpush.bf16.msra.mxu2 %v3288_v45  ;;  %v2219_v62 = vld [vmem:[#allocation2 + $0x10] sm:$0x7]  ;;  %v2081_v8 = vsel %vm3752_vm6, %v3068_v60, %v3069_v61 }
 0x1d1   : > { %1768 = vst [vmem:[#allocation1 + $0x3] ss:$4 sm:$0xff] %v1748_v19  ;;  %v2030_v19 = vld [vmem:[#allocation2 + $0x4] sm:$0x6]  ;;  %v2077_v6 = vsel %vm3752_vm6, %v3066_v56, %v3067_v57  ;;  %v2227_v7 = vrot.slane %v2219_v62, 2 }
 0x1d2   : > { %v1961_v24 = vrot.slane %v1960_v12, 2  ;;  %v2038_v29 = vrot.slane %v2030_v19, 2  ;;  %v1940_v31 = vsel %vm3504_vm9, %v1935_v17, %v1939_v23  ;;  %v2237_v12 = vsel %vm558_vm1, %v2218_v53, %v2226_v2  ;;  %v3292_v15 = vld [vmem:[%s3983_s7 + $0x108] sm:$0xff]  ;;  %v3291_v23 = vld [vmem:[%s3983_s7 + $0x100] sm:$0xff]  ;;  %v2152_v45 = vld [vmem:[#allocation2 + $0x10] sm:$0x3] }
 0x1d3   : > { %2476 = vmatpush.bf16.msra.mxu3 %v3293_v54  ;;  %v2243_v14 = vsel %vm558_vm1, %v2219_v62, %v2227_v7  ;;  %v2266_v18 = vshrl.u32 %v2237_v12, 16  ;;  %v2269_v20 = vshll.u32 %v2237_v12, 16  ;;  %v2244_v35 = vsel %vm562_vm4, %v2219_v62, %v2227_v7  ;;  %v2368_v61 = vld [vmem:[#allocation2 + $0x8] sm:$0x6] }
 0x1d4   : > { %v1966_v36 = vsel %vm3504_vm9, %v1961_v24, %v1965_v32  ;;  %v2044_v40 = vsel %vm558_vm1, %v2030_v19, %v2038_v29  ;;  %v2046_v41 = vsel %vm562_vm4, %v2030_v19, %v2038_v29  ;;  %2359 = vmatpush.bf16.msra.mxu2 %v3287_v55  ;;  %v2250_v19 = vsel %vm562_vm4, %v2220_v59, %v2228_v4  ;;  %v2151_v29 = vld [vmem:[#allocation2 + $0xc] sm:$0x3] }
 0x1d5   : > { %v3065_v52 = vrot.slane %v2046_v41, 9  ;;  %v2279_v24 = vshrl.u32 %v2243_v14, 16  ;;  %v2282_v25 = vshll.u32 %v2243_v14, 16  ;;  %v2246_v47 = vrot.slane %v2244_v35, 2 }
 0x1d6   : > { %v2275_v54 = vshll.u32 %v2240_v46, 16  ;;  %v3299_v46 = vld [vmem:[%s3986_s10 + $0x20] sm:$0xff] }
 0x1d7   : > { %2477 = vmatpush.bf16.msra.mxu3 %v3292_v15  ;;  %v2281_v43 = vrot.slane %v2279_v24, 6  ;;  %v2284_v44 = vrot.slane %v2282_v25, 7  ;;  %v2288_v56 = vshll.u32 %v2246_v47, 16 }
 0x1d8   : > { %v1769_v48 = vld.sshfl [vmem:[#allocation1] sm:$0xff pattern:$0x73625140]  ;;  %v2277_v2 = vrot.slane %v2275_v54, 7  ;;  %v3297_v54 = vld [vmem:[%s3986_s10 + $0x10] sm:$0xff] }
 0x1d9   : > { %3013 = vmatmul.msk.bf16.vlgmr.msra.gmra.mxu0 %vm477_vm0, %v1769_v48  ;;  %1826 = vst [vmem:[#allocation1] ss:$4 sm:$0xff] %v1812_v39  ;;  %v2041_v39 = vrot.slane %v2033_v26, 2  ;;  %v2217_v48 = vld [vmem:[#allocation2 + $0x8] sm:$0x7]  ;;  %v2285_v53 = vor.u32 %v2284_v44, %v2281_v43 }
 0x1da   : > { %1829 = vst [vmem:[#allocation1 + $0x1] ss:$4 sm:$0xff] %v1813_v50 }
 0x1db   : > { %1832 = vst [vmem:[#allocation1 + $0x2] ss:$4 sm:$0xff] %v1814_v51  ;;  %v2065_v49 = vsel %vm558_vm1, %v2033_v26, %v2041_v39  ;;  %v2067_v50 = vsel %vm562_vm4, %v2033_v26, %v2041_v39  ;;  %v3064_v51 = vrot.slane %v2044_v40, 9  ;;  %v2150_v26 = vld [vmem:[#allocation2 + $0x8] sm:$0x3]  ;;  %v2294_v39 = vrot.slane %v2292_v21, 6  ;;  %2478 = vmatpush.bf16.msra.mxu3 %v3291_v23 }
 0x1dc   : > { %1835 = vst [vmem:[#allocation1 + $0x3] ss:$4 sm:$0xff] %v1815_v1  ;;  %v3070_v63 = vrot.slane %v2065_v49, 9  ;;  %v3071_v0 = vrot.slane %v2067_v50, 9  ;;  %v2225_v1 = vrot.slane %v2217_v48, 2  ;;  %v2297_v40 = vrot.slane %v2295_v22, 7 }
 0x1dd   : > { %v2073_v3 = vsel %vm3752_vm6, %v3064_v51, %v3065_v52 }
 0x1de   : > { %v2085_v9 = vsel %vm3752_vm6, %v3070_v63, %v3071_v0  ;;  %v2231_v11 = vsel %vm558_vm1, %v2217_v48, %v2225_v1  ;;  %v2298_v50 = vor.u32 %v2297_v40, %v2294_v39  ;;  %v2286_v63 = vrot.slane %v2285_v53, 2  ;;  %v2369_v0 = vld [vmem:[#allocation2 + $0xc] sm:$0x6]  ;;  %v3302_v39 = vld [vmem:[%s3986_s10 + $0x38] sm:$0xff] }
 0x1df   : > { %v2253_v16 = vshrl.u32 %v2231_v11, 16  ;;  %v2256_v17 = vshll.u32 %v2231_v11, 16  ;;  %v2377_v11 = vrot.slane %v2369_v0, 2  ;;  %2574 = vmatpush.bf16.msra.mxu0 %v3302_v39  ;;  %v3301_v40 = vld [vmem:[%s3986_s10 + $0x30] sm:$0xff] }
 0x1e0   : > { %v2299_v59 = vrot.slane %v2298_v50, 2 }
 0x1e1   : > { %v2255_v32 = vrot.slane %v2253_v16, 6  ;;  %v2258_v33 = vrot.slane %v2256_v17, 7  ;;  %v2389_v17 = vsel %vm558_vm1, %v2369_v0, %v2377_v11 }
 0x1e2   : > { %v3149_v24 = vrot.slane %v2389_v17, 9 }
 0x1e3   : > { %v1836_v30 = vld.sshfl [vmem:[#allocation1] sm:$0xff pattern:$0x73625140]  ;;  %2575 = vmatpush.bf16.msra.mxu0 %v3301_v40 }
 0x1e4   : > { %3038 = vmatmul.msk.bf16.vlgmr.msrb.gmra.mxu2 %vm477_vm0, %v1836_v30  ;;  %1977 = vst [vmem:[#allocation1] ss:$4 sm:$0xff] %v1927_v27  ;;  %v2232_v27 = vsel %vm562_vm4, %v2217_v48, %v2225_v1  ;;  %v2153_v30 = vld [vmem:[#allocation2 + $0x14] sm:$0x3]  ;;  %v2259_v48 = vor.u32 %v2258_v33, %v2255_v32 }
 0x1e5   : > { %1980 = vst [vmem:[#allocation1 + $0x1] ss:$4 sm:$0xff] %v1940_v31  ;;  %v2252_v31 = vrot.slane %v2250_v19, 2  ;;  %v2234_v42 = vrot.slane %v2232_v27, 2  ;;  %v2371_v1 = vld [vmem:[#allocation2 + $0x14] sm:$0x6] }
 0x1e6   : > { %1983 = vst [vmem:[#allocation1 + $0x2] ss:$4 sm:$0xff] %v1953_v34  ;;  %v2268_v34 = vrot.slane %v2266_v18, 6  ;;  %v2260_v55 = vrot.slane %v2259_v48, 2  ;;  %v2379_v12 = vrot.slane %v2371_v1, 2  ;;  %v2391_v18 = vsel %vm562_vm4, %v2369_v0, %v2377_v11 }
 0x1e7   : > { %1986 = vst [vmem:[#allocation1 + $0x3] ss:$4 sm:$0xff] %v1966_v36  ;;  %v2271_v36 = vrot.slane %v2269_v20, 7  ;;  %v2301_v51 = vshll.u32 %v2252_v31, 16  ;;  %v2262_v52 = vshll.u32 %v2234_v42, 16  ;;  %v3150_v25 = vrot.slane %v2391_v18, 9 }
 0x1e8   : > { %v2403_v19 = vsel %vm558_vm1, %v2371_v1, %v2379_v12  ;;  %v2405_v20 = vsel %vm562_vm4, %v2371_v1, %v2379_v12 }
 0x1e9   : > { %v2272_v49 = vor.u32 %v2271_v36, %v2268_v34  ;;  %v2303_v60 = vrot.slane %v2301_v51, 7  ;;  %v2264_v62 = vrot.slane %v2262_v52, 7  ;;  %v3154_v27 = vrot.slane %v2405_v20, 9  ;;  %v3298_v52 = vld [vmem:[%s3986_s10 + $0x18] sm:$0xff] }
 0x1ea   : > { %v2415_v32 = vsel %vm3752_vm6, %v3149_v24, %v3150_v25 }
 0x1eb   : > { %v2273_v57 = vrot.slane %v2272_v49, 2  ;;  %v2265_v4 = vsel %vm3504_vm9, %v2260_v55, %v2264_v62 }
 0x1ee   : > { %v1987_v5 = vld.sshfl [vmem:[#allocation1] sm:$0xff pattern:$0x73625140] }
 0x1ef   : > { %3063 = vmatmul.msk.bf16.vlgmr.msrb.gmra.mxu3 %vm477_vm0, %v1987_v5  ;;  %2096 = vst [vmem:[#allocation1] ss:$4 sm:$0xff] %v2073_v3  ;;  %v2370_v3 = vld [vmem:[#allocation2 + $0x10] sm:$0x6]  ;;  %v2290_v5 = vrot.slane %v2288_v56, 7 }
 0x1f0   : > { %2099 = vst [vmem:[#allocation1 + $0x1] ss:$4 sm:$0xff] %v2077_v6  ;;  %v2376_v6 = vrot.slane %v2368_v61, 2  ;;  %v2378_v14 = vrot.slane %v2370_v3, 2 }
 0x1f1   : > { %2102 = vst [vmem:[#allocation1 + $0x2] ss:$4 sm:$0xff] %v2081_v8  ;;  %v2278_v8 = vsel %vm3504_vm9, %v2273_v57, %v2277_v2  ;;  %v2291_v13 = vsel %vm3504_vm9, %v2286_v63, %v2290_v5 }
 0x1f2   : > { %2105 = vst [vmem:[#allocation1 + $0x3] ss:$4 sm:$0xff] %v2085_v9  ;;  %v2304_v9 = vsel %vm3504_vm9, %v2299_v59, %v2303_v60  ;;  %v2382_v15 = vsel %vm558_vm1, %v2368_v61, %v2376_v6  ;;  %v2384_v16 = vsel %vm562_vm4, %v2368_v61, %v2376_v6  ;;  %v2396_v21 = vsel %vm558_vm1, %v2370_v3, %v2378_v14  ;;  %v3296_v61 = vld [vmem:[%s3986_s10 + $0x8] sm:$0xff]  ;;  %v3317_v6 = vld [vmem:[%s3984_s8] ss:$0 sm:$0xff] }
 0x1f3   : > { %v2398_v10 = vsel %vm562_vm4, %v2370_v3, %v2378_v14  ;;  %v3147_v22 = vrot.slane %v2382_v15, 9  ;;  %v3148_v23 = vrot.slane %v2384_v16, 9  ;;  %v3151_v28 = vrot.slane %v2396_v21, 9  ;;  %v3295_v3 = vld [vmem:[%s3986_s10] sm:$0xff] }
 0x1f4   : > { %v3318_v14 = vld [vmem:[%s3985_s9] ss:$0 sm:$0xff] }
 0x1f9   : > { %v2106_v41 = vld.sshfl [vmem:[#allocation1] sm:$0xff pattern:$0x73625140] }
 0x1fa   : > { %3096 = vmatmul.msk.bf16.vlgmr.msrb.gmra.mxu0 %vm477_vm0, %v2106_v41  ;;  %2164 = vst [vmem:[#allocation1] ss:$4 sm:$0xff] %v2150_v26  ;;  %v3153_v26 = vrot.slane %v2403_v19, 9 }
 0x1fb   : > { %2167 = vst [vmem:[#allocation1 + $0x1] ss:$4 sm:$0xff] %v2151_v29  ;;  %v3152_v29 = vrot.slane %v2398_v10, 9 }
 0x1fc   : > { %2170 = vst [vmem:[#allocation1 + $0x2] ss:$4 sm:$0xff] %v2152_v45  ;;  %v2423_v33 = vsel %vm3752_vm6, %v3153_v26, %v3154_v27  ;;  %v3300_v45 = vld [vmem:[%s3986_s10 + $0x28] sm:$0xff] }
 0x1fd   : > { %2173 = vst [vmem:[#allocation1 + $0x3] ss:$4 sm:$0xff] %v2153_v30  ;;  %v2411_v30 = vsel %vm3752_vm6, %v3147_v22, %v3148_v23  ;;  %v2419_v34 = vsel %vm3752_vm6, %v3151_v28, %v3152_v29  ;;  %2576 = vmatpush.bf16.msra.mxu0 %v3300_v45  ;;  %v3319_v29 = vld [vmem:[%s3987_s11] ss:$0 sm:$0xff] }
 0x201   : > { %2577 = vmatpush.bf16.msra.mxu0 %v3299_v46 }
 0x204   : > { %v2174_v7 = vld.sshfl [vmem:[#allocation1] sm:$0xff pattern:$0x73625140] }
 0x205   : > { %3121 = vmatmul.msk.bf16.vlgmr.msra.gmra.mxu1 %vm477_vm0, %v2174_v7  ;;  %2315 = vst [vmem:[#allocation1] ss:$4 sm:$0xff] %v2265_v4  ;;  %2578 = vmatpush.bf16.msra.mxu0 %v3298_v52 }
 0x206   : > { %2318 = vst [vmem:[#allocation1 + $0x1] ss:$4 sm:$0xff] %v2278_v8 }
 0x207   : > { %2321 = vst [vmem:[#allocation1 + $0x2] ss:$4 sm:$0xff] %v2291_v13 }
 0x208   : > { %2324 = vst [vmem:[#allocation1 + $0x3] ss:$4 sm:$0xff] %v2304_v9 }
 0x209   : > { %2579 = vmatpush.bf16.msra.mxu0 %v3297_v54 }
 0x20d   : > { %2580 = vmatpush.bf16.msra.mxu0 %v3296_v61 }
 0x20f   : > { %v2325_v31 = vld.sshfl [vmem:[#allocation1] sm:$0xff pattern:$0x73625140] }
 0x210   : > { %3146 = vmatmul.msk.bf16.vlgmr.msra.gmra.mxu2 %vm477_vm0, %v2325_v31  ;;  %2434 = vst [vmem:[#allocation1] ss:$4 sm:$0xff] %v2411_v30 }
 0x211   : > { %2437 = vst [vmem:[#allocation1 + $0x1] ss:$4 sm:$0xff] %v2415_v32  ;;  %2581 = vmatpush.bf16.msra.mxu0 %v3295_v3 }
 0x212   : > { %2440 = vst [vmem:[#allocation1 + $0x2] ss:$4 sm:$0xff] %v2419_v34 }
 0x213   : > { %2443 = vst [vmem:[#allocation1 + $0x3] ss:$4 sm:$0xff] %v2423_v33 }
 0x21a   : > { %v2444_v35 = vld.sshfl [vmem:[#allocation1] sm:$0xff pattern:$0x73625140] }
 0x21b   : > { %3179 = vmatmul.msk.bf16.vlgmr.msra.gmra.mxu3 %vm477_vm0, %v2444_v35  ;;  %vm2594_vm0 = vcmask 191488  }
 0x246   : > { %v1629_v36 = vpop.f32.mrf.mxu2 }
 0x24e   : > { %v1631_v58 = vpop.f32.mrf.mxu2 }
 0x251   : > { %v1681_v41 = vpop.f32.mrf.mxu3 }
 0x252   : > { %v1682_v49 = vadd.f32 %v1681_v41, %v1629_v36 }
 0x256   : > { %v1805_v42 = vpop.f32.mrf.mxu0 }
 0x257   : > { %v1810_v51 = vadd.f32 %v1805_v42, %v1682_v49 }
 0x259   : > { %v1683_v43 = vpop.f32.mrf.mxu3 }
 0x25a   : > { %v1684_v56 = vadd.f32 %v1683_v43, %v1631_v58 }
 0x25e   : > { %v1807_v47 = vpop.f32.mrf.mxu0 }
 0x25f   : > { %v1811_v63 = vadd.f32 %v1807_v47, %v1684_v56 }
 0x267   : > { %v1872_v44 = vpop.f32.mrf.mxu2 }
 0x268   : > { %v1877_v53 = vadd.f32 %v1872_v44, %v1810_v51 }
 0x26f   : > { %v1874_v50 = vpop.f32.mrf.mxu2 }
 0x270   : > { %v1878_v1 = vadd.f32 %v1874_v50, %v1811_v63 }
 0x272   : > { %v2023_v48 = vpop.f32.mrf.mxu3 }
 0x273   : > { %v2028_v57 = vadd.f32 %v2023_v48, %v1877_v53 }
 0x277   : > { %v2142_v55 = vpop.f32.mrf.mxu0 }
 0x278   : > { %v2147_v0 = vadd.f32 %v2142_v55, %v2028_v57 }
 0x27a   : > { %v2025_v59 = vpop.f32.mrf.mxu3 }
 0x27b   : > { %v2029_v4 = vadd.f32 %v2025_v59, %v1878_v1 }
 0x27f   : > { %v2144_v7 = vpop.f32.mrf.mxu0 }
 0x280   : > { %v2148_v12 = vadd.f32 %v2144_v7, %v2029_v4 }
 0x282   : > { %v2210_v60 = vpop.f32.mrf.mxu1 }
 0x283   : > { %v2215_v2 = vadd.f32 %v2210_v60, %v2147_v0 }
 0x28a   : > { %v2212_v11 = vpop.f32.mrf.mxu1 }
 0x28b   : > { %v2216_v16 = vadd.f32 %v2212_v11, %v2148_v12 }
 0x293   : > { %v2361_v62 = vpop.f32.mrf.mxu2 }
 0x294   : > { %v2366_v5 = vadd.f32 %v2361_v62, %v2215_v2 }
 0x29b   : > { %v2363_v15 = vpop.f32.mrf.mxu2 }
 0x29c   : > { %v2367_v17 = vadd.f32 %v2363_v15, %v2216_v16 }
 0x29e   : > { %v2480_v8 = vpop.f32.mrf.mxu3 }
 0x29f   : > { %v2485_v9 = vadd.f32 %v2480_v8, %v2366_v5 }
 0x2a1   : > { %v2491_v13 = vmul.f32 %v3317_v6, %v2485_v9 }
 0x2a3   : > { %v2497_v18 = vadd.f32 %v3318_v14, %v2491_v13 }
 0x2a5   : > { %v2499_v21 = vmul.f32 0.1, %v2497_v18 }
 0x2a6   : > { %v2482_v19 = vpop.f32.mrf.mxu3 }
 0x2a7   : > { %v2486_v20 = vadd.f32 %v2482_v19, %v2367_v17  ;;  %v2501_v23 = vmax.f32 %v2497_v18, %v2499_v21 }
 0x2a9   : > { %v2492_v10 = vmul.f32 %v3317_v6, %v2486_v20  ;;  %v2503_v26 = vadd.f32 %v2501_v23, %v3661_v37 }
 0x2ab   : > { %v2498_v22 = vadd.f32 %v3318_v14, %v2492_v10 }
 0x2ad   : > { %v2500_v24 = vmul.f32 0.1, %v2498_v22 }
 0x2af   : > { %v2502_v25 = vmax.f32 %v2498_v22, %v2500_v24 }
 0x2b1   : > { %v2504_v27 = vadd.f32 %v2502_v25, %v3663_v38 }
 0x2b3   : > { %v2505_v28 = vpack.c.bf16 %v2504_v27, %v2503_v26 }
 0x2b5   : > { %2582 = vmatmul.bf16.vlgmr.msra.gmra.mxu0 %v2505_v28 }
 0x332   : > { %v2583_v30 = vpop.f32.mrf.mxu0 }
 0x333   : > { %v2584_v31 = vadd.f32 %v3319_v29, %v2583_v30 }
 0x335   : > { %v2590_v32 = vrot.slane %v2584_v31, 4  ;;  %2595 = vst.msk [vmem:[%s413_s13] sm:$0xf] %vm2594_vm0, %v2584_v31 }
 0x337   : > { %2596 = vst.msk [vmem:[%s413_s13 + $0x4] sm:$0xf] %vm2594_vm0, %v2590_v32 }
 0x33a   : > { %v2585_v37 = vpop.f32.mrf.mxu0 }
 0x33b   : > { %v2586_v33 = vadd.f32 %v3319_v29, %v2585_v37 }
 0x33d   : > { %v2591_v38 = vrot.slane %v2586_v33, 4  ;;  %2597 = vst.msk [vmem:[%s413_s13 + $0x8] sm:$0xf] %vm2594_vm0, %v2586_v33 }
 0x33f   : > { %2598 = vst.msk [vmem:[%s413_s13 + $0xc] sm:$0xf] %vm2594_vm0, %v2591_v38 }
 0x340 PF: > { %s22_s21 = sadd.s32 1, %s3326_s21  }
 0x341   : > { %p19_p4 = scmp.ge.s32.totalorder %s22_s21, 4  }
 0x343   :  { %21 = sbr.rel (!%p19_p4) target bundleno = 1 (0x1), region = 178 }

</bundles_post_ra>
